<compile_context>
chip_gen: v6e
topology: v6e:2x2x1
jax: 0.10.0
libtpu: 0.0.40
codegen_flags: <defaults>
</compile_context>

<pallas_src>
import functools

import jax
import jax.numpy as jnp
from jax import lax
from jax.experimental import pallas as pl
from jax.experimental.pallas import tpu as pltpu


# ---------------------------------------------------------------------------
# Fused kernel: GRU layer stack (wavefront) + fc-on-last-step, one invocation.
#
# refs layout:
#   inputs : x, h0, (w_ih_t, w_hh_t, b_comb, b_hn) * n_layers, fc_w_t, fc_b
#   outputs: out (1, O) f32, hT (n_layers, 1, H) f32
#   scratch: gi0_scr (T, 3H) f32, y_scr[l] (T, H) f32 for l in 0..n_layers-2
# ---------------------------------------------------------------------------
def fused_gru_fc_kernel(*refs, hidden_size, seq_len, n_layers):
    H, T, L = hidden_size, seq_len, n_layers

    n_in = 2 + 4 * L + 2
    in_refs = refs[:n_in]
    out_ref, hT_ref = refs[n_in], refs[n_in + 1]
    gi0_scr = refs[n_in + 2]
    y_scrs = refs[n_in + 3:n_in + 3 + (L - 1)]

    x_ref, h0_ref = in_refs[0], in_refs[1]
    fc_w_ref, fc_b_ref = in_refs[2 + 4 * L], in_refs[3 + 4 * L]
    w_ih_refs = [in_refs[2 + 4 * l + 0] for l in range(L)]   # (D_in, 3H) bf16
    w_hh_refs = [in_refs[2 + 4 * l + 1] for l in range(L)]   # (H, 3H)    bf16
    b_comb = [in_refs[2 + 4 * l + 2][...] for l in range(L)]  # (1, 3H) f32
    b_hn = [in_refs[2 + 4 * l + 3][...] for l in range(L)]    # (1, H)  f32

    # Zero-init the inter-layer scratch: inactive (masked) wavefront slots may
    # read it before the producing layer has written; keep those reads finite.
    for l in range(L - 1):
        y_scrs[l][...] = jnp.zeros_like(y_scrs[l])

    # ---- Prologue: layer-0 input projection for the WHOLE sequence as one
    # batched MXU GEMM (bf16 operands, f32 accumulate); r/z combined biases and
    # the n-gate input bias are pre-folded into b_comb.
    gi0_scr[...] = (
        jnp.dot(x_ref[...].astype(jnp.bfloat16), w_ih_refs[0][...],
                preferred_element_type=jnp.float32)
        + b_comb[0])

    def gru_cell(gi_t, h, l):
        # h is kept in f32 across steps; matmul operands are bf16.
        gh = jnp.dot(h.astype(jnp.bfloat16), w_hh_refs[l][...],
                     preferred_element_type=jnp.float32)         # (1, 3H) f32
        r = jax.nn.sigmoid(gi_t[:, 0:H] + gh[:, 0:H])
        z = jax.nn.sigmoid(gi_t[:, H:2 * H] + gh[:, H:2 * H])
        n = jnp.tanh(gi_t[:, 2 * H:3 * H] + r * (gh[:, 2 * H:3 * H] + b_hn[l]))
        return (1.0 - z) * n + z * h

    n_wave = T + L - 1

    def wave_step(s, carry):
        hs = list(carry)
        # Process layers top-down. Combined with storing the *masked* value
        # hs[l] (which equals the already-correct y[l][T-1] once layer l has
        # finished, and a to-be-overwritten placeholder before it starts),
        # all same-ref read/write hazards between adjacent layers are benign.
        for l in reversed(range(L)):
            t_l = s - l
            active = (t_l >= 0) & (t_l < T)
            t_c = jnp.clip(t_l, 0, T - 1)
            if l == 0:
                gi_t = gi0_scr[pl.ds(t_c, 1), :]                  # (1, 3H) f32
            else:
                y_prev = y_scrs[l - 1][pl.ds(t_c, 1), :]          # (1, H) f32
                gi_t = (jnp.dot(y_prev.astype(jnp.bfloat16), w_ih_refs[l][...],
                                preferred_element_type=jnp.float32)
                        + b_comb[l])
            h_new = gru_cell(gi_t, hs[l], l)
            hs[l] = jnp.where(active, h_new, hs[l])
            if l < L - 1:
                # Store the masked value -> idempotent outside the active
                # window; no conditional store needed.
                y_scrs[l][pl.ds(t_c, 1), :] = hs[l]
        return tuple(hs)

    h_init = tuple(h0_ref[l].astype(jnp.float32) for l in range(L))
    unroll = True if n_wave <= 16 else 8
    h_final = lax.fori_loop(0, n_wave, wave_step, h_init, unroll=unroll)

    for l in range(L):
        hT_ref[l] = h_final[l].astype(hT_ref.dtype)

    # ---- fc only on the last timestep of the top layer (== output[-1, :, :]).
    out_ref[...] = (
        jnp.dot(h_final[L - 1].astype(jnp.bfloat16), fc_w_ref[...],
                preferred_element_type=jnp.float32)
        + fc_b_ref[...]).astype(out_ref.dtype)


def rnn_forward(x, h0, layer_params, fc_w_t, fc_b_row, *, hidden_size, n_layers):
    """x: (T, D_in) f32; h0: (n_layers, 1, H) f32 -> (out (1, O), hT)."""
    T = x.shape[0]
    H = hidden_size
    O = fc_w_t.shape[1]

    flat_inputs = [x, h0]
    for p in layer_params:
        flat_inputs += list(p)
    flat_inputs += [fc_w_t, fc_b_row]

    kernel = functools.partial(fused_gru_fc_kernel, hidden_size=H,
                               seq_len=T, n_layers=n_layers)

    scratch = [pltpu.VMEM((T, 3 * H), jnp.float32)]               # layer-0 gi
    scratch += [pltpu.VMEM((T, H), jnp.float32)                   # inter-layer y
                for _ in range(n_layers - 1)]

    return pl.pallas_call(
        kernel,
        out_shape=(jax.ShapeDtypeStruct((1, O), jnp.float32),
                   jax.ShapeDtypeStruct((n_layers, 1, H), jnp.float32)),
        in_specs=[pl.BlockSpec(memory_space=pltpu.MemorySpace.VMEM)
                  for _ in flat_inputs],
        out_specs=(pl.BlockSpec(memory_space=pltpu.MemorySpace.VMEM),
                   pl.BlockSpec(memory_space=pltpu.MemorySpace.VMEM)),
        scratch_shapes=scratch,
    )(*flat_inputs)


# ---------------------------------------------------------------------------
# RNN module (GRU stack + fc), mirroring the PyTorch forward semantics.
# ---------------------------------------------------------------------------
class RNNPallas:
    def __init__(self, input_size=256, hidden_size=128, output_size=256,
                 n_layers=3, key=jax.random.PRNGKey(0)):
        self.input_size = input_size
        self.hidden_size = hidden_size
        self.output_size = output_size
        self.n_layers = n_layers

        H = hidden_size
        scale = 1.0 / jnp.sqrt(H)
        self.params = []          # raw PyTorch layout, f32 (reference check)
        self.kernel_params = []   # pre-transposed, bf16 weights, folded biases
        for layer in range(n_layers):
            d_in = input_size if layer == 0 else H
            key, k1, k2, k3, k4 = jax.random.split(key, 5)
            w_ih = jax.random.uniform(k1, (3 * H, d_in), jnp.float32, -scale, scale)
            w_hh = jax.random.uniform(k2, (3 * H, H), jnp.float32, -scale, scale)
            b_ih = jax.random.uniform(k3, (3 * H,), jnp.float32, -scale, scale)
            b_hh = jax.random.uniform(k4, (3 * H,), jnp.float32, -scale, scale)
            self.params.append((w_ih, w_hh, b_ih, b_hh))

            # fold: r/z gates get (b_ih + b_hh), n gate gets only b_ih here;
            # b_hh_n stays separate (applied inside r * (h_n + b_hn)).
            b_comb = b_ih.at[:2 * H].add(b_hh[:2 * H]).reshape(1, 3 * H)
            b_hn = b_hh[2 * H:].reshape(1, H)
            self.kernel_params.append(
                (jnp.transpose(w_ih).astype(jnp.bfloat16),   # (D_in, 3H)
                 jnp.transpose(w_hh).astype(jnp.bfloat16),   # (H, 3H)
                 b_comb,                                     # (1, 3H) f32
                 b_hn))                                      # (1, H)  f32

        key, k5, k6 = jax.random.split(key, 3)
        self.fc_w = jax.random.uniform(k5, (output_size, H), jnp.float32, -scale, scale)
        self.fc_b = jax.random.uniform(k6, (output_size,), jnp.float32, -scale, scale)
        self.fc_w_t = jnp.transpose(self.fc_w).astype(jnp.bfloat16)   # (H, O)
        self.fc_b_row = self.fc_b.reshape(1, -1)                      # (1, O) f32

    def init_hidden(self):
        return jnp.zeros((self.n_layers, 1, self.hidden_size), jnp.float32)

    def __call__(self, inp, hidden):
        # input.view(-1, 1, input_size): time-major, batch=1 (batch dim folded).
        x = jnp.reshape(inp, (-1, self.input_size))      # (T, D_in)
        out, new_hidden = rnn_forward(
            x, hidden, self.kernel_params, self.fc_w_t, self.fc_b_row,
            hidden_size=self.hidden_size, n_layers=self.n_layers)
        return out, new_hidden                           # (1, O), (n_layers, 1, H)


# ---------------------------------------------------------------------------
# Pure-JAX f32 reference (for correctness sanity check).
# ---------------------------------------------------------------------------
def gru_ref(x, params, h0_all, hidden_size):
    H = hidden_size
    hiddens = []
    for layer, (w_ih, w_hh, b_ih, b_hh) in enumerate(params):
        h = h0_all[layer]
        ys = []
        for t in range(x.shape[0]):
            xt = x[t]                                     # (1, D_in)
            gi = xt @ w_ih.T + b_ih
            gh = h @ w_hh.T + b_hh
            i_r, i_z, i_n = gi[:, :H], gi[:, H:2 * H], gi[:, 2 * H:]
            h_r, h_z, h_n = gh[:, :H], gh[:, H:2 * H], gh[:, 2 * H:]
            r = jax.nn.sigmoid(i_r + h_r)
            z = jax.nn.sigmoid(i_z + h_z)
            n = jnp.tanh(i_n + r * h_n)
            h = (1.0 - z) * n + z * h
            ys.append(h)
        x = jnp.stack(ys, axis=0)
        hiddens.append(h)
    return x, jnp.stack(hiddens, axis=0)


if __name__ == "__main__":
    INPUT, HIDDEN, OUTPUT, LAYERS, T = 256, 128, 256, 3, 8

    model = RNNPallas(input_size=INPUT, hidden_size=HIDDEN,
                      output_size=OUTPUT, n_layers=LAYERS,
                      key=jax.random.PRNGKey(0))

    inp = jax.random.normal(jax.random.PRNGKey(0), (T, INPUT), jnp.float32)
    hidden = model.init_hidden()

    out, new_hidden = model(inp, hidden)
    out = jax.block_until_ready(out)
    new_hidden = jax.block_until_ready(new_hidden)

    assert out.shape == (1, OUTPUT)
    assert new_hidden.shape == (LAYERS, 1, HIDDEN)

    # Sanity check against a pure-JAX f32 reference (tolerance loosened because
    # the kernel uses bf16 matmul operands with f32 accumulation).
    x_ref_in = inp.reshape(T, 1, INPUT)
    y_ref, h_ref = gru_ref(x_ref_in, model.params, hidden, HIDDEN)
    out_ref = y_ref[-1, :, :] @ model.fc_w.T + model.fc_b     # output[-1, :, :]
    assert jnp.allclose(out, out_ref, rtol=5e-2, atol=5e-2)
    assert jnp.allclose(new_hidden, h_ref, rtol=5e-2, atol=5e-2)

    print("KERNEL_OK")
</pallas_src>

<mosaic_0001>
module attributes {stable_mosaic.version = 11 : i64} {
  func.func @fused_gru_fc_kernel(%arg0: memref<8x256xf32, #tpu.memory_space<vmem>>, %arg1: memref<3x1x128xf32, #tpu.memory_space<vmem>>, %arg2: memref<256x384xbf16, #tpu.memory_space<vmem>>, %arg3: memref<128x384xbf16, #tpu.memory_space<vmem>>, %arg4: memref<1x384xf32, #tpu.memory_space<vmem>>, %arg5: memref<1x128xf32, #tpu.memory_space<vmem>>, %arg6: memref<128x384xbf16, #tpu.memory_space<vmem>>, %arg7: memref<128x384xbf16, #tpu.memory_space<vmem>>, %arg8: memref<1x384xf32, #tpu.memory_space<vmem>>, %arg9: memref<1x128xf32, #tpu.memory_space<vmem>>, %arg10: memref<128x384xbf16, #tpu.memory_space<vmem>>, %arg11: memref<128x384xbf16, #tpu.memory_space<vmem>>, %arg12: memref<1x384xf32, #tpu.memory_space<vmem>>, %arg13: memref<1x128xf32, #tpu.memory_space<vmem>>, %arg14: memref<128x256xbf16, #tpu.memory_space<vmem>>, %arg15: memref<1x256xf32, #tpu.memory_space<vmem>>, %arg16: memref<1x256xf32, #tpu.memory_space<vmem>>, %arg17: memref<3x1x128xf32, #tpu.memory_space<vmem>>, %arg18: memref<8x384xf32, #tpu.memory_space<vmem>>, %arg19: memref<8x128xf32, #tpu.memory_space<vmem>>, %arg20: memref<8x128xf32, #tpu.memory_space<vmem>>) attributes {dimension_semantics = [], scalar_prefetch = 0 : i64, scratch_operands = 3 : i64, tpu.core_type = #tpu.core_type<tc>} {
    %c0 = arith.constant 0 : index
    %c0_0 = arith.constant 0 : index
    %0 = vector.load %arg4[%c0, %c0_0] : memref<1x384xf32, #tpu.memory_space<vmem>>, vector<1x384xf32>
    %c0_1 = arith.constant 0 : index
    %c0_2 = arith.constant 0 : index
    %1 = vector.load %arg8[%c0_1, %c0_2] : memref<1x384xf32, #tpu.memory_space<vmem>>, vector<1x384xf32>
    %c0_3 = arith.constant 0 : index
    %c0_4 = arith.constant 0 : index
    %2 = vector.load %arg12[%c0_3, %c0_4] : memref<1x384xf32, #tpu.memory_space<vmem>>, vector<1x384xf32>
    %c0_5 = arith.constant 0 : index
    %c0_6 = arith.constant 0 : index
    %3 = vector.load %arg5[%c0_5, %c0_6] : memref<1x128xf32, #tpu.memory_space<vmem>>, vector<1x128xf32>
    %c0_7 = arith.constant 0 : index
    %c0_8 = arith.constant 0 : index
    %4 = vector.load %arg9[%c0_7, %c0_8] : memref<1x128xf32, #tpu.memory_space<vmem>>, vector<1x128xf32>
    %c0_9 = arith.constant 0 : index
    %c0_10 = arith.constant 0 : index
    %5 = vector.load %arg13[%c0_9, %c0_10] : memref<1x128xf32, #tpu.memory_space<vmem>>, vector<1x128xf32>
    %cst = arith.constant 0.000000e+00 : f32
    %6 = vector.broadcast %cst : f32 to vector<8x128xf32>
    %c0_11 = arith.constant 0 : index
    %c0_12 = arith.constant 0 : index
    %7 = vector.load %arg19[%c0_11, %c0_12] : memref<8x128xf32, #tpu.memory_space<vmem>>, vector<8x128xf32>
    tpu.vector_store %arg19[%c0_11, %c0_12], %6 {strides = array<i32>} : memref<8x128xf32, #tpu.memory_space<vmem>>, vector<8x128xf32>,
    %cst_13 = arith.constant 0.000000e+00 : f32
    %8 = vector.broadcast %cst_13 : f32 to vector<8x128xf32>
    %c0_14 = arith.constant 0 : index
    %c0_15 = arith.constant 0 : index
    %9 = vector.load %arg20[%c0_14, %c0_15] : memref<8x128xf32, #tpu.memory_space<vmem>>, vector<8x128xf32>
    tpu.vector_store %arg20[%c0_14, %c0_15], %8 {strides = array<i32>} : memref<8x128xf32, #tpu.memory_space<vmem>>, vector<8x128xf32>,
    %c0_16 = arith.constant 0 : index
    %c0_17 = arith.constant 0 : index
    %10 = vector.load %arg0[%c0_16, %c0_17] : memref<8x256xf32, #tpu.memory_space<vmem>>, vector<8x256xf32>
    %11 = arith.truncf %10 : vector<8x256xf32> to vector<8x256xbf16>
    %c0_18 = arith.constant 0 : index
    %c0_19 = arith.constant 0 : index
    %12 = vector.load %arg2[%c0_18, %c0_19] : memref<256x384xbf16, #tpu.memory_space<vmem>>, vector<256x384xbf16>
    %cst_20 = arith.constant dense<0.000000e+00> : vector<8x384xf32>
    %13 = tpu.matmul %11, %12, %cst_20 {dimension_numbers = #tpu.dot_dimension_numbers<[1], [0], [0], [1], [0, 0, 1, 1], [], []>} : vector<8x256xbf16>, vector<256x384xbf16>, vector<8x384xf32> -> vector<8x384xf32>
    %14 = vector.broadcast %0 : vector<1x384xf32> to vector<8x384xf32>
    %15 = arith.addf %13, %14 : vector<8x384xf32>
    %c0_21 = arith.constant 0 : index
    %c0_22 = arith.constant 0 : index
    %16 = vector.load %arg18[%c0_21, %c0_22] : memref<8x384xf32, #tpu.memory_space<vmem>>, vector<8x384xf32>
    tpu.vector_store %arg18[%c0_21, %c0_22], %15 {strides = array<i32>} : memref<8x384xf32, #tpu.memory_space<vmem>>, vector<8x384xf32>,
    %c0_23 = arith.constant 0 : index
    %c0_24 = arith.constant 0 : index
    %c0_25 = arith.constant 0 : index
    %17 = vector.load %arg1[%c0_23, %c0_24, %c0_25] : memref<3x1x128xf32, #tpu.memory_space<vmem>>, vector<1x1x128xf32>
    %18 = vector.shape_cast %17 : vector<1x1x128xf32> to vector<1x128xf32>
    %c1 = arith.constant 1 : index
    %c0_26 = arith.constant 0 : index
    %c0_27 = arith.constant 0 : index
    %19 = vector.load %arg1[%c1, %c0_26, %c0_27] : memref<3x1x128xf32, #tpu.memory_space<vmem>>, vector<1x1x128xf32>
    %20 = vector.shape_cast %19 : vector<1x1x128xf32> to vector<1x128xf32>
    %c2 = arith.constant 2 : index
    %c0_28 = arith.constant 0 : index
    %c0_29 = arith.constant 0 : index
    %21 = vector.load %arg1[%c2, %c0_28, %c0_29] : memref<3x1x128xf32, #tpu.memory_space<vmem>>, vector<1x1x128xf32>
    %22 = vector.shape_cast %21 : vector<1x1x128xf32> to vector<1x128xf32>
    %c0_i32 = arith.constant 0 : i32
    %c2_i32 = arith.constant 2 : i32
    %23 = arith.subi %c0_i32, %c2_i32 : i32
    %c0_i32_30 = arith.constant 0 : i32
    %24 = arith.cmpi sge, %23, %c0_i32_30 : i32
    %c8_i32 = arith.constant 8 : i32
    %25 = arith.cmpi slt, %23, %c8_i32 : i32
    %26 = arith.andi %24, %25 : i1
    %c0_i32_31 = arith.constant 0 : i32
    %c7_i32 = arith.constant 7 : i32
    %27 = arith.maxsi %c0_i32_31, %23 : i32
    %28 = arith.minsi %c7_i32, %27 : i32
    %29 = arith.index_cast %28 : i32 to index
    %c0_32 = arith.constant 0 : index
    %30 = vector.load %arg20[%29, %c0_32] : memref<8x128xf32, #tpu.memory_space<vmem>>, vector<1x128xf32>
    %31 = arith.truncf %30 : vector<1x128xf32> to vector<1x128xbf16>
    %c0_33 = arith.constant 0 : index
    %c0_34 = arith.constant 0 : index
    %32 = vector.load %arg10[%c0_33, %c0_34] : memref<128x384xbf16, #tpu.memory_space<vmem>>, vector<128x384xbf16>
    %cst_35 = arith.constant dense<0.000000e+00> : vector<1x384xf32>
    %33 = tpu.matmul %31, %32, %cst_35 {dimension_numbers = #tpu.dot_dimension_numbers<[1], [0], [0], [1], [0, 0, 1, 1], [], []>} : vector<1x128xbf16>, vector<128x384xbf16>, vector<1x384xf32> -> vector<1x384xf32>
    %34 = arith.addf %33, %2 : vector<1x384xf32>
    %35 = arith.truncf %22 : vector<1x128xf32> to vector<1x128xbf16>
    %c0_36 = arith.constant 0 : index
    %c0_37 = arith.constant 0 : index
    %36 = vector.load %arg11[%c0_36, %c0_37] : memref<128x384xbf16, #tpu.memory_space<vmem>>, vector<128x384xbf16>
    %cst_38 = arith.constant dense<0.000000e+00> : vector<1x384xf32>
    %37 = tpu.matmul %35, %36, %cst_38 {dimension_numbers = #tpu.dot_dimension_numbers<[1], [0], [0], [1], [0, 0, 1, 1], [], []>} : vector<1x128xbf16>, vector<128x384xbf16>, vector<1x384xf32> -> vector<1x384xf32>
    %38 = vector.extract_strided_slice %34 {offsets = [0, 0], sizes = [1, 128], strides = [1, 1]} : vector<1x384xf32> to vector<1x128xf32>
    %39 = vector.extract_strided_slice %37 {offsets = [0, 0], sizes = [1, 128], strides = [1, 1]} : vector<1x384xf32> to vector<1x128xf32>
    %40 = arith.addf %38, %39 : vector<1x128xf32>
    %41 = arith.negf %40 : vector<1x128xf32>
    %42 = math.exp %41 : vector<1x128xf32>
    %cst_39 = arith.constant 1.000000e+00 : f32
    %43 = vector.broadcast %cst_39 : f32 to vector<1x128xf32>
    %44 = arith.addf %43, %42 : vector<1x128xf32>
    %45 = arith.divf %43, %44 : vector<1x128xf32>
    %46 = vector.extract_strided_slice %34 {offsets = [0, 128], sizes = [1, 128], strides = [1, 1]} : vector<1x384xf32> to vector<1x128xf32>
    %47 = vector.extract_strided_slice %37 {offsets = [0, 128], sizes = [1, 128], strides = [1, 1]} : vector<1x384xf32> to vector<1x128xf32>
    %48 = arith.addf %46, %47 : vector<1x128xf32>
    %49 = arith.negf %48 : vector<1x128xf32>
    %50 = math.exp %49 : vector<1x128xf32>
    %cst_40 = arith.constant 1.000000e+00 : f32
    %51 = vector.broadcast %cst_40 : f32 to vector<1x128xf32>
    %52 = arith.addf %51, %50 : vector<1x128xf32>
    %53 = arith.divf %51, %52 : vector<1x128xf32>
    %54 = vector.extract_strided_slice %34 {offsets = [0, 256], sizes = [1, 128], strides = [1, 1]} : vector<1x384xf32> to vector<1x128xf32>
    %55 = vector.extract_strided_slice %37 {offsets = [0, 256], sizes = [1, 128], strides = [1, 1]} : vector<1x384xf32> to vector<1x128xf32>
    %56 = arith.addf %55, %5 : vector<1x128xf32>
    %57 = arith.mulf %45, %56 : vector<1x128xf32>
    %58 = arith.addf %54, %57 : vector<1x128xf32>
    %59 = math.tanh %58 : vector<1x128xf32>
    %cst_41 = arith.constant 1.000000e+00 : f32
    %60 = vector.broadcast %cst_41 : f32 to vector<1x128xf32>
    %61 = arith.subf %60, %53 : vector<1x128xf32>
    %62 = arith.mulf %61, %59 : vector<1x128xf32>
    %63 = arith.mulf %53, %22 : vector<1x128xf32>
    %64 = arith.addf %62, %63 : vector<1x128xf32>
    %65 = arith.select %26, %64, %22 : vector<1x128xf32>
    %c1_i32 = arith.constant 1 : i32
    %66 = arith.subi %c0_i32, %c1_i32 : i32
    %c0_i32_42 = arith.constant 0 : i32
    %67 = arith.cmpi sge, %66, %c0_i32_42 : i32
    %c8_i32_43 = arith.constant 8 : i32
    %68 = arith.cmpi slt, %66, %c8_i32_43 : i32
    %69 = arith.andi %67, %68 : i1
    %c0_i32_44 = arith.constant 0 : i32
    %c7_i32_45 = arith.constant 7 : i32
    %70 = arith.maxsi %c0_i32_44, %66 : i32
    %71 = arith.minsi %c7_i32_45, %70 : i32
    %72 = arith.index_cast %71 : i32 to index
    %c0_46 = arith.constant 0 : index
    %73 = vector.load %arg19[%72, %c0_46] : memref<8x128xf32, #tpu.memory_space<vmem>>, vector<1x128xf32>
    %74 = arith.truncf %73 : vector<1x128xf32> to vector<1x128xbf16>
    %c0_47 = arith.constant 0 : index
    %c0_48 = arith.constant 0 : index
    %75 = vector.load %arg6[%c0_47, %c0_48] : memref<128x384xbf16, #tpu.memory_space<vmem>>, vector<128x384xbf16>
    %cst_49 = arith.constant dense<0.000000e+00> : vector<1x384xf32>
    %76 = tpu.matmul %74, %75, %cst_49 {dimension_numbers = #tpu.dot_dimension_numbers<[1], [0], [0], [1], [0, 0, 1, 1], [], []>} : vector<1x128xbf16>, vector<128x384xbf16>, vector<1x384xf32> -> vector<1x384xf32>
    %77 = arith.addf %76, %1 : vector<1x384xf32>
    %78 = arith.truncf %20 : vector<1x128xf32> to vector<1x128xbf16>
    %c0_50 = arith.constant 0 : index
    %c0_51 = arith.constant 0 : index
    %79 = vector.load %arg7[%c0_50, %c0_51] : memref<128x384xbf16, #tpu.memory_space<vmem>>, vector<128x384xbf16>
    %cst_52 = arith.constant dense<0.000000e+00> : vector<1x384xf32>
    %80 = tpu.matmul %78, %79, %cst_52 {dimension_numbers = #tpu.dot_dimension_numbers<[1], [0], [0], [1], [0, 0, 1, 1], [], []>} : vector<1x128xbf16>, vector<128x384xbf16>, vector<1x384xf32> -> vector<1x384xf32>
    %81 = vector.extract_strided_slice %77 {offsets = [0, 0], sizes = [1, 128], strides = [1, 1]} : vector<1x384xf32> to vector<1x128xf32>
    %82 = vector.extract_strided_slice %80 {offsets = [0, 0], sizes = [1, 128], strides = [1, 1]} : vector<1x384xf32> to vector<1x128xf32>
    %83 = arith.addf %81, %82 : vector<1x128xf32>
    %84 = arith.negf %83 : vector<1x128xf32>
    %85 = math.exp %84 : vector<1x128xf32>
    %cst_53 = arith.constant 1.000000e+00 : f32
    %86 = vector.broadcast %cst_53 : f32 to vector<1x128xf32>
    %87 = arith.addf %86, %85 : vector<1x128xf32>
    %88 = arith.divf %86, %87 : vector<1x128xf32>
    %89 = vector.extract_strided_slice %77 {offsets = [0, 128], sizes = [1, 128], strides = [1, 1]} : vector<1x384xf32> to vector<1x128xf32>
    %90 = vector.extract_strided_slice %80 {offsets = [0, 128], sizes = [1, 128], strides = [1, 1]} : vector<1x384xf32> to vector<1x128xf32>
    %91 = arith.addf %89, %90 : vector<1x128xf32>
    %92 = arith.negf %91 : vector<1x128xf32>
    %93 = math.exp %92 : vector<1x128xf32>
    %cst_54 = arith.constant 1.000000e+00 : f32
    %94 = vector.broadcast %cst_54 : f32 to vector<1x128xf32>
    %95 = arith.addf %94, %93 : vector<1x128xf32>
    %96 = arith.divf %94, %95 : vector<1x128xf32>
    %97 = vector.extract_strided_slice %77 {offsets = [0, 256], sizes = [1, 128], strides = [1, 1]} : vector<1x384xf32> to vector<1x128xf32>
    %98 = vector.extract_strided_slice %80 {offsets = [0, 256], sizes = [1, 128], strides = [1, 1]} : vector<1x384xf32> to vector<1x128xf32>
    %99 = arith.addf %98, %4 : vector<1x128xf32>
    %100 = arith.mulf %88, %99 : vector<1x128xf32>
    %101 = arith.addf %97, %100 : vector<1x128xf32>
    %102 = math.tanh %101 : vector<1x128xf32>
    %cst_55 = arith.constant 1.000000e+00 : f32
    %103 = vector.broadcast %cst_55 : f32 to vector<1x128xf32>
    %104 = arith.subf %103, %96 : vector<1x128xf32>
    %105 = arith.mulf %104, %102 : vector<1x128xf32>
    %106 = arith.mulf %96, %20 : vector<1x128xf32>
    %107 = arith.addf %105, %106 : vector<1x128xf32>
    %108 = arith.select %69, %107, %20 : vector<1x128xf32>
    %109 = arith.index_cast %71 : i32 to index
    %c0_56 = arith.constant 0 : index
    %110 = vector.load %arg20[%109, %c0_56] : memref<8x128xf32, #tpu.memory_space<vmem>>, vector<1x128xf32>
    tpu.vector_store %arg20[%109, %c0_56], %108 {strides = array<i32>} : memref<8x128xf32, #tpu.memory_space<vmem>>, vector<1x128xf32>,
    %c0_i32_57 = arith.constant 0 : i32
    %111 = arith.subi %c0_i32, %c0_i32_57 : i32
    %c0_i32_58 = arith.constant 0 : i32
    %112 = arith.cmpi sge, %111, %c0_i32_58 : i32
    %c8_i32_59 = arith.constant 8 : i32
    %113 = arith.cmpi slt, %111, %c8_i32_59 : i32
    %114 = arith.andi %112, %113 : i1
    %c0_i32_60 = arith.constant 0 : i32
    %c7_i32_61 = arith.constant 7 : i32
    %115 = arith.maxsi %c0_i32_60, %111 : i32
    %116 = arith.minsi %c7_i32_61, %115 : i32
    %117 = arith.index_cast %116 : i32 to index
    %c0_62 = arith.constant 0 : index
    %118 = vector.load %arg18[%117, %c0_62] : memref<8x384xf32, #tpu.memory_space<vmem>>, vector<1x384xf32>
    %119 = arith.truncf %18 : vector<1x128xf32> to vector<1x128xbf16>
    %c0_63 = arith.constant 0 : index
    %c0_64 = arith.constant 0 : index
    %120 = vector.load %arg3[%c0_63, %c0_64] : memref<128x384xbf16, #tpu.memory_space<vmem>>, vector<128x384xbf16>
    %cst_65 = arith.constant dense<0.000000e+00> : vector<1x384xf32>
    %121 = tpu.matmul %119, %120, %cst_65 {dimension_numbers = #tpu.dot_dimension_numbers<[1], [0], [0], [1], [0, 0, 1, 1], [], []>} : vector<1x128xbf16>, vector<128x384xbf16>, vector<1x384xf32> -> vector<1x384xf32>
    %122 = vector.extract_strided_slice %118 {offsets = [0, 0], sizes = [1, 128], strides = [1, 1]} : vector<1x384xf32> to vector<1x128xf32>
    %123 = vector.extract_strided_slice %121 {offsets = [0, 0], sizes = [1, 128], strides = [1, 1]} : vector<1x384xf32> to vector<1x128xf32>
    %124 = arith.addf %122, %123 : vector<1x128xf32>
    %125 = arith.negf %124 : vector<1x128xf32>
    %126 = math.exp %125 : vector<1x128xf32>
    %cst_66 = arith.constant 1.000000e+00 : f32
    %127 = vector.broadcast %cst_66 : f32 to vector<1x128xf32>
    %128 = arith.addf %127, %126 : vector<1x128xf32>
    %129 = arith.divf %127, %128 : vector<1x128xf32>
    %130 = vector.extract_strided_slice %118 {offsets = [0, 128], sizes = [1, 128], strides = [1, 1]} : vector<1x384xf32> to vector<1x128xf32>
    %131 = vector.extract_strided_slice %121 {offsets = [0, 128], sizes = [1, 128], strides = [1, 1]} : vector<1x384xf32> to vector<1x128xf32>
    %132 = arith.addf %130, %131 : vector<1x128xf32>
    %133 = arith.negf %132 : vector<1x128xf32>
    %134 = math.exp %133 : vector<1x128xf32>
    %cst_67 = arith.constant 1.000000e+00 : f32
    %135 = vector.broadcast %cst_67 : f32 to vector<1x128xf32>
    %136 = arith.addf %135, %134 : vector<1x128xf32>
    %137 = arith.divf %135, %136 : vector<1x128xf32>
    %138 = vector.extract_strided_slice %118 {offsets = [0, 256], sizes = [1, 128], strides = [1, 1]} : vector<1x384xf32> to vector<1x128xf32>
    %139 = vector.extract_strided_slice %121 {offsets = [0, 256], sizes = [1, 128], strides = [1, 1]} : vector<1x384xf32> to vector<1x128xf32>
    %140 = arith.addf %139, %3 : vector<1x128xf32>
    %141 = arith.mulf %129, %140 : vector<1x128xf32>
    %142 = arith.addf %138, %141 : vector<1x128xf32>
    %143 = math.tanh %142 : vector<1x128xf32>
    %cst_68 = arith.constant 1.000000e+00 : f32
    %144 = vector.broadcast %cst_68 : f32 to vector<1x128xf32>
    %145 = arith.subf %144, %137 : vector<1x128xf32>
    %146 = arith.mulf %145, %143 : vector<1x128xf32>
    %147 = arith.mulf %137, %18 : vector<1x128xf32>
    %148 = arith.addf %146, %147 : vector<1x128xf32>
    %149 = arith.select %114, %148, %18 : vector<1x128xf32>
    %150 = arith.index_cast %116 : i32 to index
    %c0_69 = arith.constant 0 : index
    %151 = vector.load %arg19[%150, %c0_69] : memref<8x128xf32, #tpu.memory_space<vmem>>, vector<1x128xf32>
    tpu.vector_store %arg19[%150, %c0_69], %149 {strides = array<i32>} : memref<8x128xf32, #tpu.memory_space<vmem>>, vector<1x128xf32>,
    %c1_i32_70 = arith.constant 1 : i32
    %c2_i32_71 = arith.constant 2 : i32
    %152 = arith.subi %c1_i32_70, %c2_i32_71 : i32
    %c0_i32_72 = arith.constant 0 : i32
    %153 = arith.cmpi sge, %152, %c0_i32_72 : i32
    %c8_i32_73 = arith.constant 8 : i32
    %154 = arith.cmpi slt, %152, %c8_i32_73 : i32
    %155 = arith.andi %153, %154 : i1
    %c0_i32_74 = arith.constant 0 : i32
    %c7_i32_75 = arith.constant 7 : i32
    %156 = arith.maxsi %c0_i32_74, %152 : i32
    %157 = arith.minsi %c7_i32_75, %156 : i32
    %158 = arith.index_cast %157 : i32 to index
    %c0_76 = arith.constant 0 : index
    %159 = vector.load %arg20[%158, %c0_76] : memref<8x128xf32, #tpu.memory_space<vmem>>, vector<1x128xf32>
    %160 = arith.truncf %159 : vector<1x128xf32> to vector<1x128xbf16>
    %c0_77 = arith.constant 0 : index
    %c0_78 = arith.constant 0 : index
    %161 = vector.load %arg10[%c0_77, %c0_78] : memref<128x384xbf16, #tpu.memory_space<vmem>>, vector<128x384xbf16>
    %cst_79 = arith.constant dense<0.000000e+00> : vector<1x384xf32>
    %162 = tpu.matmul %160, %161, %cst_79 {dimension_numbers = #tpu.dot_dimension_numbers<[1], [0], [0], [1], [0, 0, 1, 1], [], []>} : vector<1x128xbf16>, vector<128x384xbf16>, vector<1x384xf32> -> vector<1x384xf32>
    %163 = arith.addf %162, %2 : vector<1x384xf32>
    %164 = arith.truncf %65 : vector<1x128xf32> to vector<1x128xbf16>
    %c0_80 = arith.constant 0 : index
    %c0_81 = arith.constant 0 : index
    %165 = vector.load %arg11[%c0_80, %c0_81] : memref<128x384xbf16, #tpu.memory_space<vmem>>, vector<128x384xbf16>
    %cst_82 = arith.constant dense<0.000000e+00> : vector<1x384xf32>
    %166 = tpu.matmul %164, %165, %cst_82 {dimension_numbers = #tpu.dot_dimension_numbers<[1], [0], [0], [1], [0, 0, 1, 1], [], []>} : vector<1x128xbf16>, vector<128x384xbf16>, vector<1x384xf32> -> vector<1x384xf32>
    %167 = vector.extract_strided_slice %163 {offsets = [0, 0], sizes = [1, 128], strides = [1, 1]} : vector<1x384xf32> to vector<1x128xf32>
    %168 = vector.extract_strided_slice %166 {offsets = [0, 0], sizes = [1, 128], strides = [1, 1]} : vector<1x384xf32> to vector<1x128xf32>
    %169 = arith.addf %167, %168 : vector<1x128xf32>
    %170 = arith.negf %169 : vector<1x128xf32>
    %171 = math.exp %170 : vector<1x128xf32>
    %cst_83 = arith.constant 1.000000e+00 : f32
    %172 = vector.broadcast %cst_83 : f32 to vector<1x128xf32>
    %173 = arith.addf %172, %171 : vector<1x128xf32>
    %174 = arith.divf %172, %173 : vector<1x128xf32>
    %175 = vector.extract_strided_slice %163 {offsets = [0, 128], sizes = [1, 128], strides = [1, 1]} : vector<1x384xf32> to vector<1x128xf32>
    %176 = vector.extract_strided_slice %166 {offsets = [0, 128], sizes = [1, 128], strides = [1, 1]} : vector<1x384xf32> to vector<1x128xf32>
    %177 = arith.addf %175, %176 : vector<1x128xf32>
    %178 = arith.negf %177 : vector<1x128xf32>
    %179 = math.exp %178 : vector<1x128xf32>
    %cst_84 = arith.constant 1.000000e+00 : f32
    %180 = vector.broadcast %cst_84 : f32 to vector<1x128xf32>
    %181 = arith.addf %180, %179 : vector<1x128xf32>
    %182 = arith.divf %180, %181 : vector<1x128xf32>
    %183 = vector.extract_strided_slice %163 {offsets = [0, 256], sizes = [1, 128], strides = [1, 1]} : vector<1x384xf32> to vector<1x128xf32>
    %184 = vector.extract_strided_slice %166 {offsets = [0, 256], sizes = [1, 128], strides = [1, 1]} : vector<1x384xf32> to vector<1x128xf32>
    %185 = arith.addf %184, %5 : vector<1x128xf32>
    %186 = arith.mulf %174, %185 : vector<1x128xf32>
    %187 = arith.addf %183, %186 : vector<1x128xf32>
    %188 = math.tanh %187 : vector<1x128xf32>
    %cst_85 = arith.constant 1.000000e+00 : f32
    %189 = vector.broadcast %cst_85 : f32 to vector<1x128xf32>
    %190 = arith.subf %189, %182 : vector<1x128xf32>
    %191 = arith.mulf %190, %188 : vector<1x128xf32>
    %192 = arith.mulf %182, %65 : vector<1x128xf32>
    %193 = arith.addf %191, %192 : vector<1x128xf32>
    %194 = arith.select %155, %193, %65 : vector<1x128xf32>
    %c1_i32_86 = arith.constant 1 : i32
    %195 = arith.subi %c1_i32_70, %c1_i32_86 : i32
    %c0_i32_87 = arith.constant 0 : i32
    %196 = arith.cmpi sge, %195, %c0_i32_87 : i32
    %c8_i32_88 = arith.constant 8 : i32
    %197 = arith.cmpi slt, %195, %c8_i32_88 : i32
    %198 = arith.andi %196, %197 : i1
    %c0_i32_89 = arith.constant 0 : i32
    %c7_i32_90 = arith.constant 7 : i32
    %199 = arith.maxsi %c0_i32_89, %195 : i32
    %200 = arith.minsi %c7_i32_90, %199 : i32
    %201 = arith.index_cast %200 : i32 to index
    %c0_91 = arith.constant 0 : index
    %202 = vector.load %arg19[%201, %c0_91] : memref<8x128xf32, #tpu.memory_space<vmem>>, vector<1x128xf32>
    %203 = arith.truncf %202 : vector<1x128xf32> to vector<1x128xbf16>
    %c0_92 = arith.constant 0 : index
    %c0_93 = arith.constant 0 : index
    %204 = vector.load %arg6[%c0_92, %c0_93] : memref<128x384xbf16, #tpu.memory_space<vmem>>, vector<128x384xbf16>
    %cst_94 = arith.constant dense<0.000000e+00> : vector<1x384xf32>
    %205 = tpu.matmul %203, %204, %cst_94 {dimension_numbers = #tpu.dot_dimension_numbers<[1], [0], [0], [1], [0, 0, 1, 1], [], []>} : vector<1x128xbf16>, vector<128x384xbf16>, vector<1x384xf32> -> vector<1x384xf32>
    %206 = arith.addf %205, %1 : vector<1x384xf32>
    %207 = arith.truncf %108 : vector<1x128xf32> to vector<1x128xbf16>
    %c0_95 = arith.constant 0 : index
    %c0_96 = arith.constant 0 : index
    %208 = vector.load %arg7[%c0_95, %c0_96] : memref<128x384xbf16, #tpu.memory_space<vmem>>, vector<128x384xbf16>
    %cst_97 = arith.constant dense<0.000000e+00> : vector<1x384xf32>
    %209 = tpu.matmul %207, %208, %cst_97 {dimension_numbers = #tpu.dot_dimension_numbers<[1], [0], [0], [1], [0, 0, 1, 1], [], []>} : vector<1x128xbf16>, vector<128x384xbf16>, vector<1x384xf32> -> vector<1x384xf32>
    %210 = vector.extract_strided_slice %206 {offsets = [0, 0], sizes = [1, 128], strides = [1, 1]} : vector<1x384xf32> to vector<1x128xf32>
    %211 = vector.extract_strided_slice %209 {offsets = [0, 0], sizes = [1, 128], strides = [1, 1]} : vector<1x384xf32> to vector<1x128xf32>
    %212 = arith.addf %210, %211 : vector<1x128xf32>
    %213 = arith.negf %212 : vector<1x128xf32>
    %214 = math.exp %213 : vector<1x128xf32>
    %cst_98 = arith.constant 1.000000e+00 : f32
    %215 = vector.broadcast %cst_98 : f32 to vector<1x128xf32>
    %216 = arith.addf %215, %214 : vector<1x128xf32>
    %217 = arith.divf %215, %216 : vector<1x128xf32>
    %218 = vector.extract_strided_slice %206 {offsets = [0, 128], sizes = [1, 128], strides = [1, 1]} : vector<1x384xf32> to vector<1x128xf32>
    %219 = vector.extract_strided_slice %209 {offsets = [0, 128], sizes = [1, 128], strides = [1, 1]} : vector<1x384xf32> to vector<1x128xf32>
    %220 = arith.addf %218, %219 : vector<1x128xf32>
    %221 = arith.negf %220 : vector<1x128xf32>
    %222 = math.exp %221 : vector<1x128xf32>
    %cst_99 = arith.constant 1.000000e+00 : f32
    %223 = vector.broadcast %cst_99 : f32 to vector<1x128xf32>
    %224 = arith.addf %223, %222 : vector<1x128xf32>
    %225 = arith.divf %223, %224 : vector<1x128xf32>
    %226 = vector.extract_strided_slice %206 {offsets = [0, 256], sizes = [1, 128], strides = [1, 1]} : vector<1x384xf32> to vector<1x128xf32>
    %227 = vector.extract_strided_slice %209 {offsets = [0, 256], sizes = [1, 128], strides = [1, 1]} : vector<1x384xf32> to vector<1x128xf32>
    %228 = arith.addf %227, %4 : vector<1x128xf32>
    %229 = arith.mulf %217, %228 : vector<1x128xf32>
    %230 = arith.addf %226, %229 : vector<1x128xf32>
    %231 = math.tanh %230 : vector<1x128xf32>
    %cst_100 = arith.constant 1.000000e+00 : f32
    %232 = vector.broadcast %cst_100 : f32 to vector<1x128xf32>
    %233 = arith.subf %232, %225 : vector<1x128xf32>
    %234 = arith.mulf %233, %231 : vector<1x128xf32>
    %235 = arith.mulf %225, %108 : vector<1x128xf32>
    %236 = arith.addf %234, %235 : vector<1x128xf32>
    %237 = arith.select %198, %236, %108 : vector<1x128xf32>
    %238 = arith.index_cast %200 : i32 to index
    %c0_101 = arith.constant 0 : index
    %239 = vector.load %arg20[%238, %c0_101] : memref<8x128xf32, #tpu.memory_space<vmem>>, vector<1x128xf32>
    tpu.vector_store %arg20[%238, %c0_101], %237 {strides = array<i32>} : memref<8x128xf32, #tpu.memory_space<vmem>>, vector<1x128xf32>,
    %c0_i32_102 = arith.constant 0 : i32
    %240 = arith.subi %c1_i32_70, %c0_i32_102 : i32
    %c0_i32_103 = arith.constant 0 : i32
    %241 = arith.cmpi sge, %240, %c0_i32_103 : i32
    %c8_i32_104 = arith.constant 8 : i32
    %242 = arith.cmpi slt, %240, %c8_i32_104 : i32
    %243 = arith.andi %241, %242 : i1
    %c0_i32_105 = arith.constant 0 : i32
    %c7_i32_106 = arith.constant 7 : i32
    %244 = arith.maxsi %c0_i32_105, %240 : i32
    %245 = arith.minsi %c7_i32_106, %244 : i32
    %246 = arith.index_cast %245 : i32 to index
    %c0_107 = arith.constant 0 : index
    %247 = vector.load %arg18[%246, %c0_107] : memref<8x384xf32, #tpu.memory_space<vmem>>, vector<1x384xf32>
    %248 = arith.truncf %149 : vector<1x128xf32> to vector<1x128xbf16>
    %c0_108 = arith.constant 0 : index
    %c0_109 = arith.constant 0 : index
    %249 = vector.load %arg3[%c0_108, %c0_109] : memref<128x384xbf16, #tpu.memory_space<vmem>>, vector<128x384xbf16>
    %cst_110 = arith.constant dense<0.000000e+00> : vector<1x384xf32>
    %250 = tpu.matmul %248, %249, %cst_110 {dimension_numbers = #tpu.dot_dimension_numbers<[1], [0], [0], [1], [0, 0, 1, 1], [], []>} : vector<1x128xbf16>, vector<128x384xbf16>, vector<1x384xf32> -> vector<1x384xf32>
    %251 = vector.extract_strided_slice %247 {offsets = [0, 0], sizes = [1, 128], strides = [1, 1]} : vector<1x384xf32> to vector<1x128xf32>
    %252 = vector.extract_strided_slice %250 {offsets = [0, 0], sizes = [1, 128], strides = [1, 1]} : vector<1x384xf32> to vector<1x128xf32>
    %253 = arith.addf %251, %252 : vector<1x128xf32>
    %254 = arith.negf %253 : vector<1x128xf32>
    %255 = math.exp %254 : vector<1x128xf32>
    %cst_111 = arith.constant 1.000000e+00 : f32
    %256 = vector.broadcast %cst_111 : f32 to vector<1x128xf32>
    %257 = arith.addf %256, %255 : vector<1x128xf32>
    %258 = arith.divf %256, %257 : vector<1x128xf32>
    %259 = vector.extract_strided_slice %247 {offsets = [0, 128], sizes = [1, 128], strides = [1, 1]} : vector<1x384xf32> to vector<1x128xf32>
    %260 = vector.extract_strided_slice %250 {offsets = [0, 128], sizes = [1, 128], strides = [1, 1]} : vector<1x384xf32> to vector<1x128xf32>
    %261 = arith.addf %259, %260 : vector<1x128xf32>
    %262 = arith.negf %261 : vector<1x128xf32>
    %263 = math.exp %262 : vector<1x128xf32>
    %cst_112 = arith.constant 1.000000e+00 : f32
    %264 = vector.broadcast %cst_112 : f32 to vector<1x128xf32>
    %265 = arith.addf %264, %263 : vector<1x128xf32>
    %266 = arith.divf %264, %265 : vector<1x128xf32>
    %267 = vector.extract_strided_slice %247 {offsets = [0, 256], sizes = [1, 128], strides = [1, 1]} : vector<1x384xf32> to vector<1x128xf32>
    %268 = vector.extract_strided_slice %250 {offsets = [0, 256], sizes = [1, 128], strides = [1, 1]} : vector<1x384xf32> to vector<1x128xf32>
    %269 = arith.addf %268, %3 : vector<1x128xf32>
    %270 = arith.mulf %258, %269 : vector<1x128xf32>
    %271 = arith.addf %267, %270 : vector<1x128xf32>
    %272 = math.tanh %271 : vector<1x128xf32>
    %cst_113 = arith.constant 1.000000e+00 : f32
    %273 = vector.broadcast %cst_113 : f32 to vector<1x128xf32>
    %274 = arith.subf %273, %266 : vector<1x128xf32>
    %275 = arith.mulf %274, %272 : vector<1x128xf32>
    %276 = arith.mulf %266, %149 : vector<1x128xf32>
    %277 = arith.addf %275, %276 : vector<1x128xf32>
    %278 = arith.select %243, %277, %149 : vector<1x128xf32>
    %279 = arith.index_cast %245 : i32 to index
    %c0_114 = arith.constant 0 : index
    %280 = vector.load %arg19[%279, %c0_114] : memref<8x128xf32, #tpu.memory_space<vmem>>, vector<1x128xf32>
    tpu.vector_store %arg19[%279, %c0_114], %278 {strides = array<i32>} : memref<8x128xf32, #tpu.memory_space<vmem>>, vector<1x128xf32>,
    %c2_i32_115 = arith.constant 2 : i32
    %c2_i32_116 = arith.constant 2 : i32
    %281 = arith.subi %c2_i32_115, %c2_i32_116 : i32
    %c0_i32_117 = arith.constant 0 : i32
    %282 = arith.cmpi sge, %281, %c0_i32_117 : i32
    %c8_i32_118 = arith.constant 8 : i32
    %283 = arith.cmpi slt, %281, %c8_i32_118 : i32
    %284 = arith.andi %282, %283 : i1
    %c0_i32_119 = arith.constant 0 : i32
    %c7_i32_120 = arith.constant 7 : i32
    %285 = arith.maxsi %c0_i32_119, %281 : i32
    %286 = arith.minsi %c7_i32_120, %285 : i32
    %287 = arith.index_cast %286 : i32 to index
    %c0_121 = arith.constant 0 : index
    %288 = vector.load %arg20[%287, %c0_121] : memref<8x128xf32, #tpu.memory_space<vmem>>, vector<1x128xf32>
    %289 = arith.truncf %288 : vector<1x128xf32> to vector<1x128xbf16>
    %c0_122 = arith.constant 0 : index
    %c0_123 = arith.constant 0 : index
    %290 = vector.load %arg10[%c0_122, %c0_123] : memref<128x384xbf16, #tpu.memory_space<vmem>>, vector<128x384xbf16>
    %cst_124 = arith.constant dense<0.000000e+00> : vector<1x384xf32>
    %291 = tpu.matmul %289, %290, %cst_124 {dimension_numbers = #tpu.dot_dimension_numbers<[1], [0], [0], [1], [0, 0, 1, 1], [], []>} : vector<1x128xbf16>, vector<128x384xbf16>, vector<1x384xf32> -> vector<1x384xf32>
    %292 = arith.addf %291, %2 : vector<1x384xf32>
    %293 = arith.truncf %194 : vector<1x128xf32> to vector<1x128xbf16>
    %c0_125 = arith.constant 0 : index
    %c0_126 = arith.constant 0 : index
    %294 = vector.load %arg11[%c0_125, %c0_126] : memref<128x384xbf16, #tpu.memory_space<vmem>>, vector<128x384xbf16>
    %cst_127 = arith.constant dense<0.000000e+00> : vector<1x384xf32>
    %295 = tpu.matmul %293, %294, %cst_127 {dimension_numbers = #tpu.dot_dimension_numbers<[1], [0], [0], [1], [0, 0, 1, 1], [], []>} : vector<1x128xbf16>, vector<128x384xbf16>, vector<1x384xf32> -> vector<1x384xf32>
    %296 = vector.extract_strided_slice %292 {offsets = [0, 0], sizes = [1, 128], strides = [1, 1]} : vector<1x384xf32> to vector<1x128xf32>
    %297 = vector.extract_strided_slice %295 {offsets = [0, 0], sizes = [1, 128], strides = [1, 1]} : vector<1x384xf32> to vector<1x128xf32>
    %298 = arith.addf %296, %297 : vector<1x128xf32>
    %299 = arith.negf %298 : vector<1x128xf32>
    %300 = math.exp %299 : vector<1x128xf32>
    %cst_128 = arith.constant 1.000000e+00 : f32
    %301 = vector.broadcast %cst_128 : f32 to vector<1x128xf32>
    %302 = arith.addf %301, %300 : vector<1x128xf32>
    %303 = arith.divf %301, %302 : vector<1x128xf32>
    %304 = vector.extract_strided_slice %292 {offsets = [0, 128], sizes = [1, 128], strides = [1, 1]} : vector<1x384xf32> to vector<1x128xf32>
    %305 = vector.extract_strided_slice %295 {offsets = [0, 128], sizes = [1, 128], strides = [1, 1]} : vector<1x384xf32> to vector<1x128xf32>
    %306 = arith.addf %304, %305 : vector<1x128xf32>
    %307 = arith.negf %306 : vector<1x128xf32>
    %308 = math.exp %307 : vector<1x128xf32>
    %cst_129 = arith.constant 1.000000e+00 : f32
    %309 = vector.broadcast %cst_129 : f32 to vector<1x128xf32>
    %310 = arith.addf %309, %308 : vector<1x128xf32>
    %311 = arith.divf %309, %310 : vector<1x128xf32>
    %312 = vector.extract_strided_slice %292 {offsets = [0, 256], sizes = [1, 128], strides = [1, 1]} : vector<1x384xf32> to vector<1x128xf32>
    %313 = vector.extract_strided_slice %295 {offsets = [0, 256], sizes = [1, 128], strides = [1, 1]} : vector<1x384xf32> to vector<1x128xf32>
    %314 = arith.addf %313, %5 : vector<1x128xf32>
    %315 = arith.mulf %303, %314 : vector<1x128xf32>
    %316 = arith.addf %312, %315 : vector<1x128xf32>
    %317 = math.tanh %316 : vector<1x128xf32>
    %cst_130 = arith.constant 1.000000e+00 : f32
    %318 = vector.broadcast %cst_130 : f32 to vector<1x128xf32>
    %319 = arith.subf %318, %311 : vector<1x128xf32>
    %320 = arith.mulf %319, %317 : vector<1x128xf32>
    %321 = arith.mulf %311, %194 : vector<1x128xf32>
    %322 = arith.addf %320, %321 : vector<1x128xf32>
    %323 = arith.select %284, %322, %194 : vector<1x128xf32>
    %c1_i32_131 = arith.constant 1 : i32
    %324 = arith.subi %c2_i32_115, %c1_i32_131 : i32
    %c0_i32_132 = arith.constant 0 : i32
    %325 = arith.cmpi sge, %324, %c0_i32_132 : i32
    %c8_i32_133 = arith.constant 8 : i32
    %326 = arith.cmpi slt, %324, %c8_i32_133 : i32
    %327 = arith.andi %325, %326 : i1
    %c0_i32_134 = arith.constant 0 : i32
    %c7_i32_135 = arith.constant 7 : i32
    %328 = arith.maxsi %c0_i32_134, %324 : i32
    %329 = arith.minsi %c7_i32_135, %328 : i32
    %330 = arith.index_cast %329 : i32 to index
    %c0_136 = arith.constant 0 : index
    %331 = vector.load %arg19[%330, %c0_136] : memref<8x128xf32, #tpu.memory_space<vmem>>, vector<1x128xf32>
    %332 = arith.truncf %331 : vector<1x128xf32> to vector<1x128xbf16>
    %c0_137 = arith.constant 0 : index
    %c0_138 = arith.constant 0 : index
    %333 = vector.load %arg6[%c0_137, %c0_138] : memref<128x384xbf16, #tpu.memory_space<vmem>>, vector<128x384xbf16>
    %cst_139 = arith.constant dense<0.000000e+00> : vector<1x384xf32>
    %334 = tpu.matmul %332, %333, %cst_139 {dimension_numbers = #tpu.dot_dimension_numbers<[1], [0], [0], [1], [0, 0, 1, 1], [], []>} : vector<1x128xbf16>, vector<128x384xbf16>, vector<1x384xf32> -> vector<1x384xf32>
    %335 = arith.addf %334, %1 : vector<1x384xf32>
    %336 = arith.truncf %237 : vector<1x128xf32> to vector<1x128xbf16>
    %c0_140 = arith.constant 0 : index
    %c0_141 = arith.constant 0 : index
    %337 = vector.load %arg7[%c0_140, %c0_141] : memref<128x384xbf16, #tpu.memory_space<vmem>>, vector<128x384xbf16>
    %cst_142 = arith.constant dense<0.000000e+00> : vector<1x384xf32>
    %338 = tpu.matmul %336, %337, %cst_142 {dimension_numbers = #tpu.dot_dimension_numbers<[1], [0], [0], [1], [0, 0, 1, 1], [], []>} : vector<1x128xbf16>, vector<128x384xbf16>, vector<1x384xf32> -> vector<1x384xf32>
    %339 = vector.extract_strided_slice %335 {offsets = [0, 0], sizes = [1, 128], strides = [1, 1]} : vector<1x384xf32> to vector<1x128xf32>
    %340 = vector.extract_strided_slice %338 {offsets = [0, 0], sizes = [1, 128], strides = [1, 1]} : vector<1x384xf32> to vector<1x128xf32>
    %341 = arith.addf %339, %340 : vector<1x128xf32>
    %342 = arith.negf %341 : vector<1x128xf32>
    %343 = math.exp %342 : vector<1x128xf32>
    %cst_143 = arith.constant 1.000000e+00 : f32
    %344 = vector.broadcast %cst_143 : f32 to vector<1x128xf32>
    %345 = arith.addf %344, %343 : vector<1x128xf32>
    %346 = arith.divf %344, %345 : vector<1x128xf32>
    %347 = vector.extract_strided_slice %335 {offsets = [0, 128], sizes = [1, 128], strides = [1, 1]} : vector<1x384xf32> to vector<1x128xf32>
    %348 = vector.extract_strided_slice %338 {offsets = [0, 128], sizes = [1, 128], strides = [1, 1]} : vector<1x384xf32> to vector<1x128xf32>
    %349 = arith.addf %347, %348 : vector<1x128xf32>
    %350 = arith.negf %349 : vector<1x128xf32>
    %351 = math.exp %350 : vector<1x128xf32>
    %cst_144 = arith.constant 1.000000e+00 : f32
    %352 = vector.broadcast %cst_144 : f32 to vector<1x128xf32>
    %353 = arith.addf %352, %351 : vector<1x128xf32>
    %354 = arith.divf %352, %353 : vector<1x128xf32>
    %355 = vector.extract_strided_slice %335 {offsets = [0, 256], sizes = [1, 128], strides = [1, 1]} : vector<1x384xf32> to vector<1x128xf32>
    %356 = vector.extract_strided_slice %338 {offsets = [0, 256], sizes = [1, 128], strides = [1, 1]} : vector<1x384xf32> to vector<1x128xf32>
    %357 = arith.addf %356, %4 : vector<1x128xf32>
    %358 = arith.mulf %346, %357 : vector<1x128xf32>
    %359 = arith.addf %355, %358 : vector<1x128xf32>
    %360 = math.tanh %359 : vector<1x128xf32>
    %cst_145 = arith.constant 1.000000e+00 : f32
    %361 = vector.broadcast %cst_145 : f32 to vector<1x128xf32>
    %362 = arith.subf %361, %354 : vector<1x128xf32>
    %363 = arith.mulf %362, %360 : vector<1x128xf32>
    %364 = arith.mulf %354, %237 : vector<1x128xf32>
    %365 = arith.addf %363, %364 : vector<1x128xf32>
    %366 = arith.select %327, %365, %237 : vector<1x128xf32>
    %367 = arith.index_cast %329 : i32 to index
    %c0_146 = arith.constant 0 : index
    %368 = vector.load %arg20[%367, %c0_146] : memref<8x128xf32, #tpu.memory_space<vmem>>, vector<1x128xf32>
    tpu.vector_store %arg20[%367, %c0_146], %366 {strides = array<i32>} : memref<8x128xf32, #tpu.memory_space<vmem>>, vector<1x128xf32>,
    %c0_i32_147 = arith.constant 0 : i32
    %369 = arith.subi %c2_i32_115, %c0_i32_147 : i32
    %c0_i32_148 = arith.constant 0 : i32
    %370 = arith.cmpi sge, %369, %c0_i32_148 : i32
    %c8_i32_149 = arith.constant 8 : i32
    %371 = arith.cmpi slt, %369, %c8_i32_149 : i32
    %372 = arith.andi %370, %371 : i1
    %c0_i32_150 = arith.constant 0 : i32
    %c7_i32_151 = arith.constant 7 : i32
    %373 = arith.maxsi %c0_i32_150, %369 : i32
    %374 = arith.minsi %c7_i32_151, %373 : i32
    %375 = arith.index_cast %374 : i32 to index
    %c0_152 = arith.constant 0 : index
    %376 = vector.load %arg18[%375, %c0_152] : memref<8x384xf32, #tpu.memory_space<vmem>>, vector<1x384xf32>
    %377 = arith.truncf %278 : vector<1x128xf32> to vector<1x128xbf16>
    %c0_153 = arith.constant 0 : index
    %c0_154 = arith.constant 0 : index
    %378 = vector.load %arg3[%c0_153, %c0_154] : memref<128x384xbf16, #tpu.memory_space<vmem>>, vector<128x384xbf16>
    %cst_155 = arith.constant dense<0.000000e+00> : vector<1x384xf32>
    %379 = tpu.matmul %377, %378, %cst_155 {dimension_numbers = #tpu.dot_dimension_numbers<[1], [0], [0], [1], [0, 0, 1, 1], [], []>} : vector<1x128xbf16>, vector<128x384xbf16>, vector<1x384xf32> -> vector<1x384xf32>
    %380 = vector.extract_strided_slice %376 {offsets = [0, 0], sizes = [1, 128], strides = [1, 1]} : vector<1x384xf32> to vector<1x128xf32>
    %381 = vector.extract_strided_slice %379 {offsets = [0, 0], sizes = [1, 128], strides = [1, 1]} : vector<1x384xf32> to vector<1x128xf32>
    %382 = arith.addf %380, %381 : vector<1x128xf32>
    %383 = arith.negf %382 : vector<1x128xf32>
    %384 = math.exp %383 : vector<1x128xf32>
    %cst_156 = arith.constant 1.000000e+00 : f32
    %385 = vector.broadcast %cst_156 : f32 to vector<1x128xf32>
    %386 = arith.addf %385, %384 : vector<1x128xf32>
    %387 = arith.divf %385, %386 : vector<1x128xf32>
    %388 = vector.extract_strided_slice %376 {offsets = [0, 128], sizes = [1, 128], strides = [1, 1]} : vector<1x384xf32> to vector<1x128xf32>
    %389 = vector.extract_strided_slice %379 {offsets = [0, 128], sizes = [1, 128], strides = [1, 1]} : vector<1x384xf32> to vector<1x128xf32>
    %390 = arith.addf %388, %389 : vector<1x128xf32>
    %391 = arith.negf %390 : vector<1x128xf32>
    %392 = math.exp %391 : vector<1x128xf32>
    %cst_157 = arith.constant 1.000000e+00 : f32
    %393 = vector.broadcast %cst_157 : f32 to vector<1x128xf32>
    %394 = arith.addf %393, %392 : vector<1x128xf32>
    %395 = arith.divf %393, %394 : vector<1x128xf32>
    %396 = vector.extract_strided_slice %376 {offsets = [0, 256], sizes = [1, 128], strides = [1, 1]} : vector<1x384xf32> to vector<1x128xf32>
    %397 = vector.extract_strided_slice %379 {offsets = [0, 256], sizes = [1, 128], strides = [1, 1]} : vector<1x384xf32> to vector<1x128xf32>
    %398 = arith.addf %397, %3 : vector<1x128xf32>
    %399 = arith.mulf %387, %398 : vector<1x128xf32>
    %400 = arith.addf %396, %399 : vector<1x128xf32>
    %401 = math.tanh %400 : vector<1x128xf32>
    %cst_158 = arith.constant 1.000000e+00 : f32
    %402 = vector.broadcast %cst_158 : f32 to vector<1x128xf32>
    %403 = arith.subf %402, %395 : vector<1x128xf32>
    %404 = arith.mulf %403, %401 : vector<1x128xf32>
    %405 = arith.mulf %395, %278 : vector<1x128xf32>
    %406 = arith.addf %404, %405 : vector<1x128xf32>
    %407 = arith.select %372, %406, %278 : vector<1x128xf32>
    %408 = arith.index_cast %374 : i32 to index
    %c0_159 = arith.constant 0 : index
    %409 = vector.load %arg19[%408, %c0_159] : memref<8x128xf32, #tpu.memory_space<vmem>>, vector<1x128xf32>
    tpu.vector_store %arg19[%408, %c0_159], %407 {strides = array<i32>} : memref<8x128xf32, #tpu.memory_space<vmem>>, vector<1x128xf32>,
    %c3_i32 = arith.constant 3 : i32
    %c2_i32_160 = arith.constant 2 : i32
    %410 = arith.subi %c3_i32, %c2_i32_160 : i32
    %c0_i32_161 = arith.constant 0 : i32
    %411 = arith.cmpi sge, %410, %c0_i32_161 : i32
    %c8_i32_162 = arith.constant 8 : i32
    %412 = arith.cmpi slt, %410, %c8_i32_162 : i32
    %413 = arith.andi %411, %412 : i1
    %c0_i32_163 = arith.constant 0 : i32
    %c7_i32_164 = arith.constant 7 : i32
    %414 = arith.maxsi %c0_i32_163, %410 : i32
    %415 = arith.minsi %c7_i32_164, %414 : i32
    %416 = arith.index_cast %415 : i32 to index
    %c0_165 = arith.constant 0 : index
    %417 = vector.load %arg20[%416, %c0_165] : memref<8x128xf32, #tpu.memory_space<vmem>>, vector<1x128xf32>
    %418 = arith.truncf %417 : vector<1x128xf32> to vector<1x128xbf16>
    %c0_166 = arith.constant 0 : index
    %c0_167 = arith.constant 0 : index
    %419 = vector.load %arg10[%c0_166, %c0_167] : memref<128x384xbf16, #tpu.memory_space<vmem>>, vector<128x384xbf16>
    %cst_168 = arith.constant dense<0.000000e+00> : vector<1x384xf32>
    %420 = tpu.matmul %418, %419, %cst_168 {dimension_numbers = #tpu.dot_dimension_numbers<[1], [0], [0], [1], [0, 0, 1, 1], [], []>} : vector<1x128xbf16>, vector<128x384xbf16>, vector<1x384xf32> -> vector<1x384xf32>
    %421 = arith.addf %420, %2 : vector<1x384xf32>
    %422 = arith.truncf %323 : vector<1x128xf32> to vector<1x128xbf16>
    %c0_169 = arith.constant 0 : index
    %c0_170 = arith.constant 0 : index
    %423 = vector.load %arg11[%c0_169, %c0_170] : memref<128x384xbf16, #tpu.memory_space<vmem>>, vector<128x384xbf16>
    %cst_171 = arith.constant dense<0.000000e+00> : vector<1x384xf32>
    %424 = tpu.matmul %422, %423, %cst_171 {dimension_numbers = #tpu.dot_dimension_numbers<[1], [0], [0], [1], [0, 0, 1, 1], [], []>} : vector<1x128xbf16>, vector<128x384xbf16>, vector<1x384xf32> -> vector<1x384xf32>
    %425 = vector.extract_strided_slice %421 {offsets = [0, 0], sizes = [1, 128], strides = [1, 1]} : vector<1x384xf32> to vector<1x128xf32>
    %426 = vector.extract_strided_slice %424 {offsets = [0, 0], sizes = [1, 128], strides = [1, 1]} : vector<1x384xf32> to vector<1x128xf32>
    %427 = arith.addf %425, %426 : vector<1x128xf32>
    %428 = arith.negf %427 : vector<1x128xf32>
    %429 = math.exp %428 : vector<1x128xf32>
    %cst_172 = arith.constant 1.000000e+00 : f32
    %430 = vector.broadcast %cst_172 : f32 to vector<1x128xf32>
    %431 = arith.addf %430, %429 : vector<1x128xf32>
    %432 = arith.divf %430, %431 : vector<1x128xf32>
    %433 = vector.extract_strided_slice %421 {offsets = [0, 128], sizes = [1, 128], strides = [1, 1]} : vector<1x384xf32> to vector<1x128xf32>
    %434 = vector.extract_strided_slice %424 {offsets = [0, 128], sizes = [1, 128], strides = [1, 1]} : vector<1x384xf32> to vector<1x128xf32>
    %435 = arith.addf %433, %434 : vector<1x128xf32>
    %436 = arith.negf %435 : vector<1x128xf32>
    %437 = math.exp %436 : vector<1x128xf32>
    %cst_173 = arith.constant 1.000000e+00 : f32
    %438 = vector.broadcast %cst_173 : f32 to vector<1x128xf32>
    %439 = arith.addf %438, %437 : vector<1x128xf32>
    %440 = arith.divf %438, %439 : vector<1x128xf32>
    %441 = vector.extract_strided_slice %421 {offsets = [0, 256], sizes = [1, 128], strides = [1, 1]} : vector<1x384xf32> to vector<1x128xf32>
    %442 = vector.extract_strided_slice %424 {offsets = [0, 256], sizes = [1, 128], strides = [1, 1]} : vector<1x384xf32> to vector<1x128xf32>
    %443 = arith.addf %442, %5 : vector<1x128xf32>
    %444 = arith.mulf %432, %443 : vector<1x128xf32>
    %445 = arith.addf %441, %444 : vector<1x128xf32>
    %446 = math.tanh %445 : vector<1x128xf32>
    %cst_174 = arith.constant 1.000000e+00 : f32
    %447 = vector.broadcast %cst_174 : f32 to vector<1x128xf32>
    %448 = arith.subf %447, %440 : vector<1x128xf32>
    %449 = arith.mulf %448, %446 : vector<1x128xf32>
    %450 = arith.mulf %440, %323 : vector<1x128xf32>
    %451 = arith.addf %449, %450 : vector<1x128xf32>
    %452 = arith.select %413, %451, %323 : vector<1x128xf32>
    %c1_i32_175 = arith.constant 1 : i32
    %453 = arith.subi %c3_i32, %c1_i32_175 : i32
    %c0_i32_176 = arith.constant 0 : i32
    %454 = arith.cmpi sge, %453, %c0_i32_176 : i32
    %c8_i32_177 = arith.constant 8 : i32
    %455 = arith.cmpi slt, %453, %c8_i32_177 : i32
    %456 = arith.andi %454, %455 : i1
    %c0_i32_178 = arith.constant 0 : i32
    %c7_i32_179 = arith.constant 7 : i32
    %457 = arith.maxsi %c0_i32_178, %453 : i32
    %458 = arith.minsi %c7_i32_179, %457 : i32
    %459 = arith.index_cast %458 : i32 to index
    %c0_180 = arith.constant 0 : index
    %460 = vector.load %arg19[%459, %c0_180] : memref<8x128xf32, #tpu.memory_space<vmem>>, vector<1x128xf32>
    %461 = arith.truncf %460 : vector<1x128xf32> to vector<1x128xbf16>
    %c0_181 = arith.constant 0 : index
    %c0_182 = arith.constant 0 : index
    %462 = vector.load %arg6[%c0_181, %c0_182] : memref<128x384xbf16, #tpu.memory_space<vmem>>, vector<128x384xbf16>
    %cst_183 = arith.constant dense<0.000000e+00> : vector<1x384xf32>
    %463 = tpu.matmul %461, %462, %cst_183 {dimension_numbers = #tpu.dot_dimension_numbers<[1], [0], [0], [1], [0, 0, 1, 1], [], []>} : vector<1x128xbf16>, vector<128x384xbf16>, vector<1x384xf32> -> vector<1x384xf32>
    %464 = arith.addf %463, %1 : vector<1x384xf32>
    %465 = arith.truncf %366 : vector<1x128xf32> to vector<1x128xbf16>
    %c0_184 = arith.constant 0 : index
    %c0_185 = arith.constant 0 : index
    %466 = vector.load %arg7[%c0_184, %c0_185] : memref<128x384xbf16, #tpu.memory_space<vmem>>, vector<128x384xbf16>
    %cst_186 = arith.constant dense<0.000000e+00> : vector<1x384xf32>
    %467 = tpu.matmul %465, %466, %cst_186 {dimension_numbers = #tpu.dot_dimension_numbers<[1], [0], [0], [1], [0, 0, 1, 1], [], []>} : vector<1x128xbf16>, vector<128x384xbf16>, vector<1x384xf32> -> vector<1x384xf32>
    %468 = vector.extract_strided_slice %464 {offsets = [0, 0], sizes = [1, 128], strides = [1, 1]} : vector<1x384xf32> to vector<1x128xf32>
    %469 = vector.extract_strided_slice %467 {offsets = [0, 0], sizes = [1, 128], strides = [1, 1]} : vector<1x384xf32> to vector<1x128xf32>
    %470 = arith.addf %468, %469 : vector<1x128xf32>
    %471 = arith.negf %470 : vector<1x128xf32>
    %472 = math.exp %471 : vector<1x128xf32>
    %cst_187 = arith.constant 1.000000e+00 : f32
    %473 = vector.broadcast %cst_187 : f32 to vector<1x128xf32>
    %474 = arith.addf %473, %472 : vector<1x128xf32>
    %475 = arith.divf %473, %474 : vector<1x128xf32>
    %476 = vector.extract_strided_slice %464 {offsets = [0, 128], sizes = [1, 128], strides = [1, 1]} : vector<1x384xf32> to vector<1x128xf32>
    %477 = vector.extract_strided_slice %467 {offsets = [0, 128], sizes = [1, 128], strides = [1, 1]} : vector<1x384xf32> to vector<1x128xf32>
    %478 = arith.addf %476, %477 : vector<1x128xf32>
    %479 = arith.negf %478 : vector<1x128xf32>
    %480 = math.exp %479 : vector<1x128xf32>
    %cst_188 = arith.constant 1.000000e+00 : f32
    %481 = vector.broadcast %cst_188 : f32 to vector<1x128xf32>
    %482 = arith.addf %481, %480 : vector<1x128xf32>
    %483 = arith.divf %481, %482 : vector<1x128xf32>
    %484 = vector.extract_strided_slice %464 {offsets = [0, 256], sizes = [1, 128], strides = [1, 1]} : vector<1x384xf32> to vector<1x128xf32>
    %485 = vector.extract_strided_slice %467 {offsets = [0, 256], sizes = [1, 128], strides = [1, 1]} : vector<1x384xf32> to vector<1x128xf32>
    %486 = arith.addf %485, %4 : vector<1x128xf32>
    %487 = arith.mulf %475, %486 : vector<1x128xf32>
    %488 = arith.addf %484, %487 : vector<1x128xf32>
    %489 = math.tanh %488 : vector<1x128xf32>
    %cst_189 = arith.constant 1.000000e+00 : f32
    %490 = vector.broadcast %cst_189 : f32 to vector<1x128xf32>
    %491 = arith.subf %490, %483 : vector<1x128xf32>
    %492 = arith.mulf %491, %489 : vector<1x128xf32>
    %493 = arith.mulf %483, %366 : vector<1x128xf32>
    %494 = arith.addf %492, %493 : vector<1x128xf32>
    %495 = arith.select %456, %494, %366 : vector<1x128xf32>
    %496 = arith.index_cast %458 : i32 to index
    %c0_190 = arith.constant 0 : index
    %497 = vector.load %arg20[%496, %c0_190] : memref<8x128xf32, #tpu.memory_space<vmem>>, vector<1x128xf32>
    tpu.vector_store %arg20[%496, %c0_190], %495 {strides = array<i32>} : memref<8x128xf32, #tpu.memory_space<vmem>>, vector<1x128xf32>,
    %c0_i32_191 = arith.constant 0 : i32
    %498 = arith.subi %c3_i32, %c0_i32_191 : i32
    %c0_i32_192 = arith.constant 0 : i32
    %499 = arith.cmpi sge, %498, %c0_i32_192 : i32
    %c8_i32_193 = arith.constant 8 : i32
    %500 = arith.cmpi slt, %498, %c8_i32_193 : i32
    %501 = arith.andi %499, %500 : i1
    %c0_i32_194 = arith.constant 0 : i32
    %c7_i32_195 = arith.constant 7 : i32
    %502 = arith.maxsi %c0_i32_194, %498 : i32
    %503 = arith.minsi %c7_i32_195, %502 : i32
    %504 = arith.index_cast %503 : i32 to index
    %c0_196 = arith.constant 0 : index
    %505 = vector.load %arg18[%504, %c0_196] : memref<8x384xf32, #tpu.memory_space<vmem>>, vector<1x384xf32>
    %506 = arith.truncf %407 : vector<1x128xf32> to vector<1x128xbf16>
    %c0_197 = arith.constant 0 : index
    %c0_198 = arith.constant 0 : index
    %507 = vector.load %arg3[%c0_197, %c0_198] : memref<128x384xbf16, #tpu.memory_space<vmem>>, vector<128x384xbf16>
    %cst_199 = arith.constant dense<0.000000e+00> : vector<1x384xf32>
    %508 = tpu.matmul %506, %507, %cst_199 {dimension_numbers = #tpu.dot_dimension_numbers<[1], [0], [0], [1], [0, 0, 1, 1], [], []>} : vector<1x128xbf16>, vector<128x384xbf16>, vector<1x384xf32> -> vector<1x384xf32>
    %509 = vector.extract_strided_slice %505 {offsets = [0, 0], sizes = [1, 128], strides = [1, 1]} : vector<1x384xf32> to vector<1x128xf32>
    %510 = vector.extract_strided_slice %508 {offsets = [0, 0], sizes = [1, 128], strides = [1, 1]} : vector<1x384xf32> to vector<1x128xf32>
    %511 = arith.addf %509, %510 : vector<1x128xf32>
    %512 = arith.negf %511 : vector<1x128xf32>
    %513 = math.exp %512 : vector<1x128xf32>
    %cst_200 = arith.constant 1.000000e+00 : f32
    %514 = vector.broadcast %cst_200 : f32 to vector<1x128xf32>
    %515 = arith.addf %514, %513 : vector<1x128xf32>
    %516 = arith.divf %514, %515 : vector<1x128xf32>
    %517 = vector.extract_strided_slice %505 {offsets = [0, 128], sizes = [1, 128], strides = [1, 1]} : vector<1x384xf32> to vector<1x128xf32>
    %518 = vector.extract_strided_slice %508 {offsets = [0, 128], sizes = [1, 128], strides = [1, 1]} : vector<1x384xf32> to vector<1x128xf32>
    %519 = arith.addf %517, %518 : vector<1x128xf32>
    %520 = arith.negf %519 : vector<1x128xf32>
    %521 = math.exp %520 : vector<1x128xf32>
    %cst_201 = arith.constant 1.000000e+00 : f32
    %522 = vector.broadcast %cst_201 : f32 to vector<1x128xf32>
    %523 = arith.addf %522, %521 : vector<1x128xf32>
    %524 = arith.divf %522, %523 : vector<1x128xf32>
    %525 = vector.extract_strided_slice %505 {offsets = [0, 256], sizes = [1, 128], strides = [1, 1]} : vector<1x384xf32> to vector<1x128xf32>
    %526 = vector.extract_strided_slice %508 {offsets = [0, 256], sizes = [1, 128], strides = [1, 1]} : vector<1x384xf32> to vector<1x128xf32>
    %527 = arith.addf %526, %3 : vector<1x128xf32>
    %528 = arith.mulf %516, %527 : vector<1x128xf32>
    %529 = arith.addf %525, %528 : vector<1x128xf32>
    %530 = math.tanh %529 : vector<1x128xf32>
    %cst_202 = arith.constant 1.000000e+00 : f32
    %531 = vector.broadcast %cst_202 : f32 to vector<1x128xf32>
    %532 = arith.subf %531, %524 : vector<1x128xf32>
    %533 = arith.mulf %532, %530 : vector<1x128xf32>
    %534 = arith.mulf %524, %407 : vector<1x128xf32>
    %535 = arith.addf %533, %534 : vector<1x128xf32>
    %536 = arith.select %501, %535, %407 : vector<1x128xf32>
    %537 = arith.index_cast %503 : i32 to index
    %c0_203 = arith.constant 0 : index
    %538 = vector.load %arg19[%537, %c0_203] : memref<8x128xf32, #tpu.memory_space<vmem>>, vector<1x128xf32>
    tpu.vector_store %arg19[%537, %c0_203], %536 {strides = array<i32>} : memref<8x128xf32, #tpu.memory_space<vmem>>, vector<1x128xf32>,
    %c4_i32 = arith.constant 4 : i32
    %c2_i32_204 = arith.constant 2 : i32
    %539 = arith.subi %c4_i32, %c2_i32_204 : i32
    %c0_i32_205 = arith.constant 0 : i32
    %540 = arith.cmpi sge, %539, %c0_i32_205 : i32
    %c8_i32_206 = arith.constant 8 : i32
    %541 = arith.cmpi slt, %539, %c8_i32_206 : i32
    %542 = arith.andi %540, %541 : i1
    %c0_i32_207 = arith.constant 0 : i32
    %c7_i32_208 = arith.constant 7 : i32
    %543 = arith.maxsi %c0_i32_207, %539 : i32
    %544 = arith.minsi %c7_i32_208, %543 : i32
    %545 = arith.index_cast %544 : i32 to index
    %c0_209 = arith.constant 0 : index
    %546 = vector.load %arg20[%545, %c0_209] : memref<8x128xf32, #tpu.memory_space<vmem>>, vector<1x128xf32>
    %547 = arith.truncf %546 : vector<1x128xf32> to vector<1x128xbf16>
    %c0_210 = arith.constant 0 : index
    %c0_211 = arith.constant 0 : index
    %548 = vector.load %arg10[%c0_210, %c0_211] : memref<128x384xbf16, #tpu.memory_space<vmem>>, vector<128x384xbf16>
    %cst_212 = arith.constant dense<0.000000e+00> : vector<1x384xf32>
    %549 = tpu.matmul %547, %548, %cst_212 {dimension_numbers = #tpu.dot_dimension_numbers<[1], [0], [0], [1], [0, 0, 1, 1], [], []>} : vector<1x128xbf16>, vector<128x384xbf16>, vector<1x384xf32> -> vector<1x384xf32>
    %550 = arith.addf %549, %2 : vector<1x384xf32>
    %551 = arith.truncf %452 : vector<1x128xf32> to vector<1x128xbf16>
    %c0_213 = arith.constant 0 : index
    %c0_214 = arith.constant 0 : index
    %552 = vector.load %arg11[%c0_213, %c0_214] : memref<128x384xbf16, #tpu.memory_space<vmem>>, vector<128x384xbf16>
    %cst_215 = arith.constant dense<0.000000e+00> : vector<1x384xf32>
    %553 = tpu.matmul %551, %552, %cst_215 {dimension_numbers = #tpu.dot_dimension_numbers<[1], [0], [0], [1], [0, 0, 1, 1], [], []>} : vector<1x128xbf16>, vector<128x384xbf16>, vector<1x384xf32> -> vector<1x384xf32>
    %554 = vector.extract_strided_slice %550 {offsets = [0, 0], sizes = [1, 128], strides = [1, 1]} : vector<1x384xf32> to vector<1x128xf32>
    %555 = vector.extract_strided_slice %553 {offsets = [0, 0], sizes = [1, 128], strides = [1, 1]} : vector<1x384xf32> to vector<1x128xf32>
    %556 = arith.addf %554, %555 : vector<1x128xf32>
    %557 = arith.negf %556 : vector<1x128xf32>
    %558 = math.exp %557 : vector<1x128xf32>
    %cst_216 = arith.constant 1.000000e+00 : f32
    %559 = vector.broadcast %cst_216 : f32 to vector<1x128xf32>
    %560 = arith.addf %559, %558 : vector<1x128xf32>
    %561 = arith.divf %559, %560 : vector<1x128xf32>
    %562 = vector.extract_strided_slice %550 {offsets = [0, 128], sizes = [1, 128], strides = [1, 1]} : vector<1x384xf32> to vector<1x128xf32>
    %563 = vector.extract_strided_slice %553 {offsets = [0, 128], sizes = [1, 128], strides = [1, 1]} : vector<1x384xf32> to vector<1x128xf32>
    %564 = arith.addf %562, %563 : vector<1x128xf32>
    %565 = arith.negf %564 : vector<1x128xf32>
    %566 = math.exp %565 : vector<1x128xf32>
    %cst_217 = arith.constant 1.000000e+00 : f32
    %567 = vector.broadcast %cst_217 : f32 to vector<1x128xf32>
    %568 = arith.addf %567, %566 : vector<1x128xf32>
    %569 = arith.divf %567, %568 : vector<1x128xf32>
    %570 = vector.extract_strided_slice %550 {offsets = [0, 256], sizes = [1, 128], strides = [1, 1]} : vector<1x384xf32> to vector<1x128xf32>
    %571 = vector.extract_strided_slice %553 {offsets = [0, 256], sizes = [1, 128], strides = [1, 1]} : vector<1x384xf32> to vector<1x128xf32>
    %572 = arith.addf %571, %5 : vector<1x128xf32>
    %573 = arith.mulf %561, %572 : vector<1x128xf32>
    %574 = arith.addf %570, %573 : vector<1x128xf32>
    %575 = math.tanh %574 : vector<1x128xf32>
    %cst_218 = arith.constant 1.000000e+00 : f32
    %576 = vector.broadcast %cst_218 : f32 to vector<1x128xf32>
    %577 = arith.subf %576, %569 : vector<1x128xf32>
    %578 = arith.mulf %577, %575 : vector<1x128xf32>
    %579 = arith.mulf %569, %452 : vector<1x128xf32>
    %580 = arith.addf %578, %579 : vector<1x128xf32>
    %581 = arith.select %542, %580, %452 : vector<1x128xf32>
    %c1_i32_219 = arith.constant 1 : i32
    %582 = arith.subi %c4_i32, %c1_i32_219 : i32
    %c0_i32_220 = arith.constant 0 : i32
    %583 = arith.cmpi sge, %582, %c0_i32_220 : i32
    %c8_i32_221 = arith.constant 8 : i32
    %584 = arith.cmpi slt, %582, %c8_i32_221 : i32
    %585 = arith.andi %583, %584 : i1
    %c0_i32_222 = arith.constant 0 : i32
    %c7_i32_223 = arith.constant 7 : i32
    %586 = arith.maxsi %c0_i32_222, %582 : i32
    %587 = arith.minsi %c7_i32_223, %586 : i32
    %588 = arith.index_cast %587 : i32 to index
    %c0_224 = arith.constant 0 : index
    %589 = vector.load %arg19[%588, %c0_224] : memref<8x128xf32, #tpu.memory_space<vmem>>, vector<1x128xf32>
    %590 = arith.truncf %589 : vector<1x128xf32> to vector<1x128xbf16>
    %c0_225 = arith.constant 0 : index
    %c0_226 = arith.constant 0 : index
    %591 = vector.load %arg6[%c0_225, %c0_226] : memref<128x384xbf16, #tpu.memory_space<vmem>>, vector<128x384xbf16>
    %cst_227 = arith.constant dense<0.000000e+00> : vector<1x384xf32>
    %592 = tpu.matmul %590, %591, %cst_227 {dimension_numbers = #tpu.dot_dimension_numbers<[1], [0], [0], [1], [0, 0, 1, 1], [], []>} : vector<1x128xbf16>, vector<128x384xbf16>, vector<1x384xf32> -> vector<1x384xf32>
    %593 = arith.addf %592, %1 : vector<1x384xf32>
    %594 = arith.truncf %495 : vector<1x128xf32> to vector<1x128xbf16>
    %c0_228 = arith.constant 0 : index
    %c0_229 = arith.constant 0 : index
    %595 = vector.load %arg7[%c0_228, %c0_229] : memref<128x384xbf16, #tpu.memory_space<vmem>>, vector<128x384xbf16>
    %cst_230 = arith.constant dense<0.000000e+00> : vector<1x384xf32>
    %596 = tpu.matmul %594, %595, %cst_230 {dimension_numbers = #tpu.dot_dimension_numbers<[1], [0], [0], [1], [0, 0, 1, 1], [], []>} : vector<1x128xbf16>, vector<128x384xbf16>, vector<1x384xf32> -> vector<1x384xf32>
    %597 = vector.extract_strided_slice %593 {offsets = [0, 0], sizes = [1, 128], strides = [1, 1]} : vector<1x384xf32> to vector<1x128xf32>
    %598 = vector.extract_strided_slice %596 {offsets = [0, 0], sizes = [1, 128], strides = [1, 1]} : vector<1x384xf32> to vector<1x128xf32>
    %599 = arith.addf %597, %598 : vector<1x128xf32>
    %600 = arith.negf %599 : vector<1x128xf32>
    %601 = math.exp %600 : vector<1x128xf32>
    %cst_231 = arith.constant 1.000000e+00 : f32
    %602 = vector.broadcast %cst_231 : f32 to vector<1x128xf32>
    %603 = arith.addf %602, %601 : vector<1x128xf32>
    %604 = arith.divf %602, %603 : vector<1x128xf32>
    %605 = vector.extract_strided_slice %593 {offsets = [0, 128], sizes = [1, 128], strides = [1, 1]} : vector<1x384xf32> to vector<1x128xf32>
    %606 = vector.extract_strided_slice %596 {offsets = [0, 128], sizes = [1, 128], strides = [1, 1]} : vector<1x384xf32> to vector<1x128xf32>
    %607 = arith.addf %605, %606 : vector<1x128xf32>
    %608 = arith.negf %607 : vector<1x128xf32>
    %609 = math.exp %608 : vector<1x128xf32>
    %cst_232 = arith.constant 1.000000e+00 : f32
    %610 = vector.broadcast %cst_232 : f32 to vector<1x128xf32>
    %611 = arith.addf %610, %609 : vector<1x128xf32>
    %612 = arith.divf %610, %611 : vector<1x128xf32>
    %613 = vector.extract_strided_slice %593 {offsets = [0, 256], sizes = [1, 128], strides = [1, 1]} : vector<1x384xf32> to vector<1x128xf32>
    %614 = vector.extract_strided_slice %596 {offsets = [0, 256], sizes = [1, 128], strides = [1, 1]} : vector<1x384xf32> to vector<1x128xf32>
    %615 = arith.addf %614, %4 : vector<1x128xf32>
    %616 = arith.mulf %604, %615 : vector<1x128xf32>
    %617 = arith.addf %613, %616 : vector<1x128xf32>
    %618 = math.tanh %617 : vector<1x128xf32>
    %cst_233 = arith.constant 1.000000e+00 : f32
    %619 = vector.broadcast %cst_233 : f32 to vector<1x128xf32>
    %620 = arith.subf %619, %612 : vector<1x128xf32>
    %621 = arith.mulf %620, %618 : vector<1x128xf32>
    %622 = arith.mulf %612, %495 : vector<1x128xf32>
    %623 = arith.addf %621, %622 : vector<1x128xf32>
    %624 = arith.select %585, %623, %495 : vector<1x128xf32>
    %625 = arith.index_cast %587 : i32 to index
    %c0_234 = arith.constant 0 : index
    %626 = vector.load %arg20[%625, %c0_234] : memref<8x128xf32, #tpu.memory_space<vmem>>, vector<1x128xf32>
    tpu.vector_store %arg20[%625, %c0_234], %624 {strides = array<i32>} : memref<8x128xf32, #tpu.memory_space<vmem>>, vector<1x128xf32>,
    %c0_i32_235 = arith.constant 0 : i32
    %627 = arith.subi %c4_i32, %c0_i32_235 : i32
    %c0_i32_236 = arith.constant 0 : i32
    %628 = arith.cmpi sge, %627, %c0_i32_236 : i32
    %c8_i32_237 = arith.constant 8 : i32
    %629 = arith.cmpi slt, %627, %c8_i32_237 : i32
    %630 = arith.andi %628, %629 : i1
    %c0_i32_238 = arith.constant 0 : i32
    %c7_i32_239 = arith.constant 7 : i32
    %631 = arith.maxsi %c0_i32_238, %627 : i32
    %632 = arith.minsi %c7_i32_239, %631 : i32
    %633 = arith.index_cast %632 : i32 to index
    %c0_240 = arith.constant 0 : index
    %634 = vector.load %arg18[%633, %c0_240] : memref<8x384xf32, #tpu.memory_space<vmem>>, vector<1x384xf32>
    %635 = arith.truncf %536 : vector<1x128xf32> to vector<1x128xbf16>
    %c0_241 = arith.constant 0 : index
    %c0_242 = arith.constant 0 : index
    %636 = vector.load %arg3[%c0_241, %c0_242] : memref<128x384xbf16, #tpu.memory_space<vmem>>, vector<128x384xbf16>
    %cst_243 = arith.constant dense<0.000000e+00> : vector<1x384xf32>
    %637 = tpu.matmul %635, %636, %cst_243 {dimension_numbers = #tpu.dot_dimension_numbers<[1], [0], [0], [1], [0, 0, 1, 1], [], []>} : vector<1x128xbf16>, vector<128x384xbf16>, vector<1x384xf32> -> vector<1x384xf32>
    %638 = vector.extract_strided_slice %634 {offsets = [0, 0], sizes = [1, 128], strides = [1, 1]} : vector<1x384xf32> to vector<1x128xf32>
    %639 = vector.extract_strided_slice %637 {offsets = [0, 0], sizes = [1, 128], strides = [1, 1]} : vector<1x384xf32> to vector<1x128xf32>
    %640 = arith.addf %638, %639 : vector<1x128xf32>
    %641 = arith.negf %640 : vector<1x128xf32>
    %642 = math.exp %641 : vector<1x128xf32>
    %cst_244 = arith.constant 1.000000e+00 : f32
    %643 = vector.broadcast %cst_244 : f32 to vector<1x128xf32>
    %644 = arith.addf %643, %642 : vector<1x128xf32>
    %645 = arith.divf %643, %644 : vector<1x128xf32>
    %646 = vector.extract_strided_slice %634 {offsets = [0, 128], sizes = [1, 128], strides = [1, 1]} : vector<1x384xf32> to vector<1x128xf32>
    %647 = vector.extract_strided_slice %637 {offsets = [0, 128], sizes = [1, 128], strides = [1, 1]} : vector<1x384xf32> to vector<1x128xf32>
    %648 = arith.addf %646, %647 : vector<1x128xf32>
    %649 = arith.negf %648 : vector<1x128xf32>
    %650 = math.exp %649 : vector<1x128xf32>
    %cst_245 = arith.constant 1.000000e+00 : f32
    %651 = vector.broadcast %cst_245 : f32 to vector<1x128xf32>
    %652 = arith.addf %651, %650 : vector<1x128xf32>
    %653 = arith.divf %651, %652 : vector<1x128xf32>
    %654 = vector.extract_strided_slice %634 {offsets = [0, 256], sizes = [1, 128], strides = [1, 1]} : vector<1x384xf32> to vector<1x128xf32>
    %655 = vector.extract_strided_slice %637 {offsets = [0, 256], sizes = [1, 128], strides = [1, 1]} : vector<1x384xf32> to vector<1x128xf32>
    %656 = arith.addf %655, %3 : vector<1x128xf32>
    %657 = arith.mulf %645, %656 : vector<1x128xf32>
    %658 = arith.addf %654, %657 : vector<1x128xf32>
    %659 = math.tanh %658 : vector<1x128xf32>
    %cst_246 = arith.constant 1.000000e+00 : f32
    %660 = vector.broadcast %cst_246 : f32 to vector<1x128xf32>
    %661 = arith.subf %660, %653 : vector<1x128xf32>
    %662 = arith.mulf %661, %659 : vector<1x128xf32>
    %663 = arith.mulf %653, %536 : vector<1x128xf32>
    %664 = arith.addf %662, %663 : vector<1x128xf32>
    %665 = arith.select %630, %664, %536 : vector<1x128xf32>
    %666 = arith.index_cast %632 : i32 to index
    %c0_247 = arith.constant 0 : index
    %667 = vector.load %arg19[%666, %c0_247] : memref<8x128xf32, #tpu.memory_space<vmem>>, vector<1x128xf32>
    tpu.vector_store %arg19[%666, %c0_247], %665 {strides = array<i32>} : memref<8x128xf32, #tpu.memory_space<vmem>>, vector<1x128xf32>,
    %c5_i32 = arith.constant 5 : i32
    %c2_i32_248 = arith.constant 2 : i32
    %668 = arith.subi %c5_i32, %c2_i32_248 : i32
    %c0_i32_249 = arith.constant 0 : i32
    %669 = arith.cmpi sge, %668, %c0_i32_249 : i32
    %c8_i32_250 = arith.constant 8 : i32
    %670 = arith.cmpi slt, %668, %c8_i32_250 : i32
    %671 = arith.andi %669, %670 : i1
    %c0_i32_251 = arith.constant 0 : i32
    %c7_i32_252 = arith.constant 7 : i32
    %672 = arith.maxsi %c0_i32_251, %668 : i32
    %673 = arith.minsi %c7_i32_252, %672 : i32
    %674 = arith.index_cast %673 : i32 to index
    %c0_253 = arith.constant 0 : index
    %675 = vector.load %arg20[%674, %c0_253] : memref<8x128xf32, #tpu.memory_space<vmem>>, vector<1x128xf32>
    %676 = arith.truncf %675 : vector<1x128xf32> to vector<1x128xbf16>
    %c0_254 = arith.constant 0 : index
    %c0_255 = arith.constant 0 : index
    %677 = vector.load %arg10[%c0_254, %c0_255] : memref<128x384xbf16, #tpu.memory_space<vmem>>, vector<128x384xbf16>
    %cst_256 = arith.constant dense<0.000000e+00> : vector<1x384xf32>
    %678 = tpu.matmul %676, %677, %cst_256 {dimension_numbers = #tpu.dot_dimension_numbers<[1], [0], [0], [1], [0, 0, 1, 1], [], []>} : vector<1x128xbf16>, vector<128x384xbf16>, vector<1x384xf32> -> vector<1x384xf32>
    %679 = arith.addf %678, %2 : vector<1x384xf32>
    %680 = arith.truncf %581 : vector<1x128xf32> to vector<1x128xbf16>
    %c0_257 = arith.constant 0 : index
    %c0_258 = arith.constant 0 : index
    %681 = vector.load %arg11[%c0_257, %c0_258] : memref<128x384xbf16, #tpu.memory_space<vmem>>, vector<128x384xbf16>
    %cst_259 = arith.constant dense<0.000000e+00> : vector<1x384xf32>
    %682 = tpu.matmul %680, %681, %cst_259 {dimension_numbers = #tpu.dot_dimension_numbers<[1], [0], [0], [1], [0, 0, 1, 1], [], []>} : vector<1x128xbf16>, vector<128x384xbf16>, vector<1x384xf32> -> vector<1x384xf32>
    %683 = vector.extract_strided_slice %679 {offsets = [0, 0], sizes = [1, 128], strides = [1, 1]} : vector<1x384xf32> to vector<1x128xf32>
    %684 = vector.extract_strided_slice %682 {offsets = [0, 0], sizes = [1, 128], strides = [1, 1]} : vector<1x384xf32> to vector<1x128xf32>
    %685 = arith.addf %683, %684 : vector<1x128xf32>
    %686 = arith.negf %685 : vector<1x128xf32>
    %687 = math.exp %686 : vector<1x128xf32>
    %cst_260 = arith.constant 1.000000e+00 : f32
    %688 = vector.broadcast %cst_260 : f32 to vector<1x128xf32>
    %689 = arith.addf %688, %687 : vector<1x128xf32>
    %690 = arith.divf %688, %689 : vector<1x128xf32>
    %691 = vector.extract_strided_slice %679 {offsets = [0, 128], sizes = [1, 128], strides = [1, 1]} : vector<1x384xf32> to vector<1x128xf32>
    %692 = vector.extract_strided_slice %682 {offsets = [0, 128], sizes = [1, 128], strides = [1, 1]} : vector<1x384xf32> to vector<1x128xf32>
    %693 = arith.addf %691, %692 : vector<1x128xf32>
    %694 = arith.negf %693 : vector<1x128xf32>
    %695 = math.exp %694 : vector<1x128xf32>
    %cst_261 = arith.constant 1.000000e+00 : f32
    %696 = vector.broadcast %cst_261 : f32 to vector<1x128xf32>
    %697 = arith.addf %696, %695 : vector<1x128xf32>
    %698 = arith.divf %696, %697 : vector<1x128xf32>
    %699 = vector.extract_strided_slice %679 {offsets = [0, 256], sizes = [1, 128], strides = [1, 1]} : vector<1x384xf32> to vector<1x128xf32>
    %700 = vector.extract_strided_slice %682 {offsets = [0, 256], sizes = [1, 128], strides = [1, 1]} : vector<1x384xf32> to vector<1x128xf32>
    %701 = arith.addf %700, %5 : vector<1x128xf32>
    %702 = arith.mulf %690, %701 : vector<1x128xf32>
    %703 = arith.addf %699, %702 : vector<1x128xf32>
    %704 = math.tanh %703 : vector<1x128xf32>
    %cst_262 = arith.constant 1.000000e+00 : f32
    %705 = vector.broadcast %cst_262 : f32 to vector<1x128xf32>
    %706 = arith.subf %705, %698 : vector<1x128xf32>
    %707 = arith.mulf %706, %704 : vector<1x128xf32>
    %708 = arith.mulf %698, %581 : vector<1x128xf32>
    %709 = arith.addf %707, %708 : vector<1x128xf32>
    %710 = arith.select %671, %709, %581 : vector<1x128xf32>
    %c1_i32_263 = arith.constant 1 : i32
    %711 = arith.subi %c5_i32, %c1_i32_263 : i32
    %c0_i32_264 = arith.constant 0 : i32
    %712 = arith.cmpi sge, %711, %c0_i32_264 : i32
    %c8_i32_265 = arith.constant 8 : i32
    %713 = arith.cmpi slt, %711, %c8_i32_265 : i32
    %714 = arith.andi %712, %713 : i1
    %c0_i32_266 = arith.constant 0 : i32
    %c7_i32_267 = arith.constant 7 : i32
    %715 = arith.maxsi %c0_i32_266, %711 : i32
    %716 = arith.minsi %c7_i32_267, %715 : i32
    %717 = arith.index_cast %716 : i32 to index
    %c0_268 = arith.constant 0 : index
    %718 = vector.load %arg19[%717, %c0_268] : memref<8x128xf32, #tpu.memory_space<vmem>>, vector<1x128xf32>
    %719 = arith.truncf %718 : vector<1x128xf32> to vector<1x128xbf16>
    %c0_269 = arith.constant 0 : index
    %c0_270 = arith.constant 0 : index
    %720 = vector.load %arg6[%c0_269, %c0_270] : memref<128x384xbf16, #tpu.memory_space<vmem>>, vector<128x384xbf16>
    %cst_271 = arith.constant dense<0.000000e+00> : vector<1x384xf32>
    %721 = tpu.matmul %719, %720, %cst_271 {dimension_numbers = #tpu.dot_dimension_numbers<[1], [0], [0], [1], [0, 0, 1, 1], [], []>} : vector<1x128xbf16>, vector<128x384xbf16>, vector<1x384xf32> -> vector<1x384xf32>
    %722 = arith.addf %721, %1 : vector<1x384xf32>
    %723 = arith.truncf %624 : vector<1x128xf32> to vector<1x128xbf16>
    %c0_272 = arith.constant 0 : index
    %c0_273 = arith.constant 0 : index
    %724 = vector.load %arg7[%c0_272, %c0_273] : memref<128x384xbf16, #tpu.memory_space<vmem>>, vector<128x384xbf16>
    %cst_274 = arith.constant dense<0.000000e+00> : vector<1x384xf32>
    %725 = tpu.matmul %723, %724, %cst_274 {dimension_numbers = #tpu.dot_dimension_numbers<[1], [0], [0], [1], [0, 0, 1, 1], [], []>} : vector<1x128xbf16>, vector<128x384xbf16>, vector<1x384xf32> -> vector<1x384xf32>
    %726 = vector.extract_strided_slice %722 {offsets = [0, 0], sizes = [1, 128], strides = [1, 1]} : vector<1x384xf32> to vector<1x128xf32>
    %727 = vector.extract_strided_slice %725 {offsets = [0, 0], sizes = [1, 128], strides = [1, 1]} : vector<1x384xf32> to vector<1x128xf32>
    %728 = arith.addf %726, %727 : vector<1x128xf32>
    %729 = arith.negf %728 : vector<1x128xf32>
    %730 = math.exp %729 : vector<1x128xf32>
    %cst_275 = arith.constant 1.000000e+00 : f32
    %731 = vector.broadcast %cst_275 : f32 to vector<1x128xf32>
    %732 = arith.addf %731, %730 : vector<1x128xf32>
    %733 = arith.divf %731, %732 : vector<1x128xf32>
    %734 = vector.extract_strided_slice %722 {offsets = [0, 128], sizes = [1, 128], strides = [1, 1]} : vector<1x384xf32> to vector<1x128xf32>
    %735 = vector.extract_strided_slice %725 {offsets = [0, 128], sizes = [1, 128], strides = [1, 1]} : vector<1x384xf32> to vector<1x128xf32>
    %736 = arith.addf %734, %735 : vector<1x128xf32>
    %737 = arith.negf %736 : vector<1x128xf32>
    %738 = math.exp %737 : vector<1x128xf32>
    %cst_276 = arith.constant 1.000000e+00 : f32
    %739 = vector.broadcast %cst_276 : f32 to vector<1x128xf32>
    %740 = arith.addf %739, %738 : vector<1x128xf32>
    %741 = arith.divf %739, %740 : vector<1x128xf32>
    %742 = vector.extract_strided_slice %722 {offsets = [0, 256], sizes = [1, 128], strides = [1, 1]} : vector<1x384xf32> to vector<1x128xf32>
    %743 = vector.extract_strided_slice %725 {offsets = [0, 256], sizes = [1, 128], strides = [1, 1]} : vector<1x384xf32> to vector<1x128xf32>
    %744 = arith.addf %743, %4 : vector<1x128xf32>
    %745 = arith.mulf %733, %744 : vector<1x128xf32>
    %746 = arith.addf %742, %745 : vector<1x128xf32>
    %747 = math.tanh %746 : vector<1x128xf32>
    %cst_277 = arith.constant 1.000000e+00 : f32
    %748 = vector.broadcast %cst_277 : f32 to vector<1x128xf32>
    %749 = arith.subf %748, %741 : vector<1x128xf32>
    %750 = arith.mulf %749, %747 : vector<1x128xf32>
    %751 = arith.mulf %741, %624 : vector<1x128xf32>
    %752 = arith.addf %750, %751 : vector<1x128xf32>
    %753 = arith.select %714, %752, %624 : vector<1x128xf32>
    %754 = arith.index_cast %716 : i32 to index
    %c0_278 = arith.constant 0 : index
    %755 = vector.load %arg20[%754, %c0_278] : memref<8x128xf32, #tpu.memory_space<vmem>>, vector<1x128xf32>
    tpu.vector_store %arg20[%754, %c0_278], %753 {strides = array<i32>} : memref<8x128xf32, #tpu.memory_space<vmem>>, vector<1x128xf32>,
    %c0_i32_279 = arith.constant 0 : i32
    %756 = arith.subi %c5_i32, %c0_i32_279 : i32
    %c0_i32_280 = arith.constant 0 : i32
    %757 = arith.cmpi sge, %756, %c0_i32_280 : i32
    %c8_i32_281 = arith.constant 8 : i32
    %758 = arith.cmpi slt, %756, %c8_i32_281 : i32
    %759 = arith.andi %757, %758 : i1
    %c0_i32_282 = arith.constant 0 : i32
    %c7_i32_283 = arith.constant 7 : i32
    %760 = arith.maxsi %c0_i32_282, %756 : i32
    %761 = arith.minsi %c7_i32_283, %760 : i32
    %762 = arith.index_cast %761 : i32 to index
    %c0_284 = arith.constant 0 : index
    %763 = vector.load %arg18[%762, %c0_284] : memref<8x384xf32, #tpu.memory_space<vmem>>, vector<1x384xf32>
    %764 = arith.truncf %665 : vector<1x128xf32> to vector<1x128xbf16>
    %c0_285 = arith.constant 0 : index
    %c0_286 = arith.constant 0 : index
    %765 = vector.load %arg3[%c0_285, %c0_286] : memref<128x384xbf16, #tpu.memory_space<vmem>>, vector<128x384xbf16>
    %cst_287 = arith.constant dense<0.000000e+00> : vector<1x384xf32>
    %766 = tpu.matmul %764, %765, %cst_287 {dimension_numbers = #tpu.dot_dimension_numbers<[1], [0], [0], [1], [0, 0, 1, 1], [], []>} : vector<1x128xbf16>, vector<128x384xbf16>, vector<1x384xf32> -> vector<1x384xf32>
    %767 = vector.extract_strided_slice %763 {offsets = [0, 0], sizes = [1, 128], strides = [1, 1]} : vector<1x384xf32> to vector<1x128xf32>
    %768 = vector.extract_strided_slice %766 {offsets = [0, 0], sizes = [1, 128], strides = [1, 1]} : vector<1x384xf32> to vector<1x128xf32>
    %769 = arith.addf %767, %768 : vector<1x128xf32>
    %770 = arith.negf %769 : vector<1x128xf32>
    %771 = math.exp %770 : vector<1x128xf32>
    %cst_288 = arith.constant 1.000000e+00 : f32
    %772 = vector.broadcast %cst_288 : f32 to vector<1x128xf32>
    %773 = arith.addf %772, %771 : vector<1x128xf32>
    %774 = arith.divf %772, %773 : vector<1x128xf32>
    %775 = vector.extract_strided_slice %763 {offsets = [0, 128], sizes = [1, 128], strides = [1, 1]} : vector<1x384xf32> to vector<1x128xf32>
    %776 = vector.extract_strided_slice %766 {offsets = [0, 128], sizes = [1, 128], strides = [1, 1]} : vector<1x384xf32> to vector<1x128xf32>
    %777 = arith.addf %775, %776 : vector<1x128xf32>
    %778 = arith.negf %777 : vector<1x128xf32>
    %779 = math.exp %778 : vector<1x128xf32>
    %cst_289 = arith.constant 1.000000e+00 : f32
    %780 = vector.broadcast %cst_289 : f32 to vector<1x128xf32>
    %781 = arith.addf %780, %779 : vector<1x128xf32>
    %782 = arith.divf %780, %781 : vector<1x128xf32>
    %783 = vector.extract_strided_slice %763 {offsets = [0, 256], sizes = [1, 128], strides = [1, 1]} : vector<1x384xf32> to vector<1x128xf32>
    %784 = vector.extract_strided_slice %766 {offsets = [0, 256], sizes = [1, 128], strides = [1, 1]} : vector<1x384xf32> to vector<1x128xf32>
    %785 = arith.addf %784, %3 : vector<1x128xf32>
    %786 = arith.mulf %774, %785 : vector<1x128xf32>
    %787 = arith.addf %783, %786 : vector<1x128xf32>
    %788 = math.tanh %787 : vector<1x128xf32>
    %cst_290 = arith.constant 1.000000e+00 : f32
    %789 = vector.broadcast %cst_290 : f32 to vector<1x128xf32>
    %790 = arith.subf %789, %782 : vector<1x128xf32>
    %791 = arith.mulf %790, %788 : vector<1x128xf32>
    %792 = arith.mulf %782, %665 : vector<1x128xf32>
    %793 = arith.addf %791, %792 : vector<1x128xf32>
    %794 = arith.select %759, %793, %665 : vector<1x128xf32>
    %795 = arith.index_cast %761 : i32 to index
    %c0_291 = arith.constant 0 : index
    %796 = vector.load %arg19[%795, %c0_291] : memref<8x128xf32, #tpu.memory_space<vmem>>, vector<1x128xf32>
    tpu.vector_store %arg19[%795, %c0_291], %794 {strides = array<i32>} : memref<8x128xf32, #tpu.memory_space<vmem>>, vector<1x128xf32>,
    %c6_i32 = arith.constant 6 : i32
    %c2_i32_292 = arith.constant 2 : i32
    %797 = arith.subi %c6_i32, %c2_i32_292 : i32
    %c0_i32_293 = arith.constant 0 : i32
    %798 = arith.cmpi sge, %797, %c0_i32_293 : i32
    %c8_i32_294 = arith.constant 8 : i32
    %799 = arith.cmpi slt, %797, %c8_i32_294 : i32
    %800 = arith.andi %798, %799 : i1
    %c0_i32_295 = arith.constant 0 : i32
    %c7_i32_296 = arith.constant 7 : i32
    %801 = arith.maxsi %c0_i32_295, %797 : i32
    %802 = arith.minsi %c7_i32_296, %801 : i32
    %803 = arith.index_cast %802 : i32 to index
    %c0_297 = arith.constant 0 : index
    %804 = vector.load %arg20[%803, %c0_297] : memref<8x128xf32, #tpu.memory_space<vmem>>, vector<1x128xf32>
    %805 = arith.truncf %804 : vector<1x128xf32> to vector<1x128xbf16>
    %c0_298 = arith.constant 0 : index
    %c0_299 = arith.constant 0 : index
    %806 = vector.load %arg10[%c0_298, %c0_299] : memref<128x384xbf16, #tpu.memory_space<vmem>>, vector<128x384xbf16>
    %cst_300 = arith.constant dense<0.000000e+00> : vector<1x384xf32>
    %807 = tpu.matmul %805, %806, %cst_300 {dimension_numbers = #tpu.dot_dimension_numbers<[1], [0], [0], [1], [0, 0, 1, 1], [], []>} : vector<1x128xbf16>, vector<128x384xbf16>, vector<1x384xf32> -> vector<1x384xf32>
    %808 = arith.addf %807, %2 : vector<1x384xf32>
    %809 = arith.truncf %710 : vector<1x128xf32> to vector<1x128xbf16>
    %c0_301 = arith.constant 0 : index
    %c0_302 = arith.constant 0 : index
    %810 = vector.load %arg11[%c0_301, %c0_302] : memref<128x384xbf16, #tpu.memory_space<vmem>>, vector<128x384xbf16>
    %cst_303 = arith.constant dense<0.000000e+00> : vector<1x384xf32>
    %811 = tpu.matmul %809, %810, %cst_303 {dimension_numbers = #tpu.dot_dimension_numbers<[1], [0], [0], [1], [0, 0, 1, 1], [], []>} : vector<1x128xbf16>, vector<128x384xbf16>, vector<1x384xf32> -> vector<1x384xf32>
    %812 = vector.extract_strided_slice %808 {offsets = [0, 0], sizes = [1, 128], strides = [1, 1]} : vector<1x384xf32> to vector<1x128xf32>
    %813 = vector.extract_strided_slice %811 {offsets = [0, 0], sizes = [1, 128], strides = [1, 1]} : vector<1x384xf32> to vector<1x128xf32>
    %814 = arith.addf %812, %813 : vector<1x128xf32>
    %815 = arith.negf %814 : vector<1x128xf32>
    %816 = math.exp %815 : vector<1x128xf32>
    %cst_304 = arith.constant 1.000000e+00 : f32
    %817 = vector.broadcast %cst_304 : f32 to vector<1x128xf32>
    %818 = arith.addf %817, %816 : vector<1x128xf32>
    %819 = arith.divf %817, %818 : vector<1x128xf32>
    %820 = vector.extract_strided_slice %808 {offsets = [0, 128], sizes = [1, 128], strides = [1, 1]} : vector<1x384xf32> to vector<1x128xf32>
    %821 = vector.extract_strided_slice %811 {offsets = [0, 128], sizes = [1, 128], strides = [1, 1]} : vector<1x384xf32> to vector<1x128xf32>
    %822 = arith.addf %820, %821 : vector<1x128xf32>
    %823 = arith.negf %822 : vector<1x128xf32>
    %824 = math.exp %823 : vector<1x128xf32>
    %cst_305 = arith.constant 1.000000e+00 : f32
    %825 = vector.broadcast %cst_305 : f32 to vector<1x128xf32>
    %826 = arith.addf %825, %824 : vector<1x128xf32>
    %827 = arith.divf %825, %826 : vector<1x128xf32>
    %828 = vector.extract_strided_slice %808 {offsets = [0, 256], sizes = [1, 128], strides = [1, 1]} : vector<1x384xf32> to vector<1x128xf32>
    %829 = vector.extract_strided_slice %811 {offsets = [0, 256], sizes = [1, 128], strides = [1, 1]} : vector<1x384xf32> to vector<1x128xf32>
    %830 = arith.addf %829, %5 : vector<1x128xf32>
    %831 = arith.mulf %819, %830 : vector<1x128xf32>
    %832 = arith.addf %828, %831 : vector<1x128xf32>
    %833 = math.tanh %832 : vector<1x128xf32>
    %cst_306 = arith.constant 1.000000e+00 : f32
    %834 = vector.broadcast %cst_306 : f32 to vector<1x128xf32>
    %835 = arith.subf %834, %827 : vector<1x128xf32>
    %836 = arith.mulf %835, %833 : vector<1x128xf32>
    %837 = arith.mulf %827, %710 : vector<1x128xf32>
    %838 = arith.addf %836, %837 : vector<1x128xf32>
    %839 = arith.select %800, %838, %710 : vector<1x128xf32>
    %c1_i32_307 = arith.constant 1 : i32
    %840 = arith.subi %c6_i32, %c1_i32_307 : i32
    %c0_i32_308 = arith.constant 0 : i32
    %841 = arith.cmpi sge, %840, %c0_i32_308 : i32
    %c8_i32_309 = arith.constant 8 : i32
    %842 = arith.cmpi slt, %840, %c8_i32_309 : i32
    %843 = arith.andi %841, %842 : i1
    %c0_i32_310 = arith.constant 0 : i32
    %c7_i32_311 = arith.constant 7 : i32
    %844 = arith.maxsi %c0_i32_310, %840 : i32
    %845 = arith.minsi %c7_i32_311, %844 : i32
    %846 = arith.index_cast %845 : i32 to index
    %c0_312 = arith.constant 0 : index
    %847 = vector.load %arg19[%846, %c0_312] : memref<8x128xf32, #tpu.memory_space<vmem>>, vector<1x128xf32>
    %848 = arith.truncf %847 : vector<1x128xf32> to vector<1x128xbf16>
    %c0_313 = arith.constant 0 : index
    %c0_314 = arith.constant 0 : index
    %849 = vector.load %arg6[%c0_313, %c0_314] : memref<128x384xbf16, #tpu.memory_space<vmem>>, vector<128x384xbf16>
    %cst_315 = arith.constant dense<0.000000e+00> : vector<1x384xf32>
    %850 = tpu.matmul %848, %849, %cst_315 {dimension_numbers = #tpu.dot_dimension_numbers<[1], [0], [0], [1], [0, 0, 1, 1], [], []>} : vector<1x128xbf16>, vector<128x384xbf16>, vector<1x384xf32> -> vector<1x384xf32>
    %851 = arith.addf %850, %1 : vector<1x384xf32>
    %852 = arith.truncf %753 : vector<1x128xf32> to vector<1x128xbf16>
    %c0_316 = arith.constant 0 : index
    %c0_317 = arith.constant 0 : index
    %853 = vector.load %arg7[%c0_316, %c0_317] : memref<128x384xbf16, #tpu.memory_space<vmem>>, vector<128x384xbf16>
    %cst_318 = arith.constant dense<0.000000e+00> : vector<1x384xf32>
    %854 = tpu.matmul %852, %853, %cst_318 {dimension_numbers = #tpu.dot_dimension_numbers<[1], [0], [0], [1], [0, 0, 1, 1], [], []>} : vector<1x128xbf16>, vector<128x384xbf16>, vector<1x384xf32> -> vector<1x384xf32>
    %855 = vector.extract_strided_slice %851 {offsets = [0, 0], sizes = [1, 128], strides = [1, 1]} : vector<1x384xf32> to vector<1x128xf32>
    %856 = vector.extract_strided_slice %854 {offsets = [0, 0], sizes = [1, 128], strides = [1, 1]} : vector<1x384xf32> to vector<1x128xf32>
    %857 = arith.addf %855, %856 : vector<1x128xf32>
    %858 = arith.negf %857 : vector<1x128xf32>
    %859 = math.exp %858 : vector<1x128xf32>
    %cst_319 = arith.constant 1.000000e+00 : f32
    %860 = vector.broadcast %cst_319 : f32 to vector<1x128xf32>
    %861 = arith.addf %860, %859 : vector<1x128xf32>
    %862 = arith.divf %860, %861 : vector<1x128xf32>
    %863 = vector.extract_strided_slice %851 {offsets = [0, 128], sizes = [1, 128], strides = [1, 1]} : vector<1x384xf32> to vector<1x128xf32>
    %864 = vector.extract_strided_slice %854 {offsets = [0, 128], sizes = [1, 128], strides = [1, 1]} : vector<1x384xf32> to vector<1x128xf32>
    %865 = arith.addf %863, %864 : vector<1x128xf32>
    %866 = arith.negf %865 : vector<1x128xf32>
    %867 = math.exp %866 : vector<1x128xf32>
    %cst_320 = arith.constant 1.000000e+00 : f32
    %868 = vector.broadcast %cst_320 : f32 to vector<1x128xf32>
    %869 = arith.addf %868, %867 : vector<1x128xf32>
    %870 = arith.divf %868, %869 : vector<1x128xf32>
    %871 = vector.extract_strided_slice %851 {offsets = [0, 256], sizes = [1, 128], strides = [1, 1]} : vector<1x384xf32> to vector<1x128xf32>
    %872 = vector.extract_strided_slice %854 {offsets = [0, 256], sizes = [1, 128], strides = [1, 1]} : vector<1x384xf32> to vector<1x128xf32>
    %873 = arith.addf %872, %4 : vector<1x128xf32>
    %874 = arith.mulf %862, %873 : vector<1x128xf32>
    %875 = arith.addf %871, %874 : vector<1x128xf32>
    %876 = math.tanh %875 : vector<1x128xf32>
    %cst_321 = arith.constant 1.000000e+00 : f32
    %877 = vector.broadcast %cst_321 : f32 to vector<1x128xf32>
    %878 = arith.subf %877, %870 : vector<1x128xf32>
    %879 = arith.mulf %878, %876 : vector<1x128xf32>
    %880 = arith.mulf %870, %753 : vector<1x128xf32>
    %881 = arith.addf %879, %880 : vector<1x128xf32>
    %882 = arith.select %843, %881, %753 : vector<1x128xf32>
    %883 = arith.index_cast %845 : i32 to index
    %c0_322 = arith.constant 0 : index
    %884 = vector.load %arg20[%883, %c0_322] : memref<8x128xf32, #tpu.memory_space<vmem>>, vector<1x128xf32>
    tpu.vector_store %arg20[%883, %c0_322], %882 {strides = array<i32>} : memref<8x128xf32, #tpu.memory_space<vmem>>, vector<1x128xf32>,
    %c0_i32_323 = arith.constant 0 : i32
    %885 = arith.subi %c6_i32, %c0_i32_323 : i32
    %c0_i32_324 = arith.constant 0 : i32
    %886 = arith.cmpi sge, %885, %c0_i32_324 : i32
    %c8_i32_325 = arith.constant 8 : i32
    %887 = arith.cmpi slt, %885, %c8_i32_325 : i32
    %888 = arith.andi %886, %887 : i1
    %c0_i32_326 = arith.constant 0 : i32
    %c7_i32_327 = arith.constant 7 : i32
    %889 = arith.maxsi %c0_i32_326, %885 : i32
    %890 = arith.minsi %c7_i32_327, %889 : i32
    %891 = arith.index_cast %890 : i32 to index
    %c0_328 = arith.constant 0 : index
    %892 = vector.load %arg18[%891, %c0_328] : memref<8x384xf32, #tpu.memory_space<vmem>>, vector<1x384xf32>
    %893 = arith.truncf %794 : vector<1x128xf32> to vector<1x128xbf16>
    %c0_329 = arith.constant 0 : index
    %c0_330 = arith.constant 0 : index
    %894 = vector.load %arg3[%c0_329, %c0_330] : memref<128x384xbf16, #tpu.memory_space<vmem>>, vector<128x384xbf16>
    %cst_331 = arith.constant dense<0.000000e+00> : vector<1x384xf32>
    %895 = tpu.matmul %893, %894, %cst_331 {dimension_numbers = #tpu.dot_dimension_numbers<[1], [0], [0], [1], [0, 0, 1, 1], [], []>} : vector<1x128xbf16>, vector<128x384xbf16>, vector<1x384xf32> -> vector<1x384xf32>
    %896 = vector.extract_strided_slice %892 {offsets = [0, 0], sizes = [1, 128], strides = [1, 1]} : vector<1x384xf32> to vector<1x128xf32>
    %897 = vector.extract_strided_slice %895 {offsets = [0, 0], sizes = [1, 128], strides = [1, 1]} : vector<1x384xf32> to vector<1x128xf32>
    %898 = arith.addf %896, %897 : vector<1x128xf32>
    %899 = arith.negf %898 : vector<1x128xf32>
    %900 = math.exp %899 : vector<1x128xf32>
    %cst_332 = arith.constant 1.000000e+00 : f32
    %901 = vector.broadcast %cst_332 : f32 to vector<1x128xf32>
    %902 = arith.addf %901, %900 : vector<1x128xf32>
    %903 = arith.divf %901, %902 : vector<1x128xf32>
    %904 = vector.extract_strided_slice %892 {offsets = [0, 128], sizes = [1, 128], strides = [1, 1]} : vector<1x384xf32> to vector<1x128xf32>
    %905 = vector.extract_strided_slice %895 {offsets = [0, 128], sizes = [1, 128], strides = [1, 1]} : vector<1x384xf32> to vector<1x128xf32>
    %906 = arith.addf %904, %905 : vector<1x128xf32>
    %907 = arith.negf %906 : vector<1x128xf32>
    %908 = math.exp %907 : vector<1x128xf32>
    %cst_333 = arith.constant 1.000000e+00 : f32
    %909 = vector.broadcast %cst_333 : f32 to vector<1x128xf32>
    %910 = arith.addf %909, %908 : vector<1x128xf32>
    %911 = arith.divf %909, %910 : vector<1x128xf32>
    %912 = vector.extract_strided_slice %892 {offsets = [0, 256], sizes = [1, 128], strides = [1, 1]} : vector<1x384xf32> to vector<1x128xf32>
    %913 = vector.extract_strided_slice %895 {offsets = [0, 256], sizes = [1, 128], strides = [1, 1]} : vector<1x384xf32> to vector<1x128xf32>
    %914 = arith.addf %913, %3 : vector<1x128xf32>
    %915 = arith.mulf %903, %914 : vector<1x128xf32>
    %916 = arith.addf %912, %915 : vector<1x128xf32>
    %917 = math.tanh %916 : vector<1x128xf32>
    %cst_334 = arith.constant 1.000000e+00 : f32
    %918 = vector.broadcast %cst_334 : f32 to vector<1x128xf32>
    %919 = arith.subf %918, %911 : vector<1x128xf32>
    %920 = arith.mulf %919, %917 : vector<1x128xf32>
    %921 = arith.mulf %911, %794 : vector<1x128xf32>
    %922 = arith.addf %920, %921 : vector<1x128xf32>
    %923 = arith.select %888, %922, %794 : vector<1x128xf32>
    %924 = arith.index_cast %890 : i32 to index
    %c0_335 = arith.constant 0 : index
    %925 = vector.load %arg19[%924, %c0_335] : memref<8x128xf32, #tpu.memory_space<vmem>>, vector<1x128xf32>
    tpu.vector_store %arg19[%924, %c0_335], %923 {strides = array<i32>} : memref<8x128xf32, #tpu.memory_space<vmem>>, vector<1x128xf32>,
    %c7_i32_336 = arith.constant 7 : i32
    %c2_i32_337 = arith.constant 2 : i32
    %926 = arith.subi %c7_i32_336, %c2_i32_337 : i32
    %c0_i32_338 = arith.constant 0 : i32
    %927 = arith.cmpi sge, %926, %c0_i32_338 : i32
    %c8_i32_339 = arith.constant 8 : i32
    %928 = arith.cmpi slt, %926, %c8_i32_339 : i32
    %929 = arith.andi %927, %928 : i1
    %c0_i32_340 = arith.constant 0 : i32
    %c7_i32_341 = arith.constant 7 : i32
    %930 = arith.maxsi %c0_i32_340, %926 : i32
    %931 = arith.minsi %c7_i32_341, %930 : i32
    %932 = arith.index_cast %931 : i32 to index
    %c0_342 = arith.constant 0 : index
    %933 = vector.load %arg20[%932, %c0_342] : memref<8x128xf32, #tpu.memory_space<vmem>>, vector<1x128xf32>
    %934 = arith.truncf %933 : vector<1x128xf32> to vector<1x128xbf16>
    %c0_343 = arith.constant 0 : index
    %c0_344 = arith.constant 0 : index
    %935 = vector.load %arg10[%c0_343, %c0_344] : memref<128x384xbf16, #tpu.memory_space<vmem>>, vector<128x384xbf16>
    %cst_345 = arith.constant dense<0.000000e+00> : vector<1x384xf32>
    %936 = tpu.matmul %934, %935, %cst_345 {dimension_numbers = #tpu.dot_dimension_numbers<[1], [0], [0], [1], [0, 0, 1, 1], [], []>} : vector<1x128xbf16>, vector<128x384xbf16>, vector<1x384xf32> -> vector<1x384xf32>
    %937 = arith.addf %936, %2 : vector<1x384xf32>
    %938 = arith.truncf %839 : vector<1x128xf32> to vector<1x128xbf16>
    %c0_346 = arith.constant 0 : index
    %c0_347 = arith.constant 0 : index
    %939 = vector.load %arg11[%c0_346, %c0_347] : memref<128x384xbf16, #tpu.memory_space<vmem>>, vector<128x384xbf16>
    %cst_348 = arith.constant dense<0.000000e+00> : vector<1x384xf32>
    %940 = tpu.matmul %938, %939, %cst_348 {dimension_numbers = #tpu.dot_dimension_numbers<[1], [0], [0], [1], [0, 0, 1, 1], [], []>} : vector<1x128xbf16>, vector<128x384xbf16>, vector<1x384xf32> -> vector<1x384xf32>
    %941 = vector.extract_strided_slice %937 {offsets = [0, 0], sizes = [1, 128], strides = [1, 1]} : vector<1x384xf32> to vector<1x128xf32>
    %942 = vector.extract_strided_slice %940 {offsets = [0, 0], sizes = [1, 128], strides = [1, 1]} : vector<1x384xf32> to vector<1x128xf32>
    %943 = arith.addf %941, %942 : vector<1x128xf32>
    %944 = arith.negf %943 : vector<1x128xf32>
    %945 = math.exp %944 : vector<1x128xf32>
    %cst_349 = arith.constant 1.000000e+00 : f32
    %946 = vector.broadcast %cst_349 : f32 to vector<1x128xf32>
    %947 = arith.addf %946, %945 : vector<1x128xf32>
    %948 = arith.divf %946, %947 : vector<1x128xf32>
    %949 = vector.extract_strided_slice %937 {offsets = [0, 128], sizes = [1, 128], strides = [1, 1]} : vector<1x384xf32> to vector<1x128xf32>
    %950 = vector.extract_strided_slice %940 {offsets = [0, 128], sizes = [1, 128], strides = [1, 1]} : vector<1x384xf32> to vector<1x128xf32>
    %951 = arith.addf %949, %950 : vector<1x128xf32>
    %952 = arith.negf %951 : vector<1x128xf32>
    %953 = math.exp %952 : vector<1x128xf32>
    %cst_350 = arith.constant 1.000000e+00 : f32
    %954 = vector.broadcast %cst_350 : f32 to vector<1x128xf32>
    %955 = arith.addf %954, %953 : vector<1x128xf32>
    %956 = arith.divf %954, %955 : vector<1x128xf32>
    %957 = vector.extract_strided_slice %937 {offsets = [0, 256], sizes = [1, 128], strides = [1, 1]} : vector<1x384xf32> to vector<1x128xf32>
    %958 = vector.extract_strided_slice %940 {offsets = [0, 256], sizes = [1, 128], strides = [1, 1]} : vector<1x384xf32> to vector<1x128xf32>
    %959 = arith.addf %958, %5 : vector<1x128xf32>
    %960 = arith.mulf %948, %959 : vector<1x128xf32>
    %961 = arith.addf %957, %960 : vector<1x128xf32>
    %962 = math.tanh %961 : vector<1x128xf32>
    %cst_351 = arith.constant 1.000000e+00 : f32
    %963 = vector.broadcast %cst_351 : f32 to vector<1x128xf32>
    %964 = arith.subf %963, %956 : vector<1x128xf32>
    %965 = arith.mulf %964, %962 : vector<1x128xf32>
    %966 = arith.mulf %956, %839 : vector<1x128xf32>
    %967 = arith.addf %965, %966 : vector<1x128xf32>
    %968 = arith.select %929, %967, %839 : vector<1x128xf32>
    %c1_i32_352 = arith.constant 1 : i32
    %969 = arith.subi %c7_i32_336, %c1_i32_352 : i32
    %c0_i32_353 = arith.constant 0 : i32
    %970 = arith.cmpi sge, %969, %c0_i32_353 : i32
    %c8_i32_354 = arith.constant 8 : i32
    %971 = arith.cmpi slt, %969, %c8_i32_354 : i32
    %972 = arith.andi %970, %971 : i1
    %c0_i32_355 = arith.constant 0 : i32
    %c7_i32_356 = arith.constant 7 : i32
    %973 = arith.maxsi %c0_i32_355, %969 : i32
    %974 = arith.minsi %c7_i32_356, %973 : i32
    %975 = arith.index_cast %974 : i32 to index
    %c0_357 = arith.constant 0 : index
    %976 = vector.load %arg19[%975, %c0_357] : memref<8x128xf32, #tpu.memory_space<vmem>>, vector<1x128xf32>
    %977 = arith.truncf %976 : vector<1x128xf32> to vector<1x128xbf16>
    %c0_358 = arith.constant 0 : index
    %c0_359 = arith.constant 0 : index
    %978 = vector.load %arg6[%c0_358, %c0_359] : memref<128x384xbf16, #tpu.memory_space<vmem>>, vector<128x384xbf16>
    %cst_360 = arith.constant dense<0.000000e+00> : vector<1x384xf32>
    %979 = tpu.matmul %977, %978, %cst_360 {dimension_numbers = #tpu.dot_dimension_numbers<[1], [0], [0], [1], [0, 0, 1, 1], [], []>} : vector<1x128xbf16>, vector<128x384xbf16>, vector<1x384xf32> -> vector<1x384xf32>
    %980 = arith.addf %979, %1 : vector<1x384xf32>
    %981 = arith.truncf %882 : vector<1x128xf32> to vector<1x128xbf16>
    %c0_361 = arith.constant 0 : index
    %c0_362 = arith.constant 0 : index
    %982 = vector.load %arg7[%c0_361, %c0_362] : memref<128x384xbf16, #tpu.memory_space<vmem>>, vector<128x384xbf16>
    %cst_363 = arith.constant dense<0.000000e+00> : vector<1x384xf32>
    %983 = tpu.matmul %981, %982, %cst_363 {dimension_numbers = #tpu.dot_dimension_numbers<[1], [0], [0], [1], [0, 0, 1, 1], [], []>} : vector<1x128xbf16>, vector<128x384xbf16>, vector<1x384xf32> -> vector<1x384xf32>
    %984 = vector.extract_strided_slice %980 {offsets = [0, 0], sizes = [1, 128], strides = [1, 1]} : vector<1x384xf32> to vector<1x128xf32>
    %985 = vector.extract_strided_slice %983 {offsets = [0, 0], sizes = [1, 128], strides = [1, 1]} : vector<1x384xf32> to vector<1x128xf32>
    %986 = arith.addf %984, %985 : vector<1x128xf32>
    %987 = arith.negf %986 : vector<1x128xf32>
    %988 = math.exp %987 : vector<1x128xf32>
    %cst_364 = arith.constant 1.000000e+00 : f32
    %989 = vector.broadcast %cst_364 : f32 to vector<1x128xf32>
    %990 = arith.addf %989, %988 : vector<1x128xf32>
    %991 = arith.divf %989, %990 : vector<1x128xf32>
    %992 = vector.extract_strided_slice %980 {offsets = [0, 128], sizes = [1, 128], strides = [1, 1]} : vector<1x384xf32> to vector<1x128xf32>
    %993 = vector.extract_strided_slice %983 {offsets = [0, 128], sizes = [1, 128], strides = [1, 1]} : vector<1x384xf32> to vector<1x128xf32>
    %994 = arith.addf %992, %993 : vector<1x128xf32>
    %995 = arith.negf %994 : vector<1x128xf32>
    %996 = math.exp %995 : vector<1x128xf32>
    %cst_365 = arith.constant 1.000000e+00 : f32
    %997 = vector.broadcast %cst_365 : f32 to vector<1x128xf32>
    %998 = arith.addf %997, %996 : vector<1x128xf32>
    %999 = arith.divf %997, %998 : vector<1x128xf32>
    %1000 = vector.extract_strided_slice %980 {offsets = [0, 256], sizes = [1, 128], strides = [1, 1]} : vector<1x384xf32> to vector<1x128xf32>
    %1001 = vector.extract_strided_slice %983 {offsets = [0, 256], sizes = [1, 128], strides = [1, 1]} : vector<1x384xf32> to vector<1x128xf32>
    %1002 = arith.addf %1001, %4 : vector<1x128xf32>
    %1003 = arith.mulf %991, %1002 : vector<1x128xf32>
    %1004 = arith.addf %1000, %1003 : vector<1x128xf32>
    %1005 = math.tanh %1004 : vector<1x128xf32>
    %cst_366 = arith.constant 1.000000e+00 : f32
    %1006 = vector.broadcast %cst_366 : f32 to vector<1x128xf32>
    %1007 = arith.subf %1006, %999 : vector<1x128xf32>
    %1008 = arith.mulf %1007, %1005 : vector<1x128xf32>
    %1009 = arith.mulf %999, %882 : vector<1x128xf32>
    %1010 = arith.addf %1008, %1009 : vector<1x128xf32>
    %1011 = arith.select %972, %1010, %882 : vector<1x128xf32>
    %1012 = arith.index_cast %974 : i32 to index
    %c0_367 = arith.constant 0 : index
    %1013 = vector.load %arg20[%1012, %c0_367] : memref<8x128xf32, #tpu.memory_space<vmem>>, vector<1x128xf32>
    tpu.vector_store %arg20[%1012, %c0_367], %1011 {strides = array<i32>} : memref<8x128xf32, #tpu.memory_space<vmem>>, vector<1x128xf32>,
    %c0_i32_368 = arith.constant 0 : i32
    %1014 = arith.subi %c7_i32_336, %c0_i32_368 : i32
    %c0_i32_369 = arith.constant 0 : i32
    %1015 = arith.cmpi sge, %1014, %c0_i32_369 : i32
    %c8_i32_370 = arith.constant 8 : i32
    %1016 = arith.cmpi slt, %1014, %c8_i32_370 : i32
    %1017 = arith.andi %1015, %1016 : i1
    %c0_i32_371 = arith.constant 0 : i32
    %c7_i32_372 = arith.constant 7 : i32
    %1018 = arith.maxsi %c0_i32_371, %1014 : i32
    %1019 = arith.minsi %c7_i32_372, %1018 : i32
    %1020 = arith.index_cast %1019 : i32 to index
    %c0_373 = arith.constant 0 : index
    %1021 = vector.load %arg18[%1020, %c0_373] : memref<8x384xf32, #tpu.memory_space<vmem>>, vector<1x384xf32>
    %1022 = arith.truncf %923 : vector<1x128xf32> to vector<1x128xbf16>
    %c0_374 = arith.constant 0 : index
    %c0_375 = arith.constant 0 : index
    %1023 = vector.load %arg3[%c0_374, %c0_375] : memref<128x384xbf16, #tpu.memory_space<vmem>>, vector<128x384xbf16>
    %cst_376 = arith.constant dense<0.000000e+00> : vector<1x384xf32>
    %1024 = tpu.matmul %1022, %1023, %cst_376 {dimension_numbers = #tpu.dot_dimension_numbers<[1], [0], [0], [1], [0, 0, 1, 1], [], []>} : vector<1x128xbf16>, vector<128x384xbf16>, vector<1x384xf32> -> vector<1x384xf32>
    %1025 = vector.extract_strided_slice %1021 {offsets = [0, 0], sizes = [1, 128], strides = [1, 1]} : vector<1x384xf32> to vector<1x128xf32>
    %1026 = vector.extract_strided_slice %1024 {offsets = [0, 0], sizes = [1, 128], strides = [1, 1]} : vector<1x384xf32> to vector<1x128xf32>
    %1027 = arith.addf %1025, %1026 : vector<1x128xf32>
    %1028 = arith.negf %1027 : vector<1x128xf32>
    %1029 = math.exp %1028 : vector<1x128xf32>
    %cst_377 = arith.constant 1.000000e+00 : f32
    %1030 = vector.broadcast %cst_377 : f32 to vector<1x128xf32>
    %1031 = arith.addf %1030, %1029 : vector<1x128xf32>
    %1032 = arith.divf %1030, %1031 : vector<1x128xf32>
    %1033 = vector.extract_strided_slice %1021 {offsets = [0, 128], sizes = [1, 128], strides = [1, 1]} : vector<1x384xf32> to vector<1x128xf32>
    %1034 = vector.extract_strided_slice %1024 {offsets = [0, 128], sizes = [1, 128], strides = [1, 1]} : vector<1x384xf32> to vector<1x128xf32>
    %1035 = arith.addf %1033, %1034 : vector<1x128xf32>
    %1036 = arith.negf %1035 : vector<1x128xf32>
    %1037 = math.exp %1036 : vector<1x128xf32>
    %cst_378 = arith.constant 1.000000e+00 : f32
    %1038 = vector.broadcast %cst_378 : f32 to vector<1x128xf32>
    %1039 = arith.addf %1038, %1037 : vector<1x128xf32>
    %1040 = arith.divf %1038, %1039 : vector<1x128xf32>
    %1041 = vector.extract_strided_slice %1021 {offsets = [0, 256], sizes = [1, 128], strides = [1, 1]} : vector<1x384xf32> to vector<1x128xf32>
    %1042 = vector.extract_strided_slice %1024 {offsets = [0, 256], sizes = [1, 128], strides = [1, 1]} : vector<1x384xf32> to vector<1x128xf32>
    %1043 = arith.addf %1042, %3 : vector<1x128xf32>
    %1044 = arith.mulf %1032, %1043 : vector<1x128xf32>
    %1045 = arith.addf %1041, %1044 : vector<1x128xf32>
    %1046 = math.tanh %1045 : vector<1x128xf32>
    %cst_379 = arith.constant 1.000000e+00 : f32
    %1047 = vector.broadcast %cst_379 : f32 to vector<1x128xf32>
    %1048 = arith.subf %1047, %1040 : vector<1x128xf32>
    %1049 = arith.mulf %1048, %1046 : vector<1x128xf32>
    %1050 = arith.mulf %1040, %923 : vector<1x128xf32>
    %1051 = arith.addf %1049, %1050 : vector<1x128xf32>
    %1052 = arith.select %1017, %1051, %923 : vector<1x128xf32>
    %1053 = arith.index_cast %1019 : i32 to index
    %c0_380 = arith.constant 0 : index
    %1054 = vector.load %arg19[%1053, %c0_380] : memref<8x128xf32, #tpu.memory_space<vmem>>, vector<1x128xf32>
    tpu.vector_store %arg19[%1053, %c0_380], %1052 {strides = array<i32>} : memref<8x128xf32, #tpu.memory_space<vmem>>, vector<1x128xf32>,
    %c8_i32_381 = arith.constant 8 : i32
    %c2_i32_382 = arith.constant 2 : i32
    %1055 = arith.subi %c8_i32_381, %c2_i32_382 : i32
    %c0_i32_383 = arith.constant 0 : i32
    %1056 = arith.cmpi sge, %1055, %c0_i32_383 : i32
    %c8_i32_384 = arith.constant 8 : i32
    %1057 = arith.cmpi slt, %1055, %c8_i32_384 : i32
    %1058 = arith.andi %1056, %1057 : i1
    %c0_i32_385 = arith.constant 0 : i32
    %c7_i32_386 = arith.constant 7 : i32
    %1059 = arith.maxsi %c0_i32_385, %1055 : i32
    %1060 = arith.minsi %c7_i32_386, %1059 : i32
    %1061 = arith.index_cast %1060 : i32 to index
    %c0_387 = arith.constant 0 : index
    %1062 = vector.load %arg20[%1061, %c0_387] : memref<8x128xf32, #tpu.memory_space<vmem>>, vector<1x128xf32>
    %1063 = arith.truncf %1062 : vector<1x128xf32> to vector<1x128xbf16>
    %c0_388 = arith.constant 0 : index
    %c0_389 = arith.constant 0 : index
    %1064 = vector.load %arg10[%c0_388, %c0_389] : memref<128x384xbf16, #tpu.memory_space<vmem>>, vector<128x384xbf16>
    %cst_390 = arith.constant dense<0.000000e+00> : vector<1x384xf32>
    %1065 = tpu.matmul %1063, %1064, %cst_390 {dimension_numbers = #tpu.dot_dimension_numbers<[1], [0], [0], [1], [0, 0, 1, 1], [], []>} : vector<1x128xbf16>, vector<128x384xbf16>, vector<1x384xf32> -> vector<1x384xf32>
    %1066 = arith.addf %1065, %2 : vector<1x384xf32>
    %1067 = arith.truncf %968 : vector<1x128xf32> to vector<1x128xbf16>
    %c0_391 = arith.constant 0 : index
    %c0_392 = arith.constant 0 : index
    %1068 = vector.load %arg11[%c0_391, %c0_392] : memref<128x384xbf16, #tpu.memory_space<vmem>>, vector<128x384xbf16>
    %cst_393 = arith.constant dense<0.000000e+00> : vector<1x384xf32>
    %1069 = tpu.matmul %1067, %1068, %cst_393 {dimension_numbers = #tpu.dot_dimension_numbers<[1], [0], [0], [1], [0, 0, 1, 1], [], []>} : vector<1x128xbf16>, vector<128x384xbf16>, vector<1x384xf32> -> vector<1x384xf32>
    %1070 = vector.extract_strided_slice %1066 {offsets = [0, 0], sizes = [1, 128], strides = [1, 1]} : vector<1x384xf32> to vector<1x128xf32>
    %1071 = vector.extract_strided_slice %1069 {offsets = [0, 0], sizes = [1, 128], strides = [1, 1]} : vector<1x384xf32> to vector<1x128xf32>
    %1072 = arith.addf %1070, %1071 : vector<1x128xf32>
    %1073 = arith.negf %1072 : vector<1x128xf32>
    %1074 = math.exp %1073 : vector<1x128xf32>
    %cst_394 = arith.constant 1.000000e+00 : f32
    %1075 = vector.broadcast %cst_394 : f32 to vector<1x128xf32>
    %1076 = arith.addf %1075, %1074 : vector<1x128xf32>
    %1077 = arith.divf %1075, %1076 : vector<1x128xf32>
    %1078 = vector.extract_strided_slice %1066 {offsets = [0, 128], sizes = [1, 128], strides = [1, 1]} : vector<1x384xf32> to vector<1x128xf32>
    %1079 = vector.extract_strided_slice %1069 {offsets = [0, 128], sizes = [1, 128], strides = [1, 1]} : vector<1x384xf32> to vector<1x128xf32>
    %1080 = arith.addf %1078, %1079 : vector<1x128xf32>
    %1081 = arith.negf %1080 : vector<1x128xf32>
    %1082 = math.exp %1081 : vector<1x128xf32>
    %cst_395 = arith.constant 1.000000e+00 : f32
    %1083 = vector.broadcast %cst_395 : f32 to vector<1x128xf32>
    %1084 = arith.addf %1083, %1082 : vector<1x128xf32>
    %1085 = arith.divf %1083, %1084 : vector<1x128xf32>
    %1086 = vector.extract_strided_slice %1066 {offsets = [0, 256], sizes = [1, 128], strides = [1, 1]} : vector<1x384xf32> to vector<1x128xf32>
    %1087 = vector.extract_strided_slice %1069 {offsets = [0, 256], sizes = [1, 128], strides = [1, 1]} : vector<1x384xf32> to vector<1x128xf32>
    %1088 = arith.addf %1087, %5 : vector<1x128xf32>
    %1089 = arith.mulf %1077, %1088 : vector<1x128xf32>
    %1090 = arith.addf %1086, %1089 : vector<1x128xf32>
    %1091 = math.tanh %1090 : vector<1x128xf32>
    %cst_396 = arith.constant 1.000000e+00 : f32
    %1092 = vector.broadcast %cst_396 : f32 to vector<1x128xf32>
    %1093 = arith.subf %1092, %1085 : vector<1x128xf32>
    %1094 = arith.mulf %1093, %1091 : vector<1x128xf32>
    %1095 = arith.mulf %1085, %968 : vector<1x128xf32>
    %1096 = arith.addf %1094, %1095 : vector<1x128xf32>
    %1097 = arith.select %1058, %1096, %968 : vector<1x128xf32>
    %c1_i32_397 = arith.constant 1 : i32
    %1098 = arith.subi %c8_i32_381, %c1_i32_397 : i32
    %c0_i32_398 = arith.constant 0 : i32
    %1099 = arith.cmpi sge, %1098, %c0_i32_398 : i32
    %c8_i32_399 = arith.constant 8 : i32
    %1100 = arith.cmpi slt, %1098, %c8_i32_399 : i32
    %1101 = arith.andi %1099, %1100 : i1
    %c0_i32_400 = arith.constant 0 : i32
    %c7_i32_401 = arith.constant 7 : i32
    %1102 = arith.maxsi %c0_i32_400, %1098 : i32
    %1103 = arith.minsi %c7_i32_401, %1102 : i32
    %1104 = arith.index_cast %1103 : i32 to index
    %c0_402 = arith.constant 0 : index
    %1105 = vector.load %arg19[%1104, %c0_402] : memref<8x128xf32, #tpu.memory_space<vmem>>, vector<1x128xf32>
    %1106 = arith.truncf %1105 : vector<1x128xf32> to vector<1x128xbf16>
    %c0_403 = arith.constant 0 : index
    %c0_404 = arith.constant 0 : index
    %1107 = vector.load %arg6[%c0_403, %c0_404] : memref<128x384xbf16, #tpu.memory_space<vmem>>, vector<128x384xbf16>
    %cst_405 = arith.constant dense<0.000000e+00> : vector<1x384xf32>
    %1108 = tpu.matmul %1106, %1107, %cst_405 {dimension_numbers = #tpu.dot_dimension_numbers<[1], [0], [0], [1], [0, 0, 1, 1], [], []>} : vector<1x128xbf16>, vector<128x384xbf16>, vector<1x384xf32> -> vector<1x384xf32>
    %1109 = arith.addf %1108, %1 : vector<1x384xf32>
    %1110 = arith.truncf %1011 : vector<1x128xf32> to vector<1x128xbf16>
    %c0_406 = arith.constant 0 : index
    %c0_407 = arith.constant 0 : index
    %1111 = vector.load %arg7[%c0_406, %c0_407] : memref<128x384xbf16, #tpu.memory_space<vmem>>, vector<128x384xbf16>
    %cst_408 = arith.constant dense<0.000000e+00> : vector<1x384xf32>
    %1112 = tpu.matmul %1110, %1111, %cst_408 {dimension_numbers = #tpu.dot_dimension_numbers<[1], [0], [0], [1], [0, 0, 1, 1], [], []>} : vector<1x128xbf16>, vector<128x384xbf16>, vector<1x384xf32> -> vector<1x384xf32>
    %1113 = vector.extract_strided_slice %1109 {offsets = [0, 0], sizes = [1, 128], strides = [1, 1]} : vector<1x384xf32> to vector<1x128xf32>
    %1114 = vector.extract_strided_slice %1112 {offsets = [0, 0], sizes = [1, 128], strides = [1, 1]} : vector<1x384xf32> to vector<1x128xf32>
    %1115 = arith.addf %1113, %1114 : vector<1x128xf32>
    %1116 = arith.negf %1115 : vector<1x128xf32>
    %1117 = math.exp %1116 : vector<1x128xf32>
    %cst_409 = arith.constant 1.000000e+00 : f32
    %1118 = vector.broadcast %cst_409 : f32 to vector<1x128xf32>
    %1119 = arith.addf %1118, %1117 : vector<1x128xf32>
    %1120 = arith.divf %1118, %1119 : vector<1x128xf32>
    %1121 = vector.extract_strided_slice %1109 {offsets = [0, 128], sizes = [1, 128], strides = [1, 1]} : vector<1x384xf32> to vector<1x128xf32>
    %1122 = vector.extract_strided_slice %1112 {offsets = [0, 128], sizes = [1, 128], strides = [1, 1]} : vector<1x384xf32> to vector<1x128xf32>
    %1123 = arith.addf %1121, %1122 : vector<1x128xf32>
    %1124 = arith.negf %1123 : vector<1x128xf32>
    %1125 = math.exp %1124 : vector<1x128xf32>
    %cst_410 = arith.constant 1.000000e+00 : f32
    %1126 = vector.broadcast %cst_410 : f32 to vector<1x128xf32>
    %1127 = arith.addf %1126, %1125 : vector<1x128xf32>
    %1128 = arith.divf %1126, %1127 : vector<1x128xf32>
    %1129 = vector.extract_strided_slice %1109 {offsets = [0, 256], sizes = [1, 128], strides = [1, 1]} : vector<1x384xf32> to vector<1x128xf32>
    %1130 = vector.extract_strided_slice %1112 {offsets = [0, 256], sizes = [1, 128], strides = [1, 1]} : vector<1x384xf32> to vector<1x128xf32>
    %1131 = arith.addf %1130, %4 : vector<1x128xf32>
    %1132 = arith.mulf %1120, %1131 : vector<1x128xf32>
    %1133 = arith.addf %1129, %1132 : vector<1x128xf32>
    %1134 = math.tanh %1133 : vector<1x128xf32>
    %cst_411 = arith.constant 1.000000e+00 : f32
    %1135 = vector.broadcast %cst_411 : f32 to vector<1x128xf32>
    %1136 = arith.subf %1135, %1128 : vector<1x128xf32>
    %1137 = arith.mulf %1136, %1134 : vector<1x128xf32>
    %1138 = arith.mulf %1128, %1011 : vector<1x128xf32>
    %1139 = arith.addf %1137, %1138 : vector<1x128xf32>
    %1140 = arith.select %1101, %1139, %1011 : vector<1x128xf32>
    %1141 = arith.index_cast %1103 : i32 to index
    %c0_412 = arith.constant 0 : index
    %1142 = vector.load %arg20[%1141, %c0_412] : memref<8x128xf32, #tpu.memory_space<vmem>>, vector<1x128xf32>
    tpu.vector_store %arg20[%1141, %c0_412], %1140 {strides = array<i32>} : memref<8x128xf32, #tpu.memory_space<vmem>>, vector<1x128xf32>,
    %c0_i32_413 = arith.constant 0 : i32
    %1143 = arith.subi %c8_i32_381, %c0_i32_413 : i32
    %c0_i32_414 = arith.constant 0 : i32
    %1144 = arith.cmpi sge, %1143, %c0_i32_414 : i32
    %c8_i32_415 = arith.constant 8 : i32
    %1145 = arith.cmpi slt, %1143, %c8_i32_415 : i32
    %1146 = arith.andi %1144, %1145 : i1
    %c0_i32_416 = arith.constant 0 : i32
    %c7_i32_417 = arith.constant 7 : i32
    %1147 = arith.maxsi %c0_i32_416, %1143 : i32
    %1148 = arith.minsi %c7_i32_417, %1147 : i32
    %1149 = arith.index_cast %1148 : i32 to index
    %c0_418 = arith.constant 0 : index
    %1150 = vector.load %arg18[%1149, %c0_418] : memref<8x384xf32, #tpu.memory_space<vmem>>, vector<1x384xf32>
    %1151 = arith.truncf %1052 : vector<1x128xf32> to vector<1x128xbf16>
    %c0_419 = arith.constant 0 : index
    %c0_420 = arith.constant 0 : index
    %1152 = vector.load %arg3[%c0_419, %c0_420] : memref<128x384xbf16, #tpu.memory_space<vmem>>, vector<128x384xbf16>
    %cst_421 = arith.constant dense<0.000000e+00> : vector<1x384xf32>
    %1153 = tpu.matmul %1151, %1152, %cst_421 {dimension_numbers = #tpu.dot_dimension_numbers<[1], [0], [0], [1], [0, 0, 1, 1], [], []>} : vector<1x128xbf16>, vector<128x384xbf16>, vector<1x384xf32> -> vector<1x384xf32>
    %1154 = vector.extract_strided_slice %1150 {offsets = [0, 0], sizes = [1, 128], strides = [1, 1]} : vector<1x384xf32> to vector<1x128xf32>
    %1155 = vector.extract_strided_slice %1153 {offsets = [0, 0], sizes = [1, 128], strides = [1, 1]} : vector<1x384xf32> to vector<1x128xf32>
    %1156 = arith.addf %1154, %1155 : vector<1x128xf32>
    %1157 = arith.negf %1156 : vector<1x128xf32>
    %1158 = math.exp %1157 : vector<1x128xf32>
    %cst_422 = arith.constant 1.000000e+00 : f32
    %1159 = vector.broadcast %cst_422 : f32 to vector<1x128xf32>
    %1160 = arith.addf %1159, %1158 : vector<1x128xf32>
    %1161 = arith.divf %1159, %1160 : vector<1x128xf32>
    %1162 = vector.extract_strided_slice %1150 {offsets = [0, 128], sizes = [1, 128], strides = [1, 1]} : vector<1x384xf32> to vector<1x128xf32>
    %1163 = vector.extract_strided_slice %1153 {offsets = [0, 128], sizes = [1, 128], strides = [1, 1]} : vector<1x384xf32> to vector<1x128xf32>
    %1164 = arith.addf %1162, %1163 : vector<1x128xf32>
    %1165 = arith.negf %1164 : vector<1x128xf32>
    %1166 = math.exp %1165 : vector<1x128xf32>
    %cst_423 = arith.constant 1.000000e+00 : f32
    %1167 = vector.broadcast %cst_423 : f32 to vector<1x128xf32>
    %1168 = arith.addf %1167, %1166 : vector<1x128xf32>
    %1169 = arith.divf %1167, %1168 : vector<1x128xf32>
    %1170 = vector.extract_strided_slice %1150 {offsets = [0, 256], sizes = [1, 128], strides = [1, 1]} : vector<1x384xf32> to vector<1x128xf32>
    %1171 = vector.extract_strided_slice %1153 {offsets = [0, 256], sizes = [1, 128], strides = [1, 1]} : vector<1x384xf32> to vector<1x128xf32>
    %1172 = arith.addf %1171, %3 : vector<1x128xf32>
    %1173 = arith.mulf %1161, %1172 : vector<1x128xf32>
    %1174 = arith.addf %1170, %1173 : vector<1x128xf32>
    %1175 = math.tanh %1174 : vector<1x128xf32>
    %cst_424 = arith.constant 1.000000e+00 : f32
    %1176 = vector.broadcast %cst_424 : f32 to vector<1x128xf32>
    %1177 = arith.subf %1176, %1169 : vector<1x128xf32>
    %1178 = arith.mulf %1177, %1175 : vector<1x128xf32>
    %1179 = arith.mulf %1169, %1052 : vector<1x128xf32>
    %1180 = arith.addf %1178, %1179 : vector<1x128xf32>
    %1181 = arith.select %1146, %1180, %1052 : vector<1x128xf32>
    %1182 = arith.index_cast %1148 : i32 to index
    %c0_425 = arith.constant 0 : index
    %1183 = vector.load %arg19[%1182, %c0_425] : memref<8x128xf32, #tpu.memory_space<vmem>>, vector<1x128xf32>
    tpu.vector_store %arg19[%1182, %c0_425], %1181 {strides = array<i32>} : memref<8x128xf32, #tpu.memory_space<vmem>>, vector<1x128xf32>,
    %c9_i32 = arith.constant 9 : i32
    %c2_i32_426 = arith.constant 2 : i32
    %1184 = arith.subi %c9_i32, %c2_i32_426 : i32
    %c0_i32_427 = arith.constant 0 : i32
    %1185 = arith.cmpi sge, %1184, %c0_i32_427 : i32
    %c8_i32_428 = arith.constant 8 : i32
    %1186 = arith.cmpi slt, %1184, %c8_i32_428 : i32
    %1187 = arith.andi %1185, %1186 : i1
    %c0_i32_429 = arith.constant 0 : i32
    %c7_i32_430 = arith.constant 7 : i32
    %1188 = arith.maxsi %c0_i32_429, %1184 : i32
    %1189 = arith.minsi %c7_i32_430, %1188 : i32
    %1190 = arith.index_cast %1189 : i32 to index
    %c0_431 = arith.constant 0 : index
    %1191 = vector.load %arg20[%1190, %c0_431] : memref<8x128xf32, #tpu.memory_space<vmem>>, vector<1x128xf32>
    %1192 = arith.truncf %1191 : vector<1x128xf32> to vector<1x128xbf16>
    %c0_432 = arith.constant 0 : index
    %c0_433 = arith.constant 0 : index
    %1193 = vector.load %arg10[%c0_432, %c0_433] : memref<128x384xbf16, #tpu.memory_space<vmem>>, vector<128x384xbf16>
    %cst_434 = arith.constant dense<0.000000e+00> : vector<1x384xf32>
    %1194 = tpu.matmul %1192, %1193, %cst_434 {dimension_numbers = #tpu.dot_dimension_numbers<[1], [0], [0], [1], [0, 0, 1, 1], [], []>} : vector<1x128xbf16>, vector<128x384xbf16>, vector<1x384xf32> -> vector<1x384xf32>
    %1195 = arith.addf %1194, %2 : vector<1x384xf32>
    %1196 = arith.truncf %1097 : vector<1x128xf32> to vector<1x128xbf16>
    %c0_435 = arith.constant 0 : index
    %c0_436 = arith.constant 0 : index
    %1197 = vector.load %arg11[%c0_435, %c0_436] : memref<128x384xbf16, #tpu.memory_space<vmem>>, vector<128x384xbf16>
    %cst_437 = arith.constant dense<0.000000e+00> : vector<1x384xf32>
    %1198 = tpu.matmul %1196, %1197, %cst_437 {dimension_numbers = #tpu.dot_dimension_numbers<[1], [0], [0], [1], [0, 0, 1, 1], [], []>} : vector<1x128xbf16>, vector<128x384xbf16>, vector<1x384xf32> -> vector<1x384xf32>
    %1199 = vector.extract_strided_slice %1195 {offsets = [0, 0], sizes = [1, 128], strides = [1, 1]} : vector<1x384xf32> to vector<1x128xf32>
    %1200 = vector.extract_strided_slice %1198 {offsets = [0, 0], sizes = [1, 128], strides = [1, 1]} : vector<1x384xf32> to vector<1x128xf32>
    %1201 = arith.addf %1199, %1200 : vector<1x128xf32>
    %1202 = arith.negf %1201 : vector<1x128xf32>
    %1203 = math.exp %1202 : vector<1x128xf32>
    %cst_438 = arith.constant 1.000000e+00 : f32
    %1204 = vector.broadcast %cst_438 : f32 to vector<1x128xf32>
    %1205 = arith.addf %1204, %1203 : vector<1x128xf32>
    %1206 = arith.divf %1204, %1205 : vector<1x128xf32>
    %1207 = vector.extract_strided_slice %1195 {offsets = [0, 128], sizes = [1, 128], strides = [1, 1]} : vector<1x384xf32> to vector<1x128xf32>
    %1208 = vector.extract_strided_slice %1198 {offsets = [0, 128], sizes = [1, 128], strides = [1, 1]} : vector<1x384xf32> to vector<1x128xf32>
    %1209 = arith.addf %1207, %1208 : vector<1x128xf32>
    %1210 = arith.negf %1209 : vector<1x128xf32>
    %1211 = math.exp %1210 : vector<1x128xf32>
    %cst_439 = arith.constant 1.000000e+00 : f32
    %1212 = vector.broadcast %cst_439 : f32 to vector<1x128xf32>
    %1213 = arith.addf %1212, %1211 : vector<1x128xf32>
    %1214 = arith.divf %1212, %1213 : vector<1x128xf32>
    %1215 = vector.extract_strided_slice %1195 {offsets = [0, 256], sizes = [1, 128], strides = [1, 1]} : vector<1x384xf32> to vector<1x128xf32>
    %1216 = vector.extract_strided_slice %1198 {offsets = [0, 256], sizes = [1, 128], strides = [1, 1]} : vector<1x384xf32> to vector<1x128xf32>
    %1217 = arith.addf %1216, %5 : vector<1x128xf32>
    %1218 = arith.mulf %1206, %1217 : vector<1x128xf32>
    %1219 = arith.addf %1215, %1218 : vector<1x128xf32>
    %1220 = math.tanh %1219 : vector<1x128xf32>
    %cst_440 = arith.constant 1.000000e+00 : f32
    %1221 = vector.broadcast %cst_440 : f32 to vector<1x128xf32>
    %1222 = arith.subf %1221, %1214 : vector<1x128xf32>
    %1223 = arith.mulf %1222, %1220 : vector<1x128xf32>
    %1224 = arith.mulf %1214, %1097 : vector<1x128xf32>
    %1225 = arith.addf %1223, %1224 : vector<1x128xf32>
    %1226 = arith.select %1187, %1225, %1097 : vector<1x128xf32>
    %c1_i32_441 = arith.constant 1 : i32
    %1227 = arith.subi %c9_i32, %c1_i32_441 : i32
    %c0_i32_442 = arith.constant 0 : i32
    %1228 = arith.cmpi sge, %1227, %c0_i32_442 : i32
    %c8_i32_443 = arith.constant 8 : i32
    %1229 = arith.cmpi slt, %1227, %c8_i32_443 : i32
    %1230 = arith.andi %1228, %1229 : i1
    %c0_i32_444 = arith.constant 0 : i32
    %c7_i32_445 = arith.constant 7 : i32
    %1231 = arith.maxsi %c0_i32_444, %1227 : i32
    %1232 = arith.minsi %c7_i32_445, %1231 : i32
    %1233 = arith.index_cast %1232 : i32 to index
    %c0_446 = arith.constant 0 : index
    %1234 = vector.load %arg19[%1233, %c0_446] : memref<8x128xf32, #tpu.memory_space<vmem>>, vector<1x128xf32>
    %1235 = arith.truncf %1234 : vector<1x128xf32> to vector<1x128xbf16>
    %c0_447 = arith.constant 0 : index
    %c0_448 = arith.constant 0 : index
    %1236 = vector.load %arg6[%c0_447, %c0_448] : memref<128x384xbf16, #tpu.memory_space<vmem>>, vector<128x384xbf16>
    %cst_449 = arith.constant dense<0.000000e+00> : vector<1x384xf32>
    %1237 = tpu.matmul %1235, %1236, %cst_449 {dimension_numbers = #tpu.dot_dimension_numbers<[1], [0], [0], [1], [0, 0, 1, 1], [], []>} : vector<1x128xbf16>, vector<128x384xbf16>, vector<1x384xf32> -> vector<1x384xf32>
    %1238 = arith.addf %1237, %1 : vector<1x384xf32>
    %1239 = arith.truncf %1140 : vector<1x128xf32> to vector<1x128xbf16>
    %c0_450 = arith.constant 0 : index
    %c0_451 = arith.constant 0 : index
    %1240 = vector.load %arg7[%c0_450, %c0_451] : memref<128x384xbf16, #tpu.memory_space<vmem>>, vector<128x384xbf16>
    %cst_452 = arith.constant dense<0.000000e+00> : vector<1x384xf32>
    %1241 = tpu.matmul %1239, %1240, %cst_452 {dimension_numbers = #tpu.dot_dimension_numbers<[1], [0], [0], [1], [0, 0, 1, 1], [], []>} : vector<1x128xbf16>, vector<128x384xbf16>, vector<1x384xf32> -> vector<1x384xf32>
    %1242 = vector.extract_strided_slice %1238 {offsets = [0, 0], sizes = [1, 128], strides = [1, 1]} : vector<1x384xf32> to vector<1x128xf32>
    %1243 = vector.extract_strided_slice %1241 {offsets = [0, 0], sizes = [1, 128], strides = [1, 1]} : vector<1x384xf32> to vector<1x128xf32>
    %1244 = arith.addf %1242, %1243 : vector<1x128xf32>
    %1245 = arith.negf %1244 : vector<1x128xf32>
    %1246 = math.exp %1245 : vector<1x128xf32>
    %cst_453 = arith.constant 1.000000e+00 : f32
    %1247 = vector.broadcast %cst_453 : f32 to vector<1x128xf32>
    %1248 = arith.addf %1247, %1246 : vector<1x128xf32>
    %1249 = arith.divf %1247, %1248 : vector<1x128xf32>
    %1250 = vector.extract_strided_slice %1238 {offsets = [0, 128], sizes = [1, 128], strides = [1, 1]} : vector<1x384xf32> to vector<1x128xf32>
    %1251 = vector.extract_strided_slice %1241 {offsets = [0, 128], sizes = [1, 128], strides = [1, 1]} : vector<1x384xf32> to vector<1x128xf32>
    %1252 = arith.addf %1250, %1251 : vector<1x128xf32>
    %1253 = arith.negf %1252 : vector<1x128xf32>
    %1254 = math.exp %1253 : vector<1x128xf32>
    %cst_454 = arith.constant 1.000000e+00 : f32
    %1255 = vector.broadcast %cst_454 : f32 to vector<1x128xf32>
    %1256 = arith.addf %1255, %1254 : vector<1x128xf32>
    %1257 = arith.divf %1255, %1256 : vector<1x128xf32>
    %1258 = vector.extract_strided_slice %1238 {offsets = [0, 256], sizes = [1, 128], strides = [1, 1]} : vector<1x384xf32> to vector<1x128xf32>
    %1259 = vector.extract_strided_slice %1241 {offsets = [0, 256], sizes = [1, 128], strides = [1, 1]} : vector<1x384xf32> to vector<1x128xf32>
    %1260 = arith.addf %1259, %4 : vector<1x128xf32>
    %1261 = arith.mulf %1249, %1260 : vector<1x128xf32>
    %1262 = arith.addf %1258, %1261 : vector<1x128xf32>
    %1263 = math.tanh %1262 : vector<1x128xf32>
    %cst_455 = arith.constant 1.000000e+00 : f32
    %1264 = vector.broadcast %cst_455 : f32 to vector<1x128xf32>
    %1265 = arith.subf %1264, %1257 : vector<1x128xf32>
    %1266 = arith.mulf %1265, %1263 : vector<1x128xf32>
    %1267 = arith.mulf %1257, %1140 : vector<1x128xf32>
    %1268 = arith.addf %1266, %1267 : vector<1x128xf32>
    %1269 = arith.select %1230, %1268, %1140 : vector<1x128xf32>
    %1270 = arith.index_cast %1232 : i32 to index
    %c0_456 = arith.constant 0 : index
    %1271 = vector.load %arg20[%1270, %c0_456] : memref<8x128xf32, #tpu.memory_space<vmem>>, vector<1x128xf32>
    tpu.vector_store %arg20[%1270, %c0_456], %1269 {strides = array<i32>} : memref<8x128xf32, #tpu.memory_space<vmem>>, vector<1x128xf32>,
    %c0_i32_457 = arith.constant 0 : i32
    %1272 = arith.subi %c9_i32, %c0_i32_457 : i32
    %c0_i32_458 = arith.constant 0 : i32
    %1273 = arith.cmpi sge, %1272, %c0_i32_458 : i32
    %c8_i32_459 = arith.constant 8 : i32
    %1274 = arith.cmpi slt, %1272, %c8_i32_459 : i32
    %1275 = arith.andi %1273, %1274 : i1
    %c0_i32_460 = arith.constant 0 : i32
    %c7_i32_461 = arith.constant 7 : i32
    %1276 = arith.maxsi %c0_i32_460, %1272 : i32
    %1277 = arith.minsi %c7_i32_461, %1276 : i32
    %1278 = arith.index_cast %1277 : i32 to index
    %c0_462 = arith.constant 0 : index
    %1279 = vector.load %arg18[%1278, %c0_462] : memref<8x384xf32, #tpu.memory_space<vmem>>, vector<1x384xf32>
    %1280 = arith.truncf %1181 : vector<1x128xf32> to vector<1x128xbf16>
    %c0_463 = arith.constant 0 : index
    %c0_464 = arith.constant 0 : index
    %1281 = vector.load %arg3[%c0_463, %c0_464] : memref<128x384xbf16, #tpu.memory_space<vmem>>, vector<128x384xbf16>
    %cst_465 = arith.constant dense<0.000000e+00> : vector<1x384xf32>
    %1282 = tpu.matmul %1280, %1281, %cst_465 {dimension_numbers = #tpu.dot_dimension_numbers<[1], [0], [0], [1], [0, 0, 1, 1], [], []>} : vector<1x128xbf16>, vector<128x384xbf16>, vector<1x384xf32> -> vector<1x384xf32>
    %1283 = vector.extract_strided_slice %1279 {offsets = [0, 0], sizes = [1, 128], strides = [1, 1]} : vector<1x384xf32> to vector<1x128xf32>
    %1284 = vector.extract_strided_slice %1282 {offsets = [0, 0], sizes = [1, 128], strides = [1, 1]} : vector<1x384xf32> to vector<1x128xf32>
    %1285 = arith.addf %1283, %1284 : vector<1x128xf32>
    %1286 = arith.negf %1285 : vector<1x128xf32>
    %1287 = math.exp %1286 : vector<1x128xf32>
    %cst_466 = arith.constant 1.000000e+00 : f32
    %1288 = vector.broadcast %cst_466 : f32 to vector<1x128xf32>
    %1289 = arith.addf %1288, %1287 : vector<1x128xf32>
    %1290 = arith.divf %1288, %1289 : vector<1x128xf32>
    %1291 = vector.extract_strided_slice %1279 {offsets = [0, 128], sizes = [1, 128], strides = [1, 1]} : vector<1x384xf32> to vector<1x128xf32>
    %1292 = vector.extract_strided_slice %1282 {offsets = [0, 128], sizes = [1, 128], strides = [1, 1]} : vector<1x384xf32> to vector<1x128xf32>
    %1293 = arith.addf %1291, %1292 : vector<1x128xf32>
    %1294 = arith.negf %1293 : vector<1x128xf32>
    %1295 = math.exp %1294 : vector<1x128xf32>
    %cst_467 = arith.constant 1.000000e+00 : f32
    %1296 = vector.broadcast %cst_467 : f32 to vector<1x128xf32>
    %1297 = arith.addf %1296, %1295 : vector<1x128xf32>
    %1298 = arith.divf %1296, %1297 : vector<1x128xf32>
    %1299 = vector.extract_strided_slice %1279 {offsets = [0, 256], sizes = [1, 128], strides = [1, 1]} : vector<1x384xf32> to vector<1x128xf32>
    %1300 = vector.extract_strided_slice %1282 {offsets = [0, 256], sizes = [1, 128], strides = [1, 1]} : vector<1x384xf32> to vector<1x128xf32>
    %1301 = arith.addf %1300, %3 : vector<1x128xf32>
    %1302 = arith.mulf %1290, %1301 : vector<1x128xf32>
    %1303 = arith.addf %1299, %1302 : vector<1x128xf32>
    %1304 = math.tanh %1303 : vector<1x128xf32>
    %cst_468 = arith.constant 1.000000e+00 : f32
    %1305 = vector.broadcast %cst_468 : f32 to vector<1x128xf32>
    %1306 = arith.subf %1305, %1298 : vector<1x128xf32>
    %1307 = arith.mulf %1306, %1304 : vector<1x128xf32>
    %1308 = arith.mulf %1298, %1181 : vector<1x128xf32>
    %1309 = arith.addf %1307, %1308 : vector<1x128xf32>
    %1310 = arith.select %1275, %1309, %1181 : vector<1x128xf32>
    %1311 = arith.index_cast %1277 : i32 to index
    %c0_469 = arith.constant 0 : index
    %1312 = vector.load %arg19[%1311, %c0_469] : memref<8x128xf32, #tpu.memory_space<vmem>>, vector<1x128xf32>
    tpu.vector_store %arg19[%1311, %c0_469], %1310 {strides = array<i32>} : memref<8x128xf32, #tpu.memory_space<vmem>>, vector<1x128xf32>,
    %c10_i32 = arith.constant 10 : i32
    %c0_470 = arith.constant 0 : index
    %c0_471 = arith.constant 0 : index
    %c0_472 = arith.constant 0 : index
    %1313 = vector.load %arg17[%c0_470, %c0_471, %c0_472] : memref<3x1x128xf32, #tpu.memory_space<vmem>>, vector<1x1x128xf32>
    %1314 = vector.shape_cast %1313 : vector<1x1x128xf32> to vector<1x128xf32>
    %1315 = vector.shape_cast %1310 : vector<1x128xf32> to vector<1x1x128xf32>
    tpu.vector_store %arg17[%c0_470, %c0_471, %c0_472], %1315 {strides = array<i32>} : memref<3x1x128xf32, #tpu.memory_space<vmem>>, vector<1x1x128xf32>,
    %c1_473 = arith.constant 1 : index
    %c0_474 = arith.constant 0 : index
    %c0_475 = arith.constant 0 : index
    %1316 = vector.load %arg17[%c1_473, %c0_474, %c0_475] : memref<3x1x128xf32, #tpu.memory_space<vmem>>, vector<1x1x128xf32>
    %1317 = vector.shape_cast %1316 : vector<1x1x128xf32> to vector<1x128xf32>
    %1318 = vector.shape_cast %1269 : vector<1x128xf32> to vector<1x1x128xf32>
    tpu.vector_store %arg17[%c1_473, %c0_474, %c0_475], %1318 {strides = array<i32>} : memref<3x1x128xf32, #tpu.memory_space<vmem>>, vector<1x1x128xf32>,
    %c2_476 = arith.constant 2 : index
    %c0_477 = arith.constant 0 : index
    %c0_478 = arith.constant 0 : index
    %1319 = vector.load %arg17[%c2_476, %c0_477, %c0_478] : memref<3x1x128xf32, #tpu.memory_space<vmem>>, vector<1x1x128xf32>
    %1320 = vector.shape_cast %1319 : vector<1x1x128xf32> to vector<1x128xf32>
    %1321 = vector.shape_cast %1226 : vector<1x128xf32> to vector<1x1x128xf32>
    tpu.vector_store %arg17[%c2_476, %c0_477, %c0_478], %1321 {strides = array<i32>} : memref<3x1x128xf32, #tpu.memory_space<vmem>>, vector<1x1x128xf32>,
    %1322 = arith.truncf %1226 : vector<1x128xf32> to vector<1x128xbf16>
    %c0_479 = arith.constant 0 : index
    %c0_480 = arith.constant 0 : index
    %1323 = vector.load %arg14[%c0_479, %c0_480] : memref<128x256xbf16, #tpu.memory_space<vmem>>, vector<128x256xbf16>
    %cst_481 = arith.constant dense<0.000000e+00> : vector<1x256xf32>
    %1324 = tpu.matmul %1322, %1323, %cst_481 {dimension_numbers = #tpu.dot_dimension_numbers<[1], [0], [0], [1], [0, 0, 1, 1], [], []>} : vector<1x128xbf16>, vector<128x256xbf16>, vector<1x256xf32> -> vector<1x256xf32>
    %c0_482 = arith.constant 0 : index
    %c0_483 = arith.constant 0 : index
    %1325 = vector.load %arg15[%c0_482, %c0_483] : memref<1x256xf32, #tpu.memory_space<vmem>>, vector<1x256xf32>
    %1326 = arith.addf %1324, %1325 : vector<1x256xf32>
    %c0_484 = arith.constant 0 : index
    %c0_485 = arith.constant 0 : index
    %1327 = vector.load %arg16[%c0_484, %c0_485] : memref<1x256xf32, #tpu.memory_space<vmem>>, vector<1x256xf32>
    tpu.vector_store %arg16[%c0_484, %c0_485], %1326 {strides = array<i32>} : memref<1x256xf32, #tpu.memory_space<vmem>>, vector<1x256xf32>,
    return
  }
}

</mosaic_0001>

<bundles_post_ra>
// kernel: tpu_custom_call.1
= control target key start
LH: loop header
LB: loop body
LE: loop exit
PB: predicated region body
PF: predicated region fallthrough
CT: control target
= control target key end

     0   :  { %s16357_s0 = inlined_call_operand.hbm [shape: f32[8,256], index: 0, kind: input, shape index: {}]   ;;  %s16358_s1 = inlined_call_operand.hbm [shape: f32[3,1,128], index: 1, kind: input, shape index: {}]   ;;  %s16359_s2 = inlined_call_operand.hbm [shape: bf16[256,384], index: 2, kind: input, shape index: {}]   ;;  %s16360_s3 = inlined_call_operand.hbm [shape: bf16[128,384], index: 3, kind: input, shape index: {}]   ;;  %s16361_s4 = inlined_call_operand.vmem [shape: f32[1,384], index: 4, kind: input, shape index: {}]   ;;  %s16362_s5 = inlined_call_operand.hbm [shape: f32[1,128], index: 5, kind: input, shape index: {}]   ;;  %s16363_s6 = inlined_call_operand.hbm [shape: bf16[128,384], index: 6, kind: input, shape index: {}]   ;;  %s16364_s7 = inlined_call_operand.hbm [shape: bf16[128,384], index: 7, kind: input, shape index: {}]   ;;  %s16365_s8 = inlined_call_operand.vmem [shape: f32[1,384], index: 8, kind: input, shape index: {}]   ;;  %s16366_s9 = inlined_call_operand.vmem [shape: f32[1,128], index: 9, kind: input, shape index: {}]   ;;  %s16367_s10 = inlined_call_operand.hbm [shape: bf16[128,384], index: 10, kind: input, shape index: {}]   ;;  %s16368_s11 = inlined_call_operand.hbm [shape: bf16[128,384], index: 11, kind: input, shape index: {}]   ;;  %s16369_s12 = inlined_call_operand.vmem [shape: f32[1,384], index: 12, kind: input, shape index: {}]   ;;  %s16370_s13 = inlined_call_operand.vmem [shape: f32[1,128], index: 13, kind: input, shape index: {}]   ;;  %s16371_s14 = inlined_call_operand.hbm [shape: bf16[128,256], index: 14, kind: input, shape index: {}]   ;;  %s16372_s15 = inlined_call_operand.vmem [shape: f32[1,256], index: 15, kind: input, shape index: {}]   ;;  %s16373_s16 = inlined_call_operand.hbm [shape: f32[1,256], index: 16, kind: output, shape index: {0}]   ;;  %s16374_s17 = inlined_call_operand.hbm [shape: f32[3,1,128], index: 17, kind: output, shape index: {1}]  }
   0x1   :  { %16375 = sst [smem:[#allocation33_spill]] %s16357_s0 }
   0x2   :  { %16376 = sst [smem:[#allocation34_spill]] %s16358_s1 }
   0x3   :  { %23 = vsyncpa [#allocation6], 0 }
   0x4   :  { %24 = vsyncpa [#allocation9], 0 }
   0x5   :  { %25 = vsyncpa [#allocation12], 0 }
   0x6   :  { %26 = vsyncpa [#allocation15], 0 }
   0x7   :  { %27 = vsyncpa [#allocation18], 0 }
   0x8   :  { %28 = vsyncpa [#allocation21], 0 }
   0x9   :  { %29 = vsyncpa [#allocation7], 0 }
   0xa   :  { %30 = vsyncpa [#allocation24], 0  ;;  %s15268_s24 = smov [#allocation8]  }
   0xb   :  { %s46_s25 = sshll.u32 %s15268_s24, 4  ;;  %s47_s25 = int_to_ptr.vmem [resolvable:$true] %s46_s25 }
   0xc   :  { %s15020_s26 = scalar_lea.vmem %s47_s25, 48  ;;  %s15024_s27 = scalar_lea.vmem %s47_s25, 64 }
   0xd   :  { %p15021_p0 = scmp.ne.s32.totalorder %s47_s25, %s15020_s26  ;;  %p15025_p1 = scmp.lt.s32.totalorder %s47_s25, %s47_s25 }
   0xe   :  { %p15026_p2 = scmp.lt.s32.totalorder %s15024_s27, %s15020_s26 }
  0x10   :  { %p15027_p3 = por %p15026_p2, %p15025_p1 }
  0x12   :  { %p15028_p4 = pnand %p15027_p3, %p15021_p0 }
  0x14   :  { %15031 = shalt.err (!%p15028_p4)
}
  0x15   :  { %s15269_s28 = smov 16   ;;  %s15270_s29 = smov 1  }
  0x16   :  { %s16377_s18 = sld [smem:[#allocation34_spill]]  ;;  %s15271_s19 = smov [#allocation11]  }
  0x17   :  { %s70_s1 = sshll.u32 %s15271_s19, 4  ;;  %s15272_s20 = smov [#allocation14]   ;;  %s71_s1 = int_to_ptr.vmem [resolvable:$true] %s70_s1 }
  0x18   :  { %s94_s21 = sshll.u32 %s15272_s20, 4  ;;  %s15040_s22 = scalar_lea.vmem %s71_s1, 3072  ;;  %s95_s21 = int_to_ptr.vmem [resolvable:$true] %s94_s21 }
  0x19   :  { %p15041_p5 = scmp.ne.s32.totalorder %s71_s1, %s15040_s22  ;;  %p15045_p6 = scmp.lt.s32.totalorder %s71_s1, %s71_s1 }
  0x1a   :  { %p15046_p7 = scmp.lt.s32.totalorder %s15040_s22, %s15040_s22 }
  0x1c   :  { %52 = dma.hbm_to_vmem [thread:$0]  %s16377_s18, 48, %s47_s25, [#allocation9], %s15269_s28, %s15269_s28, %s15270_s29  }
  0x1d   :  { %p15047_p8 = por %p15046_p7, %p15045_p6 }
  0x1f   :  { %p15048_p9 = pnand %p15047_p8, %p15041_p5 }
  0x21   :  { %15051 = shalt.err (!%p15048_p9)
}
  0x22   :  { %s15273_s23 = smov 192   ;;  %s15274_s24 = smov 12  }
  0x23   :  { %76 = dma.hbm_to_vmem [thread:$0]  %s16360_s3, 3072, %s71_s1, [#allocation12], %s15273_s23, %s15273_s23, %s15274_s24  }
  0x24   :  { %s15060_s25 = scalar_lea.vmem %s95_s21, 3072  ;;  %p15065_p11 = scmp.lt.s32.totalorder %s95_s21, %s95_s21 }
  0x25   :  { %p15061_p10 = scmp.ne.s32.totalorder %s95_s21, %s15060_s25  ;;  %p15066_p12 = scmp.lt.s32.totalorder %s15060_s25, %s15060_s25 }
  0x27   :  { %p15067_p13 = por %p15066_p12, %p15065_p11 }
  0x29   :  { %p15068_p0 = pnand %p15067_p13, %p15061_p10 }
  0x2b   :  { %15071 = shalt.err (!%p15068_p0)
}
  0x2c   :  { %100 = dma.hbm_to_vmem [thread:$0]  %s16363_s6, 3072, %s95_s21, [#allocation15], %s15273_s23, %s15273_s23, %s15274_s24  }
  0x2d   :  { %s15275_s18 = smov [#allocation17]   ;;  %s15276_s20 = smov [#allocation5]  }
  0x2e   :  { %s122_s19 = sshll.u32 %s15275_s18, 4  ;;  %s37_s3 = sshll.u32 %s15276_s20, 4  ;;  %s123_s19 = int_to_ptr.vmem [resolvable:$true] %s122_s19  ;;  %s38_s3 = int_to_ptr.vmem [resolvable:$true] %s37_s3 }
  0x2f   :  { %s15080_s1 = scalar_lea.vmem %s123_s19, 3072  ;;  %p15085_p2 = scmp.lt.s32.totalorder %s123_s19, %s123_s19 }
  0x30   :  { %p15081_p1 = scmp.ne.s32.totalorder %s123_s19, %s15080_s1  ;;  %p15086_p3 = scmp.lt.s32.totalorder %s15080_s1, %s15080_s1 }
  0x32   :  { %p15087_p4 = por %p15086_p3, %p15085_p2 }
  0x34   :  { %p15088_p5 = pnand %p15087_p4, %p15081_p1 }
  0x36   :  { %15091 = shalt.err (!%p15088_p5)
}
  0x37   :  { %128 = dma.hbm_to_vmem [thread:$0]  %s16367_s10, 3072, %s123_s19, [#allocation18], %s15273_s23, %s15273_s23, %s15274_s24  }
  0x38   :  { %s15100_s6 = scalar_lea.vmem %s38_s3, 256  ;;  %p15105_p7 = scmp.lt.s32.totalorder %s38_s3, %s38_s3 }
  0x39   :  { %p15101_p6 = scmp.ne.s32.totalorder %s38_s3, %s15100_s6  ;;  %p15106_p8 = scmp.lt.s32.totalorder %s15100_s6, %s15100_s6 }
  0x3b   :  { %p15107_p9 = por %p15106_p8, %p15105_p7 }
  0x3d   :  { %p15108_p10 = pnand %p15107_p9, %p15101_p6 }
  0x3f   :  { %15111 = shalt.err (!%p15108_p10)
}
  0x40   :  { %s16378_s25 = sld [smem:[#allocation33_spill]]  ;;  %s15277_s0 = smov [#allocation10]  }
  0x41   :  { %s58_s30 = sshll.u32 %s15277_s0, 4  ;;  %s15278_s18 = smov [#allocation13]   ;;  %s59_s30 = int_to_ptr.vmem [resolvable:$true] %s58_s30 }
  0x42   :  { %s85_s20 = sshll.u32 %s15278_s18, 4  ;;  %s15120_s1 = scalar_lea.vmem %s59_s30, 6144  ;;  %s86_s20 = int_to_ptr.vmem [resolvable:$true] %s85_s20 }
  0x43   :  { %p15121_p11 = scmp.ne.s32.totalorder %s59_s30, %s15120_s1  ;;  %p15125_p12 = scmp.lt.s32.totalorder %s59_s30, %s59_s30 }
  0x44   :  { %p15126_p13 = scmp.lt.s32.totalorder %s15120_s1, %s15120_s1 }
  0x46   :  { %40 = dma.hbm_to_vmem [thread:$0]  %s16378_s25, 256, %s38_s3, [#allocation6]  }
  0x47   :  { %p15127_p0 = por %p15126_p13, %p15125_p12 }
  0x49   :  { %p15128_p1 = pnand %p15127_p0, %p15121_p11 }
  0x4b   :  { %15131 = shalt.err (!%p15128_p1)
}
  0x4c   :  { %64 = dma.hbm_to_vmem [thread:$0]  %s16359_s2, 6144, %s59_s30, [#allocation9], %s15273_s23, %s15273_s23, %s15274_s24  }
  0x4d   :  { %s15140_s3 = scalar_lea.vmem %s86_s20, 16  ;;  %s15144_s22 = scalar_lea.vmem %s86_s20, 32 }
  0x4e   :  { %p15141_p2 = scmp.ne.s32.totalorder %s86_s20, %s15140_s3  ;;  %p15145_p3 = scmp.lt.s32.totalorder %s86_s20, %s86_s20 }
  0x4f   :  { %p15146_p4 = scmp.lt.s32.totalorder %s15144_s22, %s15140_s3 }
  0x51   :  { %p15147_p5 = por %p15146_p4, %p15145_p3 }
  0x53   :  { %p15148_p6 = pnand %p15147_p5, %p15141_p2 }
  0x55   :  { %15151 = shalt.err (!%p15148_p6)
}
  0x56   :  { %88 = dma.hbm_to_vmem [thread:$0]  %s16362_s5, 16, %s86_s20, [#allocation12]  }
  0x57   :  { %s15279_s21 = smov [#allocation16]   ;;  %s15280_s25 = smov [#allocation19]  }
  0x58   :  { %s106_s27 = sshll.u32 %s15279_s21, 4  ;;  %s134_s0 = sshll.u32 %s15280_s25, 4  ;;  %s107_s27 = int_to_ptr.vmem [resolvable:$true] %s106_s27  ;;  %s135_s0 = int_to_ptr.vmem [resolvable:$true] %s134_s0 }
  0x59   :  { %s15160_s18 = scalar_lea.vmem %s107_s27, 3072  ;;  %p15165_p8 = scmp.lt.s32.totalorder %s107_s27, %s107_s27 }
  0x5a   :  { %p15161_p7 = scmp.ne.s32.totalorder %s107_s27, %s15160_s18  ;;  %p15166_p9 = scmp.lt.s32.totalorder %s15160_s18, %s15160_s18 }
  0x5c   :  { %p15167_p10 = por %p15166_p9, %p15165_p8 }
  0x5e   :  { %p15168_p11 = pnand %p15167_p10, %p15161_p7 }
  0x60   :  { %15171 = shalt.err (!%p15168_p11)
}
  0x61   :  { %112 = dma.hbm_to_vmem [thread:$0]  %s16364_s7, 3072, %s107_s27, [#allocation15], %s15273_s23, %s15273_s23, %s15274_s24  }
  0x62   :  { %s15180_s5 = scalar_lea.vmem %s135_s0, 3072  ;;  %p15185_p13 = scmp.lt.s32.totalorder %s135_s0, %s135_s0 }
  0x63   :  { %p15181_p12 = scmp.ne.s32.totalorder %s135_s0, %s15180_s5  ;;  %p15186_p0 = scmp.lt.s32.totalorder %s15180_s5, %s15180_s5 }
  0x65   :  { %p15187_p1 = por %p15186_p0, %p15185_p13 }
  0x67   :  { %p15188_p2 = pnand %p15187_p1, %p15181_p12 }
  0x69   :  { %15191 = shalt.err (!%p15188_p2)
}
  0x6a   :  { %140 = dma.hbm_to_vmem [thread:$0]  %s16368_s11, 3072, %s135_s0, [#allocation18], %s15273_s23, %s15273_s23, %s15274_s24  }
  0x6b   :  { %s15281_s10 = smov [#allocation20]  }
  0x6c   :  { %s150_s19 = sshll.u32 %s15281_s10, 4  ;;  %s151_s19 = int_to_ptr.vmem [resolvable:$true] %s150_s19 }
  0x6d   :  { %s15200_s3 = scalar_lea.vmem %s151_s19, 2048  ;;  %p15205_p4 = scmp.lt.s32.totalorder %s151_s19, %s151_s19 }
  0x6e   :  { %p15201_p3 = scmp.ne.s32.totalorder %s151_s19, %s15200_s3  ;;  %p15206_p5 = scmp.lt.s32.totalorder %s15200_s3, %s15200_s3 }
  0x70   :  { %p15207_p6 = por %p15206_p5, %p15205_p4 }
  0x72   :  { %p15208_p7 = pnand %p15207_p6, %p15201_p3 }
  0x74   :  { %15211 = shalt.err (!%p15208_p7)
}
  0x75   :  { %s15282_s7 = smov 128   ;;  %s15283_s22 = smov 8  }
  0x76   :  { %156 = dma.hbm_to_vmem [thread:$0]  %s16371_s14, 2048, %s151_s19, [#allocation21], %s15282_s7, %s15282_s7, %s15283_s22  }
  0x77   :  { %15252 = dma.done.wait [#allocation6], 256  }
  0x78   :  { %15253 = vsyncadd [#allocation6], 4294967040 }
  0x79   :  { %15254 = dma.done.wait [#allocation9], 6192  }
  0x7a   :  { %15255 = vsyncadd [#allocation9], 4294961104 }
  0x7b   :  { %15256 = dma.done.wait [#allocation12], 3088  }
  0x7c   :  { %15257 = vsyncadd [#allocation12], 4294964208 }
  0x7d   :  { %15258 = dma.done.wait [#allocation15], 6144  }
  0x7e   :  { %15259 = vsyncadd [#allocation15], 4294961152 }
  0x7f   :  { %15260 = dma.done.wait [#allocation18], 6144  }
  0x80   :  { %15261 = vsyncadd [#allocation18], 4294961152 }
  0x81   :  { %15262 = dma.done.wait [#allocation21], 2048  }
  0x82   :  { %15263 = vsyncadd [#allocation21], 4294965248  ;;  %v15284_v0 = vmov 0.0   ;;  %v13448_v1 = vld [vmem:[#allocation10 + $0xac] ss:$12 sps:$4 sm:$0xff]   ;;  %v15285_v47 = vmov 0  }
  0x83   :  { %196 = vst [vmem:[#allocation3] sm:$0xff] %v15284_v0  ;;  %197 = vst [vmem:[#allocation4] sm:$0xff] %v15284_v0  ;;  %v13450_v2 = vld [vmem:[#allocation10 + $0xa8] ss:$12 sps:$4 sm:$0xff]   ;;  %538 = vmatprep.subr.bf16.mxu0 %v13448_v1  ;;  %v13453_v4 = vld [vmem:[#allocation10 + $0x90] ss:$12 sps:$4 sm:$0xff]  }
  0x84   :  { %v13451_v3 = vld [vmem:[#allocation10 + $0x94] ss:$12 sps:$4 sm:$0xff]   ;;  %539 = vmatpush1.bf16.msra.mxu0 %v13450_v2  ;;  %v13454_v5 = vld [vmem:[#allocation10 + $0x170] ss:$12 sps:$4 sm:$0xff]   ;;  %v13458_v8 = vld [vmem:[#allocation10 + $0x78] ss:$12 sps:$4 sm:$0xff]  }
  0x85   :  { %540 = vmatprep.subr.bf16.mxu0 %v13451_v3  ;;  %v13455_v6 = vld [vmem:[#allocation10 + $0xb0] ss:$12 sps:$4 sm:$0xff]   ;;  %12244 = vmatprep.subr.bf16.mxu1 %v13454_v5  ;;  %v13459_v9 = vld [vmem:[#allocation10 + $0x158] ss:$12 sps:$4 sm:$0xff]   ;;  %v13463_v12 = vld [vmem:[#allocation10 + $0x60] ss:$12 sps:$4 sm:$0xff]  }
  0x86   :  { %v13456_v7 = vld [vmem:[#allocation10 + $0x7c] ss:$12 sps:$4 sm:$0xff]   ;;  %12245 = vmatpush3.bf16.msra.mxu1 %v13455_v6  ;;  %v13460_v10 = vld [vmem:[#allocation10 + $0x98] ss:$12 sps:$4 sm:$0xff]   ;;  %v13464_v13 = vld [vmem:[#allocation10 + $0x140] ss:$12 sps:$4 sm:$0xff]  }
  0x87   :  { %12246 = vmatprep.subr.bf16.mxu1 %v13459_v9  ;;  %v13461_v11 = vld [vmem:[#allocation10 + $0x64] ss:$12 sps:$4 sm:$0xff]   ;;  %v13465_v14 = vld [vmem:[#allocation10 + $0x80] ss:$12 sps:$4 sm:$0xff]   ;;  %v13469_v16 = vld [vmem:[#allocation10 + $0x128] ss:$12 sps:$4 sm:$0xff]  }
  0x88   :  { %541 = vmatpush1.bf16.msra.mxu0 %v13453_v4  ;;  %v13466_v15 = vld [vmem:[#allocation10 + $0x4c] ss:$12 sps:$4 sm:$0xff]   ;;  %v13470_v17 = vld [vmem:[#allocation10 + $0x68] ss:$12 sps:$4 sm:$0xff]   ;;  %v13474_v20 = vld [vmem:[#allocation10 + $0x110] ss:$12 sps:$4 sm:$0xff]  }
  0x89   :  { %542 = vmatprep.subr.bf16.mxu0 %v13456_v7  ;;  %v13468_v18 = vld [vmem:[#allocation10 + $0x48] ss:$12 sps:$4 sm:$0xff]   ;;  %v13473_v21 = vld [vmem:[#allocation10 + $0x30] ss:$12 sps:$4 sm:$0xff]   ;;  %v13479_v24 = vld [vmem:[#allocation10 + $0xf8] ss:$12 sps:$4 sm:$0xff]  }
  0x8a   :  { %12247 = vmatpush3.bf16.msra.mxu1 %v13460_v10  ;;  %v13471_v19 = vld [vmem:[#allocation10 + $0x34] ss:$12 sps:$4 sm:$0xff]   ;;  %v13475_v22 = vld [vmem:[#allocation10 + $0x50] ss:$12 sps:$4 sm:$0xff]   ;;  %v13478_v25 = vld [vmem:[#allocation10 + $0x18] ss:$12 sps:$4 sm:$0xff]  }
  0x8b   :  { %12248 = vmatprep.subr.bf16.mxu1 %v13464_v13  ;;  %v13476_v23 = vld [vmem:[#allocation10 + $0x1c] ss:$12 sps:$4 sm:$0xff]   ;;  %v13480_v26 = vld [vmem:[#allocation10 + $0x38] ss:$12 sps:$4 sm:$0xff]   ;;  %v13484_v27 = vld [vmem:[#allocation10 + $0xe0] ss:$12 sps:$4 sm:$0xff]  }
  0x8c   :  { %543 = vmatpush1.bf16.msra.mxu0 %v13458_v8  ;;  %v13481_v28 = vld [vmem:[#allocation10 + $0x4] ss:$12 sps:$4 sm:$0xff]   ;;  %v13483_v29 = vld [vmem:[#allocation10] ss:$12 sps:$4 sm:$0xff]   ;;  %v13489_v31 = vld [vmem:[#allocation10 + $0xc8] ss:$12 sps:$4 sm:$0xff]  }
  0x8d   :  { %544 = vmatprep.subr.bf16.mxu0 %v13461_v11  ;;  %v13485_v30 = vld [vmem:[#allocation10 + $0x20] ss:$12 sps:$4 sm:$0xff]   ;;  %v13488_v33 = vld [vmem:[#allocation10 + $0x168] ss:$12 sps:$4 sm:$0xff]   ;;  %v13493_v40 = vld [vmem:[#allocation10 + $0x150] ss:$12 sps:$4 sm:$0xff]  }
  0x8e   :  { %12249 = vmatpush3.bf16.msra.mxu1 %v13465_v14  ;;  %v13486_v32 = vld [vmem:[#allocation10 + $0x16c] ss:$12 sps:$4 sm:$0xff]   ;;  %v13490_v35 = vld [vmem:[#allocation10 + $0x8] ss:$12 sps:$4 sm:$0xff]   ;;  %v13500_v46 = vld [vmem:[#allocation11 + $0x90] ss:$12 sps:$4 sm:$0xff]  }
  0x8f   :  { %12250 = vmatprep.subr.bf16.mxu1 %v13469_v16  ;;  %v199_v34 = vld [vmem:[#allocation5 + $0x8] sm:$0xff]  ;;  %v198_v38 = vld [vmem:[#allocation5] sm:$0xff]  ;;  %v13497_v44 = vld [vmem:[#allocation10 + $0x13c] ss:$12 sps:$4 sm:$0xff]   ;;  %vm15286_vm0 = vmmov 0  }
  0x90   :  { %545 = vmatpush1.bf16.msra.mxu0 %v13463_v12  ;;  %v201_v36 = vpack.c.bf16 %v199_v34, %v199_v34  ;;  %v13496_v37 = vld [vmem:[#allocation11 + $0xac] ss:$12 sps:$4 sm:$0xff]   ;;  %v13491_v39 = vld [vmem:[#allocation10 + $0x154] ss:$12 sps:$4 sm:$0xff]   ;;  %v15433_v41 = vpack.c.bf16 %v198_v38, %v198_v38  ;;  %v13508_v48 = vld [vmem:[#allocation11 + $0x7c] ss:$12 sps:$4 sm:$0xff]  }
  0x91   :  { %546 = vmatprep.subr.bf16.mxu0 %v13466_v15  ;;  %v13494_v42 = vld [vmem:[#allocation11 + $0xa8] ss:$12 sps:$4 sm:$0xff]   ;;  %v13499_v45 = vld [vmem:[#allocation10 + $0x138] ss:$12 sps:$4 sm:$0xff]   ;;  %v13505_v50 = vld [vmem:[#allocation10 + $0x120] ss:$12 sps:$4 sm:$0xff]  }
  0x92   :  { %12251 = vmatpush3.bf16.msra.mxu1 %v13470_v17  ;;  %611 = vmatprep.mubr.bf16.mxu1 %v201_v36  ;;  %v13502_v43 = vld [vmem:[#allocation11 + $0x94] ss:$12 sps:$4 sm:$0xff]   ;;  %v13503_v49 = vld [vmem:[#allocation10 + $0x124] ss:$12 sps:$4 sm:$0xff]   ;;  %v13509_v53 = vld [vmem:[#allocation10 + $0x10c] ss:$12 sps:$4 sm:$0xff]  }
  0x93   :  { %12252 = vmatprep.subr.bf16.mxu1 %v13474_v20  ;;  %570 = vmatprep.mubr.bf16.mxu0 %v201_v36  ;;  %v13506_v51 = vld [vmem:[#allocation11 + $0x78] ss:$12 sps:$4 sm:$0xff]   ;;  %v13511_v54 = vld [vmem:[#allocation10 + $0x108] ss:$12 sps:$4 sm:$0xff]   ;;  %v13512_v55 = vld [vmem:[#allocation11 + $0x60] ss:$12 sps:$4 sm:$0xff]  }
  0x94   :  { %547 = vmatpush1.bf16.msra.mxu0 %v13468_v18  ;;  %v13514_v52 = vld [vmem:[#allocation11 + $0x64] ss:$12 sps:$4 sm:$0xff]   ;;  %v13520_v56 = vld [vmem:[#allocation11 + $0x4c] ss:$12 sps:$4 sm:$0xff]   ;;  %v13515_v57 = vld [vmem:[#allocation10 + $0xf4] ss:$12 sps:$4 sm:$0xff]  }
  0x95   :  { %548 = vmatprep.subr.bf16.mxu0 %v13471_v19  ;;  %v13517_v58 = vld [vmem:[#allocation10 + $0xf0] ss:$12 sps:$4 sm:$0xff]   ;;  %v13518_v59 = vld [vmem:[#allocation11 + $0x48] ss:$12 sps:$4 sm:$0xff]   ;;  %v13523_v62 = vld [vmem:[#allocation10 + $0xd8] ss:$12 sps:$4 sm:$0xff]  }
  0x96   :  { %12253 = vmatpush3.bf16.msra.mxu1 %v13475_v22  ;;  %v13526_v60 = vld [vmem:[#allocation11 + $0x34] ss:$12 sps:$4 sm:$0xff]   ;;  %v13521_v61 = vld [vmem:[#allocation10 + $0xdc] ss:$12 sps:$4 sm:$0xff]   ;;  %v13527_v1 = vld [vmem:[#allocation10 + $0xc4] ss:$12 sps:$4 sm:$0xff]  }
  0x97   :  { %12254 = vmatprep.subr.bf16.mxu1 %v13479_v24  ;;  %v13524_v63 = vld [vmem:[#allocation11 + $0x30] ss:$12 sps:$4 sm:$0xff]   ;;  %v13530_v3 = vld [vmem:[#allocation11 + $0x18] ss:$12 sps:$4 sm:$0xff]   ;;  %v13529_v4 = vld [vmem:[#allocation10 + $0xc0] ss:$12 sps:$4 sm:$0xff]  }
  0x98   :  { %549 = vmatpush1.bf16.msra.mxu0 %v13473_v21  ;;  %v13532_v2 = vld [vmem:[#allocation11 + $0x1c] ss:$12 sps:$4 sm:$0xff]   ;;  %v13535_v5 = vld [vmem:[#allocation11 + $0x4] ss:$12 sps:$4 sm:$0xff]   ;;  %v13533_v6 = vld [vmem:[#allocation11] ss:$12 sps:$4 sm:$0xff]  }
  0x99   :  { %550 = vmatprep.subr.bf16.mxu0 %v13476_v23  ;;  %v622_v7 = vld [vmem:[#allocation8] sm:$0x1]  ;;  %v13537_v10 = vld [vmem:[#allocation11 + $0x98] ss:$12 sps:$4 sm:$0xff]   ;;  %v13538_v11 = vld [vmem:[#allocation11 + $0x80] ss:$12 sps:$4 sm:$0xff]  }
  0x9a   :  { %12255 = vmatpush3.bf16.msra.mxu1 %v13480_v26  ;;  %v13536_v8 = vld [vmem:[#allocation11 + $0xb0] ss:$12 sps:$4 sm:$0xff]   ;;  %v629_v9 = vpack.c.bf16 %v622_v7, %v622_v7  ;;  %v13539_v12 = vld [vmem:[#allocation11 + $0x68] ss:$12 sps:$4 sm:$0xff]   ;;  %v13541_v14 = vld [vmem:[#allocation11 + $0x38] ss:$12 sps:$4 sm:$0xff]  }
  0x9b   :  { %12256 = vmatprep.subr.bf16.mxu1 %v13484_v27  ;;  %v13540_v13 = vld [vmem:[#allocation11 + $0x50] ss:$12 sps:$4 sm:$0xff]   ;;  %v13542_v15 = vld [vmem:[#allocation11 + $0x20] ss:$12 sps:$4 sm:$0xff]   ;;  %v13543_v16 = vld [vmem:[#allocation11 + $0x8] ss:$12 sps:$4 sm:$0xff]  }
  0x9c   :  { %551 = vmatpush1.bf16.msra.mxu0 %v13478_v25  ;;  %v13546_v17 = vld [vmem:[#allocation14 + $0xac] ss:$12 sps:$4 sm:$0xff]   ;;  %v13544_v18 = vld [vmem:[#allocation14 + $0xa8] ss:$12 sps:$4 sm:$0xff]   ;;  %v13547_v19 = vld [vmem:[#allocation14 + $0xb0] ss:$12 sps:$4 sm:$0xff]  }
  0x9d   :  { %552 = vmatprep.subr.bf16.mxu0 %v13481_v28  ;;  %v13550_v20 = vld [vmem:[#allocation14 + $0x94] ss:$12 sps:$4 sm:$0xff]   ;;  %v13548_v22 = vld [vmem:[#allocation14 + $0x90] ss:$12 sps:$4 sm:$0xff]   ;;  %v13551_v23 = vld [vmem:[#allocation14 + $0x98] ss:$12 sps:$4 sm:$0xff]  }
  0x9e   :  { %12257 = vmatpush3.bf16.msra.mxu1 %v13485_v30  ;;  %v15452_v21 = vld [vmem:[#allocation3] sm:$0xff]  ;;  %v13558_v26 = vld [vmem:[#allocation14 + $0x64] ss:$12 sps:$4 sm:$0xff]   ;;  %v13559_v28 = vld [vmem:[#allocation14 + $0x68] ss:$12 sps:$4 sm:$0xff]  }
  0x9f   :  { %12258 = vmatprep.subr.bf16.mxu1 %v13489_v31  ;;  %v13554_v24 = vld [vmem:[#allocation14 + $0x7c] ss:$12 sps:$4 sm:$0xff]   ;;  %v13555_v25 = vld [vmem:[#allocation14 + $0x80] ss:$12 sps:$4 sm:$0xff]   ;;  %v13567_v34 = vld [vmem:[#allocation14 + $0x38] ss:$12 sps:$4 sm:$0xff]  }
  0xa0   :  { %553 = vmatpush1.bf16.msra.mxu0 %v13483_v29  ;;  %v13556_v27 = vld [vmem:[#allocation14 + $0x60] ss:$12 sps:$4 sm:$0xff]   ;;  %v13560_v30 = vld [vmem:[#allocation14 + $0x48] ss:$12 sps:$4 sm:$0xff]   ;;  %v13563_v31 = vld [vmem:[#allocation14 + $0x50] ss:$12 sps:$4 sm:$0xff]  }
  0xa1   :  { %554 = vmatprep.subr.bf16.mxu0 %v13486_v32  ;;  %v13562_v29 = vld [vmem:[#allocation14 + $0x4c] ss:$12 sps:$4 sm:$0xff]   ;;  %v13566_v32 = vld [vmem:[#allocation14 + $0x34] ss:$12 sps:$4 sm:$0xff]  }
  0xa2   :  { %12259 = vmatpush3.bf16.msra.mxu1 %v13490_v35  ;;  %v13570_v35 = vld [vmem:[#allocation14 + $0x1c] ss:$12 sps:$4 sm:$0xff]   ;;  %v13568_v36 = vld [vmem:[#allocation14 + $0x18] ss:$12 sps:$4 sm:$0xff]   ;;  %v13572_v38 = vld [vmem:[#allocation14] ss:$12 sps:$4 sm:$0xff]  }
  0xa3   :  { %790 = vmatprep.subr.bf16.mxu1 %v13496_v37  ;;  %v13571_v37 = vld [vmem:[#allocation14 + $0x20] ss:$12 sps:$4 sm:$0xff]  }
  0xa4   :  { %555 = vmatpush2.bf16.msra.mxu0 %v13488_v33  ;;  %v13564_v33 = vld [vmem:[#allocation14 + $0x30] ss:$12 sps:$4 sm:$0xff]  }
  0xa5   :  { %556 = vmatprep.subr.bf16.mxu0 %v13491_v39  ;;  %612 = vmatmul.mubr.bf16.vlgmr.msra.gmra.mxu1 %v15433_v41  ;;  %v13574_v39 = vld [vmem:[#allocation14 + $0x4] ss:$12 sps:$4 sm:$0xff]  }
  0xa6   :  { %791 = vmatpush1.bf16.msra.mxu1 %v13494_v42  ;;  %822 = vmatprep.mubr.bf16.mxu1 %v15285_v47  ;;  %v267_v42 = vlaneseq }
  0xa7   :  { %792 = vmatprep.subr.bf16.mxu1 %v13502_v43 }
  0xa8   :  { %557 = vmatpush2.bf16.msra.mxu0 %v13493_v40  ;;  %v13575_v40 = vld [vmem:[#allocation14 + $0x8] ss:$12 sps:$4 sm:$0xff]   ;;  %v15463_v43 = vshrl.u32 %v267_v42, 7 }
  0xa9   :  { %558 = vmatprep.subr.bf16.mxu0 %v13497_v44  ;;  %v190_v44 = vld [vmem:[%s16361_s4] sm:$0x7] }
  0xaa   :  { %793 = vmatpush1.bf16.msra.mxu1 %v13500_v46 }
  0xab   :  { %794 = vmatprep.subr.bf16.mxu1 %v13508_v48 }
  0xac   :  { %559 = vmatpush2.bf16.msra.mxu0 %v13499_v45  ;;  %v15469_v45 = vsub.s32 2, %v15463_v43 }
  0xad   :  { %560 = vmatprep.subr.bf16.mxu0 %v13503_v49 }
  0xae   :  { %795 = vmatpush1.bf16.msra.mxu1 %v13506_v51  ;;  %v278_v48 = vrot.slane %v190_v44, %v15469_v45 }
  0xaf   :  { %796 = vmatprep.subr.bf16.mxu1 %v13514_v52 }
  0xb0   :  { %561 = vmatpush2.bf16.msra.mxu0 %v13505_v50 }
  0xb1   :  { %562 = vmatprep.subr.bf16.mxu0 %v13509_v53 }
  0xb2   :  { %797 = vmatpush1.bf16.msra.mxu1 %v13512_v55  ;;  %v15476_v55 = vsub.s32 0, %v15463_v43 }
  0xb3   :  { %798 = vmatprep.subr.bf16.mxu1 %v13520_v56  ;;  %v15479_v56 = vsub.s32 1, %v15463_v43 }
  0xb4   :  { %563 = vmatpush2.bf16.msra.mxu0 %v13511_v54  ;;  %v15472_v54 = vld [vmem:[#allocation8 + $0x1] sm:$0x1] }
  0xb5   :  { %564 = vmatprep.subr.bf16.mxu0 %v13515_v57  ;;  %627 = vst [vmem:[#allocation4] sm:$0x1] %v15472_v54  ;;  %v270_v57 = vrot.slane %v190_v44, %v15476_v55 }
  0xb6   :  { %799 = vmatpush1.bf16.msra.mxu1 %v13518_v59 }
  0xb7   :  { %800 = vmatprep.subr.bf16.mxu1 %v13526_v60 }
  0xb8   :  { %565 = vmatpush2.bf16.msra.mxu0 %v13517_v58  ;;  %v274_v58 = vrot.slane %v190_v44, %v15479_v56  ;;  %v13587_v44 = vld [vmem:[#allocation16 + $0x80] ss:$12 sps:$4 sm:$0xff]  }
  0xb9   :  { %566 = vmatprep.subr.bf16.mxu0 %v13521_v61 }
  0xba   :  { %801 = vmatpush1.bf16.msra.mxu1 %v13524_v63 }
  0xbb   :  { %802 = vmatprep.subr.bf16.mxu1 %v13532_v2 }
  0xbc   :  { %567 = vmatpush2.bf16.msra.mxu0 %v13523_v62 }
  0xbd   :  { %568 = vmatprep.subr.bf16.mxu0 %v13527_v1 }
  0xbe   :  { %803 = vmatpush1.bf16.msra.mxu1 %v13530_v3 }
  0xbf   :  { %804 = vmatprep.subr.bf16.mxu1 %v13535_v5 }
  0xc0   :  { %569 = vmatpush2.bf16.msra.mxu0 %v13529_v4 }
  0xc1   :  { %12626 = vmatprep.subr.bf16.mxu0 %v15284_v0 }
  0xc2   :  { %805 = vmatpush1.bf16.msra.mxu1 %v13533_v6 }
  0xc3   :  { %571 = vmatmul.mubr.bf16.vlgmr.msra.gmra.mxu0 %v15433_v41  ;;  %1077 = vmatprep.subr.bf16.mxu1 %v13546_v17  ;;  %v13578_v41 = vld [vmem:[#allocation16 + $0xac] ss:$12 sps:$4 sm:$0xff]   ;;  %v193_v17 = vld [vmem:[#allocation13] sm:$0x1] }
  0xc4   :  { %12627 = vmatpush3.bf16.msra.mxu0 %v13536_v8  ;;  %12642 = vmatprep.mubr.msk.bf16.mxu0 %vm15286_vm0, %v15284_v0 }
  0xc5   :  { %12628 = vmatprep.subr.bf16.mxu0 %v15284_v0  ;;  %823 = vmatmul.mubr.bf16.vlgmr.msra.gmra.mxu1 %v629_v9 }
  0xc6   :  { %1109 = vmatprep.mubr.bf16.mxu1 %v15285_v47  ;;  %1078 = vmatpush1.bf16.msra.mxu1 %v13544_v18 }
  0xc7   :  { %1079 = vmatprep.subr.bf16.mxu1 %v13550_v20 }
  0xc8   :  { %12629 = vmatpush3.bf16.msra.mxu0 %v13537_v10 }
  0xc9   :  { %12630 = vmatprep.subr.bf16.mxu0 %v15284_v0 }
  0xca   :  { %1080 = vmatpush1.bf16.msra.mxu1 %v13548_v22 }
  0xcb   :  { %1081 = vmatprep.subr.bf16.mxu1 %v13554_v24 }
  0xcc   :  { %12631 = vmatpush3.bf16.msra.mxu0 %v13538_v11 }
  0xcd   :  { %12632 = vmatprep.subr.bf16.mxu0 %v15284_v0 }
  0xd0   :  { %12633 = vmatpush3.bf16.msra.mxu0 %v13539_v12 }
  0xd1   :  { %12634 = vmatprep.subr.bf16.mxu0 %v15284_v0 }
  0xd4   :  { %12635 = vmatpush3.bf16.msra.mxu0 %v13540_v13 }
  0xd5   :  { %12636 = vmatprep.subr.bf16.mxu0 %v15284_v0 }
  0xd8   :  { %12637 = vmatpush3.bf16.msra.mxu0 %v13541_v14 }
  0xd9   :  { %12638 = vmatprep.subr.bf16.mxu0 %v15284_v0 }
  0xdc   :  { %12639 = vmatpush3.bf16.msra.mxu0 %v13542_v15 }
  0xdd   :  { %12640 = vmatprep.subr.bf16.mxu0 %v15284_v0 }
  0xe0   :  { %12641 = vmatpush3.bf16.msra.mxu0 %v13543_v16 }
  0xe1   :  { %12646 = vmatprep.subr.bf16.mxu0 %v15284_v0 }
  0xe3   :  { %12643 = vmatmul.mubr.bf16.vlgmr.msra.gmra.mxu0 %v629_v9 }
  0xe4   :  { %12662 = vmatprep.mubr.msk.bf16.mxu0 %vm15286_vm0, %v15284_v0  ;;  %12647 = vmatpush3.bf16.msra.mxu0 %v13547_v19  ;;  %v13552_v0 = vld [vmem:[#allocation14 + $0x78] ss:$12 sps:$4 sm:$0xff]  }
  0xe5   :  { %12648 = vmatprep.subr.bf16.mxu0 %v15452_v21  ;;  %1082 = vmatpush1.bf16.msra.mxu1 %v13552_v0 }
  0xe6   :  { %1083 = vmatprep.subr.bf16.mxu1 %v13558_v26 }
  0xe8   :  { %12649 = vmatpush3.bf16.msra.mxu0 %v13551_v23 }
  0xe9   :  { %12650 = vmatprep.subr.bf16.mxu0 %v15452_v21  ;;  %1084 = vmatpush1.bf16.msra.mxu1 %v13556_v27 }
  0xea   :  { %1085 = vmatprep.subr.bf16.mxu1 %v13562_v29  ;;  %v14985_v29 = vld [vmem:[#allocation8] sm:$0x1] }
  0xec   :  { %12651 = vmatpush3.bf16.msra.mxu0 %v13555_v25 }
  0xed   :  { %12652 = vmatprep.subr.bf16.mxu0 %v15452_v21  ;;  %1086 = vmatpush1.bf16.msra.mxu1 %v13560_v30 }
  0xee   :  { %1087 = vmatprep.subr.bf16.mxu1 %v13566_v32 }
  0xf0   :  { %12653 = vmatpush3.bf16.msra.mxu0 %v13559_v28 }
  0xf1   :  { %12654 = vmatprep.subr.bf16.mxu0 %v15452_v21  ;;  %1088 = vmatpush1.bf16.msra.mxu1 %v13564_v33  ;;  %v13576_v33 = vld [vmem:[#allocation16 + $0xa8] ss:$12 sps:$4 sm:$0xff]  }
  0xf2   :  { %1089 = vmatprep.subr.bf16.mxu1 %v13570_v35  ;;  %v13582_v35 = vld [vmem:[#allocation16 + $0x94] ss:$12 sps:$4 sm:$0xff]  }
  0xf4   :  { %12655 = vmatpush3.bf16.msra.mxu0 %v13563_v31 }
  0xf5   :  { %12656 = vmatprep.subr.bf16.mxu0 %v15452_v21  ;;  %1090 = vmatpush1.bf16.msra.mxu1 %v13568_v36 }
  0xf6   :  { %1091 = vmatprep.subr.bf16.mxu1 %v13574_v39  ;;  %v13583_v39 = vld [vmem:[#allocation16 + $0x98] ss:$12 sps:$4 sm:$0xff]  }
  0xf8   :  { %12657 = vmatpush3.bf16.msra.mxu0 %v13567_v34  ;;  %v13579_v34 = vld [vmem:[#allocation16 + $0xb0] ss:$12 sps:$4 sm:$0xff]  }
  0xf9   :  { %12658 = vmatprep.subr.bf16.mxu0 %v15452_v21  ;;  %1092 = vmatpush1.bf16.msra.mxu1 %v13572_v38  ;;  %v13580_v38 = vld [vmem:[#allocation16 + $0x90] ss:$12 sps:$4 sm:$0xff]  }
  0xfa   :  { %1319 = vmatprep.subr.bf16.mxu1 %v13578_v41  ;;  %v13584_v41 = vld [vmem:[#allocation16 + $0x78] ss:$12 sps:$4 sm:$0xff]  }
  0xfc   :  { %12659 = vmatpush3.bf16.msra.mxu0 %v13571_v37 }
  0xfd   :  { %12660 = vmatprep.subr.bf16.mxu0 %v15452_v21 }
 0x100   :  { %12661 = vmatpush3.bf16.msra.mxu0 %v13575_v40  ;;  %v13586_v40 = vld [vmem:[#allocation16 + $0x7c] ss:$12 sps:$4 sm:$0xff]  }
 0x101   :  { %12666 = vmatprep.subr.bf16.mxu0 %v15452_v21 }
 0x165   :  { %v12260_v46 = vpop.f32.mrf.mxu1 }
 0x167   :  { %v12261_v49 = vpop.f32.mrf.mxu1 }
 0x168   :  { %v12262_v50 = vadd.f32 %v12261_v49, %v12260_v46  ;;  %v13590_v46 = vld [vmem:[#allocation16 + $0x64] ss:$12 sps:$4 sm:$0xff]   ;;  %v13591_v49 = vld [vmem:[#allocation16 + $0x68] ss:$12 sps:$4 sm:$0xff]  }
 0x169   :  { %v12263_v51 = vpop.f32.mrf.mxu1 }
 0x16a   :  { %v614_v52 = vadd.f32 %v12262_v50, %v278_v48  ;;  %v13588_v48 = vld [vmem:[#allocation16 + $0x60] ss:$12 sps:$4 sm:$0xff]   ;;  %v13592_v51 = vld [vmem:[#allocation16 + $0x48] ss:$12 sps:$4 sm:$0xff]  }
 0x16b   :  { %v12264_v53 = vpop.f32.mrf.mxu1  ;;  %v13594_v50 = vld [vmem:[#allocation16 + $0x4c] ss:$12 sps:$4 sm:$0xff]  }
 0x16c   :  { %621 = vst [vmem:[#allocation2 + $0x10] sm:$0xff] %v614_v52  ;;  %v13595_v52 = vld [vmem:[#allocation16 + $0x50] ss:$12 sps:$4 sm:$0xff]   ;;  %v13598_v53 = vld [vmem:[#allocation16 + $0x34] ss:$12 sps:$4 sm:$0xff]  }
 0x183   :  { %v572_v59 = vpop.f32.mrf.mxu0 }
 0x184   :  { %v573_v60 = vadd.f32 %v572_v59, %v270_v57  ;;  %v13596_v57 = vld [vmem:[#allocation16 + $0x30] ss:$12 sps:$4 sm:$0xff]  }
 0x185   :  { %v574_v61 = vpop.f32.mrf.mxu0  ;;  %v824_v63 = vpop.f32.mrf.mxu1  ;;  %v13602_v59 = vld [vmem:[#allocation16 + $0x1c] ss:$12 sps:$4 sm:$0xff]  }
 0x186   :  { %619 = vst [vmem:[#allocation2] sm:$0xff] %v573_v60  ;;  %v575_v62 = vadd.f32 %v574_v61, %v274_v58  ;;  %v13599_v58 = vld [vmem:[#allocation16 + $0x38] ss:$12 sps:$4 sm:$0xff]   ;;  %v13603_v61 = vld [vmem:[#allocation16 + $0x20] ss:$12 sps:$4 sm:$0xff]  }
 0x187   :  { %v576_v1 = vpop.f32.mrf.mxu0  ;;  %v826_v2 = vpop.f32.mrf.mxu1  ;;  %v13600_v60 = vld [vmem:[#allocation16 + $0x18] ss:$12 sps:$4 sm:$0xff]  }
 0x188   :  { %620 = vst [vmem:[#allocation2 + $0x8] sm:$0xff] %v575_v62  ;;  %v13606_v62 = vld [vmem:[#allocation16 + $0x4] ss:$12 sps:$4 sm:$0xff]   ;;  %v13607_v1 = vld [vmem:[#allocation16 + $0x8] ss:$12 sps:$4 sm:$0xff]  }
 0x189   :  { %v577_v3 = vpop.f32.mrf.mxu0  ;;  %v828_v4 = vpop.f32.mrf.mxu1 }
 0x18a   :  { %v1158_v3 = vpack.c.bf16 %v15472_v54, %v15472_v54  ;;  %v14986_v4 = vld [vmem:[#allocation11 + $0xac] ss:$12 sps:$4 sm:$0xff]  }
 0x18b   :  { %v829_v5 = vpop.f32.mrf.mxu1 }
 0x18c   :  { %v13609_v5 = vld [vmem:[#allocation11 + $0x98] ss:$12 sps:$4 sm:$0xff]  }
 0x18f   :  { %v628_v6 = vld [vmem:[#allocation2] ss:$8 sm:$0x7] }
 0x190   :  { %v871_v7 = vadd.f32 %v824_v63, %v628_v6  ;;  %v879_v8 = vrot.slane %v628_v6, 1  ;;  %v890_v24 = vrot.slane %v628_v6, 2  ;;  %v13604_v63 = vld [vmem:[#allocation16] ss:$12 sps:$4 sm:$0xff]   ;;  %v14987_v6 = vld [vmem:[#allocation11 + $0xa8] ss:$12 sps:$4 sm:$0xff]  }
 0x192   :  { %v11244_v9 = vmul.f32 -1.442695, %v871_v7  ;;  %v881_v10 = vadd.f32 %v879_v8, %v826_v2  ;;  %v13608_v2 = vld [vmem:[#allocation11 + $0xb0] ss:$12 sps:$4 sm:$0xff]   ;;  %v14988_v7 = vld [vmem:[#allocation11 + $0x94] ss:$12 sps:$4 sm:$0xff]  }
 0x193   :  { %v13610_v8 = vld [vmem:[#allocation11 + $0x80] ss:$12 sps:$4 sm:$0xff]  }
 0x194   :  { %14744 = vpow2.f32 %v11244_v9  ;;  %v11245_v11 = vmul.f32 -1.442695, %v881_v10  ;;  %v14989_v9 = vld [vmem:[#allocation11 + $0x90] ss:$12 sps:$4 sm:$0xff]  }
 0x195   :  { %v14990_v10 = vld [vmem:[#allocation11 + $0x7c] ss:$12 sps:$4 sm:$0xff]  }
 0x196   :  { %14746 = vpow2.f32 %v11245_v11  ;;  %v13611_v11 = vld [vmem:[#allocation11 + $0x68] ss:$12 sps:$4 sm:$0xff]  }
 0x1a1   :  { %v14745_v12 = vpop.eup %14744 }
 0x1a2   :  { %v875_v13 = vadd.f32 1.0, %v14745_v12  ;;  %v14991_v12 = vld [vmem:[#allocation11 + $0x78] ss:$12 sps:$4 sm:$0xff]  }
 0x1a3   :  { %v865_v14 = vpop.f32.mrf.mxu0  ;;  %v14747_v19 = vpop.eup %14746 }
 0x1a4   :  { %14748 = vrcp.f32 %v875_v13  ;;  %v885_v20 = vadd.f32 1.0, %v14747_v19  ;;  %v888_v22 = vadd.f32 %v865_v14, %v193_v17  ;;  %v14992_v13 = vld [vmem:[#allocation11 + $0x64] ss:$12 sps:$4 sm:$0xff]   ;;  %v14996_v19 = vld [vmem:[#allocation11 + $0x34] ss:$12 sps:$4 sm:$0xff]  }
 0x1a5   :  { %v12644_v15 = vpop.f32.mrf.mxu0  ;;  %v13612_v14 = vld [vmem:[#allocation11 + $0x50] ss:$12 sps:$4 sm:$0xff]   ;;  %v13613_v17 = vld [vmem:[#allocation11 + $0x38] ss:$12 sps:$4 sm:$0xff]  }
 0x1a6   :  { %14750 = vrcp.f32 %v885_v20  ;;  %v14993_v15 = vld [vmem:[#allocation11 + $0x60] ss:$12 sps:$4 sm:$0xff]  }
 0x1a7   :  { %v868_v16 = vpop.f32.mrf.mxu0  ;;  %v13614_v20 = vld [vmem:[#allocation11 + $0x20] ss:$12 sps:$4 sm:$0xff]  }
 0x1a8   :  { %v14994_v16 = vld [vmem:[#allocation11 + $0x4c] ss:$12 sps:$4 sm:$0xff]  }
 0x1a9   :  { %v12645_v18 = vpop.f32.mrf.mxu0 }
 0x1aa   :  { %v14995_v18 = vld [vmem:[#allocation11 + $0x48] ss:$12 sps:$4 sm:$0xff]  }
 0x1b1   :  { %v14749_v23 = vpop.eup %14748 }
 0x1b2   :  { %v889_v0 = vmul.f32 %v14749_v23, %v888_v22  ;;  %v14997_v22 = vld [vmem:[#allocation11 + $0x30] ss:$12 sps:$4 sm:$0xff]  }
 0x1b3   :  { %v14751_v26 = vpop.eup %14750  ;;  %v14998_v23 = vld [vmem:[#allocation11 + $0x1c] ss:$12 sps:$4 sm:$0xff]  }
 0x1b4   :  { %v892_v25 = vadd.f32 %v890_v24, %v889_v0  ;;  %v894_v27 = vsub.f32 1.0, %v14751_v26  ;;  %v896_v30 = vmul.f32 %v14985_v29, %v14751_v26  ;;  %v13615_v24 = vld [vmem:[#allocation11 + $0x8] ss:$12 sps:$4 sm:$0xff]   ;;  %v14999_v0 = vld [vmem:[#allocation11 + $0x18] ss:$12 sps:$4 sm:$0xff]  }
 0x1b5   :  { %v15001_v26 = vld [vmem:[#allocation11] ss:$12 sps:$4 sm:$0xff]  }
 0x1b6   :  { %14752 = vtanh.f32 %v892_v25  ;;  %v15000_v25 = vld [vmem:[#allocation11 + $0x4] ss:$12 sps:$4 sm:$0xff]   ;;  %v13616_v29 = vld [vmem:[#allocation17 + $0xa8] ss:$12 sps:$4 sm:$0xff]  }
 0x1c3   :  { %v14753_v28 = vpop.eup %14752 }
 0x1c4   :  { %v895_v31 = vmul.f32 %v14753_v28, %v894_v27  ;;  %v13618_v28 = vld [vmem:[#allocation17 + $0xac] ss:$12 sps:$4 sm:$0xff]  }
 0x1c6   :  { %v15483_v32 = vadd.f32 %v896_v30, %v895_v31  ;;  %v13619_v30 = vld [vmem:[#allocation17 + $0xb0] ss:$12 sps:$4 sm:$0xff]   ;;  %v13622_v31 = vld [vmem:[#allocation17 + $0x94] ss:$12 sps:$4 sm:$0xff]  }
 0x1c8   :  { %898 = vst [vmem:[#allocation3] sm:$0x1] %v15483_v32  ;;  %v1425_v27 = vpack.c.bf16 %v15483_v32, %v15483_v32 }
 0x1cf   :  { %v899_v36 = vld [vmem:[#allocation3] sm:$0x1] }
 0x1d0   :  { %v900_v37 = vpack.c.bf16 %v899_v36, %v899_v36  ;;  %v13624_v36 = vld [vmem:[#allocation17 + $0x78] ss:$12 sps:$4 sm:$0xff]  }
 0x1d2   :  { %1110 = vmatmul.mubr.bf16.vlgmr.msra.gmra.mxu1 %v900_v37  ;;  %12663 = vmatmul.mubr.bf16.vlgmr.msra.gmra.mxu0 %v900_v37  ;;  %v13627_v37 = vld [vmem:[#allocation17 + $0x80] ss:$12 sps:$4 sm:$0xff]  }
 0x1d3   :  { %1320 = vmatpush1.bf16.msra.mxu1 %v13576_v33  ;;  %12667 = vmatpush3.bf16.msra.mxu0 %v13579_v34  ;;  %v13620_v33 = vld [vmem:[#allocation17 + $0x90] ss:$12 sps:$4 sm:$0xff]   ;;  %v13623_v34 = vld [vmem:[#allocation17 + $0x98] ss:$12 sps:$4 sm:$0xff]  }
 0x1d4   :  { %1321 = vmatprep.subr.bf16.mxu1 %v13582_v35  ;;  %12668 = vmatprep.subr.bf16.mxu0 %v15452_v21  ;;  %v13626_v35 = vld [vmem:[#allocation17 + $0x7c] ss:$12 sps:$4 sm:$0xff]  }
 0x1d5   :  { %1351 = vmatprep.mubr.bf16.mxu1 %v15285_v47  ;;  %12682 = vmatprep.mubr.msk.bf16.mxu0 %vm15286_vm0, %v15452_v21 }
 0x1d7   :  { %1322 = vmatpush1.bf16.msra.mxu1 %v13580_v38  ;;  %12669 = vmatpush3.bf16.msra.mxu0 %v13583_v39  ;;  %v13630_v38 = vld [vmem:[#allocation17 + $0x64] ss:$12 sps:$4 sm:$0xff]   ;;  %v13628_v39 = vld [vmem:[#allocation17 + $0x60] ss:$12 sps:$4 sm:$0xff]  }
 0x1d8   :  { %1323 = vmatprep.subr.bf16.mxu1 %v13586_v40  ;;  %12670 = vmatprep.subr.bf16.mxu0 %v15452_v21  ;;  %v13631_v40 = vld [vmem:[#allocation17 + $0x68] ss:$12 sps:$4 sm:$0xff]  }
 0x1db   :  { %1324 = vmatpush1.bf16.msra.mxu1 %v13584_v41  ;;  %12671 = vmatpush3.bf16.msra.mxu0 %v13587_v44  ;;  %v13634_v41 = vld [vmem:[#allocation17 + $0x4c] ss:$12 sps:$4 sm:$0xff]   ;;  %v13632_v44 = vld [vmem:[#allocation17 + $0x48] ss:$12 sps:$4 sm:$0xff]  }
 0x1dc   :  { %1325 = vmatprep.subr.bf16.mxu1 %v13590_v46  ;;  %12672 = vmatprep.subr.bf16.mxu0 %v15452_v21  ;;  %v13635_v46 = vld [vmem:[#allocation17 + $0x50] ss:$12 sps:$4 sm:$0xff]  }
 0x1df   :  { %1326 = vmatpush1.bf16.msra.mxu1 %v13588_v48  ;;  %12673 = vmatpush3.bf16.msra.mxu0 %v13591_v49  ;;  %v13638_v48 = vld [vmem:[#allocation17 + $0x34] ss:$12 sps:$4 sm:$0xff]   ;;  %v13636_v49 = vld [vmem:[#allocation17 + $0x30] ss:$12 sps:$4 sm:$0xff]  }
 0x1e0   :  { %1327 = vmatprep.subr.bf16.mxu1 %v13594_v50  ;;  %12674 = vmatprep.subr.bf16.mxu0 %v15452_v21  ;;  %v13639_v50 = vld [vmem:[#allocation17 + $0x38] ss:$12 sps:$4 sm:$0xff]  }
 0x1e3   :  { %1328 = vmatpush1.bf16.msra.mxu1 %v13592_v51  ;;  %12675 = vmatpush3.bf16.msra.mxu0 %v13595_v52  ;;  %v13642_v51 = vld [vmem:[#allocation17 + $0x1c] ss:$12 sps:$4 sm:$0xff]   ;;  %v13640_v52 = vld [vmem:[#allocation17 + $0x18] ss:$12 sps:$4 sm:$0xff]  }
 0x1e4   :  { %1329 = vmatprep.subr.bf16.mxu1 %v13598_v53  ;;  %12676 = vmatprep.subr.bf16.mxu0 %v15452_v21  ;;  %v13643_v53 = vld [vmem:[#allocation17 + $0x20] ss:$12 sps:$4 sm:$0xff]  }
 0x1e7   :  { %1330 = vmatpush1.bf16.msra.mxu1 %v13596_v57  ;;  %12677 = vmatpush3.bf16.msra.mxu0 %v13599_v58  ;;  %v13646_v57 = vld [vmem:[#allocation17 + $0x4] ss:$12 sps:$4 sm:$0xff]   ;;  %v13644_v58 = vld [vmem:[#allocation17] ss:$12 sps:$4 sm:$0xff]  }
 0x1e8   :  { %1331 = vmatprep.subr.bf16.mxu1 %v13602_v59  ;;  %12678 = vmatprep.subr.bf16.mxu0 %v15452_v21  ;;  %v13647_v59 = vld [vmem:[#allocation17 + $0x8] ss:$12 sps:$4 sm:$0xff]  }
 0x1eb   :  { %1332 = vmatpush1.bf16.msra.mxu1 %v13600_v60  ;;  %12679 = vmatpush3.bf16.msra.mxu0 %v13603_v61  ;;  %v13650_v60 = vld [vmem:[#allocation19 + $0xac] ss:$12 sps:$4 sm:$0xff]  }
 0x1ec   :  { %1333 = vmatprep.subr.bf16.mxu1 %v13606_v62  ;;  %12680 = vmatprep.subr.bf16.mxu0 %v15452_v21 }
 0x1ef   :  { %1334 = vmatpush1.bf16.msra.mxu1 %v13604_v63  ;;  %12681 = vmatpush3.bf16.msra.mxu0 %v13607_v1 }
 0x1f0   :  { %1586 = vmatprep.subr.bf16.mxu1 %v14986_v4  ;;  %12686 = vmatprep.subr.bf16.mxu0 %v15452_v21 }
 0x1f2   :  { %1352 = vmatmul.mubr.bf16.vlgmr.msra.gmra.mxu1 %v1158_v3  ;;  %12683 = vmatmul.mubr.bf16.vlgmr.msra.gmra.mxu0 %v1158_v3 }
 0x1f3   :  { %1587 = vmatpush1.bf16.msra.mxu1 %v14987_v6  ;;  %12687 = vmatpush3.bf16.msra.mxu0 %v13608_v2  ;;  %v191_v6 = vld [vmem:[%s16365_s8] sm:$0x7] }
 0x1f4   :  { %1588 = vmatprep.subr.bf16.mxu1 %v14988_v7  ;;  %12688 = vmatprep.subr.bf16.mxu0 %v15452_v21  ;;  %v15527_v7 = vrot.slane %v191_v6, %v15476_v55 }
 0x1f5   :  { %1618 = vmatprep.mubr.bf16.mxu1 %v15285_v47  ;;  %12702 = vmatprep.mubr.msk.bf16.mxu0 %vm15286_vm0, %v15452_v21 }
 0x1f7   :  { %1589 = vmatpush1.bf16.msra.mxu1 %v14989_v9  ;;  %12689 = vmatpush3.bf16.msra.mxu0 %v13609_v5 }
 0x1f8   :  { %1590 = vmatprep.subr.bf16.mxu1 %v14990_v10  ;;  %12690 = vmatprep.subr.bf16.mxu0 %v15452_v21 }
 0x1fb   :  { %1591 = vmatpush1.bf16.msra.mxu1 %v14991_v12  ;;  %12691 = vmatpush3.bf16.msra.mxu0 %v13610_v8 }
 0x1fc   :  { %1592 = vmatprep.subr.bf16.mxu1 %v14992_v13  ;;  %12692 = vmatprep.subr.bf16.mxu0 %v15452_v21 }
 0x1ff   :  { %1593 = vmatpush1.bf16.msra.mxu1 %v14993_v15  ;;  %12693 = vmatpush3.bf16.msra.mxu0 %v13611_v11  ;;  %v15531_v11 = vrot.slane %v191_v6, %v15479_v56 }
 0x200   :  { %1594 = vmatprep.subr.bf16.mxu1 %v14994_v16  ;;  %12694 = vmatprep.subr.bf16.mxu0 %v15452_v21 }
 0x203   :  { %1595 = vmatpush1.bf16.msra.mxu1 %v14995_v18  ;;  %12695 = vmatpush3.bf16.msra.mxu0 %v13612_v14 }
 0x204   :  { %1596 = vmatprep.subr.bf16.mxu1 %v14996_v19  ;;  %12696 = vmatprep.subr.bf16.mxu0 %v15452_v21 }
 0x207   :  { %1597 = vmatpush1.bf16.msra.mxu1 %v14997_v22  ;;  %12697 = vmatpush3.bf16.msra.mxu0 %v13613_v17 }
 0x208   :  { %1598 = vmatprep.subr.bf16.mxu1 %v14998_v23  ;;  %12698 = vmatprep.subr.bf16.mxu0 %v15452_v21 }
 0x20b   :  { %1599 = vmatpush1.bf16.msra.mxu1 %v14999_v0  ;;  %12699 = vmatpush3.bf16.msra.mxu0 %v13614_v20 }
 0x20c   :  { %1600 = vmatprep.subr.bf16.mxu1 %v15000_v25  ;;  %12700 = vmatprep.subr.bf16.mxu0 %v15452_v21 }
 0x20f   :  { %1601 = vmatpush1.bf16.msra.mxu1 %v15001_v26  ;;  %12701 = vmatpush3.bf16.msra.mxu0 %v13615_v24  ;;  %v15537_v26 = vld [vmem:[%s16366_s9] sm:$0x1] }
 0x210   :  { %12706 = vmatprep.subr.bf16.mxu0 %v15452_v21  ;;  %1873 = vmatprep.subr.bf16.mxu1 %v13618_v28 }
 0x212   :  { %1619 = vmatmul.mubr.bf16.vlgmr.msra.gmra.mxu1 %v1425_v27  ;;  %12703 = vmatmul.mubr.bf16.vlgmr.msra.gmra.mxu0 %v1425_v27  ;;  %v15540_v27 = vrot.slane %v191_v6, %v15469_v45  ;;  %v15548_v6 = vld [vmem:[#allocation13] sm:$0x1] }
 0x213   :  { %1905 = vmatprep.mubr.bf16.mxu1 %v15285_v47  ;;  %12722 = vmatprep.mubr.msk.bf16.mxu0 %vm15286_vm0, %v15452_v21 }
 0x214   :  { %1874 = vmatpush1.bf16.msra.mxu1 %v13616_v29  ;;  %12707 = vmatpush3.bf16.msra.mxu0 %v13619_v30  ;;  %v1424_v30 = vld [vmem:[#allocation2 + $0x1] ss:$8 sm:$0x7] }
 0x215   :  { %12708 = vmatprep.subr.bf16.mxu0 %v15452_v21  ;;  %1875 = vmatprep.subr.bf16.mxu1 %v13622_v31 }
 0x218   :  { %1876 = vmatpush1.bf16.msra.mxu1 %v13620_v33  ;;  %12709 = vmatpush3.bf16.msra.mxu0 %v13623_v34 }
 0x219   :  { %12710 = vmatprep.subr.bf16.mxu0 %v15452_v21  ;;  %1877 = vmatprep.subr.bf16.mxu1 %v13626_v35 }
 0x21c   :  { %1878 = vmatpush1.bf16.msra.mxu1 %v13624_v36  ;;  %12711 = vmatpush3.bf16.msra.mxu0 %v13627_v37 }
 0x21d   :  { %12712 = vmatprep.subr.bf16.mxu0 %v15452_v21  ;;  %1879 = vmatprep.subr.bf16.mxu1 %v13630_v38 }
 0x220   :  { %1880 = vmatpush1.bf16.msra.mxu1 %v13628_v39  ;;  %12713 = vmatpush3.bf16.msra.mxu0 %v13631_v40 }
 0x221   :  { %12714 = vmatprep.subr.bf16.mxu0 %v15452_v21  ;;  %1881 = vmatprep.subr.bf16.mxu1 %v13634_v41 }
 0x224   :  { %1882 = vmatpush1.bf16.msra.mxu1 %v13632_v44  ;;  %12715 = vmatpush3.bf16.msra.mxu0 %v13635_v46 }
 0x225   :  { %12716 = vmatprep.subr.bf16.mxu0 %v15452_v21  ;;  %1883 = vmatprep.subr.bf16.mxu1 %v13638_v48  ;;  %v1675_v48 = vrot.slane %v1424_v30, 1 }
 0x228   :  { %1884 = vmatpush1.bf16.msra.mxu1 %v13636_v49  ;;  %12717 = vmatpush3.bf16.msra.mxu0 %v13639_v50 }
 0x229   :  { %12718 = vmatprep.subr.bf16.mxu0 %v15452_v21  ;;  %1885 = vmatprep.subr.bf16.mxu1 %v13642_v51 }
 0x22c   :  { %1886 = vmatpush1.bf16.msra.mxu1 %v13640_v52  ;;  %12719 = vmatpush3.bf16.msra.mxu0 %v13643_v53 }
 0x22d   :  { %12720 = vmatprep.subr.bf16.mxu0 %v15452_v21  ;;  %1887 = vmatprep.subr.bf16.mxu1 %v13646_v57 }
 0x230   :  { %1888 = vmatpush1.bf16.msra.mxu1 %v13644_v58  ;;  %12721 = vmatpush3.bf16.msra.mxu0 %v13647_v59 }
 0x231   :  { %12726 = vmatprep.subr.bf16.mxu0 %v15452_v21  ;;  %2115 = vmatprep.subr.bf16.mxu1 %v13650_v60 }
 0x292   :  { %v1111_v61 = vpop.f32.mrf.mxu1  ;;  %v1152_v62 = vpop.f32.mrf.mxu0 }
 0x293   :  { %v1112_v8 = vadd.f32 %v1111_v61, %v15527_v7  ;;  %v1153_v38 = vadd.f32 %v1152_v62, %v15540_v27 }
 0x294   :  { %v1113_v63 = vpop.f32.mrf.mxu1  ;;  %v12664_v1 = vpop.f32.mrf.mxu0 }
 0x295   :  { %v1114_v18 = vadd.f32 %v1113_v63, %v15531_v11 }
 0x296   :  { %v1115_v2 = vpop.f32.mrf.mxu1  ;;  %v1155_v3 = vpop.f32.mrf.mxu0 }
 0x297   :  { %v13648_v3 = vld [vmem:[#allocation19 + $0xa8] ss:$12 sps:$4 sm:$0xff]  }
 0x298   :  { %v1116_v4 = vpop.f32.mrf.mxu1  ;;  %v12665_v5 = vpop.f32.mrf.mxu0 }
 0x299   :  { %v13651_v5 = vld [vmem:[#allocation19 + $0xb0] ss:$12 sps:$4 sm:$0xff]  }
 0x2b2   :  { %v1353_v9 = vpop.f32.mrf.mxu1  ;;  %v1394_v10 = vpop.f32.mrf.mxu0 }
 0x2b3   :  { %v1400_v12 = vadd.f32 %v1353_v9, %v1112_v8  ;;  %v1414_v29 = vadd.f32 %v1394_v10, %v15537_v26  ;;  %v13654_v10 = vld [vmem:[#allocation19 + $0x94] ss:$12 sps:$4 sm:$0xff]  }
 0x2b4   :  { %v1355_v13 = vpop.f32.mrf.mxu1  ;;  %v12684_v14 = vpop.f32.mrf.mxu0 }
 0x2b5   :  { %v11294_v15 = vmul.f32 -1.442695, %v1400_v12  ;;  %v1407_v22 = vadd.f32 %v1355_v13, %v1114_v18  ;;  %v1686_v13 = vrot.slane %v1424_v30, 2  ;;  %v13652_v14 = vld [vmem:[#allocation19 + $0x90] ss:$12 sps:$4 sm:$0xff]  }
 0x2b6   :  { %v1357_v16 = vpop.f32.mrf.mxu1  ;;  %v1397_v17 = vpop.f32.mrf.mxu0  ;;  %v13656_v18 = vld [vmem:[#allocation19 + $0x78] ss:$12 sps:$4 sm:$0xff]  }
 0x2b7   :  { %14754 = vpow2.f32 %v11294_v15  ;;  %v11295_v23 = vmul.f32 -1.442695, %v1407_v22  ;;  %v13655_v15 = vld [vmem:[#allocation19 + $0x98] ss:$12 sps:$4 sm:$0xff]   ;;  %v13658_v17 = vld [vmem:[#allocation19 + $0x7c] ss:$12 sps:$4 sm:$0xff]  }
 0x2b8   :  { %v1358_v19 = vpop.f32.mrf.mxu1  ;;  %v12685_v20 = vpop.f32.mrf.mxu0  ;;  %v13660_v22 = vld [vmem:[#allocation19 + $0x60] ss:$12 sps:$4 sm:$0xff]  }
 0x2b9   :  { %14756 = vpow2.f32 %v11295_v23  ;;  %v13659_v19 = vld [vmem:[#allocation19 + $0x80] ss:$12 sps:$4 sm:$0xff]   ;;  %v13662_v20 = vld [vmem:[#allocation19 + $0x64] ss:$12 sps:$4 sm:$0xff]   ;;  %v13663_v23 = vld [vmem:[#allocation19 + $0x68] ss:$12 sps:$4 sm:$0xff]  }
 0x2c4   :  { %v14755_v24 = vpop.eup %14754 }
 0x2c5   :  { %v1404_v0 = vadd.f32 1.0, %v14755_v24  ;;  %v13666_v24 = vld [vmem:[#allocation19 + $0x4c] ss:$12 sps:$4 sm:$0xff]  }
 0x2c6   :  { %v14757_v25 = vpop.eup %14756 }
 0x2c7   :  { %14758 = vrcp.f32 %v1404_v0  ;;  %v1411_v28 = vadd.f32 1.0, %v14757_v25  ;;  %v13664_v25 = vld [vmem:[#allocation19 + $0x48] ss:$12 sps:$4 sm:$0xff]  }
 0x2c9   :  { %14760 = vrcp.f32 %v1411_v28  ;;  %v13667_v28 = vld [vmem:[#allocation19 + $0x50] ss:$12 sps:$4 sm:$0xff]  }
 0x2d2   :  { %v1620_v31 = vpop.f32.mrf.mxu1  ;;  %v1661_v33 = vpop.f32.mrf.mxu0 }
 0x2d3   :  { %v1667_v34 = vadd.f32 %v1620_v31, %v1424_v30  ;;  %v1684_v8 = vadd.f32 %v15548_v6, %v1661_v33  ;;  %v13668_v33 = vld [vmem:[#allocation19 + $0x30] ss:$12 sps:$4 sm:$0xff]  }
 0x2d4   :  { %v14759_v35 = vpop.eup %14758  ;;  %v1622_v36 = vpop.f32.mrf.mxu1 }
 0x2d5   :  { %v12704_v37 = vpop.f32.mrf.mxu0  ;;  %v1415_v39 = vmul.f32 %v14759_v35, %v1414_v29  ;;  %v11320_v40 = vmul.f32 -1.442695, %v1667_v34  ;;  %v1677_v51 = vadd.f32 %v1675_v48, %v1622_v36  ;;  %v13670_v29 = vld [vmem:[#allocation19 + $0x34] ss:$12 sps:$4 sm:$0xff]   ;;  %v13671_v34 = vld [vmem:[#allocation19 + $0x38] ss:$12 sps:$4 sm:$0xff]  }
 0x2d6   :  { %v1624_v41 = vpop.f32.mrf.mxu1  ;;  %v14761_v53 = vpop.eup %14760  ;;  %v13674_v37 = vld [vmem:[#allocation19 + $0x1c] ss:$12 sps:$4 sm:$0xff]   ;;  %v13682_v48 = vld [vmem:[#allocation14 + $0xac] ss:$12 sps:$4 sm:$0xff]  }
 0x2d7   :  { %v1664_v44 = vpop.f32.mrf.mxu0  ;;  %v1416_v46 = vadd.f32 %v1415_v39, %v1153_v38  ;;  %14762 = vpow2.f32 %v11320_v40  ;;  %v11321_v52 = vmul.f32 -1.442695, %v1677_v51  ;;  %v1418_v58 = vsub.f32 1.0, %v14761_v53  ;;  %v13672_v39 = vld [vmem:[#allocation19 + $0x18] ss:$12 sps:$4 sm:$0xff]  }
 0x2d8   :  { %v1625_v49 = vpop.f32.mrf.mxu1  ;;  %v1420_v61 = vmul.f32 %v14761_v53, %v15472_v54  ;;  %v13675_v40 = vld [vmem:[#allocation19 + $0x20] ss:$12 sps:$4 sm:$0xff]   ;;  %v13678_v41 = vld [vmem:[#allocation19 + $0x4] ss:$12 sps:$4 sm:$0xff]  }
 0x2d9   :  { %v12705_v50 = vpop.f32.mrf.mxu0  ;;  %14764 = vtanh.f32 %v1416_v46  ;;  %v13676_v44 = vld [vmem:[#allocation19] ss:$12 sps:$4 sm:$0xff]   ;;  %v15564_v46 = vld [vmem:[#allocation8 + $0x2] sm:$0x1] }
 0x2da   :  { %14766 = vpow2.f32 %v11321_v52  ;;  %v1954_v49 = vpack.c.bf16 %v15564_v46, %v15564_v46  ;;  %v13680_v50 = vld [vmem:[#allocation14 + $0xa8] ss:$12 sps:$4 sm:$0xff]   ;;  %v13683_v51 = vld [vmem:[#allocation14 + $0xb0] ss:$12 sps:$4 sm:$0xff]  }
 0x2db   :  { %v13686_v52 = vld [vmem:[#allocation14 + $0x94] ss:$12 sps:$4 sm:$0xff]   ;;  %v13684_v53 = vld [vmem:[#allocation14 + $0x90] ss:$12 sps:$4 sm:$0xff]  }
 0x2e4   :  { %v14763_v57 = vpop.eup %14762 }
 0x2e5   :  { %v1671_v59 = vadd.f32 1.0, %v14763_v57  ;;  %v13687_v57 = vld [vmem:[#allocation14 + $0x98] ss:$12 sps:$4 sm:$0xff]  }
 0x2e6   :  { %v14765_v60 = vpop.eup %14764 }
 0x2e7   :  { %v1419_v62 = vmul.f32 %v14765_v60, %v1418_v58  ;;  %14768 = vrcp.f32 %v1671_v59  ;;  %v14767_v1 = vpop.eup %14766  ;;  %v13690_v58 = vld [vmem:[#allocation14 + $0x7c] ss:$12 sps:$4 sm:$0xff]   ;;  %v13688_v59 = vld [vmem:[#allocation14 + $0x78] ss:$12 sps:$4 sm:$0xff]   ;;  %v13691_v60 = vld [vmem:[#allocation14 + $0x80] ss:$12 sps:$4 sm:$0xff]  }
 0x2e8   :  { %v1681_v2 = vadd.f32 1.0, %v14767_v1  ;;  %v13695_v1 = vld [vmem:[#allocation14 + $0x68] ss:$12 sps:$4 sm:$0xff]  }
 0x2e9   :  { %v15545_v63 = vadd.f32 %v1420_v61, %v1419_v62  ;;  %v13694_v61 = vld [vmem:[#allocation14 + $0x64] ss:$12 sps:$4 sm:$0xff]   ;;  %v13692_v62 = vld [vmem:[#allocation14 + $0x60] ss:$12 sps:$4 sm:$0xff]  }
 0x2ea   :  { %14770 = vrcp.f32 %v1681_v2  ;;  %v13698_v2 = vld [vmem:[#allocation14 + $0x4c] ss:$12 sps:$4 sm:$0xff]  }
 0x2eb   :  { %1422 = vst [vmem:[#allocation4] sm:$0x1] %v15545_v63 }
 0x2f2   :  { %v1695_v4 = vld [vmem:[#allocation4] sm:$0x1] }
 0x2f3   :  { %v1696_v9 = vpack.c.bf16 %v1695_v4, %v1695_v4  ;;  %v13699_v4 = vld [vmem:[#allocation14 + $0x50] ss:$12 sps:$4 sm:$0xff]  }
 0x2f4   :  { %v14769_v12 = vpop.eup %14768 }
 0x2f5   :  { %v1685_v54 = vmul.f32 %v14769_v12, %v1684_v8  ;;  %1906 = vmatmul.mubr.bf16.vlgmr.msra.gmra.mxu1 %v1696_v9  ;;  %12723 = vmatmul.mubr.bf16.vlgmr.msra.gmra.mxu0 %v1696_v9  ;;  %v13700_v8 = vld [vmem:[#allocation14 + $0x30] ss:$12 sps:$4 sm:$0xff]   ;;  %v13703_v9 = vld [vmem:[#allocation14 + $0x38] ss:$12 sps:$4 sm:$0xff]  }
 0x2f6   :  { %2116 = vmatpush1.bf16.msra.mxu1 %v13648_v3  ;;  %12727 = vmatpush3.bf16.msra.mxu0 %v13651_v5  ;;  %v13696_v3 = vld [vmem:[#allocation14 + $0x48] ss:$12 sps:$4 sm:$0xff]   ;;  %v13704_v12 = vld [vmem:[#allocation14 + $0x18] ss:$12 sps:$4 sm:$0xff]  }
 0x2f7   :  { %v1688_v16 = vadd.f32 %v1686_v13, %v1685_v54  ;;  %2117 = vmatprep.subr.bf16.mxu1 %v13654_v10  ;;  %12728 = vmatprep.subr.bf16.mxu0 %v15452_v21  ;;  %v14771_v0 = vpop.eup %14770  ;;  %v13702_v5 = vld [vmem:[#allocation14 + $0x34] ss:$12 sps:$4 sm:$0xff]   ;;  %v13706_v10 = vld [vmem:[#allocation14 + $0x1c] ss:$12 sps:$4 sm:$0xff]   ;;  %v13710_v54 = vld [vmem:[#allocation14 + $0x4] ss:$12 sps:$4 sm:$0xff]  }
 0x2f8   :  { %2147 = vmatprep.mubr.bf16.mxu1 %v15285_v47  ;;  %12742 = vmatprep.mubr.msk.bf16.mxu0 %vm15286_vm0, %v15452_v21  ;;  %v1690_v30 = vsub.f32 1.0, %v14771_v0  ;;  %v1692_v36 = vmul.f32 %v14771_v0, %v15483_v32  ;;  %v13679_v32 = vld [vmem:[#allocation19 + $0x8] ss:$12 sps:$4 sm:$0xff]   ;;  %v13707_v13 = vld [vmem:[#allocation14 + $0x20] ss:$12 sps:$4 sm:$0xff]  }
 0x2f9   :  { %14772 = vtanh.f32 %v1688_v16  ;;  %v13714_v16 = vld [vmem:[#allocation16 + $0xac] ss:$12 sps:$4 sm:$0xff]   ;;  %v13722_v0 = vld [vmem:[#allocation16 + $0x7c] ss:$12 sps:$4 sm:$0xff]  }
 0x2fa   :  { %2118 = vmatpush1.bf16.msra.mxu1 %v13652_v14  ;;  %12729 = vmatpush3.bf16.msra.mxu0 %v13655_v15  ;;  %v13708_v14 = vld [vmem:[#allocation14] ss:$12 sps:$4 sm:$0xff]   ;;  %v13711_v15 = vld [vmem:[#allocation14 + $0x8] ss:$12 sps:$4 sm:$0xff]  }
 0x2fb   :  { %2119 = vmatprep.subr.bf16.mxu1 %v13658_v17  ;;  %12730 = vmatprep.subr.bf16.mxu0 %v15452_v21 }
 0x2fe   :  { %2120 = vmatpush1.bf16.msra.mxu1 %v13656_v18  ;;  %12731 = vmatpush3.bf16.msra.mxu0 %v13659_v19  ;;  %v13712_v18 = vld [vmem:[#allocation16 + $0xa8] ss:$12 sps:$4 sm:$0xff]   ;;  %v13715_v19 = vld [vmem:[#allocation16 + $0xb0] ss:$12 sps:$4 sm:$0xff]  }
 0x2ff   :  { %2121 = vmatprep.subr.bf16.mxu1 %v13662_v20  ;;  %12732 = vmatprep.subr.bf16.mxu0 %v15452_v21 }
 0x302   :  { %2122 = vmatpush1.bf16.msra.mxu1 %v13660_v22  ;;  %12733 = vmatpush3.bf16.msra.mxu0 %v13663_v23  ;;  %v13718_v22 = vld [vmem:[#allocation16 + $0x94] ss:$12 sps:$4 sm:$0xff]   ;;  %v13716_v23 = vld [vmem:[#allocation16 + $0x90] ss:$12 sps:$4 sm:$0xff]  }
 0x303   :  { %2123 = vmatprep.subr.bf16.mxu1 %v13666_v24  ;;  %12734 = vmatprep.subr.bf16.mxu0 %v15452_v21  ;;  %v13719_v24 = vld [vmem:[#allocation16 + $0x98] ss:$12 sps:$4 sm:$0xff]  }
 0x306   :  { %v14773_v31 = vpop.eup %14772  ;;  %2124 = vmatpush1.bf16.msra.mxu1 %v13664_v25  ;;  %12735 = vmatpush3.bf16.msra.mxu0 %v13667_v28  ;;  %v13720_v25 = vld [vmem:[#allocation16 + $0x78] ss:$12 sps:$4 sm:$0xff]   ;;  %v13723_v28 = vld [vmem:[#allocation16 + $0x80] ss:$12 sps:$4 sm:$0xff]  }
 0x307   :  { %v1691_v35 = vmul.f32 %v14773_v31, %v1690_v30  ;;  %2125 = vmatprep.subr.bf16.mxu1 %v13670_v29  ;;  %12736 = vmatprep.subr.bf16.mxu0 %v15452_v21  ;;  %v13726_v29 = vld [vmem:[#allocation16 + $0x64] ss:$12 sps:$4 sm:$0xff]   ;;  %v13724_v30 = vld [vmem:[#allocation16 + $0x60] ss:$12 sps:$4 sm:$0xff]   ;;  %v13727_v31 = vld [vmem:[#allocation16 + $0x68] ss:$12 sps:$4 sm:$0xff]  }
 0x309   :  { %v15560_v38 = vadd.f32 %v1692_v36, %v1691_v35  ;;  %v13731_v35 = vld [vmem:[#allocation16 + $0x50] ss:$12 sps:$4 sm:$0xff]   ;;  %v13734_v36 = vld [vmem:[#allocation16 + $0x34] ss:$12 sps:$4 sm:$0xff]  }
 0x30a   :  { %2126 = vmatpush1.bf16.msra.mxu1 %v13668_v33  ;;  %12737 = vmatpush3.bf16.msra.mxu0 %v13671_v34  ;;  %v13730_v33 = vld [vmem:[#allocation16 + $0x4c] ss:$12 sps:$4 sm:$0xff]   ;;  %v13728_v34 = vld [vmem:[#allocation16 + $0x48] ss:$12 sps:$4 sm:$0xff]  }
 0x30b   :  { %1694 = vst [vmem:[#allocation3 + $0x1] sm:$0x1] %v15560_v38  ;;  %2127 = vmatprep.subr.bf16.mxu1 %v13674_v37  ;;  %12738 = vmatprep.subr.bf16.mxu0 %v15452_v21  ;;  %v13732_v37 = vld [vmem:[#allocation16 + $0x30] ss:$12 sps:$4 sm:$0xff]  }
 0x30e   :  { %2128 = vmatpush1.bf16.msra.mxu1 %v13672_v39  ;;  %12739 = vmatpush3.bf16.msra.mxu0 %v13675_v40  ;;  %v13735_v39 = vld [vmem:[#allocation16 + $0x38] ss:$12 sps:$4 sm:$0xff]   ;;  %v13738_v40 = vld [vmem:[#allocation16 + $0x1c] ss:$12 sps:$4 sm:$0xff]  }
 0x30f   :  { %2129 = vmatprep.subr.bf16.mxu1 %v13678_v41  ;;  %12740 = vmatprep.subr.bf16.mxu0 %v15452_v21  ;;  %v13736_v41 = vld [vmem:[#allocation16 + $0x18] ss:$12 sps:$4 sm:$0xff]  }
 0x312   :  { %2130 = vmatpush1.bf16.msra.mxu1 %v13676_v44  ;;  %12741 = vmatpush3.bf16.msra.mxu0 %v13679_v32  ;;  %v2218_v17 = vld [vmem:[#allocation3 + $0x1] sm:$0x1]  ;;  %v13739_v44 = vld [vmem:[#allocation16 + $0x20] ss:$12 sps:$4 sm:$0xff]   ;;  %v13742_v32 = vld [vmem:[#allocation16 + $0x4] ss:$12 sps:$4 sm:$0xff]  }
 0x313   :  { %2380 = vmatprep.subr.bf16.mxu1 %v13682_v48  ;;  %12746 = vmatprep.subr.bf16.mxu0 %v15452_v21  ;;  %v2219_v20 = vpack.c.bf16 %v2218_v17, %v2218_v17  ;;  %v13740_v48 = vld [vmem:[#allocation16] ss:$12 sps:$4 sm:$0xff]   ;;  %v13775_v17 = vld [vmem:[#allocation11 + $0x8] ss:$12 sps:$4 sm:$0xff]  }
 0x315   :  { %2148 = vmatmul.mubr.bf16.vlgmr.msra.gmra.mxu1 %v1954_v49  ;;  %12743 = vmatmul.mubr.bf16.vlgmr.msra.gmra.mxu0 %v1954_v49  ;;  %v13743_v49 = vld [vmem:[#allocation16 + $0x8] ss:$12 sps:$4 sm:$0xff]  }
 0x316   :  { %2381 = vmatpush1.bf16.msra.mxu1 %v13680_v50  ;;  %12747 = vmatpush3.bf16.msra.mxu0 %v13683_v51  ;;  %v13746_v50 = vld [vmem:[#allocation11 + $0xac] ss:$12 sps:$4 sm:$0xff]   ;;  %v13744_v51 = vld [vmem:[#allocation11 + $0xa8] ss:$12 sps:$4 sm:$0xff]  }
 0x317   :  { %2382 = vmatprep.subr.bf16.mxu1 %v13686_v52  ;;  %12748 = vmatprep.subr.bf16.mxu0 %v15452_v21  ;;  %v13747_v52 = vld [vmem:[#allocation11 + $0xb0] ss:$12 sps:$4 sm:$0xff]  }
 0x318   :  { %2412 = vmatprep.mubr.bf16.mxu1 %v15285_v47  ;;  %12762 = vmatprep.mubr.msk.bf16.mxu0 %vm15286_vm0, %v15452_v21 }
 0x31a   :  { %2383 = vmatpush1.bf16.msra.mxu1 %v13684_v53  ;;  %12749 = vmatpush3.bf16.msra.mxu0 %v13687_v57  ;;  %v2461_v53 = vpack.c.bf16 %v15545_v63, %v15545_v63  ;;  %v13750_v57 = vld [vmem:[#allocation11 + $0x94] ss:$12 sps:$4 sm:$0xff]  }
 0x31b   :  { %2384 = vmatprep.subr.bf16.mxu1 %v13690_v58  ;;  %12750 = vmatprep.subr.bf16.mxu0 %v15452_v21  ;;  %v13748_v58 = vld [vmem:[#allocation11 + $0x90] ss:$12 sps:$4 sm:$0xff]  }
 0x31e   :  { %2385 = vmatpush1.bf16.msra.mxu1 %v13688_v59  ;;  %12751 = vmatpush3.bf16.msra.mxu0 %v13691_v60  ;;  %v13751_v59 = vld [vmem:[#allocation11 + $0x98] ss:$12 sps:$4 sm:$0xff]   ;;  %v13754_v60 = vld [vmem:[#allocation11 + $0x7c] ss:$12 sps:$4 sm:$0xff]  }
 0x31f   :  { %2386 = vmatprep.subr.bf16.mxu1 %v13694_v61  ;;  %12752 = vmatprep.subr.bf16.mxu0 %v15452_v21  ;;  %v13752_v61 = vld [vmem:[#allocation11 + $0x78] ss:$12 sps:$4 sm:$0xff]  }
 0x322   :  { %2387 = vmatpush1.bf16.msra.mxu1 %v13692_v62  ;;  %12753 = vmatpush3.bf16.msra.mxu0 %v13695_v1  ;;  %v13755_v62 = vld [vmem:[#allocation11 + $0x80] ss:$12 sps:$4 sm:$0xff]   ;;  %v13758_v1 = vld [vmem:[#allocation11 + $0x64] ss:$12 sps:$4 sm:$0xff]  }
 0x323   :  { %2388 = vmatprep.subr.bf16.mxu1 %v13698_v2  ;;  %12754 = vmatprep.subr.bf16.mxu0 %v15452_v21  ;;  %v13756_v2 = vld [vmem:[#allocation11 + $0x60] ss:$12 sps:$4 sm:$0xff]  }
 0x326   :  { %2389 = vmatpush1.bf16.msra.mxu1 %v13696_v3  ;;  %12755 = vmatpush3.bf16.msra.mxu0 %v13699_v4  ;;  %v13759_v3 = vld [vmem:[#allocation11 + $0x68] ss:$12 sps:$4 sm:$0xff]   ;;  %v13762_v4 = vld [vmem:[#allocation11 + $0x4c] ss:$12 sps:$4 sm:$0xff]  }
 0x327   :  { %2390 = vmatprep.subr.bf16.mxu1 %v13702_v5  ;;  %12756 = vmatprep.subr.bf16.mxu0 %v15452_v21  ;;  %v13760_v5 = vld [vmem:[#allocation11 + $0x48] ss:$12 sps:$4 sm:$0xff]  }
 0x32a   :  { %2391 = vmatpush1.bf16.msra.mxu1 %v13700_v8  ;;  %12757 = vmatpush3.bf16.msra.mxu0 %v13703_v9  ;;  %v13763_v8 = vld [vmem:[#allocation11 + $0x50] ss:$12 sps:$4 sm:$0xff]   ;;  %v13766_v9 = vld [vmem:[#allocation11 + $0x34] ss:$12 sps:$4 sm:$0xff]  }
 0x32b   :  { %2392 = vmatprep.subr.bf16.mxu1 %v13706_v10  ;;  %12758 = vmatprep.subr.bf16.mxu0 %v15452_v21  ;;  %v13764_v10 = vld [vmem:[#allocation11 + $0x30] ss:$12 sps:$4 sm:$0xff]  }
 0x32e   :  { %2393 = vmatpush1.bf16.msra.mxu1 %v13704_v12  ;;  %12759 = vmatpush3.bf16.msra.mxu0 %v13707_v13  ;;  %v13767_v12 = vld [vmem:[#allocation11 + $0x38] ss:$12 sps:$4 sm:$0xff]   ;;  %v13770_v13 = vld [vmem:[#allocation11 + $0x1c] ss:$12 sps:$4 sm:$0xff]  }
 0x32f   :  { %2394 = vmatprep.subr.bf16.mxu1 %v13710_v54  ;;  %12760 = vmatprep.subr.bf16.mxu0 %v15452_v21  ;;  %v13768_v54 = vld [vmem:[#allocation11 + $0x18] ss:$12 sps:$4 sm:$0xff]  }
 0x332   :  { %2395 = vmatpush1.bf16.msra.mxu1 %v13708_v14  ;;  %12761 = vmatpush3.bf16.msra.mxu0 %v13711_v15  ;;  %v13771_v14 = vld [vmem:[#allocation11 + $0x20] ss:$12 sps:$4 sm:$0xff]   ;;  %v13774_v15 = vld [vmem:[#allocation11 + $0x4] ss:$12 sps:$4 sm:$0xff]  }
 0x333   :  { %2622 = vmatprep.subr.bf16.mxu1 %v13714_v16  ;;  %12766 = vmatprep.subr.bf16.mxu0 %v15452_v21  ;;  %v13772_v16 = vld [vmem:[#allocation11] ss:$12 sps:$4 sm:$0xff]  }
 0x335   :  { %2413 = vmatmul.mubr.bf16.vlgmr.msra.gmra.mxu1 %v2219_v20  ;;  %12763 = vmatmul.mubr.bf16.vlgmr.msra.gmra.mxu0 %v2219_v20 }
 0x336   :  { %2623 = vmatpush1.bf16.msra.mxu1 %v13712_v18  ;;  %12767 = vmatpush3.bf16.msra.mxu0 %v13715_v19  ;;  %v2728_v18 = vpack.c.bf16 %v15560_v38, %v15560_v38 }
 0x337   :  { %2624 = vmatprep.subr.bf16.mxu1 %v13718_v22  ;;  %12768 = vmatprep.subr.bf16.mxu0 %v15452_v21  ;;  %v13778_v22 = vld [vmem:[#allocation17 + $0xac] ss:$12 sps:$4 sm:$0xff]  }
 0x338   :  { %2654 = vmatprep.mubr.bf16.mxu1 %v15285_v47  ;;  %12782 = vmatprep.mubr.msk.bf16.mxu0 %vm15286_vm0, %v15452_v21 }
 0x33a   :  { %2625 = vmatpush1.bf16.msra.mxu1 %v13716_v23  ;;  %12769 = vmatpush3.bf16.msra.mxu0 %v13719_v24 }
 0x33b   :  { %2626 = vmatprep.subr.bf16.mxu1 %v13722_v0  ;;  %12770 = vmatprep.subr.bf16.mxu0 %v15452_v21  ;;  %v13776_v0 = vld [vmem:[#allocation17 + $0xa8] ss:$12 sps:$4 sm:$0xff]  }
 0x33e   :  { %2627 = vmatpush1.bf16.msra.mxu1 %v13720_v25  ;;  %12771 = vmatpush3.bf16.msra.mxu0 %v13723_v28  ;;  %v13779_v25 = vld [vmem:[#allocation17 + $0xb0] ss:$12 sps:$4 sm:$0xff]  }
 0x33f   :  { %2628 = vmatprep.subr.bf16.mxu1 %v13726_v29  ;;  %12772 = vmatprep.subr.bf16.mxu0 %v15452_v21 }
 0x342   :  { %2629 = vmatpush1.bf16.msra.mxu1 %v13724_v30  ;;  %12773 = vmatpush3.bf16.msra.mxu0 %v13727_v31  ;;  %v13782_v30 = vld [vmem:[#allocation17 + $0x94] ss:$12 sps:$4 sm:$0xff]  }
 0x343   :  { %2630 = vmatprep.subr.bf16.mxu1 %v13730_v33  ;;  %12774 = vmatprep.subr.bf16.mxu0 %v15452_v21 }
 0x346   :  { %2631 = vmatpush1.bf16.msra.mxu1 %v13728_v34  ;;  %12775 = vmatpush3.bf16.msra.mxu0 %v13731_v35  ;;  %v13780_v34 = vld [vmem:[#allocation17 + $0x90] ss:$12 sps:$4 sm:$0xff]   ;;  %v13783_v35 = vld [vmem:[#allocation17 + $0x98] ss:$12 sps:$4 sm:$0xff]  }
 0x347   :  { %2632 = vmatprep.subr.bf16.mxu1 %v13734_v36  ;;  %12776 = vmatprep.subr.bf16.mxu0 %v15452_v21  ;;  %v13786_v36 = vld [vmem:[#allocation17 + $0x7c] ss:$12 sps:$4 sm:$0xff]  }
 0x34a   :  { %2633 = vmatpush1.bf16.msra.mxu1 %v13732_v37  ;;  %12777 = vmatpush3.bf16.msra.mxu0 %v13735_v39  ;;  %v13784_v37 = vld [vmem:[#allocation17 + $0x78] ss:$12 sps:$4 sm:$0xff]   ;;  %v13787_v39 = vld [vmem:[#allocation17 + $0x80] ss:$12 sps:$4 sm:$0xff]  }
 0x34b   :  { %2634 = vmatprep.subr.bf16.mxu1 %v13738_v40  ;;  %12778 = vmatprep.subr.bf16.mxu0 %v15452_v21  ;;  %v13790_v40 = vld [vmem:[#allocation17 + $0x64] ss:$12 sps:$4 sm:$0xff]  }
 0x34e   :  { %2635 = vmatpush1.bf16.msra.mxu1 %v13736_v41  ;;  %12779 = vmatpush3.bf16.msra.mxu0 %v13739_v44  ;;  %v13788_v41 = vld [vmem:[#allocation17 + $0x60] ss:$12 sps:$4 sm:$0xff]   ;;  %v13791_v44 = vld [vmem:[#allocation17 + $0x68] ss:$12 sps:$4 sm:$0xff]  }
 0x34f   :  { %2636 = vmatprep.subr.bf16.mxu1 %v13742_v32  ;;  %12780 = vmatprep.subr.bf16.mxu0 %v15452_v21  ;;  %v13794_v32 = vld [vmem:[#allocation17 + $0x4c] ss:$12 sps:$4 sm:$0xff]  }
 0x352   :  { %2637 = vmatpush1.bf16.msra.mxu1 %v13740_v48  ;;  %12781 = vmatpush3.bf16.msra.mxu0 %v13743_v49  ;;  %v13792_v48 = vld [vmem:[#allocation17 + $0x48] ss:$12 sps:$4 sm:$0xff]   ;;  %v13795_v49 = vld [vmem:[#allocation17 + $0x50] ss:$12 sps:$4 sm:$0xff]  }
 0x353   :  { %2889 = vmatprep.subr.bf16.mxu1 %v13746_v50  ;;  %12786 = vmatprep.subr.bf16.mxu0 %v15452_v21  ;;  %v13798_v50 = vld [vmem:[#allocation17 + $0x34] ss:$12 sps:$4 sm:$0xff]  }
 0x355   :  { %2655 = vmatmul.mubr.bf16.vlgmr.msra.gmra.mxu1 %v2461_v53  ;;  %12783 = vmatmul.mubr.bf16.vlgmr.msra.gmra.mxu0 %v2461_v53  ;;  %v192_v53 = vld [vmem:[%s16369_s12] sm:$0x7] }
 0x356   :  { %2890 = vmatpush1.bf16.msra.mxu1 %v13744_v51  ;;  %12787 = vmatpush3.bf16.msra.mxu0 %v13747_v52  ;;  %v13796_v51 = vld [vmem:[#allocation17 + $0x30] ss:$12 sps:$4 sm:$0xff]   ;;  %v13799_v52 = vld [vmem:[#allocation17 + $0x38] ss:$12 sps:$4 sm:$0xff]  }
 0x357   :  { %2891 = vmatprep.subr.bf16.mxu1 %v13750_v57  ;;  %12788 = vmatprep.subr.bf16.mxu0 %v15452_v21  ;;  %v13802_v57 = vld [vmem:[#allocation17 + $0x1c] ss:$12 sps:$4 sm:$0xff]  }
 0x358   :  { %2921 = vmatprep.mubr.bf16.mxu1 %v15285_v47  ;;  %12802 = vmatprep.mubr.msk.bf16.mxu0 %vm15286_vm0, %v15452_v21 }
 0x35a   :  { %2892 = vmatpush1.bf16.msra.mxu1 %v13748_v58  ;;  %12789 = vmatpush3.bf16.msra.mxu0 %v13751_v59  ;;  %v13800_v58 = vld [vmem:[#allocation17 + $0x18] ss:$12 sps:$4 sm:$0xff]   ;;  %v13803_v59 = vld [vmem:[#allocation17 + $0x20] ss:$12 sps:$4 sm:$0xff]  }
 0x35b   :  { %2893 = vmatprep.subr.bf16.mxu1 %v13754_v60  ;;  %12790 = vmatprep.subr.bf16.mxu0 %v15452_v21  ;;  %v15626_v60 = vrot.slane %v192_v53, %v15476_v55 }
 0x35e   :  { %2894 = vmatpush1.bf16.msra.mxu1 %v13752_v61  ;;  %12791 = vmatpush3.bf16.msra.mxu0 %v13755_v62  ;;  %v15629_v61 = vrot.slane %v192_v53, %v15479_v56  ;;  %v13806_v62 = vld [vmem:[#allocation17 + $0x4] ss:$12 sps:$4 sm:$0xff]  }
 0x35f   :  { %2895 = vmatprep.subr.bf16.mxu1 %v13758_v1  ;;  %12792 = vmatprep.subr.bf16.mxu0 %v15452_v21  ;;  %v13804_v1 = vld [vmem:[#allocation17] ss:$12 sps:$4 sm:$0xff]  }
 0x362   :  { %2896 = vmatpush1.bf16.msra.mxu1 %v13756_v2  ;;  %12793 = vmatpush3.bf16.msra.mxu0 %v13759_v3  ;;  %v13807_v2 = vld [vmem:[#allocation17 + $0x8] ss:$12 sps:$4 sm:$0xff]  }
 0x363   :  { %2897 = vmatprep.subr.bf16.mxu1 %v13762_v4  ;;  %12794 = vmatprep.subr.bf16.mxu0 %v15452_v21 }
 0x366   :  { %2898 = vmatpush1.bf16.msra.mxu1 %v13760_v5  ;;  %12795 = vmatpush3.bf16.msra.mxu0 %v13763_v8 }
 0x367   :  { %2899 = vmatprep.subr.bf16.mxu1 %v13766_v9  ;;  %12796 = vmatprep.subr.bf16.mxu0 %v15452_v21 }
 0x36a   :  { %2900 = vmatpush1.bf16.msra.mxu1 %v13764_v10  ;;  %12797 = vmatpush3.bf16.msra.mxu0 %v13767_v12  ;;  %v13810_v10 = vld [vmem:[#allocation19 + $0xac] ss:$12 sps:$4 sm:$0xff]  }
 0x36b   :  { %2901 = vmatprep.subr.bf16.mxu1 %v13770_v13  ;;  %12798 = vmatprep.subr.bf16.mxu0 %v15452_v21 }
 0x36e   :  { %2902 = vmatpush1.bf16.msra.mxu1 %v13768_v54  ;;  %12799 = vmatpush3.bf16.msra.mxu0 %v13771_v14 }
 0x36f   :  { %2903 = vmatprep.subr.bf16.mxu1 %v13774_v15  ;;  %12800 = vmatprep.subr.bf16.mxu0 %v15452_v21 }
 0x372   :  { %2904 = vmatpush1.bf16.msra.mxu1 %v13772_v16  ;;  %12801 = vmatpush3.bf16.msra.mxu0 %v13775_v17 }
 0x373   :  { %12806 = vmatprep.subr.bf16.mxu0 %v15452_v21  ;;  %3160 = vmatprep.subr.bf16.mxu1 %v13778_v22 }
 0x375   :  { %2922 = vmatmul.mubr.bf16.vlgmr.msra.gmra.mxu1 %v2728_v18  ;;  %12803 = vmatmul.mubr.bf16.vlgmr.msra.gmra.mxu0 %v2728_v18 }
 0x376   :  { %3192 = vmatprep.mubr.bf16.mxu1 %v15285_v47  ;;  %12822 = vmatprep.mubr.msk.bf16.mxu0 %vm15286_vm0, %v15452_v21 }
 0x377   :  { %3161 = vmatpush1.bf16.msra.mxu1 %v13776_v0  ;;  %12807 = vmatpush3.bf16.msra.mxu0 %v13779_v25  ;;  %v15640_v0 = vld [vmem:[%s16370_s13] sm:$0x1]  ;;  %v15643_v25 = vrot.slane %v192_v53, %v15469_v45 }
 0x378   :  { %12808 = vmatprep.subr.bf16.mxu0 %v15452_v21  ;;  %3162 = vmatprep.subr.bf16.mxu1 %v13782_v30 }
 0x37b   :  { %3163 = vmatpush1.bf16.msra.mxu1 %v13780_v34  ;;  %12809 = vmatpush3.bf16.msra.mxu0 %v13783_v35 }
 0x37c   :  { %12810 = vmatprep.subr.bf16.mxu0 %v15452_v21  ;;  %3164 = vmatprep.subr.bf16.mxu1 %v13786_v36 }
 0x37f   :  { %3165 = vmatpush1.bf16.msra.mxu1 %v13784_v37  ;;  %12811 = vmatpush3.bf16.msra.mxu0 %v13787_v39 }
 0x380   :  { %12812 = vmatprep.subr.bf16.mxu0 %v15452_v21  ;;  %3166 = vmatprep.subr.bf16.mxu1 %v13790_v40 }
 0x383   :  { %3167 = vmatpush1.bf16.msra.mxu1 %v13788_v41  ;;  %12813 = vmatpush3.bf16.msra.mxu0 %v13791_v44 }
 0x384   :  { %12814 = vmatprep.subr.bf16.mxu0 %v15452_v21  ;;  %3168 = vmatprep.subr.bf16.mxu1 %v13794_v32 }
 0x387   :  { %3169 = vmatpush1.bf16.msra.mxu1 %v13792_v48  ;;  %12815 = vmatpush3.bf16.msra.mxu0 %v13795_v49 }
 0x388   :  { %12816 = vmatprep.subr.bf16.mxu0 %v15452_v21  ;;  %3170 = vmatprep.subr.bf16.mxu1 %v13798_v50 }
 0x38b   :  { %3171 = vmatpush1.bf16.msra.mxu1 %v13796_v51  ;;  %12817 = vmatpush3.bf16.msra.mxu0 %v13799_v52 }
 0x38c   :  { %12818 = vmatprep.subr.bf16.mxu0 %v15452_v21  ;;  %3172 = vmatprep.subr.bf16.mxu1 %v13802_v57 }
 0x38f   :  { %3173 = vmatpush1.bf16.msra.mxu1 %v13800_v58  ;;  %12819 = vmatpush3.bf16.msra.mxu0 %v13803_v59 }
 0x390   :  { %12820 = vmatprep.subr.bf16.mxu0 %v15452_v21  ;;  %3174 = vmatprep.subr.bf16.mxu1 %v13806_v62 }
 0x393   :  { %3175 = vmatpush1.bf16.msra.mxu1 %v13804_v1  ;;  %12821 = vmatpush3.bf16.msra.mxu0 %v13807_v2 }
 0x394   :  { %12826 = vmatprep.subr.bf16.mxu0 %v15452_v21  ;;  %3402 = vmatprep.subr.bf16.mxu1 %v13810_v10 }
 0x3b5   :  { %v15610_v19 = vpop.f32.mrf.mxu1  ;;  %v15612_v20 = vpop.f32.mrf.mxu0 }
 0x3b6   :  { %v1908_v3 = vadd.f32 %v15610_v19, %v15626_v60  ;;  %v1949_v36 = vadd.f32 %v15612_v20, %v15643_v25 }
 0x3b7   :  { %v15614_v23 = vpop.f32.mrf.mxu1  ;;  %v12724_v24 = vpop.f32.mrf.mxu0 }
 0x3b8   :  { %v1910_v8 = vadd.f32 %v15614_v23, %v15629_v61 }
 0x3b9   :  { %v1911_v28 = vpop.f32.mrf.mxu1  ;;  %v1951_v29 = vpop.f32.mrf.mxu0 }
 0x3bb   :  { %v1912_v31 = vpop.f32.mrf.mxu1  ;;  %v12725_v33 = vpop.f32.mrf.mxu0 }
 0x3d5   :  { %v2149_v4 = vpop.f32.mrf.mxu1  ;;  %v2190_v5 = vpop.f32.mrf.mxu0 }
 0x3d6   :  { %v2196_v9 = vadd.f32 %v2149_v4, %v1908_v3  ;;  %v2210_v29 = vadd.f32 %v2190_v5, %v15640_v0 }
 0x3d7   :  { %v2151_v12 = vpop.f32.mrf.mxu1  ;;  %v12744_v13 = vpop.f32.mrf.mxu0 }
 0x3d8   :  { %v11370_v54 = vmul.f32 -1.442695, %v2196_v9  ;;  %v2203_v14 = vadd.f32 %v2151_v12, %v1910_v8 }
 0x3d9   :  { %v2153_v15 = vpop.f32.mrf.mxu1  ;;  %v2193_v16 = vpop.f32.mrf.mxu0 }
 0x3da   :  { %14774 = vpow2.f32 %v11370_v54  ;;  %v11371_v19 = vmul.f32 -1.442695, %v2203_v14  ;;  %v2727_v14 = vld [vmem:[#allocation2 + $0x2] ss:$8 sm:$0x7] }
 0x3db   :  { %v2154_v17 = vpop.f32.mrf.mxu1  ;;  %v12745_v18 = vpop.f32.mrf.mxu0 }
 0x3dc   :  { %14776 = vpow2.f32 %v11371_v19 }
 0x3e7   :  { %v14775_v22 = vpop.eup %14774 }
 0x3e8   :  { %v2200_v24 = vadd.f32 1.0, %v14775_v22 }
 0x3e9   :  { %v14777_v23 = vpop.eup %14776 }
 0x3ea   :  { %14778 = vrcp.f32 %v2200_v24  ;;  %v2207_v28 = vadd.f32 1.0, %v14777_v23 }
 0x3ec   :  { %14780 = vrcp.f32 %v2207_v28 }
 0x3f5   :  { %v2414_v30 = vpop.f32.mrf.mxu1  ;;  %v2455_v31 = vpop.f32.mrf.mxu0 }
 0x3f6   :  { %v2415_v53 = vadd.f32 %v2414_v30, %v15527_v7  ;;  %v2456_v23 = vadd.f32 %v2455_v31, %v15540_v27 }
 0x3f7   :  { %v14779_v33 = vpop.eup %14778  ;;  %v2416_v34 = vpop.f32.mrf.mxu1 }
 0x3f8   :  { %v12764_v35 = vpop.f32.mrf.mxu0  ;;  %v2211_v37 = vmul.f32 %v14779_v33, %v2210_v29  ;;  %v2417_v4 = vadd.f32 %v2416_v34, %v15531_v11 }
 0x3f9   :  { %v2418_v39 = vpop.f32.mrf.mxu1  ;;  %v14781_v45 = vpop.eup %14780  ;;  %v2978_v35 = vrot.slane %v2727_v14, 1 }
 0x3fa   :  { %v2458_v40 = vpop.f32.mrf.mxu0  ;;  %v2212_v41 = vadd.f32 %v2211_v37, %v1949_v36  ;;  %v2214_v48 = vsub.f32 1.0, %v14781_v45  ;;  %v2216_v51 = vmul.f32 %v14781_v45, %v15564_v46 }
 0x3fb   :  { %v2419_v44 = vpop.f32.mrf.mxu1 }
 0x3fc   :  { %v12765_v32 = vpop.f32.mrf.mxu0  ;;  %14782 = vtanh.f32 %v2212_v41 }
 0x409   :  { %v14783_v49 = vpop.eup %14782 }
 0x40a   :  { %v2215_v50 = vmul.f32 %v14783_v49, %v2214_v48 }
 0x40c   :  { %v15649_v52 = vadd.f32 %v2216_v51, %v2215_v50 }
 0x415   :  { %v2656_v57 = vpop.f32.mrf.mxu1  ;;  %v2697_v20 = vpop.f32.mrf.mxu0 }
 0x416   :  { %v2703_v58 = vadd.f32 %v2656_v57, %v2415_v53  ;;  %v2717_v17 = vadd.f32 %v2697_v20, %v15537_v26  ;;  %v13808_v53 = vld [vmem:[#allocation19 + $0xa8] ss:$12 sps:$4 sm:$0xff]   ;;  %v13811_v20 = vld [vmem:[#allocation19 + $0xb0] ss:$12 sps:$4 sm:$0xff]  }
 0x417   :  { %v2658_v59 = vpop.f32.mrf.mxu1  ;;  %v12784_v62 = vpop.f32.mrf.mxu0 }
 0x418   :  { %v11420_v1 = vmul.f32 -1.442695, %v2703_v58  ;;  %v2710_v9 = vadd.f32 %v2658_v59, %v2417_v4  ;;  %v13814_v62 = vld [vmem:[#allocation19 + $0x94] ss:$12 sps:$4 sm:$0xff]   ;;  %v13815_v4 = vld [vmem:[#allocation19 + $0x98] ss:$12 sps:$4 sm:$0xff]  }
 0x419   :  { %v2660_v2 = vpop.f32.mrf.mxu1  ;;  %v2700_v3 = vpop.f32.mrf.mxu0 }
 0x41a   :  { %14784 = vpow2.f32 %v11420_v1  ;;  %v11421_v10 = vmul.f32 -1.442695, %v2710_v9  ;;  %v2989_v2 = vrot.slane %v2727_v14, 2  ;;  %v13819_v9 = vld [vmem:[#allocation19 + $0x80] ss:$12 sps:$4 sm:$0xff]  }
 0x41b   :  { %v2661_v5 = vpop.f32.mrf.mxu1  ;;  %v12785_v8 = vpop.f32.mrf.mxu0 }
 0x41c   :  { %14786 = vpow2.f32 %v11421_v10  ;;  %v13818_v8 = vld [vmem:[#allocation19 + $0x7c] ss:$12 sps:$4 sm:$0xff]   ;;  %v13822_v10 = vld [vmem:[#allocation19 + $0x64] ss:$12 sps:$4 sm:$0xff]  }
 0x427   :  { %v14785_v46 = vpop.eup %14784 }
 0x428   :  { %v2707_v12 = vadd.f32 1.0, %v14785_v46  ;;  %v13820_v46 = vld [vmem:[#allocation19 + $0x60] ss:$12 sps:$4 sm:$0xff]  }
 0x429   :  { %v14787_v13 = vpop.eup %14786 }
 0x42a   :  { %14788 = vrcp.f32 %v2707_v12  ;;  %v2714_v54 = vadd.f32 1.0, %v14787_v13  ;;  %v13823_v12 = vld [vmem:[#allocation19 + $0x68] ss:$12 sps:$4 sm:$0xff]   ;;  %v13826_v13 = vld [vmem:[#allocation19 + $0x4c] ss:$12 sps:$4 sm:$0xff]  }
 0x42c   :  { %14790 = vrcp.f32 %v2714_v54 }
 0x435   :  { %v2923_v15 = vpop.f32.mrf.mxu1  ;;  %v2964_v16 = vpop.f32.mrf.mxu0 }
 0x436   :  { %v2970_v18 = vadd.f32 %v2923_v15, %v2727_v14  ;;  %v2987_v58 = vadd.f32 %v15548_v6, %v2964_v16  ;;  %v13816_v6 = vld [vmem:[#allocation19 + $0x78] ss:$12 sps:$4 sm:$0xff]   ;;  %v13824_v14 = vld [vmem:[#allocation19 + $0x48] ss:$12 sps:$4 sm:$0xff]   ;;  %v13827_v15 = vld [vmem:[#allocation19 + $0x50] ss:$12 sps:$4 sm:$0xff]  }
 0x437   :  { %v14789_v19 = vpop.eup %14788  ;;  %v2925_v22 = vpop.f32.mrf.mxu1  ;;  %v13830_v16 = vld [vmem:[#allocation19 + $0x34] ss:$12 sps:$4 sm:$0xff]  }
 0x438   :  { %v12804_v24 = vpop.f32.mrf.mxu0  ;;  %v2718_v28 = vmul.f32 %v14789_v19, %v2717_v17  ;;  %v11446_v29 = vmul.f32 -1.442695, %v2970_v18  ;;  %v2980_v39 = vadd.f32 %v2978_v35, %v2925_v22  ;;  %v13828_v19 = vld [vmem:[#allocation19 + $0x30] ss:$12 sps:$4 sm:$0xff]   ;;  %v13831_v22 = vld [vmem:[#allocation19 + $0x38] ss:$12 sps:$4 sm:$0xff]  }
 0x439   :  { %v2927_v30 = vpop.f32.mrf.mxu1  ;;  %v14791_v26 = vpop.eup %14790  ;;  %v13836_v35 = vld [vmem:[#allocation19] ss:$12 sps:$4 sm:$0xff]  }
 0x43a   :  { %v2967_v33 = vpop.f32.mrf.mxu0  ;;  %v2719_v34 = vadd.f32 %v2718_v28, %v2456_v23  ;;  %14792 = vpow2.f32 %v11446_v29  ;;  %v11447_v40 = vmul.f32 -1.442695, %v2980_v39  ;;  %v2721_v44 = vsub.f32 1.0, %v14791_v26  ;;  %v13834_v28 = vld [vmem:[#allocation19 + $0x1c] ss:$12 sps:$4 sm:$0xff]  }
 0x43b   :  { %v2928_v36 = vpop.f32.mrf.mxu1  ;;  %v2723_v48 = vmul.f32 %v14791_v26, %v15545_v63  ;;  %v13812_v63 = vld [vmem:[#allocation19 + $0x90] ss:$12 sps:$4 sm:$0xff]   ;;  %v13832_v30 = vld [vmem:[#allocation19 + $0x18] ss:$12 sps:$4 sm:$0xff]   ;;  %v13835_v33 = vld [vmem:[#allocation19 + $0x20] ss:$12 sps:$4 sm:$0xff]  }
 0x43c   :  { %v12805_v37 = vpop.f32.mrf.mxu0  ;;  %14794 = vtanh.f32 %v2719_v34  ;;  %v13838_v34 = vld [vmem:[#allocation19 + $0x4] ss:$12 sps:$4 sm:$0xff]   ;;  %v13842_v36 = vld [vmem:[#allocation14 + $0xac] ss:$12 sps:$4 sm:$0xff]   ;;  %v13846_v26 = vld [vmem:[#allocation14 + $0x94] ss:$12 sps:$4 sm:$0xff]  }
 0x43d   :  { %14796 = vpow2.f32 %v11447_v40  ;;  %v13840_v37 = vld [vmem:[#allocation14 + $0xa8] ss:$12 sps:$4 sm:$0xff]   ;;  %v13843_v39 = vld [vmem:[#allocation14 + $0xb0] ss:$12 sps:$4 sm:$0xff]   ;;  %v3241_v40 = vpack.c.bf16 %v15649_v52, %v15649_v52 }
 0x447   :  { %v14793_v41 = vpop.eup %14792 }
 0x448   :  { %v2974_v32 = vadd.f32 1.0, %v14793_v41  ;;  %v13844_v41 = vld [vmem:[#allocation14 + $0x90] ss:$12 sps:$4 sm:$0xff]  }
 0x449   :  { %v14795_v45 = vpop.eup %14794 }
 0x44a   :  { %v2722_v31 = vmul.f32 %v14795_v45, %v2721_v44  ;;  %14798 = vrcp.f32 %v2974_v32  ;;  %v14797_v50 = vpop.eup %14796  ;;  %v13847_v44 = vld [vmem:[#allocation14 + $0x98] ss:$12 sps:$4 sm:$0xff]   ;;  %v13850_v32 = vld [vmem:[#allocation14 + $0x7c] ss:$12 sps:$4 sm:$0xff]  }
 0x44b   :  { %v2984_v51 = vadd.f32 1.0, %v14797_v50  ;;  %v13848_v45 = vld [vmem:[#allocation14 + $0x78] ss:$12 sps:$4 sm:$0xff]   ;;  %v13852_v50 = vld [vmem:[#allocation14 + $0x60] ss:$12 sps:$4 sm:$0xff]  }
 0x44c   :  { %v15656_v49 = vadd.f32 %v2723_v48, %v2722_v31  ;;  %v13851_v31 = vld [vmem:[#allocation14 + $0x80] ss:$12 sps:$4 sm:$0xff]   ;;  %v13854_v48 = vld [vmem:[#allocation14 + $0x64] ss:$12 sps:$4 sm:$0xff]  }
 0x44d   :  { %14800 = vrcp.f32 %v2984_v51  ;;  %v13855_v51 = vld [vmem:[#allocation14 + $0x68] ss:$12 sps:$4 sm:$0xff]  }
 0x44e   :  { %2725 = vst [vmem:[#allocation4 + $0x1] sm:$0x1] %v15656_v49 }
 0x455   :  { %v2998_v57 = vld [vmem:[#allocation4 + $0x1] sm:$0x1] }
 0x456   :  { %v2999_v59 = vpack.c.bf16 %v2998_v57, %v2998_v57  ;;  %v13856_v57 = vld [vmem:[#allocation14 + $0x48] ss:$12 sps:$4 sm:$0xff]  }
 0x457   :  { %v14799_v1 = vpop.eup %14798 }
 0x458   :  { %v2988_v3 = vmul.f32 %v14799_v1, %v2987_v58  ;;  %3193 = vmatmul.mubr.bf16.vlgmr.msra.gmra.mxu1 %v2999_v59  ;;  %12823 = vmatmul.mubr.bf16.vlgmr.msra.gmra.mxu0 %v2999_v59  ;;  %v13862_v58 = vld [vmem:[#allocation14 + $0x34] ss:$12 sps:$4 sm:$0xff]   ;;  %v13860_v59 = vld [vmem:[#allocation14 + $0x30] ss:$12 sps:$4 sm:$0xff]  }
 0x459   :  { %3403 = vmatpush1.bf16.msra.mxu1 %v13808_v53  ;;  %12827 = vmatpush3.bf16.msra.mxu0 %v13811_v20  ;;  %v13858_v53 = vld [vmem:[#allocation14 + $0x4c] ss:$12 sps:$4 sm:$0xff]   ;;  %v13859_v20 = vld [vmem:[#allocation14 + $0x50] ss:$12 sps:$4 sm:$0xff]  }
 0x45a   :  { %v2991_v5 = vadd.f32 %v2989_v2, %v2988_v3  ;;  %3404 = vmatprep.subr.bf16.mxu1 %v13814_v62  ;;  %12828 = vmatprep.subr.bf16.mxu0 %v15452_v21  ;;  %v14801_v54 = vpop.eup %14800  ;;  %v13863_v62 = vld [vmem:[#allocation14 + $0x38] ss:$12 sps:$4 sm:$0xff]   ;;  %v13866_v1 = vld [vmem:[#allocation14 + $0x1c] ss:$12 sps:$4 sm:$0xff]   ;;  %v13867_v3 = vld [vmem:[#allocation14 + $0x20] ss:$12 sps:$4 sm:$0xff]  }
 0x45b   :  { %3434 = vmatprep.mubr.bf16.mxu1 %v15285_v47  ;;  %12842 = vmatprep.mubr.msk.bf16.mxu0 %vm15286_vm0, %v15452_v21  ;;  %v2993_v17 = vsub.f32 1.0, %v14801_v54  ;;  %v2995_v23 = vmul.f32 %v14801_v54, %v15560_v38  ;;  %v13839_v38 = vld [vmem:[#allocation19 + $0x8] ss:$12 sps:$4 sm:$0xff]   ;;  %v13864_v2 = vld [vmem:[#allocation14 + $0x18] ss:$12 sps:$4 sm:$0xff]  }
 0x45c   :  { %14802 = vtanh.f32 %v2991_v5  ;;  %v13871_v5 = vld [vmem:[#allocation14 + $0x8] ss:$12 sps:$4 sm:$0xff]   ;;  %v13879_v54 = vld [vmem:[#allocation16 + $0x98] ss:$12 sps:$4 sm:$0xff]  }
 0x45d   :  { %3405 = vmatpush1.bf16.msra.mxu1 %v13812_v63  ;;  %12829 = vmatpush3.bf16.msra.mxu0 %v13815_v4  ;;  %v13870_v63 = vld [vmem:[#allocation14 + $0x4] ss:$12 sps:$4 sm:$0xff]   ;;  %v13868_v4 = vld [vmem:[#allocation14] ss:$12 sps:$4 sm:$0xff]  }
 0x45e   :  { %3406 = vmatprep.subr.bf16.mxu1 %v13818_v8  ;;  %12830 = vmatprep.subr.bf16.mxu0 %v15452_v21  ;;  %v13874_v8 = vld [vmem:[#allocation16 + $0xac] ss:$12 sps:$4 sm:$0xff]  }
 0x461   :  { %3407 = vmatpush1.bf16.msra.mxu1 %v13816_v6  ;;  %12831 = vmatpush3.bf16.msra.mxu0 %v13819_v9  ;;  %v13872_v9 = vld [vmem:[#allocation16 + $0xa8] ss:$12 sps:$4 sm:$0xff]  }
 0x462   :  { %3408 = vmatprep.subr.bf16.mxu1 %v13822_v10  ;;  %12832 = vmatprep.subr.bf16.mxu0 %v15452_v21  ;;  %v13875_v10 = vld [vmem:[#allocation16 + $0xb0] ss:$12 sps:$4 sm:$0xff]  }
 0x465   :  { %3409 = vmatpush1.bf16.msra.mxu1 %v13820_v46  ;;  %12833 = vmatpush3.bf16.msra.mxu0 %v13823_v12  ;;  %v13878_v12 = vld [vmem:[#allocation16 + $0x94] ss:$12 sps:$4 sm:$0xff]  }
 0x466   :  { %3410 = vmatprep.subr.bf16.mxu1 %v13826_v13  ;;  %12834 = vmatprep.subr.bf16.mxu0 %v15452_v21  ;;  %v13876_v13 = vld [vmem:[#allocation16 + $0x90] ss:$12 sps:$4 sm:$0xff]  }
 0x469   :  { %v14803_v18 = vpop.eup %14802  ;;  %3411 = vmatpush1.bf16.msra.mxu1 %v13824_v14  ;;  %12835 = vmatpush3.bf16.msra.mxu0 %v13827_v15  ;;  %v13882_v14 = vld [vmem:[#allocation16 + $0x7c] ss:$12 sps:$4 sm:$0xff]   ;;  %v13880_v15 = vld [vmem:[#allocation16 + $0x78] ss:$12 sps:$4 sm:$0xff]  }
 0x46a   :  { %v2994_v24 = vmul.f32 %v14803_v18, %v2993_v17  ;;  %3412 = vmatprep.subr.bf16.mxu1 %v13830_v16  ;;  %12836 = vmatprep.subr.bf16.mxu0 %v15452_v21  ;;  %v13883_v16 = vld [vmem:[#allocation16 + $0x80] ss:$12 sps:$4 sm:$0xff]   ;;  %v13886_v17 = vld [vmem:[#allocation16 + $0x64] ss:$12 sps:$4 sm:$0xff]  }
 0x46b   :  { %v13884_v18 = vld [vmem:[#allocation16 + $0x60] ss:$12 sps:$4 sm:$0xff]  }
 0x46c   :  { %v15669_v29 = vadd.f32 %v2995_v23, %v2994_v24  ;;  %v13888_v24 = vld [vmem:[#allocation16 + $0x48] ss:$12 sps:$4 sm:$0xff]   ;;  %v13891_v23 = vld [vmem:[#allocation16 + $0x50] ss:$12 sps:$4 sm:$0xff]  }
 0x46d   :  { %3413 = vmatpush1.bf16.msra.mxu1 %v13828_v19  ;;  %12837 = vmatpush3.bf16.msra.mxu0 %v13831_v22  ;;  %v13887_v19 = vld [vmem:[#allocation16 + $0x68] ss:$12 sps:$4 sm:$0xff]   ;;  %v13890_v22 = vld [vmem:[#allocation16 + $0x4c] ss:$12 sps:$4 sm:$0xff]  }
 0x46e   :  { %2997 = vst [vmem:[#allocation3 + $0x2] sm:$0x1] %v15669_v29  ;;  %3414 = vmatprep.subr.bf16.mxu1 %v13834_v28  ;;  %12838 = vmatprep.subr.bf16.mxu0 %v15452_v21  ;;  %v13894_v28 = vld [vmem:[#allocation16 + $0x34] ss:$12 sps:$4 sm:$0xff]  }
 0x471   :  { %3415 = vmatpush1.bf16.msra.mxu1 %v13832_v30  ;;  %12839 = vmatpush3.bf16.msra.mxu0 %v13835_v33  ;;  %v13892_v30 = vld [vmem:[#allocation16 + $0x30] ss:$12 sps:$4 sm:$0xff]   ;;  %v13895_v33 = vld [vmem:[#allocation16 + $0x38] ss:$12 sps:$4 sm:$0xff]  }
 0x472   :  { %3416 = vmatprep.subr.bf16.mxu1 %v13838_v34  ;;  %12840 = vmatprep.subr.bf16.mxu0 %v15452_v21  ;;  %v13898_v34 = vld [vmem:[#allocation16 + $0x1c] ss:$12 sps:$4 sm:$0xff]  }
 0x475   :  { %3417 = vmatpush1.bf16.msra.mxu1 %v13836_v35  ;;  %12841 = vmatpush3.bf16.msra.mxu0 %v13839_v38  ;;  %v3505_v6 = vld [vmem:[#allocation3 + $0x2] sm:$0x1]  ;;  %v13896_v35 = vld [vmem:[#allocation16 + $0x18] ss:$12 sps:$4 sm:$0xff]   ;;  %v13899_v38 = vld [vmem:[#allocation16 + $0x20] ss:$12 sps:$4 sm:$0xff]  }
 0x476   :  { %3667 = vmatprep.subr.bf16.mxu1 %v13842_v36  ;;  %12846 = vmatprep.subr.bf16.mxu0 %v15452_v21  ;;  %v3506_v46 = vpack.c.bf16 %v3505_v6, %v3505_v6  ;;  %v13902_v36 = vld [vmem:[#allocation16 + $0x4] ss:$12 sps:$4 sm:$0xff]   ;;  %v13932_v6 = vld [vmem:[#allocation11] ss:$12 sps:$4 sm:$0xff]  }
 0x478   :  { %3435 = vmatmul.mubr.bf16.vlgmr.msra.gmra.mxu1 %v3241_v40  ;;  %12843 = vmatmul.mubr.bf16.vlgmr.msra.gmra.mxu0 %v3241_v40  ;;  %v13906_v40 = vld [vmem:[#allocation11 + $0xac] ss:$12 sps:$4 sm:$0xff]  }
 0x479   :  { %3668 = vmatpush1.bf16.msra.mxu1 %v13840_v37  ;;  %12847 = vmatpush3.bf16.msra.mxu0 %v13843_v39  ;;  %v13900_v37 = vld [vmem:[#allocation16] ss:$12 sps:$4 sm:$0xff]   ;;  %v13903_v39 = vld [vmem:[#allocation16 + $0x8] ss:$12 sps:$4 sm:$0xff]  }
 0x47a   :  { %3669 = vmatprep.subr.bf16.mxu1 %v13846_v26  ;;  %12848 = vmatprep.subr.bf16.mxu0 %v15452_v21  ;;  %v13904_v26 = vld [vmem:[#allocation11 + $0xa8] ss:$12 sps:$4 sm:$0xff]  }
 0x47b   :  { %3699 = vmatprep.mubr.bf16.mxu1 %v15285_v47  ;;  %12862 = vmatprep.mubr.msk.bf16.mxu0 %vm15286_vm0, %v15452_v21 }
 0x47d   :  { %3670 = vmatpush1.bf16.msra.mxu1 %v13844_v41  ;;  %12849 = vmatpush3.bf16.msra.mxu0 %v13847_v44  ;;  %v13907_v41 = vld [vmem:[#allocation11 + $0xb0] ss:$12 sps:$4 sm:$0xff]   ;;  %v3748_v44 = vpack.c.bf16 %v15656_v49, %v15656_v49 }
 0x47e   :  { %3671 = vmatprep.subr.bf16.mxu1 %v13850_v32  ;;  %12850 = vmatprep.subr.bf16.mxu0 %v15452_v21  ;;  %v13910_v32 = vld [vmem:[#allocation11 + $0x94] ss:$12 sps:$4 sm:$0xff]  }
 0x481   :  { %3672 = vmatpush1.bf16.msra.mxu1 %v13848_v45  ;;  %12851 = vmatpush3.bf16.msra.mxu0 %v13851_v31  ;;  %v13908_v45 = vld [vmem:[#allocation11 + $0x90] ss:$12 sps:$4 sm:$0xff]   ;;  %v13911_v31 = vld [vmem:[#allocation11 + $0x98] ss:$12 sps:$4 sm:$0xff]  }
 0x482   :  { %3673 = vmatprep.subr.bf16.mxu1 %v13854_v48  ;;  %12852 = vmatprep.subr.bf16.mxu0 %v15452_v21  ;;  %v13914_v48 = vld [vmem:[#allocation11 + $0x7c] ss:$12 sps:$4 sm:$0xff]  }
 0x485   :  { %3674 = vmatpush1.bf16.msra.mxu1 %v13852_v50  ;;  %12853 = vmatpush3.bf16.msra.mxu0 %v13855_v51  ;;  %v13912_v50 = vld [vmem:[#allocation11 + $0x78] ss:$12 sps:$4 sm:$0xff]   ;;  %v13915_v51 = vld [vmem:[#allocation11 + $0x80] ss:$12 sps:$4 sm:$0xff]  }
 0x486   :  { %3675 = vmatprep.subr.bf16.mxu1 %v13858_v53  ;;  %12854 = vmatprep.subr.bf16.mxu0 %v15452_v21  ;;  %v13918_v53 = vld [vmem:[#allocation11 + $0x64] ss:$12 sps:$4 sm:$0xff]  }
 0x489   :  { %3676 = vmatpush1.bf16.msra.mxu1 %v13856_v57  ;;  %12855 = vmatpush3.bf16.msra.mxu0 %v13859_v20  ;;  %v13916_v57 = vld [vmem:[#allocation11 + $0x60] ss:$12 sps:$4 sm:$0xff]   ;;  %v13919_v20 = vld [vmem:[#allocation11 + $0x68] ss:$12 sps:$4 sm:$0xff]  }
 0x48a   :  { %3677 = vmatprep.subr.bf16.mxu1 %v13862_v58  ;;  %12856 = vmatprep.subr.bf16.mxu0 %v15452_v21  ;;  %v13922_v58 = vld [vmem:[#allocation11 + $0x4c] ss:$12 sps:$4 sm:$0xff]  }
 0x48d   :  { %3678 = vmatpush1.bf16.msra.mxu1 %v13860_v59  ;;  %12857 = vmatpush3.bf16.msra.mxu0 %v13863_v62  ;;  %v13920_v59 = vld [vmem:[#allocation11 + $0x48] ss:$12 sps:$4 sm:$0xff]   ;;  %v13923_v62 = vld [vmem:[#allocation11 + $0x50] ss:$12 sps:$4 sm:$0xff]  }
 0x48e   :  { %3679 = vmatprep.subr.bf16.mxu1 %v13866_v1  ;;  %12858 = vmatprep.subr.bf16.mxu0 %v15452_v21  ;;  %v13926_v1 = vld [vmem:[#allocation11 + $0x34] ss:$12 sps:$4 sm:$0xff]  }
 0x491   :  { %3680 = vmatpush1.bf16.msra.mxu1 %v13864_v2  ;;  %12859 = vmatpush3.bf16.msra.mxu0 %v13867_v3  ;;  %v13924_v2 = vld [vmem:[#allocation11 + $0x30] ss:$12 sps:$4 sm:$0xff]   ;;  %v13927_v3 = vld [vmem:[#allocation11 + $0x38] ss:$12 sps:$4 sm:$0xff]  }
 0x492   :  { %3681 = vmatprep.subr.bf16.mxu1 %v13870_v63  ;;  %12860 = vmatprep.subr.bf16.mxu0 %v15452_v21  ;;  %v13930_v63 = vld [vmem:[#allocation11 + $0x1c] ss:$12 sps:$4 sm:$0xff]  }
 0x495   :  { %3682 = vmatpush1.bf16.msra.mxu1 %v13868_v4  ;;  %12861 = vmatpush3.bf16.msra.mxu0 %v13871_v5  ;;  %v13928_v4 = vld [vmem:[#allocation11 + $0x18] ss:$12 sps:$4 sm:$0xff]   ;;  %v13931_v5 = vld [vmem:[#allocation11 + $0x20] ss:$12 sps:$4 sm:$0xff]  }
 0x496   :  { %3909 = vmatprep.subr.bf16.mxu1 %v13874_v8  ;;  %12866 = vmatprep.subr.bf16.mxu0 %v15452_v21  ;;  %v13934_v8 = vld [vmem:[#allocation11 + $0x4] ss:$12 sps:$4 sm:$0xff]  }
 0x498   :  { %3700 = vmatmul.mubr.bf16.vlgmr.msra.gmra.mxu1 %v3506_v46  ;;  %12863 = vmatmul.mubr.bf16.vlgmr.msra.gmra.mxu0 %v3506_v46 }
 0x499   :  { %3910 = vmatpush1.bf16.msra.mxu1 %v13872_v9  ;;  %12867 = vmatpush3.bf16.msra.mxu0 %v13875_v10  ;;  %v13935_v9 = vld [vmem:[#allocation11 + $0x8] ss:$12 sps:$4 sm:$0xff]   ;;  %v4015_v10 = vpack.c.bf16 %v15669_v29, %v15669_v29 }
 0x49a   :  { %3911 = vmatprep.subr.bf16.mxu1 %v13878_v12  ;;  %12868 = vmatprep.subr.bf16.mxu0 %v15452_v21 }
 0x49b   :  { %3941 = vmatprep.mubr.bf16.mxu1 %v15285_v47  ;;  %12882 = vmatprep.mubr.msk.bf16.mxu0 %vm15286_vm0, %v15452_v21 }
 0x49d   :  { %3912 = vmatpush1.bf16.msra.mxu1 %v13876_v13  ;;  %12869 = vmatpush3.bf16.msra.mxu0 %v13879_v54  ;;  %v13938_v13 = vld [vmem:[#allocation17 + $0xac] ss:$12 sps:$4 sm:$0xff]  }
 0x49e   :  { %3913 = vmatprep.subr.bf16.mxu1 %v13882_v14  ;;  %12870 = vmatprep.subr.bf16.mxu0 %v15452_v21 }
 0x4a1   :  { %3914 = vmatpush1.bf16.msra.mxu1 %v13880_v15  ;;  %12871 = vmatpush3.bf16.msra.mxu0 %v13883_v16  ;;  %v13936_v15 = vld [vmem:[#allocation17 + $0xa8] ss:$12 sps:$4 sm:$0xff]   ;;  %v13939_v16 = vld [vmem:[#allocation17 + $0xb0] ss:$12 sps:$4 sm:$0xff]  }
 0x4a2   :  { %3915 = vmatprep.subr.bf16.mxu1 %v13886_v17  ;;  %12872 = vmatprep.subr.bf16.mxu0 %v15452_v21 }
 0x4a5   :  { %3916 = vmatpush1.bf16.msra.mxu1 %v13884_v18  ;;  %12873 = vmatpush3.bf16.msra.mxu0 %v13887_v19  ;;  %v13942_v19 = vld [vmem:[#allocation17 + $0x94] ss:$12 sps:$4 sm:$0xff]  }
 0x4a6   :  { %3917 = vmatprep.subr.bf16.mxu1 %v13890_v22  ;;  %12874 = vmatprep.subr.bf16.mxu0 %v15452_v21 }
 0x4a9   :  { %3918 = vmatpush1.bf16.msra.mxu1 %v13888_v24  ;;  %12875 = vmatpush3.bf16.msra.mxu0 %v13891_v23  ;;  %v13940_v23 = vld [vmem:[#allocation17 + $0x90] ss:$12 sps:$4 sm:$0xff]  }
 0x4aa   :  { %3919 = vmatprep.subr.bf16.mxu1 %v13894_v28  ;;  %12876 = vmatprep.subr.bf16.mxu0 %v15452_v21  ;;  %v13943_v28 = vld [vmem:[#allocation17 + $0x98] ss:$12 sps:$4 sm:$0xff]  }
 0x4ad   :  { %3920 = vmatpush1.bf16.msra.mxu1 %v13892_v30  ;;  %12877 = vmatpush3.bf16.msra.mxu0 %v13895_v33  ;;  %v13946_v30 = vld [vmem:[#allocation17 + $0x7c] ss:$12 sps:$4 sm:$0xff]   ;;  %v13944_v33 = vld [vmem:[#allocation17 + $0x78] ss:$12 sps:$4 sm:$0xff]  }
 0x4ae   :  { %3921 = vmatprep.subr.bf16.mxu1 %v13898_v34  ;;  %12878 = vmatprep.subr.bf16.mxu0 %v15452_v21  ;;  %v13947_v34 = vld [vmem:[#allocation17 + $0x80] ss:$12 sps:$4 sm:$0xff]  }
 0x4b1   :  { %3922 = vmatpush1.bf16.msra.mxu1 %v13896_v35  ;;  %12879 = vmatpush3.bf16.msra.mxu0 %v13899_v38  ;;  %v13950_v35 = vld [vmem:[#allocation17 + $0x64] ss:$12 sps:$4 sm:$0xff]   ;;  %v13948_v38 = vld [vmem:[#allocation17 + $0x60] ss:$12 sps:$4 sm:$0xff]  }
 0x4b2   :  { %3923 = vmatprep.subr.bf16.mxu1 %v13902_v36  ;;  %12880 = vmatprep.subr.bf16.mxu0 %v15452_v21  ;;  %v13951_v36 = vld [vmem:[#allocation17 + $0x68] ss:$12 sps:$4 sm:$0xff]  }
 0x4b5   :  { %3924 = vmatpush1.bf16.msra.mxu1 %v13900_v37  ;;  %12881 = vmatpush3.bf16.msra.mxu0 %v13903_v39  ;;  %v13954_v37 = vld [vmem:[#allocation17 + $0x4c] ss:$12 sps:$4 sm:$0xff]   ;;  %v13952_v39 = vld [vmem:[#allocation17 + $0x48] ss:$12 sps:$4 sm:$0xff]  }
 0x4b6   :  { %4176 = vmatprep.subr.bf16.mxu1 %v13906_v40  ;;  %12886 = vmatprep.subr.bf16.mxu0 %v15452_v21  ;;  %v13955_v40 = vld [vmem:[#allocation17 + $0x50] ss:$12 sps:$4 sm:$0xff]  }
 0x4b8   :  { %3942 = vmatmul.mubr.bf16.vlgmr.msra.gmra.mxu1 %v3748_v44  ;;  %12883 = vmatmul.mubr.bf16.vlgmr.msra.gmra.mxu0 %v3748_v44  ;;  %v13959_v44 = vld [vmem:[#allocation17 + $0x38] ss:$12 sps:$4 sm:$0xff]  }
 0x4b9   :  { %4177 = vmatpush1.bf16.msra.mxu1 %v13904_v26  ;;  %12887 = vmatpush3.bf16.msra.mxu0 %v13907_v41  ;;  %v13958_v26 = vld [vmem:[#allocation17 + $0x34] ss:$12 sps:$4 sm:$0xff]   ;;  %v13956_v41 = vld [vmem:[#allocation17 + $0x30] ss:$12 sps:$4 sm:$0xff]  }
 0x4ba   :  { %4178 = vmatprep.subr.bf16.mxu1 %v13910_v32  ;;  %12888 = vmatprep.subr.bf16.mxu0 %v15452_v21  ;;  %v13962_v32 = vld [vmem:[#allocation17 + $0x1c] ss:$12 sps:$4 sm:$0xff]  }
 0x4bb   :  { %4208 = vmatprep.mubr.bf16.mxu1 %v15285_v47  ;;  %12902 = vmatprep.mubr.msk.bf16.mxu0 %vm15286_vm0, %v15452_v21 }
 0x4bd   :  { %4179 = vmatpush1.bf16.msra.mxu1 %v13908_v45  ;;  %12889 = vmatpush3.bf16.msra.mxu0 %v13911_v31  ;;  %v13960_v45 = vld [vmem:[#allocation17 + $0x18] ss:$12 sps:$4 sm:$0xff]   ;;  %v13963_v31 = vld [vmem:[#allocation17 + $0x20] ss:$12 sps:$4 sm:$0xff]  }
 0x4be   :  { %4180 = vmatprep.subr.bf16.mxu1 %v13914_v48  ;;  %12890 = vmatprep.subr.bf16.mxu0 %v15452_v21  ;;  %v13966_v48 = vld [vmem:[#allocation17 + $0x4] ss:$12 sps:$4 sm:$0xff]  }
 0x4c1   :  { %4181 = vmatpush1.bf16.msra.mxu1 %v13912_v50  ;;  %12891 = vmatpush3.bf16.msra.mxu0 %v13915_v51  ;;  %v13964_v50 = vld [vmem:[#allocation17] ss:$12 sps:$4 sm:$0xff]   ;;  %v13967_v51 = vld [vmem:[#allocation17 + $0x8] ss:$12 sps:$4 sm:$0xff]  }
 0x4c2   :  { %4182 = vmatprep.subr.bf16.mxu1 %v13918_v53  ;;  %12892 = vmatprep.subr.bf16.mxu0 %v15452_v21 }
 0x4c5   :  { %4183 = vmatpush1.bf16.msra.mxu1 %v13916_v57  ;;  %12893 = vmatpush3.bf16.msra.mxu0 %v13919_v20 }
 0x4c6   :  { %4184 = vmatprep.subr.bf16.mxu1 %v13922_v58  ;;  %12894 = vmatprep.subr.bf16.mxu0 %v15452_v21 }
 0x4c9   :  { %4185 = vmatpush1.bf16.msra.mxu1 %v13920_v59  ;;  %12895 = vmatpush3.bf16.msra.mxu0 %v13923_v62  ;;  %v13970_v62 = vld [vmem:[#allocation19 + $0xac] ss:$12 sps:$4 sm:$0xff]  }
 0x4ca   :  { %4186 = vmatprep.subr.bf16.mxu1 %v13926_v1  ;;  %12896 = vmatprep.subr.bf16.mxu0 %v15452_v21 }
 0x4cd   :  { %4187 = vmatpush1.bf16.msra.mxu1 %v13924_v2  ;;  %12897 = vmatpush3.bf16.msra.mxu0 %v13927_v3 }
 0x4ce   :  { %4188 = vmatprep.subr.bf16.mxu1 %v13930_v63  ;;  %12898 = vmatprep.subr.bf16.mxu0 %v15452_v21 }
 0x4d1   :  { %4189 = vmatpush1.bf16.msra.mxu1 %v13928_v4  ;;  %12899 = vmatpush3.bf16.msra.mxu0 %v13931_v5 }
 0x4d2   :  { %4190 = vmatprep.subr.bf16.mxu1 %v13934_v8  ;;  %12900 = vmatprep.subr.bf16.mxu0 %v15452_v21 }
 0x4d5   :  { %4191 = vmatpush1.bf16.msra.mxu1 %v13932_v6  ;;  %12901 = vmatpush3.bf16.msra.mxu0 %v13935_v9 }
 0x4d6   :  { %12906 = vmatprep.subr.bf16.mxu0 %v15452_v21  ;;  %4447 = vmatprep.subr.bf16.mxu1 %v13938_v13 }
 0x4d8   :  { %4209 = vmatmul.mubr.bf16.vlgmr.msra.gmra.mxu1 %v4015_v10  ;;  %12903 = vmatmul.mubr.bf16.vlgmr.msra.gmra.mxu0 %v4015_v10 }
 0x4d9   :  { %4479 = vmatprep.mubr.bf16.mxu1 %v15285_v47  ;;  %12922 = vmatprep.mubr.msk.bf16.mxu0 %vm15286_vm0, %v15452_v21 }
 0x4da   :  { %4448 = vmatpush1.bf16.msra.mxu1 %v13936_v15  ;;  %12907 = vmatpush3.bf16.msra.mxu0 %v13939_v16 }
 0x4db   :  { %12908 = vmatprep.subr.bf16.mxu0 %v15452_v21  ;;  %4449 = vmatprep.subr.bf16.mxu1 %v13942_v19 }
 0x4de   :  { %4450 = vmatpush1.bf16.msra.mxu1 %v13940_v23  ;;  %12909 = vmatpush3.bf16.msra.mxu0 %v13943_v28 }
 0x4df   :  { %12910 = vmatprep.subr.bf16.mxu0 %v15452_v21  ;;  %4451 = vmatprep.subr.bf16.mxu1 %v13946_v30 }
 0x4e2   :  { %4452 = vmatpush1.bf16.msra.mxu1 %v13944_v33  ;;  %12911 = vmatpush3.bf16.msra.mxu0 %v13947_v34 }
 0x4e3   :  { %12912 = vmatprep.subr.bf16.mxu0 %v15452_v21  ;;  %4453 = vmatprep.subr.bf16.mxu1 %v13950_v35 }
 0x4e6   :  { %4454 = vmatpush1.bf16.msra.mxu1 %v13948_v38  ;;  %12913 = vmatpush3.bf16.msra.mxu0 %v13951_v36 }
 0x4e7   :  { %12914 = vmatprep.subr.bf16.mxu0 %v15452_v21  ;;  %4455 = vmatprep.subr.bf16.mxu1 %v13954_v37 }
 0x4ea   :  { %4456 = vmatpush1.bf16.msra.mxu1 %v13952_v39  ;;  %12915 = vmatpush3.bf16.msra.mxu0 %v13955_v40 }
 0x4eb   :  { %12916 = vmatprep.subr.bf16.mxu0 %v15452_v21  ;;  %4457 = vmatprep.subr.bf16.mxu1 %v13958_v26 }
 0x4ee   :  { %4458 = vmatpush1.bf16.msra.mxu1 %v13956_v41  ;;  %12917 = vmatpush3.bf16.msra.mxu0 %v13959_v44 }
 0x4ef   :  { %12918 = vmatprep.subr.bf16.mxu0 %v15452_v21  ;;  %4459 = vmatprep.subr.bf16.mxu1 %v13962_v32 }
 0x4f2   :  { %4460 = vmatpush1.bf16.msra.mxu1 %v13960_v45  ;;  %12919 = vmatpush3.bf16.msra.mxu0 %v13963_v31 }
 0x4f3   :  { %12920 = vmatprep.subr.bf16.mxu0 %v15452_v21  ;;  %4461 = vmatprep.subr.bf16.mxu1 %v13966_v48 }
 0x4f6   :  { %4462 = vmatpush1.bf16.msra.mxu1 %v13964_v50  ;;  %12921 = vmatpush3.bf16.msra.mxu0 %v13967_v51 }
 0x4f7   :  { %12926 = vmatprep.subr.bf16.mxu0 %v15452_v21  ;;  %4689 = vmatprep.subr.bf16.mxu1 %v13970_v62 }
 0x518   :  { %v3194_v46 = vpop.f32.mrf.mxu1  ;;  %v15717_v12 = vpop.f32.mrf.mxu0 }
 0x519   :  { %v3195_v53 = vadd.f32 %v3194_v46, %v15626_v60 }
 0x51a   :  { %v15719_v54 = vpop.f32.mrf.mxu1  ;;  %v12824_v14 = vpop.f32.mrf.mxu0 }
 0x51b   :  { %v3197_v58 = vadd.f32 %v15719_v54, %v15629_v61 }
 0x51c   :  { %v3198_v17 = vpop.f32.mrf.mxu1  ;;  %v3238_v18 = vpop.f32.mrf.mxu0 }
 0x51e   :  { %v3199_v22 = vpop.f32.mrf.mxu1  ;;  %v12825_v24 = vpop.f32.mrf.mxu0 }
 0x51f   :  { %v3236_v22 = vadd.f32 %v15717_v12, %v15643_v25 }
 0x538   :  { %v3436_v57 = vpop.f32.mrf.mxu1  ;;  %v3477_v20 = vpop.f32.mrf.mxu0 }
 0x539   :  { %v3483_v59 = vadd.f32 %v3436_v57, %v3195_v53  ;;  %v3497_v16 = vadd.f32 %v3477_v20, %v15640_v0 }
 0x53a   :  { %v3438_v1 = vpop.f32.mrf.mxu1  ;;  %v12844_v2 = vpop.f32.mrf.mxu0 }
 0x53b   :  { %v11496_v3 = vmul.f32 -1.442695, %v3483_v59  ;;  %v3490_v63 = vadd.f32 %v3438_v1, %v3197_v58  ;;  %v4014_v1 = vld [vmem:[#allocation2 + $0x3] ss:$8 sm:$0x7] }
 0x53c   :  { %v3440_v4 = vpop.f32.mrf.mxu1  ;;  %v3480_v5 = vpop.f32.mrf.mxu0 }
 0x53d   :  { %14804 = vpow2.f32 %v11496_v3  ;;  %v11497_v9 = vmul.f32 -1.442695, %v3490_v63  ;;  %v15743_v63 = vld [vmem:[%s16366_s9] sm:$0x1] }
 0x53e   :  { %v3441_v8 = vpop.f32.mrf.mxu1  ;;  %v12845_v6 = vpop.f32.mrf.mxu0 }
 0x53f   :  { %14806 = vpow2.f32 %v11497_v9 }
 0x54a   :  { %v14805_v10 = vpop.eup %14804 }
 0x54b   :  { %v3487_v46 = vadd.f32 1.0, %v14805_v10 }
 0x54c   :  { %v14807_v13 = vpop.eup %14806 }
 0x54d   :  { %14808 = vrcp.f32 %v3487_v46  ;;  %v3494_v54 = vadd.f32 1.0, %v14807_v13 }
 0x54f   :  { %14810 = vrcp.f32 %v3494_v54 }
 0x558   :  { %v3701_v14 = vpop.f32.mrf.mxu1  ;;  %v3742_v15 = vpop.f32.mrf.mxu0 }
 0x559   :  { %v3702_v40 = vadd.f32 %v3701_v14, %v15527_v7  ;;  %v3743_v10 = vadd.f32 %v3742_v15, %v15540_v27 }
 0x55a   :  { %v14809_v17 = vpop.eup %14808  ;;  %v3703_v18 = vpop.f32.mrf.mxu1 }
 0x55b   :  { %v12864_v19 = vpop.f32.mrf.mxu0  ;;  %v3498_v24 = vmul.f32 %v14809_v17, %v3497_v16  ;;  %v3704_v50 = vadd.f32 %v3703_v18, %v15531_v11  ;;  %v4265_v17 = vrot.slane %v4014_v1, 1 }
 0x55c   :  { %v3705_v23 = vpop.f32.mrf.mxu1  ;;  %v14811_v35 = vpop.eup %14810 }
 0x55d   :  { %v3745_v28 = vpop.f32.mrf.mxu0  ;;  %v3499_v30 = vadd.f32 %v3498_v24, %v3236_v22  ;;  %v3501_v38 = vsub.f32 1.0, %v14811_v35  ;;  %v3503_v0 = vmul.f32 %v14811_v35, %v15649_v52 }
 0x55e   :  { %v3706_v33 = vpop.f32.mrf.mxu1 }
 0x55f   :  { %v12865_v34 = vpop.f32.mrf.mxu0  ;;  %14812 = vtanh.f32 %v3499_v30 }
 0x56c   :  { %v14813_v36 = vpop.eup %14812 }
 0x56d   :  { %v3502_v37 = vmul.f32 %v14813_v36, %v3501_v38 }
 0x56f   :  { %v15736_v39 = vadd.f32 %v3503_v0, %v3502_v37  ;;  %v13968_v0 = vld [vmem:[#allocation19 + $0xa8] ss:$12 sps:$4 sm:$0xff]  }
 0x578   :  { %v3943_v26 = vpop.f32.mrf.mxu1  ;;  %v3984_v12 = vpop.f32.mrf.mxu0 }
 0x579   :  { %v3990_v41 = vadd.f32 %v3943_v26, %v3702_v40  ;;  %v4004_v4 = vadd.f32 %v15743_v63, %v3984_v12  ;;  %v13971_v26 = vld [vmem:[#allocation19 + $0xb0] ss:$12 sps:$4 sm:$0xff]  }
 0x57a   :  { %v3945_v44 = vpop.f32.mrf.mxu1  ;;  %v12884_v32 = vpop.f32.mrf.mxu0  ;;  %v15751_v12 = vld [vmem:[#allocation13] sm:$0x1] }
 0x57b   :  { %v11546_v45 = vmul.f32 -1.442695, %v3990_v41  ;;  %v3997_v57 = vadd.f32 %v3945_v44, %v3704_v50  ;;  %v13974_v32 = vld [vmem:[#allocation19 + $0x94] ss:$12 sps:$4 sm:$0xff]   ;;  %v13975_v50 = vld [vmem:[#allocation19 + $0x98] ss:$12 sps:$4 sm:$0xff]  }
 0x57c   :  { %v3947_v31 = vpop.f32.mrf.mxu1  ;;  %v3987_v48 = vpop.f32.mrf.mxu0 }
 0x57d   :  { %14814 = vpow2.f32 %v11546_v45  ;;  %v11547_v20 = vmul.f32 -1.442695, %v3997_v57  ;;  %v4276_v31 = vrot.slane %v4014_v1, 2  ;;  %v13976_v57 = vld [vmem:[#allocation19 + $0x78] ss:$12 sps:$4 sm:$0xff]  }
 0x57e   :  { %v3948_v51 = vpop.f32.mrf.mxu1  ;;  %v12885_v53 = vpop.f32.mrf.mxu0 }
 0x57f   :  { %14816 = vpow2.f32 %v11547_v20  ;;  %v13978_v53 = vld [vmem:[#allocation19 + $0x7c] ss:$12 sps:$4 sm:$0xff]   ;;  %v13979_v20 = vld [vmem:[#allocation19 + $0x80] ss:$12 sps:$4 sm:$0xff]  }
 0x58a   :  { %v14815_v52 = vpop.eup %14814 }
 0x58b   :  { %v3994_v58 = vadd.f32 1.0, %v14815_v52  ;;  %v13982_v52 = vld [vmem:[#allocation19 + $0x64] ss:$12 sps:$4 sm:$0xff]  }
 0x58c   :  { %v14817_v59 = vpop.eup %14816 }
 0x58d   :  { %14818 = vrcp.f32 %v3994_v58  ;;  %v4001_v62 = vadd.f32 1.0, %v14817_v59  ;;  %v13980_v58 = vld [vmem:[#allocation19 + $0x60] ss:$12 sps:$4 sm:$0xff]   ;;  %v13983_v59 = vld [vmem:[#allocation19 + $0x68] ss:$12 sps:$4 sm:$0xff]  }
 0x58f   :  { %14820 = vrcp.f32 %v4001_v62  ;;  %v13986_v62 = vld [vmem:[#allocation19 + $0x4c] ss:$12 sps:$4 sm:$0xff]  }
 0x598   :  { %v4210_v2 = vpop.f32.mrf.mxu1  ;;  %v4251_v3 = vpop.f32.mrf.mxu0 }
 0x599   :  { %v4257_v5 = vadd.f32 %v4210_v2, %v4014_v1  ;;  %v4274_v41 = vadd.f32 %v15751_v12, %v4251_v3  ;;  %v13984_v2 = vld [vmem:[#allocation19 + $0x48] ss:$12 sps:$4 sm:$0xff]   ;;  %v13987_v3 = vld [vmem:[#allocation19 + $0x50] ss:$12 sps:$4 sm:$0xff]  }
 0x59a   :  { %v14819_v8 = vpop.eup %14818  ;;  %v4212_v6 = vpop.f32.mrf.mxu1 }
 0x59b   :  { %v12904_v9 = vpop.f32.mrf.mxu0  ;;  %v4005_v46 = vmul.f32 %v14819_v8, %v4004_v4  ;;  %v11572_v13 = vmul.f32 -1.442695, %v4257_v5  ;;  %v4267_v22 = vadd.f32 %v4265_v17, %v4212_v6  ;;  %v13990_v4 = vld [vmem:[#allocation19 + $0x34] ss:$12 sps:$4 sm:$0xff]   ;;  %v13988_v6 = vld [vmem:[#allocation19 + $0x30] ss:$12 sps:$4 sm:$0xff]  }
 0x59c   :  { %v4214_v54 = vpop.f32.mrf.mxu1  ;;  %v14821_v23 = vpop.eup %14820  ;;  %v13991_v9 = vld [vmem:[#allocation19 + $0x38] ss:$12 sps:$4 sm:$0xff]  }
 0x59d   :  { %v4254_v14 = vpop.f32.mrf.mxu0  ;;  %v4006_v16 = vadd.f32 %v4005_v46, %v3743_v10  ;;  %14822 = vpow2.f32 %v11572_v13  ;;  %v11573_v24 = vmul.f32 -1.442695, %v4267_v22  ;;  %v4008_v30 = vsub.f32 1.0, %v14821_v23  ;;  %v13994_v13 = vld [vmem:[#allocation19 + $0x1c] ss:$12 sps:$4 sm:$0xff]  }
 0x59e   :  { %v4215_v18 = vpop.f32.mrf.mxu1  ;;  %v4010_v35 = vmul.f32 %v14821_v23, %v15656_v49  ;;  %v13972_v49 = vld [vmem:[#allocation19 + $0x90] ss:$12 sps:$4 sm:$0xff]   ;;  %v13992_v14 = vld [vmem:[#allocation19 + $0x18] ss:$12 sps:$4 sm:$0xff]   ;;  %v14000_v22 = vld [vmem:[#allocation14 + $0xa8] ss:$12 sps:$4 sm:$0xff]   ;;  %v4528_v23 = vpack.c.bf16 %v15736_v39, %v15736_v39 }
 0x59f   :  { %v12905_v19 = vpop.f32.mrf.mxu0  ;;  %14824 = vtanh.f32 %v4006_v16  ;;  %v13995_v16 = vld [vmem:[#allocation19 + $0x20] ss:$12 sps:$4 sm:$0xff]   ;;  %v13998_v17 = vld [vmem:[#allocation19 + $0x4] ss:$12 sps:$4 sm:$0xff]  }
 0x5a0   :  { %14826 = vpow2.f32 %v11573_v24  ;;  %v13996_v18 = vld [vmem:[#allocation19] ss:$12 sps:$4 sm:$0xff]   ;;  %v14003_v24 = vld [vmem:[#allocation14 + $0xb0] ss:$12 sps:$4 sm:$0xff]  }
 0x5a1   :  { %v14002_v19 = vld [vmem:[#allocation14 + $0xac] ss:$12 sps:$4 sm:$0xff]  }
 0x5aa   :  { %v14823_v28 = vpop.eup %14822 }
 0x5ab   :  { %v4261_v33 = vadd.f32 1.0, %v14823_v28  ;;  %v14006_v28 = vld [vmem:[#allocation14 + $0x94] ss:$12 sps:$4 sm:$0xff]  }
 0x5ac   :  { %v14825_v34 = vpop.eup %14824 }
 0x5ad   :  { %v4009_v15 = vmul.f32 %v14825_v34, %v4008_v30  ;;  %14828 = vrcp.f32 %v4261_v33  ;;  %v14827_v36 = vpop.eup %14826  ;;  %v14004_v30 = vld [vmem:[#allocation14 + $0x90] ss:$12 sps:$4 sm:$0xff]   ;;  %v14007_v33 = vld [vmem:[#allocation14 + $0x98] ss:$12 sps:$4 sm:$0xff]  }
 0x5ae   :  { %v4271_v37 = vadd.f32 1.0, %v14827_v36  ;;  %v14010_v34 = vld [vmem:[#allocation14 + $0x7c] ss:$12 sps:$4 sm:$0xff]   ;;  %v14014_v36 = vld [vmem:[#allocation14 + $0x64] ss:$12 sps:$4 sm:$0xff]  }
 0x5af   :  { %v15748_v38 = vadd.f32 %v4010_v35, %v4009_v15  ;;  %v14008_v15 = vld [vmem:[#allocation14 + $0x78] ss:$12 sps:$4 sm:$0xff]   ;;  %v14011_v35 = vld [vmem:[#allocation14 + $0x80] ss:$12 sps:$4 sm:$0xff]  }
 0x5b0   :  { %14830 = vrcp.f32 %v4271_v37  ;;  %v14012_v37 = vld [vmem:[#allocation14 + $0x60] ss:$12 sps:$4 sm:$0xff]  }
 0x5b1   :  { %4012 = vst [vmem:[#allocation4 + $0x2] sm:$0x1] %v15748_v38 }
 0x5b8   :  { %v4285_v40 = vld [vmem:[#allocation4 + $0x2] sm:$0x1] }
 0x5b9   :  { %v4286_v44 = vpack.c.bf16 %v4285_v40, %v4285_v40  ;;  %v14018_v40 = vld [vmem:[#allocation14 + $0x4c] ss:$12 sps:$4 sm:$0xff]  }
 0x5ba   :  { %v14829_v45 = vpop.eup %14828 }
 0x5bb   :  { %v4275_v48 = vmul.f32 %v14829_v45, %v4274_v41  ;;  %4480 = vmatmul.mubr.bf16.vlgmr.msra.gmra.mxu1 %v4286_v44  ;;  %12923 = vmatmul.mubr.bf16.vlgmr.msra.gmra.mxu0 %v4286_v44  ;;  %v14019_v41 = vld [vmem:[#allocation14 + $0x50] ss:$12 sps:$4 sm:$0xff]   ;;  %v14022_v44 = vld [vmem:[#allocation14 + $0x34] ss:$12 sps:$4 sm:$0xff]   ;;  %v14023_v45 = vld [vmem:[#allocation14 + $0x38] ss:$12 sps:$4 sm:$0xff]  }
 0x5bc   :  { %4690 = vmatpush1.bf16.msra.mxu1 %v13968_v0  ;;  %12927 = vmatpush3.bf16.msra.mxu0 %v13971_v26  ;;  %v14015_v0 = vld [vmem:[#allocation14 + $0x68] ss:$12 sps:$4 sm:$0xff]  }
 0x5bd   :  { %v4278_v51 = vadd.f32 %v4276_v31, %v4275_v48  ;;  %4691 = vmatprep.subr.bf16.mxu1 %v13974_v32  ;;  %12928 = vmatprep.subr.bf16.mxu0 %v15452_v21  ;;  %v14831_v1 = vpop.eup %14830  ;;  %v14016_v26 = vld [vmem:[#allocation14 + $0x48] ss:$12 sps:$4 sm:$0xff]   ;;  %v14020_v32 = vld [vmem:[#allocation14 + $0x30] ss:$12 sps:$4 sm:$0xff]   ;;  %v14024_v48 = vld [vmem:[#allocation14 + $0x18] ss:$12 sps:$4 sm:$0xff]  }
 0x5be   :  { %4721 = vmatprep.mubr.bf16.mxu1 %v15285_v47  ;;  %12942 = vmatprep.mubr.msk.bf16.mxu0 %vm15286_vm0, %v15452_v21  ;;  %v4280_v5 = vsub.f32 1.0, %v14831_v1  ;;  %v4282_v46 = vmul.f32 %v14831_v1, %v15669_v29  ;;  %v13999_v29 = vld [vmem:[#allocation19 + $0x8] ss:$12 sps:$4 sm:$0xff]   ;;  %v14036_v1 = vld [vmem:[#allocation16 + $0x90] ss:$12 sps:$4 sm:$0xff]  }
 0x5bf   :  { %14832 = vtanh.f32 %v4278_v51  ;;  %v14026_v31 = vld [vmem:[#allocation14 + $0x1c] ss:$12 sps:$4 sm:$0xff]   ;;  %v14028_v51 = vld [vmem:[#allocation14] ss:$12 sps:$4 sm:$0xff]  }
 0x5c0   :  { %4692 = vmatpush1.bf16.msra.mxu1 %v13972_v49  ;;  %12929 = vmatpush3.bf16.msra.mxu0 %v13975_v50  ;;  %v14027_v49 = vld [vmem:[#allocation14 + $0x20] ss:$12 sps:$4 sm:$0xff]   ;;  %v14030_v50 = vld [vmem:[#allocation14 + $0x4] ss:$12 sps:$4 sm:$0xff]  }
 0x5c1   :  { %4693 = vmatprep.subr.bf16.mxu1 %v13978_v53  ;;  %12930 = vmatprep.subr.bf16.mxu0 %v15452_v21  ;;  %v14031_v53 = vld [vmem:[#allocation14 + $0x8] ss:$12 sps:$4 sm:$0xff]  }
 0x5c4   :  { %4694 = vmatpush1.bf16.msra.mxu1 %v13976_v57  ;;  %12931 = vmatpush3.bf16.msra.mxu0 %v13979_v20  ;;  %v14034_v57 = vld [vmem:[#allocation16 + $0xac] ss:$12 sps:$4 sm:$0xff]  }
 0x5c5   :  { %4695 = vmatprep.subr.bf16.mxu1 %v13982_v52  ;;  %12932 = vmatprep.subr.bf16.mxu0 %v15452_v21  ;;  %v14032_v52 = vld [vmem:[#allocation16 + $0xa8] ss:$12 sps:$4 sm:$0xff]  }
 0x5c8   :  { %4696 = vmatpush1.bf16.msra.mxu1 %v13980_v58  ;;  %12933 = vmatpush3.bf16.msra.mxu0 %v13983_v59  ;;  %v14035_v58 = vld [vmem:[#allocation16 + $0xb0] ss:$12 sps:$4 sm:$0xff]  }
 0x5c9   :  { %4697 = vmatprep.subr.bf16.mxu1 %v13986_v62  ;;  %12934 = vmatprep.subr.bf16.mxu0 %v15452_v21  ;;  %v14038_v62 = vld [vmem:[#allocation16 + $0x94] ss:$12 sps:$4 sm:$0xff]  }
 0x5cc   :  { %v14833_v8 = vpop.eup %14832  ;;  %4698 = vmatpush1.bf16.msra.mxu1 %v13984_v2  ;;  %12935 = vmatpush3.bf16.msra.mxu0 %v13987_v3  ;;  %v14039_v2 = vld [vmem:[#allocation16 + $0x98] ss:$12 sps:$4 sm:$0xff]   ;;  %v14042_v3 = vld [vmem:[#allocation16 + $0x7c] ss:$12 sps:$4 sm:$0xff]  }
 0x5cd   :  { %v4281_v10 = vmul.f32 %v14833_v8, %v4280_v5  ;;  %4699 = vmatprep.subr.bf16.mxu1 %v13990_v4  ;;  %12936 = vmatprep.subr.bf16.mxu0 %v15452_v21  ;;  %v14040_v4 = vld [vmem:[#allocation16 + $0x78] ss:$12 sps:$4 sm:$0xff]   ;;  %v14043_v5 = vld [vmem:[#allocation16 + $0x80] ss:$12 sps:$4 sm:$0xff]  }
 0x5ce   :  { %v14046_v8 = vld [vmem:[#allocation16 + $0x64] ss:$12 sps:$4 sm:$0xff]  }
 0x5cf   :  { %v15763_v54 = vadd.f32 %v4282_v46, %v4281_v10  ;;  %v14050_v10 = vld [vmem:[#allocation16 + $0x4c] ss:$12 sps:$4 sm:$0xff]   ;;  %v14048_v46 = vld [vmem:[#allocation16 + $0x48] ss:$12 sps:$4 sm:$0xff]  }
 0x5d0   :  { %4700 = vmatpush1.bf16.msra.mxu1 %v13988_v6  ;;  %12937 = vmatpush3.bf16.msra.mxu0 %v13991_v9  ;;  %v14044_v6 = vld [vmem:[#allocation16 + $0x60] ss:$12 sps:$4 sm:$0xff]   ;;  %v14047_v9 = vld [vmem:[#allocation16 + $0x68] ss:$12 sps:$4 sm:$0xff]  }
 0x5d1   :  { %4284 = vst [vmem:[#allocation3 + $0x3] sm:$0x1] %v15763_v54  ;;  %4701 = vmatprep.subr.bf16.mxu1 %v13994_v13  ;;  %12938 = vmatprep.subr.bf16.mxu0 %v15452_v21  ;;  %v14051_v13 = vld [vmem:[#allocation16 + $0x50] ss:$12 sps:$4 sm:$0xff]  }
 0x5d4   :  { %4702 = vmatpush1.bf16.msra.mxu1 %v13992_v14  ;;  %12939 = vmatpush3.bf16.msra.mxu0 %v13995_v16  ;;  %v14054_v14 = vld [vmem:[#allocation16 + $0x34] ss:$12 sps:$4 sm:$0xff]   ;;  %v14052_v16 = vld [vmem:[#allocation16 + $0x30] ss:$12 sps:$4 sm:$0xff]  }
 0x5d5   :  { %4703 = vmatprep.subr.bf16.mxu1 %v13998_v17  ;;  %12940 = vmatprep.subr.bf16.mxu0 %v15452_v21  ;;  %v14055_v17 = vld [vmem:[#allocation16 + $0x38] ss:$12 sps:$4 sm:$0xff]  }
 0x5d8   :  { %4704 = vmatpush1.bf16.msra.mxu1 %v13996_v18  ;;  %12941 = vmatpush3.bf16.msra.mxu0 %v13999_v29  ;;  %v4792_v20 = vld [vmem:[#allocation3 + $0x3] sm:$0x1]  ;;  %v14056_v29 = vld [vmem:[#allocation16 + $0x18] ss:$12 sps:$4 sm:$0xff]  }
 0x5d9   :  { %4954 = vmatprep.subr.bf16.mxu1 %v14002_v19  ;;  %12946 = vmatprep.subr.bf16.mxu0 %v15452_v21  ;;  %v4793_v59 = vpack.c.bf16 %v4792_v20, %v4792_v20  ;;  %v14058_v18 = vld [vmem:[#allocation16 + $0x1c] ss:$12 sps:$4 sm:$0xff]   ;;  %v14059_v19 = vld [vmem:[#allocation16 + $0x20] ss:$12 sps:$4 sm:$0xff]  }
 0x5da   :  { %v14094_v20 = vld [vmem:[#allocation11 + $0x4] ss:$12 sps:$4 sm:$0xff]  }
 0x5db   :  { %4722 = vmatmul.mubr.bf16.vlgmr.msra.gmra.mxu1 %v4528_v23  ;;  %12943 = vmatmul.mubr.bf16.vlgmr.msra.gmra.mxu0 %v4528_v23  ;;  %v14063_v23 = vld [vmem:[#allocation16 + $0x8] ss:$12 sps:$4 sm:$0xff]  }
 0x5dc   :  { %4955 = vmatpush1.bf16.msra.mxu1 %v14000_v22  ;;  %12947 = vmatpush3.bf16.msra.mxu0 %v14003_v24  ;;  %v14062_v22 = vld [vmem:[#allocation16 + $0x4] ss:$12 sps:$4 sm:$0xff]   ;;  %v14060_v24 = vld [vmem:[#allocation16] ss:$12 sps:$4 sm:$0xff]  }
 0x5dd   :  { %4956 = vmatprep.subr.bf16.mxu1 %v14006_v28  ;;  %12948 = vmatprep.subr.bf16.mxu0 %v15452_v21  ;;  %v14066_v28 = vld [vmem:[#allocation11 + $0xac] ss:$12 sps:$4 sm:$0xff]  }
 0x5de   :  { %4986 = vmatprep.mubr.bf16.mxu1 %v15285_v47  ;;  %12962 = vmatprep.mubr.msk.bf16.mxu0 %vm15286_vm0, %v15452_v21 }
 0x5e0   :  { %4957 = vmatpush1.bf16.msra.mxu1 %v14004_v30  ;;  %12949 = vmatpush3.bf16.msra.mxu0 %v14007_v33  ;;  %v14064_v30 = vld [vmem:[#allocation11 + $0xa8] ss:$12 sps:$4 sm:$0xff]   ;;  %v14067_v33 = vld [vmem:[#allocation11 + $0xb0] ss:$12 sps:$4 sm:$0xff]  }
 0x5e1   :  { %4958 = vmatprep.subr.bf16.mxu1 %v14010_v34  ;;  %12950 = vmatprep.subr.bf16.mxu0 %v15452_v21  ;;  %v5035_v34 = vpack.c.bf16 %v15748_v38, %v15748_v38 }
 0x5e4   :  { %4959 = vmatpush1.bf16.msra.mxu1 %v14008_v15  ;;  %12951 = vmatpush3.bf16.msra.mxu0 %v14011_v35  ;;  %v14070_v15 = vld [vmem:[#allocation11 + $0x94] ss:$12 sps:$4 sm:$0xff]   ;;  %v14068_v35 = vld [vmem:[#allocation11 + $0x90] ss:$12 sps:$4 sm:$0xff]  }
 0x5e5   :  { %4960 = vmatprep.subr.bf16.mxu1 %v14014_v36  ;;  %12952 = vmatprep.subr.bf16.mxu0 %v15452_v21  ;;  %v14071_v36 = vld [vmem:[#allocation11 + $0x98] ss:$12 sps:$4 sm:$0xff]  }
 0x5e8   :  { %4961 = vmatpush1.bf16.msra.mxu1 %v14012_v37  ;;  %12953 = vmatpush3.bf16.msra.mxu0 %v14015_v0  ;;  %v14074_v37 = vld [vmem:[#allocation11 + $0x7c] ss:$12 sps:$4 sm:$0xff]   ;;  %v14072_v0 = vld [vmem:[#allocation11 + $0x78] ss:$12 sps:$4 sm:$0xff]  }
 0x5e9   :  { %4962 = vmatprep.subr.bf16.mxu1 %v14018_v40  ;;  %12954 = vmatprep.subr.bf16.mxu0 %v15452_v21  ;;  %v14075_v40 = vld [vmem:[#allocation11 + $0x80] ss:$12 sps:$4 sm:$0xff]  }
 0x5ec   :  { %4963 = vmatpush1.bf16.msra.mxu1 %v14016_v26  ;;  %12955 = vmatpush3.bf16.msra.mxu0 %v14019_v41  ;;  %v14078_v26 = vld [vmem:[#allocation11 + $0x64] ss:$12 sps:$4 sm:$0xff]   ;;  %v14076_v41 = vld [vmem:[#allocation11 + $0x60] ss:$12 sps:$4 sm:$0xff]  }
 0x5ed   :  { %4964 = vmatprep.subr.bf16.mxu1 %v14022_v44  ;;  %12956 = vmatprep.subr.bf16.mxu0 %v15452_v21  ;;  %v14079_v44 = vld [vmem:[#allocation11 + $0x68] ss:$12 sps:$4 sm:$0xff]  }
 0x5f0   :  { %4965 = vmatpush1.bf16.msra.mxu1 %v14020_v32  ;;  %12957 = vmatpush3.bf16.msra.mxu0 %v14023_v45  ;;  %v14082_v32 = vld [vmem:[#allocation11 + $0x4c] ss:$12 sps:$4 sm:$0xff]   ;;  %v14080_v45 = vld [vmem:[#allocation11 + $0x48] ss:$12 sps:$4 sm:$0xff]  }
 0x5f1   :  { %4966 = vmatprep.subr.bf16.mxu1 %v14026_v31  ;;  %12958 = vmatprep.subr.bf16.mxu0 %v15452_v21  ;;  %v14083_v31 = vld [vmem:[#allocation11 + $0x50] ss:$12 sps:$4 sm:$0xff]  }
 0x5f4   :  { %4967 = vmatpush1.bf16.msra.mxu1 %v14024_v48  ;;  %12959 = vmatpush3.bf16.msra.mxu0 %v14027_v49  ;;  %v14086_v48 = vld [vmem:[#allocation11 + $0x34] ss:$12 sps:$4 sm:$0xff]   ;;  %v14084_v49 = vld [vmem:[#allocation11 + $0x30] ss:$12 sps:$4 sm:$0xff]  }
 0x5f5   :  { %4968 = vmatprep.subr.bf16.mxu1 %v14030_v50  ;;  %12960 = vmatprep.subr.bf16.mxu0 %v15452_v21  ;;  %v14087_v50 = vld [vmem:[#allocation11 + $0x38] ss:$12 sps:$4 sm:$0xff]  }
 0x5f8   :  { %4969 = vmatpush1.bf16.msra.mxu1 %v14028_v51  ;;  %12961 = vmatpush3.bf16.msra.mxu0 %v14031_v53  ;;  %v14090_v51 = vld [vmem:[#allocation11 + $0x1c] ss:$12 sps:$4 sm:$0xff]   ;;  %v14088_v53 = vld [vmem:[#allocation11 + $0x18] ss:$12 sps:$4 sm:$0xff]  }
 0x5f9   :  { %5196 = vmatprep.subr.bf16.mxu1 %v14034_v57  ;;  %12966 = vmatprep.subr.bf16.mxu0 %v15452_v21  ;;  %v14091_v57 = vld [vmem:[#allocation11 + $0x20] ss:$12 sps:$4 sm:$0xff]  }
 0x5fb   :  { %4987 = vmatmul.mubr.bf16.vlgmr.msra.gmra.mxu1 %v4793_v59  ;;  %12963 = vmatmul.mubr.bf16.vlgmr.msra.gmra.mxu0 %v4793_v59  ;;  %v5302_v59 = vpack.c.bf16 %v15763_v54, %v15763_v54 }
 0x5fc   :  { %5197 = vmatpush1.bf16.msra.mxu1 %v14032_v52  ;;  %12967 = vmatpush3.bf16.msra.mxu0 %v14035_v58  ;;  %v14092_v52 = vld [vmem:[#allocation11] ss:$12 sps:$4 sm:$0xff]   ;;  %v14095_v58 = vld [vmem:[#allocation11 + $0x8] ss:$12 sps:$4 sm:$0xff]  }
 0x5fd   :  { %5198 = vmatprep.subr.bf16.mxu1 %v14038_v62  ;;  %12968 = vmatprep.subr.bf16.mxu0 %v15452_v21 }
 0x5fe   :  { %5228 = vmatprep.mubr.bf16.mxu1 %v15285_v47  ;;  %12982 = vmatprep.mubr.msk.bf16.mxu0 %vm15286_vm0, %v15452_v21 }
 0x600   :  { %5199 = vmatpush1.bf16.msra.mxu1 %v14036_v1  ;;  %12969 = vmatpush3.bf16.msra.mxu0 %v14039_v2  ;;  %v14098_v2 = vld [vmem:[#allocation17 + $0xac] ss:$12 sps:$4 sm:$0xff]  }
 0x601   :  { %5200 = vmatprep.subr.bf16.mxu1 %v14042_v3  ;;  %12970 = vmatprep.subr.bf16.mxu0 %v15452_v21 }
 0x604   :  { %5201 = vmatpush1.bf16.msra.mxu1 %v14040_v4  ;;  %12971 = vmatpush3.bf16.msra.mxu0 %v14043_v5  ;;  %v14096_v5 = vld [vmem:[#allocation17 + $0xa8] ss:$12 sps:$4 sm:$0xff]  }
 0x605   :  { %5202 = vmatprep.subr.bf16.mxu1 %v14046_v8  ;;  %12972 = vmatprep.subr.bf16.mxu0 %v15452_v21  ;;  %v14099_v8 = vld [vmem:[#allocation17 + $0xb0] ss:$12 sps:$4 sm:$0xff]  }
 0x608   :  { %5203 = vmatpush1.bf16.msra.mxu1 %v14044_v6  ;;  %12973 = vmatpush3.bf16.msra.mxu0 %v14047_v9 }
 0x609   :  { %5204 = vmatprep.subr.bf16.mxu1 %v14050_v10  ;;  %12974 = vmatprep.subr.bf16.mxu0 %v15452_v21  ;;  %v14102_v10 = vld [vmem:[#allocation17 + $0x94] ss:$12 sps:$4 sm:$0xff]  }
 0x60c   :  { %5205 = vmatpush1.bf16.msra.mxu1 %v14048_v46  ;;  %12975 = vmatpush3.bf16.msra.mxu0 %v14051_v13 }
 0x60d   :  { %5206 = vmatprep.subr.bf16.mxu1 %v14054_v14  ;;  %12976 = vmatprep.subr.bf16.mxu0 %v15452_v21  ;;  %v14100_v14 = vld [vmem:[#allocation17 + $0x90] ss:$12 sps:$4 sm:$0xff]  }
 0x610   :  { %5207 = vmatpush1.bf16.msra.mxu1 %v14052_v16  ;;  %12977 = vmatpush3.bf16.msra.mxu0 %v14055_v17  ;;  %v14103_v16 = vld [vmem:[#allocation17 + $0x98] ss:$12 sps:$4 sm:$0xff]   ;;  %v14106_v17 = vld [vmem:[#allocation17 + $0x7c] ss:$12 sps:$4 sm:$0xff]  }
 0x611   :  { %5208 = vmatprep.subr.bf16.mxu1 %v14058_v18  ;;  %12978 = vmatprep.subr.bf16.mxu0 %v15452_v21  ;;  %v14104_v18 = vld [vmem:[#allocation17 + $0x78] ss:$12 sps:$4 sm:$0xff]  }
 0x614   :  { %5209 = vmatpush1.bf16.msra.mxu1 %v14056_v29  ;;  %12979 = vmatpush3.bf16.msra.mxu0 %v14059_v19  ;;  %v14107_v29 = vld [vmem:[#allocation17 + $0x80] ss:$12 sps:$4 sm:$0xff]   ;;  %v14110_v19 = vld [vmem:[#allocation17 + $0x64] ss:$12 sps:$4 sm:$0xff]  }
 0x615   :  { %5210 = vmatprep.subr.bf16.mxu1 %v14062_v22  ;;  %12980 = vmatprep.subr.bf16.mxu0 %v15452_v21  ;;  %v14108_v22 = vld [vmem:[#allocation17 + $0x60] ss:$12 sps:$4 sm:$0xff]  }
 0x618   :  { %5211 = vmatpush1.bf16.msra.mxu1 %v14060_v24  ;;  %12981 = vmatpush3.bf16.msra.mxu0 %v14063_v23  ;;  %v14111_v24 = vld [vmem:[#allocation17 + $0x68] ss:$12 sps:$4 sm:$0xff]   ;;  %v14114_v23 = vld [vmem:[#allocation17 + $0x4c] ss:$12 sps:$4 sm:$0xff]  }
 0x619   :  { %5463 = vmatprep.subr.bf16.mxu1 %v14066_v28  ;;  %12986 = vmatprep.subr.bf16.mxu0 %v15452_v21  ;;  %v14112_v28 = vld [vmem:[#allocation17 + $0x48] ss:$12 sps:$4 sm:$0xff]  }
 0x61b   :  { %5229 = vmatmul.mubr.bf16.vlgmr.msra.gmra.mxu1 %v5035_v34  ;;  %12983 = vmatmul.mubr.bf16.vlgmr.msra.gmra.mxu0 %v5035_v34  ;;  %v14116_v34 = vld [vmem:[#allocation17 + $0x30] ss:$12 sps:$4 sm:$0xff]  }
 0x61c   :  { %5464 = vmatpush1.bf16.msra.mxu1 %v14064_v30  ;;  %12987 = vmatpush3.bf16.msra.mxu0 %v14067_v33  ;;  %v14115_v30 = vld [vmem:[#allocation17 + $0x50] ss:$12 sps:$4 sm:$0xff]   ;;  %v14118_v33 = vld [vmem:[#allocation17 + $0x34] ss:$12 sps:$4 sm:$0xff]  }
 0x61d   :  { %5465 = vmatprep.subr.bf16.mxu1 %v14070_v15  ;;  %12988 = vmatprep.subr.bf16.mxu0 %v15452_v21  ;;  %v14119_v15 = vld [vmem:[#allocation17 + $0x38] ss:$12 sps:$4 sm:$0xff]  }
 0x61e   :  { %5495 = vmatprep.mubr.bf16.mxu1 %v15285_v47  ;;  %13002 = vmatprep.mubr.msk.bf16.mxu0 %vm15286_vm0, %v15452_v21 }
 0x620   :  { %5466 = vmatpush1.bf16.msra.mxu1 %v14068_v35  ;;  %12989 = vmatpush3.bf16.msra.mxu0 %v14071_v36  ;;  %v14122_v35 = vld [vmem:[#allocation17 + $0x1c] ss:$12 sps:$4 sm:$0xff]   ;;  %v14120_v36 = vld [vmem:[#allocation17 + $0x18] ss:$12 sps:$4 sm:$0xff]  }
 0x621   :  { %5467 = vmatprep.subr.bf16.mxu1 %v14074_v37  ;;  %12990 = vmatprep.subr.bf16.mxu0 %v15452_v21  ;;  %v14123_v37 = vld [vmem:[#allocation17 + $0x20] ss:$12 sps:$4 sm:$0xff]  }
 0x624   :  { %5468 = vmatpush1.bf16.msra.mxu1 %v14072_v0  ;;  %12991 = vmatpush3.bf16.msra.mxu0 %v14075_v40  ;;  %v14126_v0 = vld [vmem:[#allocation17 + $0x4] ss:$12 sps:$4 sm:$0xff]   ;;  %v14124_v40 = vld [vmem:[#allocation17] ss:$12 sps:$4 sm:$0xff]  }
 0x625   :  { %5469 = vmatprep.subr.bf16.mxu1 %v14078_v26  ;;  %12992 = vmatprep.subr.bf16.mxu0 %v15452_v21  ;;  %v14127_v26 = vld [vmem:[#allocation17 + $0x8] ss:$12 sps:$4 sm:$0xff]  }
 0x628   :  { %5470 = vmatpush1.bf16.msra.mxu1 %v14076_v41  ;;  %12993 = vmatpush3.bf16.msra.mxu0 %v14079_v44 }
 0x629   :  { %5471 = vmatprep.subr.bf16.mxu1 %v14082_v32  ;;  %12994 = vmatprep.subr.bf16.mxu0 %v15452_v21 }
 0x62c   :  { %5472 = vmatpush1.bf16.msra.mxu1 %v14080_v45  ;;  %12995 = vmatpush3.bf16.msra.mxu0 %v14083_v31 }
 0x62d   :  { %5473 = vmatprep.subr.bf16.mxu1 %v14086_v48  ;;  %12996 = vmatprep.subr.bf16.mxu0 %v15452_v21  ;;  %v14130_v48 = vld [vmem:[#allocation19 + $0xac] ss:$12 sps:$4 sm:$0xff]  }
 0x630   :  { %5474 = vmatpush1.bf16.msra.mxu1 %v14084_v49  ;;  %12997 = vmatpush3.bf16.msra.mxu0 %v14087_v50 }
 0x631   :  { %5475 = vmatprep.subr.bf16.mxu1 %v14090_v51  ;;  %12998 = vmatprep.subr.bf16.mxu0 %v15452_v21 }
 0x634   :  { %5476 = vmatpush1.bf16.msra.mxu1 %v14088_v53  ;;  %12999 = vmatpush3.bf16.msra.mxu0 %v14091_v57 }
 0x635   :  { %5477 = vmatprep.subr.bf16.mxu1 %v14094_v20  ;;  %13000 = vmatprep.subr.bf16.mxu0 %v15452_v21 }
 0x638   :  { %5478 = vmatpush1.bf16.msra.mxu1 %v14092_v52  ;;  %13001 = vmatpush3.bf16.msra.mxu0 %v14095_v58 }
 0x639   :  { %13006 = vmatprep.subr.bf16.mxu0 %v15452_v21  ;;  %5734 = vmatprep.subr.bf16.mxu1 %v14098_v2 }
 0x63b   :  { %5496 = vmatmul.mubr.bf16.vlgmr.msra.gmra.mxu1 %v5302_v59  ;;  %13003 = vmatmul.mubr.bf16.vlgmr.msra.gmra.mxu0 %v5302_v59 }
 0x63c   :  { %5766 = vmatprep.mubr.bf16.mxu1 %v15285_v47  ;;  %13022 = vmatprep.mubr.msk.bf16.mxu0 %vm15286_vm0, %v15452_v21 }
 0x63d   :  { %5735 = vmatpush1.bf16.msra.mxu1 %v14096_v5  ;;  %13007 = vmatpush3.bf16.msra.mxu0 %v14099_v8 }
 0x63e   :  { %13008 = vmatprep.subr.bf16.mxu0 %v15452_v21  ;;  %5736 = vmatprep.subr.bf16.mxu1 %v14102_v10 }
 0x641   :  { %5737 = vmatpush1.bf16.msra.mxu1 %v14100_v14  ;;  %13009 = vmatpush3.bf16.msra.mxu0 %v14103_v16 }
 0x642   :  { %13010 = vmatprep.subr.bf16.mxu0 %v15452_v21  ;;  %5738 = vmatprep.subr.bf16.mxu1 %v14106_v17 }
 0x645   :  { %5739 = vmatpush1.bf16.msra.mxu1 %v14104_v18  ;;  %13011 = vmatpush3.bf16.msra.mxu0 %v14107_v29 }
 0x646   :  { %13012 = vmatprep.subr.bf16.mxu0 %v15452_v21  ;;  %5740 = vmatprep.subr.bf16.mxu1 %v14110_v19 }
 0x649   :  { %5741 = vmatpush1.bf16.msra.mxu1 %v14108_v22  ;;  %13013 = vmatpush3.bf16.msra.mxu0 %v14111_v24 }
 0x64a   :  { %13014 = vmatprep.subr.bf16.mxu0 %v15452_v21  ;;  %5742 = vmatprep.subr.bf16.mxu1 %v14114_v23 }
 0x64d   :  { %5743 = vmatpush1.bf16.msra.mxu1 %v14112_v28  ;;  %13015 = vmatpush3.bf16.msra.mxu0 %v14115_v30 }
 0x64e   :  { %13016 = vmatprep.subr.bf16.mxu0 %v15452_v21  ;;  %5744 = vmatprep.subr.bf16.mxu1 %v14118_v33 }
 0x651   :  { %5745 = vmatpush1.bf16.msra.mxu1 %v14116_v34  ;;  %13017 = vmatpush3.bf16.msra.mxu0 %v14119_v15 }
 0x652   :  { %13018 = vmatprep.subr.bf16.mxu0 %v15452_v21  ;;  %5746 = vmatprep.subr.bf16.mxu1 %v14122_v35 }
 0x655   :  { %5747 = vmatpush1.bf16.msra.mxu1 %v14120_v36  ;;  %13019 = vmatpush3.bf16.msra.mxu0 %v14123_v37 }
 0x656   :  { %13020 = vmatprep.subr.bf16.mxu0 %v15452_v21  ;;  %5748 = vmatprep.subr.bf16.mxu1 %v14126_v0 }
 0x659   :  { %5749 = vmatpush1.bf16.msra.mxu1 %v14124_v40  ;;  %13021 = vmatpush3.bf16.msra.mxu0 %v14127_v26 }
 0x65a   :  { %13026 = vmatprep.subr.bf16.mxu0 %v15452_v21  ;;  %5976 = vmatprep.subr.bf16.mxu1 %v14130_v48 }
 0x67b   :  { %v4481_v62 = vpop.f32.mrf.mxu1  ;;  %v15811_v1 = vpop.f32.mrf.mxu0 }
 0x67c   :  { %v4482_v41 = vadd.f32 %v4481_v62, %v15626_v60  ;;  %v4523_v14 = vadd.f32 %v15811_v1, %v15643_v25 }
 0x67d   :  { %v15813_v3 = vpop.f32.mrf.mxu1  ;;  %v12924_v4 = vpop.f32.mrf.mxu0 }
 0x67e   :  { %v4484_v45 = vadd.f32 %v15813_v3, %v15629_v61 }
 0x67f   :  { %v4485_v6 = vpop.f32.mrf.mxu1  ;;  %v4525_v9 = vpop.f32.mrf.mxu0 }
 0x680   :  { %v15829_v6 = vld [vmem:[%s16370_s13] sm:$0x1] }
 0x681   :  { %v4486_v46 = vpop.f32.mrf.mxu1  ;;  %v12925_v13 = vpop.f32.mrf.mxu0 }
 0x69b   :  { %v4723_v44 = vpop.f32.mrf.mxu1  ;;  %v4764_v32 = vpop.f32.mrf.mxu0 }
 0x69c   :  { %v4770_v31 = vadd.f32 %v4723_v44, %v4482_v41  ;;  %v4784_v9 = vadd.f32 %v15829_v6, %v4764_v32 }
 0x69d   :  { %v4725_v49 = vpop.f32.mrf.mxu1  ;;  %v12944_v50 = vpop.f32.mrf.mxu0 }
 0x69e   :  { %v11622_v51 = vmul.f32 -1.442695, %v4770_v31  ;;  %v4777_v53 = vadd.f32 %v4725_v49, %v4484_v45 }
 0x69f   :  { %v4727_v57 = vpop.f32.mrf.mxu1  ;;  %v4767_v20 = vpop.f32.mrf.mxu0 }
 0x6a0   :  { %14834 = vpow2.f32 %v11622_v51  ;;  %v11623_v59 = vmul.f32 -1.442695, %v4777_v53  ;;  %v5301_v53 = vld [vmem:[#allocation2 + $0x4] ss:$8 sm:$0x7] }
 0x6a1   :  { %v4728_v52 = vpop.f32.mrf.mxu1  ;;  %v12945_v58 = vpop.f32.mrf.mxu0 }
 0x6a2   :  { %14836 = vpow2.f32 %v11623_v59 }
 0x6ad   :  { %v14835_v62 = vpop.eup %14834 }
 0x6ae   :  { %v4774_v2 = vadd.f32 1.0, %v14835_v62 }
 0x6af   :  { %v14837_v3 = vpop.eup %14836 }
 0x6b0   :  { %14838 = vrcp.f32 %v4774_v2  ;;  %v4781_v4 = vadd.f32 1.0, %v14837_v3 }
 0x6b2   :  { %14840 = vrcp.f32 %v4781_v4 }
 0x6bb   :  { %v4988_v5 = vpop.f32.mrf.mxu1  ;;  %v5029_v8 = vpop.f32.mrf.mxu0 }
 0x6bc   :  { %v4989_v15 = vadd.f32 %v4988_v5, %v15527_v7  ;;  %v5030_v3 = vadd.f32 %v5029_v8, %v15540_v27 }
 0x6bd   :  { %v14839_v10 = vpop.eup %14838  ;;  %v4990_v46 = vpop.f32.mrf.mxu1 }
 0x6be   :  { %v12964_v13 = vpop.f32.mrf.mxu0  ;;  %v4785_v16 = vmul.f32 %v14839_v10, %v4784_v9  ;;  %v4991_v44 = vadd.f32 %v4990_v46, %v15531_v11 }
 0x6bf   :  { %v4992_v17 = vpop.f32.mrf.mxu1  ;;  %v14841_v24 = vpop.eup %14840  ;;  %v5552_v13 = vrot.slane %v5301_v53, 1 }
 0x6c0   :  { %v5032_v18 = vpop.f32.mrf.mxu0  ;;  %v4786_v29 = vadd.f32 %v4785_v16, %v4523_v14  ;;  %v4788_v23 = vsub.f32 1.0, %v14841_v24  ;;  %v4790_v33 = vmul.f32 %v14841_v24, %v15736_v39 }
 0x6c1   :  { %v4993_v19 = vpop.f32.mrf.mxu1 }
 0x6c2   :  { %v12965_v22 = vpop.f32.mrf.mxu0  ;;  %14842 = vtanh.f32 %v4786_v29 }
 0x6cf   :  { %v14843_v28 = vpop.eup %14842 }
 0x6d0   :  { %v4789_v30 = vmul.f32 %v14843_v28, %v4788_v23 }
 0x6d2   :  { %v15835_v34 = vadd.f32 %v4790_v33, %v4789_v30 }
 0x6db   :  { %v5230_v35 = vpop.f32.mrf.mxu1  ;;  %v5271_v1 = vpop.f32.mrf.mxu0 }
 0x6dc   :  { %v5277_v36 = vadd.f32 %v5230_v35, %v4989_v15  ;;  %v5291_v52 = vadd.f32 %v15743_v63, %v5271_v1  ;;  %v14128_v15 = vld [vmem:[#allocation19 + $0xa8] ss:$12 sps:$4 sm:$0xff]   ;;  %v14131_v1 = vld [vmem:[#allocation19 + $0xb0] ss:$12 sps:$4 sm:$0xff]  }
 0x6dd   :  { %v5232_v37 = vpop.f32.mrf.mxu1  ;;  %v12984_v0 = vpop.f32.mrf.mxu0 }
 0x6de   :  { %v11672_v40 = vmul.f32 -1.442695, %v5277_v36  ;;  %v5284_v31 = vadd.f32 %v5232_v37, %v4991_v44  ;;  %v14134_v0 = vld [vmem:[#allocation19 + $0x94] ss:$12 sps:$4 sm:$0xff]   ;;  %v14135_v44 = vld [vmem:[#allocation19 + $0x98] ss:$12 sps:$4 sm:$0xff]  }
 0x6df   :  { %v5234_v26 = vpop.f32.mrf.mxu1  ;;  %v5274_v41 = vpop.f32.mrf.mxu0 }
 0x6e0   :  { %14844 = vpow2.f32 %v11672_v40  ;;  %v11673_v48 = vmul.f32 -1.442695, %v5284_v31  ;;  %v5563_v26 = vrot.slane %v5301_v53, 2  ;;  %v14139_v31 = vld [vmem:[#allocation19 + $0x80] ss:$12 sps:$4 sm:$0xff]  }
 0x6e1   :  { %v5235_v32 = vpop.f32.mrf.mxu1  ;;  %v12985_v45 = vpop.f32.mrf.mxu0 }
 0x6e2   :  { %14846 = vpow2.f32 %v11673_v48  ;;  %v14138_v45 = vld [vmem:[#allocation19 + $0x7c] ss:$12 sps:$4 sm:$0xff]   ;;  %v14142_v48 = vld [vmem:[#allocation19 + $0x64] ss:$12 sps:$4 sm:$0xff]  }
 0x6ed   :  { %v14845_v39 = vpop.eup %14844 }
 0x6ee   :  { %v5281_v49 = vadd.f32 1.0, %v14845_v39  ;;  %v14140_v39 = vld [vmem:[#allocation19 + $0x60] ss:$12 sps:$4 sm:$0xff]  }
 0x6ef   :  { %v14847_v50 = vpop.eup %14846 }
 0x6f0   :  { %14848 = vrcp.f32 %v5281_v49  ;;  %v5288_v51 = vadd.f32 1.0, %v14847_v50  ;;  %v14143_v49 = vld [vmem:[#allocation19 + $0x68] ss:$12 sps:$4 sm:$0xff]   ;;  %v14146_v50 = vld [vmem:[#allocation19 + $0x4c] ss:$12 sps:$4 sm:$0xff]  }
 0x6f2   :  { %14850 = vrcp.f32 %v5288_v51 }
 0x6fb   :  { %v5497_v57 = vpop.f32.mrf.mxu1  ;;  %v5538_v20 = vpop.f32.mrf.mxu0 }
 0x6fc   :  { %v5544_v58 = vadd.f32 %v5497_v57, %v5301_v53  ;;  %v5561_v36 = vadd.f32 %v15751_v12, %v5538_v20  ;;  %v14136_v12 = vld [vmem:[#allocation19 + $0x78] ss:$12 sps:$4 sm:$0xff]   ;;  %v14144_v53 = vld [vmem:[#allocation19 + $0x48] ss:$12 sps:$4 sm:$0xff]   ;;  %v14147_v57 = vld [vmem:[#allocation19 + $0x50] ss:$12 sps:$4 sm:$0xff]  }
 0x6fd   :  { %v14849_v59 = vpop.eup %14848  ;;  %v5499_v62 = vpop.f32.mrf.mxu1  ;;  %v14150_v20 = vld [vmem:[#allocation19 + $0x34] ss:$12 sps:$4 sm:$0xff]  }
 0x6fe   :  { %v13004_v2 = vpop.f32.mrf.mxu0  ;;  %v5292_v4 = vmul.f32 %v14849_v59, %v5291_v52  ;;  %v11698_v5 = vmul.f32 -1.442695, %v5544_v58  ;;  %v5554_v17 = vadd.f32 %v5552_v13, %v5499_v62  ;;  %v14148_v59 = vld [vmem:[#allocation19 + $0x30] ss:$12 sps:$4 sm:$0xff]   ;;  %v14151_v62 = vld [vmem:[#allocation19 + $0x38] ss:$12 sps:$4 sm:$0xff]  }
 0x6ff   :  { %v5501_v9 = vpop.f32.mrf.mxu1  ;;  %v14851_v63 = vpop.eup %14850  ;;  %v14156_v13 = vld [vmem:[#allocation19] ss:$12 sps:$4 sm:$0xff]  }
 0x700   :  { %v5541_v10 = vpop.f32.mrf.mxu0  ;;  %v5293_v46 = vadd.f32 %v5292_v4, %v5030_v3  ;;  %14852 = vpow2.f32 %v11698_v5  ;;  %v11699_v18 = vmul.f32 -1.442695, %v5554_v17  ;;  %v5295_v19 = vsub.f32 1.0, %v14851_v63  ;;  %v14154_v4 = vld [vmem:[#allocation19 + $0x1c] ss:$12 sps:$4 sm:$0xff]  }
 0x701   :  { %v5502_v14 = vpop.f32.mrf.mxu1  ;;  %v5297_v23 = vmul.f32 %v14851_v63, %v15748_v38  ;;  %v14132_v38 = vld [vmem:[#allocation19 + $0x90] ss:$12 sps:$4 sm:$0xff]   ;;  %v14152_v9 = vld [vmem:[#allocation19 + $0x18] ss:$12 sps:$4 sm:$0xff]   ;;  %v14155_v10 = vld [vmem:[#allocation19 + $0x20] ss:$12 sps:$4 sm:$0xff]  }
 0x702   :  { %v13005_v16 = vpop.f32.mrf.mxu0  ;;  %14854 = vtanh.f32 %v5293_v46  ;;  %v14158_v46 = vld [vmem:[#allocation19 + $0x4] ss:$12 sps:$4 sm:$0xff]   ;;  %v14162_v14 = vld [vmem:[#allocation14 + $0xac] ss:$12 sps:$4 sm:$0xff]   ;;  %v14166_v63 = vld [vmem:[#allocation14 + $0x94] ss:$12 sps:$4 sm:$0xff]  }
 0x703   :  { %14856 = vpow2.f32 %v11699_v18  ;;  %v14160_v16 = vld [vmem:[#allocation14 + $0xa8] ss:$12 sps:$4 sm:$0xff]   ;;  %v14163_v17 = vld [vmem:[#allocation14 + $0xb0] ss:$12 sps:$4 sm:$0xff]   ;;  %v5815_v18 = vpack.c.bf16 %v15835_v34, %v15835_v34 }
 0x70d   :  { %v14853_v29 = vpop.eup %14852 }
 0x70e   :  { %v5548_v22 = vadd.f32 1.0, %v14853_v29  ;;  %v14164_v29 = vld [vmem:[#allocation14 + $0x90] ss:$12 sps:$4 sm:$0xff]  }
 0x70f   :  { %v14855_v24 = vpop.eup %14854 }
 0x710   :  { %v5296_v8 = vmul.f32 %v14855_v24, %v5295_v19  ;;  %14858 = vrcp.f32 %v5548_v22  ;;  %v14857_v30 = vpop.eup %14856  ;;  %v14167_v19 = vld [vmem:[#allocation14 + $0x98] ss:$12 sps:$4 sm:$0xff]   ;;  %v14170_v22 = vld [vmem:[#allocation14 + $0x7c] ss:$12 sps:$4 sm:$0xff]  }
 0x711   :  { %v5558_v33 = vadd.f32 1.0, %v14857_v30  ;;  %v14168_v24 = vld [vmem:[#allocation14 + $0x78] ss:$12 sps:$4 sm:$0xff]   ;;  %v14172_v30 = vld [vmem:[#allocation14 + $0x60] ss:$12 sps:$4 sm:$0xff]  }
 0x712   :  { %v15842_v28 = vadd.f32 %v5297_v23, %v5296_v8  ;;  %v14171_v8 = vld [vmem:[#allocation14 + $0x80] ss:$12 sps:$4 sm:$0xff]   ;;  %v14174_v23 = vld [vmem:[#allocation14 + $0x64] ss:$12 sps:$4 sm:$0xff]  }
 0x713   :  { %14860 = vrcp.f32 %v5558_v33  ;;  %v14175_v33 = vld [vmem:[#allocation14 + $0x68] ss:$12 sps:$4 sm:$0xff]  }
 0x714   :  { %5299 = vst [vmem:[#allocation4 + $0x3] sm:$0x1] %v15842_v28 }
 0x71b   :  { %v5572_v35 = vld [vmem:[#allocation4 + $0x3] sm:$0x1] }
 0x71c   :  { %v5573_v37 = vpack.c.bf16 %v5572_v35, %v5572_v35  ;;  %v14176_v35 = vld [vmem:[#allocation14 + $0x48] ss:$12 sps:$4 sm:$0xff]  }
 0x71d   :  { %v14859_v40 = vpop.eup %14858 }
 0x71e   :  { %v5562_v41 = vmul.f32 %v14859_v40, %v5561_v36  ;;  %5767 = vmatmul.mubr.bf16.vlgmr.msra.gmra.mxu1 %v5573_v37  ;;  %13023 = vmatmul.mubr.bf16.vlgmr.msra.gmra.mxu0 %v5573_v37  ;;  %v14182_v36 = vld [vmem:[#allocation14 + $0x34] ss:$12 sps:$4 sm:$0xff]   ;;  %v14180_v37 = vld [vmem:[#allocation14 + $0x30] ss:$12 sps:$4 sm:$0xff]  }
 0x71f   :  { %5977 = vmatpush1.bf16.msra.mxu1 %v14128_v15  ;;  %13027 = vmatpush3.bf16.msra.mxu0 %v14131_v1  ;;  %v14178_v15 = vld [vmem:[#allocation14 + $0x4c] ss:$12 sps:$4 sm:$0xff]   ;;  %v14179_v1 = vld [vmem:[#allocation14 + $0x50] ss:$12 sps:$4 sm:$0xff]  }
 0x720   :  { %v5565_v32 = vadd.f32 %v5563_v26, %v5562_v41  ;;  %5978 = vmatprep.subr.bf16.mxu1 %v14134_v0  ;;  %13028 = vmatprep.subr.bf16.mxu0 %v15452_v21  ;;  %v14861_v51 = vpop.eup %14860  ;;  %v14183_v0 = vld [vmem:[#allocation14 + $0x38] ss:$12 sps:$4 sm:$0xff]   ;;  %v14186_v40 = vld [vmem:[#allocation14 + $0x1c] ss:$12 sps:$4 sm:$0xff]   ;;  %v14187_v41 = vld [vmem:[#allocation14 + $0x20] ss:$12 sps:$4 sm:$0xff]  }
 0x721   :  { %6008 = vmatprep.mubr.bf16.mxu1 %v15285_v47  ;;  %13042 = vmatprep.mubr.msk.bf16.mxu0 %vm15286_vm0, %v15452_v21  ;;  %v5567_v52 = vsub.f32 1.0, %v14861_v51  ;;  %v5569_v3 = vmul.f32 %v14861_v51, %v15763_v54  ;;  %v14159_v54 = vld [vmem:[#allocation19 + $0x8] ss:$12 sps:$4 sm:$0xff]   ;;  %v14184_v26 = vld [vmem:[#allocation14 + $0x18] ss:$12 sps:$4 sm:$0xff]  }
 0x722   :  { %14862 = vtanh.f32 %v5565_v32  ;;  %v14191_v32 = vld [vmem:[#allocation14 + $0x8] ss:$12 sps:$4 sm:$0xff]   ;;  %v14199_v51 = vld [vmem:[#allocation16 + $0x98] ss:$12 sps:$4 sm:$0xff]  }
 0x723   :  { %5979 = vmatpush1.bf16.msra.mxu1 %v14132_v38  ;;  %13029 = vmatpush3.bf16.msra.mxu0 %v14135_v44  ;;  %v14190_v38 = vld [vmem:[#allocation14 + $0x4] ss:$12 sps:$4 sm:$0xff]   ;;  %v14188_v44 = vld [vmem:[#allocation14] ss:$12 sps:$4 sm:$0xff]  }
 0x724   :  { %5980 = vmatprep.subr.bf16.mxu1 %v14138_v45  ;;  %13030 = vmatprep.subr.bf16.mxu0 %v15452_v21  ;;  %v14194_v45 = vld [vmem:[#allocation16 + $0xac] ss:$12 sps:$4 sm:$0xff]  }
 0x727   :  { %5981 = vmatpush1.bf16.msra.mxu1 %v14136_v12  ;;  %13031 = vmatpush3.bf16.msra.mxu0 %v14139_v31  ;;  %v14192_v31 = vld [vmem:[#allocation16 + $0xa8] ss:$12 sps:$4 sm:$0xff]  }
 0x728   :  { %5982 = vmatprep.subr.bf16.mxu1 %v14142_v48  ;;  %13032 = vmatprep.subr.bf16.mxu0 %v15452_v21  ;;  %v14195_v48 = vld [vmem:[#allocation16 + $0xb0] ss:$12 sps:$4 sm:$0xff]  }
 0x72b   :  { %5983 = vmatpush1.bf16.msra.mxu1 %v14140_v39  ;;  %13033 = vmatpush3.bf16.msra.mxu0 %v14143_v49  ;;  %v14198_v49 = vld [vmem:[#allocation16 + $0x94] ss:$12 sps:$4 sm:$0xff]  }
 0x72c   :  { %5984 = vmatprep.subr.bf16.mxu1 %v14146_v50  ;;  %13034 = vmatprep.subr.bf16.mxu0 %v15452_v21  ;;  %v14196_v50 = vld [vmem:[#allocation16 + $0x90] ss:$12 sps:$4 sm:$0xff]  }
 0x72f   :  { %v14863_v58 = vpop.eup %14862  ;;  %5985 = vmatpush1.bf16.msra.mxu1 %v14144_v53  ;;  %13035 = vmatpush3.bf16.msra.mxu0 %v14147_v57  ;;  %v14202_v53 = vld [vmem:[#allocation16 + $0x7c] ss:$12 sps:$4 sm:$0xff]   ;;  %v14200_v57 = vld [vmem:[#allocation16 + $0x78] ss:$12 sps:$4 sm:$0xff]  }
 0x730   :  { %v5568_v2 = vmul.f32 %v14863_v58, %v5567_v52  ;;  %5986 = vmatprep.subr.bf16.mxu1 %v14150_v20  ;;  %13036 = vmatprep.subr.bf16.mxu0 %v15452_v21  ;;  %v14203_v20 = vld [vmem:[#allocation16 + $0x80] ss:$12 sps:$4 sm:$0xff]   ;;  %v14206_v52 = vld [vmem:[#allocation16 + $0x64] ss:$12 sps:$4 sm:$0xff]  }
 0x731   :  { %v14204_v58 = vld [vmem:[#allocation16 + $0x60] ss:$12 sps:$4 sm:$0xff]  }
 0x732   :  { %v15855_v5 = vadd.f32 %v5569_v3, %v5568_v2  ;;  %v14208_v2 = vld [vmem:[#allocation16 + $0x48] ss:$12 sps:$4 sm:$0xff]   ;;  %v14211_v3 = vld [vmem:[#allocation16 + $0x50] ss:$12 sps:$4 sm:$0xff]  }
 0x733   :  { %5987 = vmatpush1.bf16.msra.mxu1 %v14148_v59  ;;  %13037 = vmatpush3.bf16.msra.mxu0 %v14151_v62  ;;  %v14207_v59 = vld [vmem:[#allocation16 + $0x68] ss:$12 sps:$4 sm:$0xff]   ;;  %v14210_v62 = vld [vmem:[#allocation16 + $0x4c] ss:$12 sps:$4 sm:$0xff]  }
 0x734   :  { %5571 = vst [vmem:[#allocation3 + $0x4] sm:$0x1] %v15855_v5  ;;  %5988 = vmatprep.subr.bf16.mxu1 %v14154_v4  ;;  %13038 = vmatprep.subr.bf16.mxu0 %v15452_v21  ;;  %v14214_v4 = vld [vmem:[#allocation16 + $0x34] ss:$12 sps:$4 sm:$0xff]  }
 0x737   :  { %5989 = vmatpush1.bf16.msra.mxu1 %v14152_v9  ;;  %13039 = vmatpush3.bf16.msra.mxu0 %v14155_v10  ;;  %v14212_v9 = vld [vmem:[#allocation16 + $0x30] ss:$12 sps:$4 sm:$0xff]   ;;  %v14215_v10 = vld [vmem:[#allocation16 + $0x38] ss:$12 sps:$4 sm:$0xff]  }
 0x738   :  { %5990 = vmatprep.subr.bf16.mxu1 %v14158_v46  ;;  %13040 = vmatprep.subr.bf16.mxu0 %v15452_v21  ;;  %v14218_v46 = vld [vmem:[#allocation16 + $0x1c] ss:$12 sps:$4 sm:$0xff]  }
 0x73b   :  { %5991 = vmatpush1.bf16.msra.mxu1 %v14156_v13  ;;  %13041 = vmatpush3.bf16.msra.mxu0 %v14159_v54  ;;  %v6079_v12 = vld [vmem:[#allocation3 + $0x4] sm:$0x1]  ;;  %v14216_v13 = vld [vmem:[#allocation16 + $0x18] ss:$12 sps:$4 sm:$0xff]   ;;  %v14219_v54 = vld [vmem:[#allocation16 + $0x20] ss:$12 sps:$4 sm:$0xff]  }
 0x73c   :  { %6241 = vmatprep.subr.bf16.mxu1 %v14162_v14  ;;  %13046 = vmatprep.subr.bf16.mxu0 %v15452_v21  ;;  %v6080_v39 = vpack.c.bf16 %v6079_v12, %v6079_v12  ;;  %v14222_v14 = vld [vmem:[#allocation16 + $0x4] ss:$12 sps:$4 sm:$0xff]   ;;  %v14252_v12 = vld [vmem:[#allocation11] ss:$12 sps:$4 sm:$0xff]  }
 0x73e   :  { %6009 = vmatmul.mubr.bf16.vlgmr.msra.gmra.mxu1 %v5815_v18  ;;  %13043 = vmatmul.mubr.bf16.vlgmr.msra.gmra.mxu0 %v5815_v18  ;;  %v14226_v18 = vld [vmem:[#allocation11 + $0xac] ss:$12 sps:$4 sm:$0xff]  }
 0x73f   :  { %6242 = vmatpush1.bf16.msra.mxu1 %v14160_v16  ;;  %13047 = vmatpush3.bf16.msra.mxu0 %v14163_v17  ;;  %v14220_v16 = vld [vmem:[#allocation16] ss:$12 sps:$4 sm:$0xff]   ;;  %v14223_v17 = vld [vmem:[#allocation16 + $0x8] ss:$12 sps:$4 sm:$0xff]  }
 0x740   :  { %6243 = vmatprep.subr.bf16.mxu1 %v14166_v63  ;;  %13048 = vmatprep.subr.bf16.mxu0 %v15452_v21  ;;  %v14224_v63 = vld [vmem:[#allocation11 + $0xa8] ss:$12 sps:$4 sm:$0xff]  }
 0x741   :  { %6273 = vmatprep.mubr.bf16.mxu1 %v15285_v47  ;;  %13062 = vmatprep.mubr.msk.bf16.mxu0 %vm15286_vm0, %v15452_v21 }
 0x743   :  { %6244 = vmatpush1.bf16.msra.mxu1 %v14164_v29  ;;  %13049 = vmatpush3.bf16.msra.mxu0 %v14167_v19  ;;  %v14227_v29 = vld [vmem:[#allocation11 + $0xb0] ss:$12 sps:$4 sm:$0xff]   ;;  %v6322_v19 = vpack.c.bf16 %v15842_v28, %v15842_v28 }
 0x744   :  { %6245 = vmatprep.subr.bf16.mxu1 %v14170_v22  ;;  %13050 = vmatprep.subr.bf16.mxu0 %v15452_v21  ;;  %v14230_v22 = vld [vmem:[#allocation11 + $0x94] ss:$12 sps:$4 sm:$0xff]  }
 0x747   :  { %6246 = vmatpush1.bf16.msra.mxu1 %v14168_v24  ;;  %13051 = vmatpush3.bf16.msra.mxu0 %v14171_v8  ;;  %v14228_v24 = vld [vmem:[#allocation11 + $0x90] ss:$12 sps:$4 sm:$0xff]   ;;  %v14231_v8 = vld [vmem:[#allocation11 + $0x98] ss:$12 sps:$4 sm:$0xff]  }
 0x748   :  { %6247 = vmatprep.subr.bf16.mxu1 %v14174_v23  ;;  %13052 = vmatprep.subr.bf16.mxu0 %v15452_v21  ;;  %v14234_v23 = vld [vmem:[#allocation11 + $0x7c] ss:$12 sps:$4 sm:$0xff]  }
 0x74b   :  { %6248 = vmatpush1.bf16.msra.mxu1 %v14172_v30  ;;  %13053 = vmatpush3.bf16.msra.mxu0 %v14175_v33  ;;  %v14232_v30 = vld [vmem:[#allocation11 + $0x78] ss:$12 sps:$4 sm:$0xff]   ;;  %v14235_v33 = vld [vmem:[#allocation11 + $0x80] ss:$12 sps:$4 sm:$0xff]  }
 0x74c   :  { %6249 = vmatprep.subr.bf16.mxu1 %v14178_v15  ;;  %13054 = vmatprep.subr.bf16.mxu0 %v15452_v21  ;;  %v14238_v15 = vld [vmem:[#allocation11 + $0x64] ss:$12 sps:$4 sm:$0xff]  }
 0x74f   :  { %6250 = vmatpush1.bf16.msra.mxu1 %v14176_v35  ;;  %13055 = vmatpush3.bf16.msra.mxu0 %v14179_v1  ;;  %v14236_v35 = vld [vmem:[#allocation11 + $0x60] ss:$12 sps:$4 sm:$0xff]   ;;  %v14239_v1 = vld [vmem:[#allocation11 + $0x68] ss:$12 sps:$4 sm:$0xff]  }
 0x750   :  { %6251 = vmatprep.subr.bf16.mxu1 %v14182_v36  ;;  %13056 = vmatprep.subr.bf16.mxu0 %v15452_v21  ;;  %v14242_v36 = vld [vmem:[#allocation11 + $0x4c] ss:$12 sps:$4 sm:$0xff]  }
 0x753   :  { %6252 = vmatpush1.bf16.msra.mxu1 %v14180_v37  ;;  %13057 = vmatpush3.bf16.msra.mxu0 %v14183_v0  ;;  %v14240_v37 = vld [vmem:[#allocation11 + $0x48] ss:$12 sps:$4 sm:$0xff]   ;;  %v14243_v0 = vld [vmem:[#allocation11 + $0x50] ss:$12 sps:$4 sm:$0xff]  }
 0x754   :  { %6253 = vmatprep.subr.bf16.mxu1 %v14186_v40  ;;  %13058 = vmatprep.subr.bf16.mxu0 %v15452_v21  ;;  %v14246_v40 = vld [vmem:[#allocation11 + $0x34] ss:$12 sps:$4 sm:$0xff]  }
 0x757   :  { %6254 = vmatpush1.bf16.msra.mxu1 %v14184_v26  ;;  %13059 = vmatpush3.bf16.msra.mxu0 %v14187_v41  ;;  %v14244_v26 = vld [vmem:[#allocation11 + $0x30] ss:$12 sps:$4 sm:$0xff]   ;;  %v14247_v41 = vld [vmem:[#allocation11 + $0x38] ss:$12 sps:$4 sm:$0xff]  }
 0x758   :  { %6255 = vmatprep.subr.bf16.mxu1 %v14190_v38  ;;  %13060 = vmatprep.subr.bf16.mxu0 %v15452_v21  ;;  %v14250_v38 = vld [vmem:[#allocation11 + $0x1c] ss:$12 sps:$4 sm:$0xff]  }
 0x75b   :  { %6256 = vmatpush1.bf16.msra.mxu1 %v14188_v44  ;;  %13061 = vmatpush3.bf16.msra.mxu0 %v14191_v32  ;;  %v14248_v44 = vld [vmem:[#allocation11 + $0x18] ss:$12 sps:$4 sm:$0xff]   ;;  %v14251_v32 = vld [vmem:[#allocation11 + $0x20] ss:$12 sps:$4 sm:$0xff]  }
 0x75c   :  { %6483 = vmatprep.subr.bf16.mxu1 %v14194_v45  ;;  %13066 = vmatprep.subr.bf16.mxu0 %v15452_v21  ;;  %v14254_v45 = vld [vmem:[#allocation11 + $0x4] ss:$12 sps:$4 sm:$0xff]  }
 0x75e   :  { %6274 = vmatmul.mubr.bf16.vlgmr.msra.gmra.mxu1 %v6080_v39  ;;  %13063 = vmatmul.mubr.bf16.vlgmr.msra.gmra.mxu0 %v6080_v39 }
 0x75f   :  { %6484 = vmatpush1.bf16.msra.mxu1 %v14192_v31  ;;  %13067 = vmatpush3.bf16.msra.mxu0 %v14195_v48  ;;  %v14255_v31 = vld [vmem:[#allocation11 + $0x8] ss:$12 sps:$4 sm:$0xff]   ;;  %v6589_v48 = vpack.c.bf16 %v15855_v5, %v15855_v5 }
 0x760   :  { %6485 = vmatprep.subr.bf16.mxu1 %v14198_v49  ;;  %13068 = vmatprep.subr.bf16.mxu0 %v15452_v21 }
 0x761   :  { %6515 = vmatprep.mubr.bf16.mxu1 %v15285_v47  ;;  %13082 = vmatprep.mubr.msk.bf16.mxu0 %vm15286_vm0, %v15452_v21 }
 0x763   :  { %6486 = vmatpush1.bf16.msra.mxu1 %v14196_v50  ;;  %13069 = vmatpush3.bf16.msra.mxu0 %v14199_v51 }
 0x764   :  { %6487 = vmatprep.subr.bf16.mxu1 %v14202_v53  ;;  %13070 = vmatprep.subr.bf16.mxu0 %v15452_v21 }
 0x767   :  { %6488 = vmatpush1.bf16.msra.mxu1 %v14200_v57  ;;  %13071 = vmatpush3.bf16.msra.mxu0 %v14203_v20 }
 0x768   :  { %6489 = vmatprep.subr.bf16.mxu1 %v14206_v52  ;;  %13072 = vmatprep.subr.bf16.mxu0 %v15452_v21 }
 0x76b   :  { %6490 = vmatpush1.bf16.msra.mxu1 %v14204_v58  ;;  %13073 = vmatpush3.bf16.msra.mxu0 %v14207_v59 }
 0x76c   :  { %6491 = vmatprep.subr.bf16.mxu1 %v14210_v62  ;;  %13074 = vmatprep.subr.bf16.mxu0 %v15452_v21 }
 0x76f   :  { %6492 = vmatpush1.bf16.msra.mxu1 %v14208_v2  ;;  %13075 = vmatpush3.bf16.msra.mxu0 %v14211_v3 }
 0x770   :  { %6493 = vmatprep.subr.bf16.mxu1 %v14214_v4  ;;  %13076 = vmatprep.subr.bf16.mxu0 %v15452_v21 }
 0x773   :  { %6494 = vmatpush1.bf16.msra.mxu1 %v14212_v9  ;;  %13077 = vmatpush3.bf16.msra.mxu0 %v14215_v10 }
 0x774   :  { %6495 = vmatprep.subr.bf16.mxu1 %v14218_v46  ;;  %13078 = vmatprep.subr.bf16.mxu0 %v15452_v21 }
 0x777   :  { %6496 = vmatpush1.bf16.msra.mxu1 %v14216_v13  ;;  %13079 = vmatpush3.bf16.msra.mxu0 %v14219_v54 }
 0x778   :  { %6497 = vmatprep.subr.bf16.mxu1 %v14222_v14  ;;  %13080 = vmatprep.subr.bf16.mxu0 %v15452_v21 }
 0x77b   :  { %6498 = vmatpush1.bf16.msra.mxu1 %v14220_v16  ;;  %13081 = vmatpush3.bf16.msra.mxu0 %v14223_v17 }
 0x77c   :  { %6750 = vmatprep.subr.bf16.mxu1 %v14226_v18  ;;  %13086 = vmatprep.subr.bf16.mxu0 %v15452_v21  ;;  %v14258_v18 = vld [vmem:[#allocation17 + $0xac] ss:$12 sps:$4 sm:$0xff]  }
 0x77e   :  { %6516 = vmatmul.mubr.bf16.vlgmr.msra.gmra.mxu1 %v6322_v19  ;;  %13083 = vmatmul.mubr.bf16.vlgmr.msra.gmra.mxu0 %v6322_v19 }
 0x77f   :  { %6751 = vmatpush1.bf16.msra.mxu1 %v14224_v63  ;;  %13087 = vmatpush3.bf16.msra.mxu0 %v14227_v29  ;;  %v14256_v63 = vld [vmem:[#allocation17 + $0xa8] ss:$12 sps:$4 sm:$0xff]   ;;  %v14259_v29 = vld [vmem:[#allocation17 + $0xb0] ss:$12 sps:$4 sm:$0xff]  }
 0x780   :  { %6752 = vmatprep.subr.bf16.mxu1 %v14230_v22  ;;  %13088 = vmatprep.subr.bf16.mxu0 %v15452_v21 }
 0x781   :  { %6782 = vmatprep.mubr.bf16.mxu1 %v15285_v47  ;;  %13102 = vmatprep.mubr.msk.bf16.mxu0 %vm15286_vm0, %v15452_v21 }
 0x783   :  { %6753 = vmatpush1.bf16.msra.mxu1 %v14228_v24  ;;  %13089 = vmatpush3.bf16.msra.mxu0 %v14231_v8  ;;  %v14262_v24 = vld [vmem:[#allocation17 + $0x94] ss:$12 sps:$4 sm:$0xff]   ;;  %v14260_v8 = vld [vmem:[#allocation17 + $0x90] ss:$12 sps:$4 sm:$0xff]  }
 0x784   :  { %6754 = vmatprep.subr.bf16.mxu1 %v14234_v23  ;;  %13090 = vmatprep.subr.bf16.mxu0 %v15452_v21  ;;  %v14263_v23 = vld [vmem:[#allocation17 + $0x98] ss:$12 sps:$4 sm:$0xff]  }
 0x787   :  { %6755 = vmatpush1.bf16.msra.mxu1 %v14232_v30  ;;  %13091 = vmatpush3.bf16.msra.mxu0 %v14235_v33  ;;  %v14266_v30 = vld [vmem:[#allocation17 + $0x7c] ss:$12 sps:$4 sm:$0xff]   ;;  %v14264_v33 = vld [vmem:[#allocation17 + $0x78] ss:$12 sps:$4 sm:$0xff]  }
 0x788   :  { %6756 = vmatprep.subr.bf16.mxu1 %v14238_v15  ;;  %13092 = vmatprep.subr.bf16.mxu0 %v15452_v21  ;;  %v14267_v15 = vld [vmem:[#allocation17 + $0x80] ss:$12 sps:$4 sm:$0xff]  }
 0x78b   :  { %6757 = vmatpush1.bf16.msra.mxu1 %v14236_v35  ;;  %13093 = vmatpush3.bf16.msra.mxu0 %v14239_v1  ;;  %v14270_v35 = vld [vmem:[#allocation17 + $0x64] ss:$12 sps:$4 sm:$0xff]   ;;  %v14268_v1 = vld [vmem:[#allocation17 + $0x60] ss:$12 sps:$4 sm:$0xff]  }
 0x78c   :  { %6758 = vmatprep.subr.bf16.mxu1 %v14242_v36  ;;  %13094 = vmatprep.subr.bf16.mxu0 %v15452_v21  ;;  %v14271_v36 = vld [vmem:[#allocation17 + $0x68] ss:$12 sps:$4 sm:$0xff]  }
 0x78f   :  { %6759 = vmatpush1.bf16.msra.mxu1 %v14240_v37  ;;  %13095 = vmatpush3.bf16.msra.mxu0 %v14243_v0  ;;  %v14274_v37 = vld [vmem:[#allocation17 + $0x4c] ss:$12 sps:$4 sm:$0xff]  }
 0x790   :  { %6760 = vmatprep.subr.bf16.mxu1 %v14246_v40  ;;  %13096 = vmatprep.subr.bf16.mxu0 %v15452_v21  ;;  %v14272_v40 = vld [vmem:[#allocation17 + $0x48] ss:$12 sps:$4 sm:$0xff]  }
 0x793   :  { %6761 = vmatpush1.bf16.msra.mxu1 %v14244_v26  ;;  %13097 = vmatpush3.bf16.msra.mxu0 %v14247_v41  ;;  %v14275_v26 = vld [vmem:[#allocation17 + $0x50] ss:$12 sps:$4 sm:$0xff]  }
 0x794   :  { %6762 = vmatprep.subr.bf16.mxu1 %v14250_v38  ;;  %13098 = vmatprep.subr.bf16.mxu0 %v15452_v21  ;;  %v14278_v38 = vld [vmem:[#allocation17 + $0x34] ss:$12 sps:$4 sm:$0xff]  }
 0x797   :  { %6763 = vmatpush1.bf16.msra.mxu1 %v14248_v44  ;;  %13099 = vmatpush3.bf16.msra.mxu0 %v14251_v32 }
 0x798   :  { %6764 = vmatprep.subr.bf16.mxu1 %v14254_v45  ;;  %13100 = vmatprep.subr.bf16.mxu0 %v15452_v21 }
 0x79b   :  { %6765 = vmatpush1.bf16.msra.mxu1 %v14252_v12  ;;  %13101 = vmatpush3.bf16.msra.mxu0 %v14255_v31 }
 0x79c   :  { %13106 = vmatprep.subr.bf16.mxu0 %v15452_v21  ;;  %7021 = vmatprep.subr.bf16.mxu1 %v14258_v18 }
 0x79e   :  { %6783 = vmatmul.mubr.bf16.vlgmr.msra.gmra.mxu1 %v6589_v48  ;;  %13103 = vmatmul.mubr.bf16.vlgmr.msra.gmra.mxu0 %v6589_v48 }
 0x79f   :  { %7053 = vmatprep.mubr.bf16.mxu1 %v15285_v47  ;;  %13122 = vmatprep.mubr.msk.bf16.mxu0 %vm15286_vm0, %v15452_v21 }
 0x7a0   :  { %7022 = vmatpush1.bf16.msra.mxu1 %v14256_v63  ;;  %13107 = vmatpush3.bf16.msra.mxu0 %v14259_v29 }
 0x7a1   :  { %13108 = vmatprep.subr.bf16.mxu0 %v15452_v21  ;;  %7023 = vmatprep.subr.bf16.mxu1 %v14262_v24 }
 0x7a4   :  { %7024 = vmatpush1.bf16.msra.mxu1 %v14260_v8  ;;  %13109 = vmatpush3.bf16.msra.mxu0 %v14263_v23 }
 0x7a5   :  { %13110 = vmatprep.subr.bf16.mxu0 %v15452_v21  ;;  %7025 = vmatprep.subr.bf16.mxu1 %v14266_v30 }
 0x7a8   :  { %7026 = vmatpush1.bf16.msra.mxu1 %v14264_v33  ;;  %13111 = vmatpush3.bf16.msra.mxu0 %v14267_v15 }
 0x7a9   :  { %7027 = vmatprep.subr.bf16.mxu1 %v14270_v35  ;;  %13112 = vmatprep.subr.bf16.mxu0 %v15452_v21 }
 0x7ac   :  { %7028 = vmatpush1.bf16.msra.mxu1 %v14268_v1  ;;  %13113 = vmatpush3.bf16.msra.mxu0 %v14271_v36 }
 0x7ad   :  { %7029 = vmatprep.subr.bf16.mxu1 %v14274_v37  ;;  %13114 = vmatprep.subr.bf16.mxu0 %v15452_v21 }
 0x7b0   :  { %7030 = vmatpush1.bf16.msra.mxu1 %v14272_v40  ;;  %13115 = vmatpush3.bf16.msra.mxu0 %v14275_v26  ;;  %v6588_v40 = vld [vmem:[#allocation2 + $0x5] ss:$8 sm:$0x7] }
 0x7b1   :  { %7031 = vmatprep.subr.bf16.mxu1 %v14278_v38  ;;  %13116 = vmatprep.subr.bf16.mxu0 %v15452_v21  ;;  %v15928_v38 = vld [vmem:[%s16366_s9] sm:$0x1] }
 0x7de   :  { %v5768_v39 = vpop.f32.mrf.mxu1  ;;  %v15903_v49 = vpop.f32.mrf.mxu0 }
 0x7df   :  { %v5769_v58 = vadd.f32 %v5768_v39, %v15626_v60  ;;  %v14276_v39 = vld [vmem:[#allocation17 + $0x30] ss:$12 sps:$4 sm:$0xff]  }
 0x7e0   :  { %v5770_v50 = vpop.f32.mrf.mxu1  ;;  %v13024_v51 = vpop.f32.mrf.mxu0  ;;  %7032 = vmatpush1.bf16.msra.mxu1 %v14276_v39 }
 0x7e1   :  { %v5771_v2 = vadd.f32 %v5770_v50, %v15629_v61  ;;  %v14279_v50 = vld [vmem:[#allocation17 + $0x38] ss:$12 sps:$4 sm:$0xff]   ;;  %v5810_v51 = vadd.f32 %v15903_v49, %v15643_v25 }
 0x7e2   :  { %v5772_v53 = vpop.f32.mrf.mxu1  ;;  %v5812_v57 = vpop.f32.mrf.mxu0  ;;  %13117 = vmatpush3.bf16.msra.mxu0 %v14279_v50  ;;  %v14286_v49 = vld [vmem:[#allocation17 + $0x4] ss:$12 sps:$4 sm:$0xff]  }
 0x7e3   :  { %v14282_v57 = vld [vmem:[#allocation17 + $0x1c] ss:$12 sps:$4 sm:$0xff]   ;;  %13118 = vmatprep.subr.bf16.mxu0 %v15452_v21 }
 0x7e4   :  { %v5773_v20 = vpop.f32.mrf.mxu1  ;;  %v13025_v52 = vpop.f32.mrf.mxu0  ;;  %7033 = vmatprep.subr.bf16.mxu1 %v14282_v57 }
 0x7fe   :  { %v6010_v59 = vpop.f32.mrf.mxu1  ;;  %v6051_v62 = vpop.f32.mrf.mxu0 }
 0x7ff   :  { %v6057_v3 = vadd.f32 %v6010_v59, %v5769_v58  ;;  %v6071_v45 = vadd.f32 %v15829_v6, %v6051_v62  ;;  %v14280_v62 = vld [vmem:[#allocation17 + $0x18] ss:$12 sps:$4 sm:$0xff]  }
 0x800   :  { %v6012_v4 = vpop.f32.mrf.mxu1  ;;  %v13044_v9 = vpop.f32.mrf.mxu0  ;;  %7034 = vmatpush1.bf16.msra.mxu1 %v14280_v62 }
 0x801   :  { %v11748_v10 = vmul.f32 -1.442695, %v6057_v3  ;;  %v6064_v46 = vadd.f32 %v6012_v4, %v5771_v2  ;;  %v14283_v2 = vld [vmem:[#allocation17 + $0x20] ss:$12 sps:$4 sm:$0xff]   ;;  %v14287_v4 = vld [vmem:[#allocation17 + $0x8] ss:$12 sps:$4 sm:$0xff]   ;;  %7035 = vmatprep.subr.bf16.mxu1 %v14286_v49 }
 0x802   :  { %v6014_v13 = vpop.f32.mrf.mxu1  ;;  %v6054_v54 = vpop.f32.mrf.mxu0  ;;  %13119 = vmatpush3.bf16.msra.mxu0 %v14283_v2  ;;  %v14284_v3 = vld [vmem:[#allocation17] ss:$12 sps:$4 sm:$0xff]  }
 0x803   :  { %14864 = vpow2.f32 %v11748_v10  ;;  %v11749_v17 = vmul.f32 -1.442695, %v6064_v46  ;;  %13120 = vmatprep.subr.bf16.mxu0 %v15452_v21  ;;  %v14290_v9 = vld [vmem:[#allocation19 + $0xac] ss:$12 sps:$4 sm:$0xff]  }
 0x804   :  { %v6015_v14 = vpop.f32.mrf.mxu1  ;;  %v13045_v16 = vpop.f32.mrf.mxu0  ;;  %7036 = vmatpush1.bf16.msra.mxu1 %v14284_v3 }
 0x805   :  { %14866 = vpow2.f32 %v11749_v17  ;;  %7263 = vmatprep.subr.bf16.mxu1 %v14290_v9 }
 0x806   :  { %13121 = vmatpush3.bf16.msra.mxu0 %v14287_v4 }
 0x807   :  { %13126 = vmatprep.subr.bf16.mxu0 %v15452_v21 }
 0x810   :  { %v14865_v19 = vpop.eup %14864 }
 0x811   :  { %v6061_v22 = vadd.f32 1.0, %v14865_v19 }
 0x812   :  { %v14867_v0 = vpop.eup %14866 }
 0x813   :  { %14868 = vrcp.f32 %v6061_v22  ;;  %v6068_v41 = vadd.f32 1.0, %v14867_v0 }
 0x815   :  { %14870 = vrcp.f32 %v6068_v41 }
 0x81e   :  { %v6275_v44 = vpop.f32.mrf.mxu1  ;;  %v15911_v32 = vpop.f32.mrf.mxu0 }
 0x81f   :  { %v6276_v17 = vadd.f32 %v6275_v44, %v15527_v7  ;;  %v6317_v39 = vadd.f32 %v15911_v32, %v15540_v27 }
 0x820   :  { %v14869_v12 = vpop.eup %14868  ;;  %v6277_v31 = vpop.f32.mrf.mxu1 }
 0x821   :  { %v13064_v48 = vpop.f32.mrf.mxu0  ;;  %v6072_v53 = vmul.f32 %v14869_v12, %v6071_v45  ;;  %v6278_v30 = vadd.f32 %v6277_v31, %v15531_v11 }
 0x822   :  { %v6279_v20 = vpop.f32.mrf.mxu1  ;;  %v14871_v10 = vpop.eup %14870 }
 0x823   :  { %v6319_v52 = vpop.f32.mrf.mxu0  ;;  %v6073_v58 = vadd.f32 %v6072_v53, %v5810_v51  ;;  %v6075_v46 = vsub.f32 1.0, %v14871_v10  ;;  %v6077_v14 = vmul.f32 %v14871_v10, %v15835_v34 }
 0x824   :  { %v6280_v6 = vpop.f32.mrf.mxu1  ;;  %v6839_v52 = vrot.slane %v6588_v40, 1 }
 0x825   :  { %v13065_v59 = vpop.f32.mrf.mxu0  ;;  %14872 = vtanh.f32 %v6073_v58 }
 0x832   :  { %v14873_v13 = vpop.eup %14872 }
 0x833   :  { %v6076_v54 = vmul.f32 %v14873_v13, %v6075_v46 }
 0x835   :  { %v15921_v16 = vadd.f32 %v6077_v14, %v6076_v54  ;;  %v14288_v14 = vld [vmem:[#allocation19 + $0xa8] ss:$12 sps:$4 sm:$0xff]  }
 0x83e   :  { %v6517_v18 = vpop.f32.mrf.mxu1  ;;  %v6558_v63 = vpop.f32.mrf.mxu0 }
 0x83f   :  { %v6564_v29 = vadd.f32 %v6517_v18, %v6276_v17  ;;  %v6578_v44 = vadd.f32 %v15928_v38, %v6558_v63  ;;  %v14291_v18 = vld [vmem:[#allocation19 + $0xb0] ss:$12 sps:$4 sm:$0xff]  }
 0x840   :  { %v6519_v19 = vpop.f32.mrf.mxu1  ;;  %v13084_v22 = vpop.f32.mrf.mxu0  ;;  %v15937_v63 = vld [vmem:[#allocation13] sm:$0x1] }
 0x841   :  { %v11798_v24 = vmul.f32 -1.442695, %v6564_v29  ;;  %v6571_v35 = vadd.f32 %v6519_v19, %v6278_v30  ;;  %v14294_v22 = vld [vmem:[#allocation19 + $0x94] ss:$12 sps:$4 sm:$0xff]   ;;  %v14295_v30 = vld [vmem:[#allocation19 + $0x98] ss:$12 sps:$4 sm:$0xff]  }
 0x842   :  { %v6521_v8 = vpop.f32.mrf.mxu1  ;;  %v6561_v23 = vpop.f32.mrf.mxu0 }
 0x843   :  { %14874 = vpow2.f32 %v11798_v24  ;;  %v11799_v1 = vmul.f32 -1.442695, %v6571_v35  ;;  %v6850_v8 = vrot.slane %v6588_v40, 2  ;;  %v14296_v35 = vld [vmem:[#allocation19 + $0x78] ss:$12 sps:$4 sm:$0xff]  }
 0x844   :  { %v6522_v33 = vpop.f32.mrf.mxu1  ;;  %v13085_v15 = vpop.f32.mrf.mxu0 }
 0x845   :  { %14876 = vpow2.f32 %v11799_v1  ;;  %v14298_v15 = vld [vmem:[#allocation19 + $0x7c] ss:$12 sps:$4 sm:$0xff]   ;;  %v14299_v1 = vld [vmem:[#allocation19 + $0x80] ss:$12 sps:$4 sm:$0xff]  }
 0x850   :  { %v14875_v34 = vpop.eup %14874 }
 0x851   :  { %v6568_v36 = vadd.f32 1.0, %v14875_v34  ;;  %v14302_v34 = vld [vmem:[#allocation19 + $0x64] ss:$12 sps:$4 sm:$0xff]  }
 0x852   :  { %v14877_v37 = vpop.eup %14876 }
 0x853   :  { %14878 = vrcp.f32 %v6568_v36  ;;  %v6575_v0 = vadd.f32 1.0, %v14877_v37  ;;  %v14300_v36 = vld [vmem:[#allocation19 + $0x60] ss:$12 sps:$4 sm:$0xff]   ;;  %v14303_v37 = vld [vmem:[#allocation19 + $0x68] ss:$12 sps:$4 sm:$0xff]  }
 0x855   :  { %14880 = vrcp.f32 %v6575_v0  ;;  %v14306_v0 = vld [vmem:[#allocation19 + $0x4c] ss:$12 sps:$4 sm:$0xff]  }
 0x85e   :  { %v6784_v26 = vpop.f32.mrf.mxu1  ;;  %v6825_v41 = vpop.f32.mrf.mxu0 }
 0x85f   :  { %v6831_v45 = vadd.f32 %v6784_v26, %v6588_v40  ;;  %v6848_v29 = vadd.f32 %v15937_v63, %v6825_v41  ;;  %v14304_v26 = vld [vmem:[#allocation19 + $0x48] ss:$12 sps:$4 sm:$0xff]   ;;  %v14307_v41 = vld [vmem:[#allocation19 + $0x50] ss:$12 sps:$4 sm:$0xff]  }
 0x860   :  { %v14879_v12 = vpop.eup %14878  ;;  %v6786_v31 = vpop.f32.mrf.mxu1 }
 0x861   :  { %v13104_v48 = vpop.f32.mrf.mxu0  ;;  %v6579_v50 = vmul.f32 %v14879_v12, %v6578_v44  ;;  %v11824_v51 = vmul.f32 -1.442695, %v6831_v45  ;;  %v6841_v59 = vadd.f32 %v6839_v52, %v6786_v31  ;;  %v14310_v44 = vld [vmem:[#allocation19 + $0x34] ss:$12 sps:$4 sm:$0xff]   ;;  %v14308_v31 = vld [vmem:[#allocation19 + $0x30] ss:$12 sps:$4 sm:$0xff]  }
 0x862   :  { %v6788_v53 = vpop.f32.mrf.mxu1  ;;  %v14881_v2 = vpop.eup %14880  ;;  %v14311_v48 = vld [vmem:[#allocation19 + $0x38] ss:$12 sps:$4 sm:$0xff]  }
 0x863   :  { %v6828_v57 = vpop.f32.mrf.mxu0  ;;  %v6580_v20 = vadd.f32 %v6579_v50, %v6317_v39  ;;  %14882 = vpow2.f32 %v11824_v51  ;;  %v11825_v62 = vmul.f32 -1.442695, %v6841_v59  ;;  %v6582_v3 = vsub.f32 1.0, %v14881_v2  ;;  %v14314_v51 = vld [vmem:[#allocation19 + $0x1c] ss:$12 sps:$4 sm:$0xff]  }
 0x864   :  { %v6789_v58 = vpop.f32.mrf.mxu1  ;;  %v6584_v10 = vmul.f32 %v14881_v2, %v15842_v28  ;;  %v14292_v28 = vld [vmem:[#allocation19 + $0x90] ss:$12 sps:$4 sm:$0xff]   ;;  %v14312_v57 = vld [vmem:[#allocation19 + $0x18] ss:$12 sps:$4 sm:$0xff]   ;;  %v14320_v59 = vld [vmem:[#allocation14 + $0xa8] ss:$12 sps:$4 sm:$0xff]   ;;  %v7102_v2 = vpack.c.bf16 %v15921_v16, %v15921_v16 }
 0x865   :  { %v13105_v6 = vpop.f32.mrf.mxu0  ;;  %14884 = vtanh.f32 %v6580_v20  ;;  %v14315_v20 = vld [vmem:[#allocation19 + $0x20] ss:$12 sps:$4 sm:$0xff]   ;;  %v14318_v52 = vld [vmem:[#allocation19 + $0x4] ss:$12 sps:$4 sm:$0xff]  }
 0x866   :  { %14886 = vpow2.f32 %v11825_v62  ;;  %v14316_v58 = vld [vmem:[#allocation19] ss:$12 sps:$4 sm:$0xff]   ;;  %v14323_v62 = vld [vmem:[#allocation14 + $0xb0] ss:$12 sps:$4 sm:$0xff]  }
 0x867   :  { %v14322_v6 = vld [vmem:[#allocation14 + $0xac] ss:$12 sps:$4 sm:$0xff]  }
 0x870   :  { %v14883_v49 = vpop.eup %14882 }
 0x871   :  { %v6835_v4 = vadd.f32 1.0, %v14883_v49  ;;  %v14326_v49 = vld [vmem:[#allocation14 + $0x94] ss:$12 sps:$4 sm:$0xff]  }
 0x872   :  { %v14885_v9 = vpop.eup %14884 }
 0x873   :  { %v6583_v32 = vmul.f32 %v14885_v9, %v6582_v3  ;;  %14888 = vrcp.f32 %v6835_v4  ;;  %v14887_v13 = vpop.eup %14886  ;;  %v14324_v3 = vld [vmem:[#allocation14 + $0x90] ss:$12 sps:$4 sm:$0xff]   ;;  %v14327_v4 = vld [vmem:[#allocation14 + $0x98] ss:$12 sps:$4 sm:$0xff]  }
 0x874   :  { %v6845_v54 = vadd.f32 1.0, %v14887_v13  ;;  %v14330_v9 = vld [vmem:[#allocation14 + $0x7c] ss:$12 sps:$4 sm:$0xff]   ;;  %v14334_v13 = vld [vmem:[#allocation14 + $0x64] ss:$12 sps:$4 sm:$0xff]  }
 0x875   :  { %v15934_v46 = vadd.f32 %v6584_v10, %v6583_v32  ;;  %v14328_v32 = vld [vmem:[#allocation14 + $0x78] ss:$12 sps:$4 sm:$0xff]   ;;  %v14331_v10 = vld [vmem:[#allocation14 + $0x80] ss:$12 sps:$4 sm:$0xff]  }
 0x876   :  { %14890 = vrcp.f32 %v6845_v54  ;;  %v14332_v54 = vld [vmem:[#allocation14 + $0x60] ss:$12 sps:$4 sm:$0xff]  }
 0x877   :  { %6586 = vst [vmem:[#allocation4 + $0x4] sm:$0x1] %v15934_v46 }
 0x87e   :  { %v6859_v17 = vld [vmem:[#allocation4 + $0x4] sm:$0x1] }
 0x87f   :  { %v6860_v19 = vpack.c.bf16 %v6859_v17, %v6859_v17  ;;  %v14338_v17 = vld [vmem:[#allocation14 + $0x4c] ss:$12 sps:$4 sm:$0xff]  }
 0x880   :  { %v14889_v24 = vpop.eup %14888 }
 0x881   :  { %v6849_v23 = vmul.f32 %v14889_v24, %v6848_v29  ;;  %7054 = vmatmul.mubr.bf16.vlgmr.msra.gmra.mxu1 %v6860_v19  ;;  %13123 = vmatmul.mubr.bf16.vlgmr.msra.gmra.mxu0 %v6860_v19  ;;  %v14339_v29 = vld [vmem:[#allocation14 + $0x50] ss:$12 sps:$4 sm:$0xff]   ;;  %v14342_v19 = vld [vmem:[#allocation14 + $0x34] ss:$12 sps:$4 sm:$0xff]   ;;  %v14343_v24 = vld [vmem:[#allocation14 + $0x38] ss:$12 sps:$4 sm:$0xff]  }
 0x882   :  { %7264 = vmatpush1.bf16.msra.mxu1 %v14288_v14  ;;  %13127 = vmatpush3.bf16.msra.mxu0 %v14291_v18  ;;  %v14335_v14 = vld [vmem:[#allocation14 + $0x68] ss:$12 sps:$4 sm:$0xff]  }
 0x883   :  { %v6852_v33 = vadd.f32 %v6850_v8, %v6849_v23  ;;  %7265 = vmatprep.subr.bf16.mxu1 %v14294_v22  ;;  %13128 = vmatprep.subr.bf16.mxu0 %v15452_v21  ;;  %v14891_v40 = vpop.eup %14890  ;;  %v14336_v18 = vld [vmem:[#allocation14 + $0x48] ss:$12 sps:$4 sm:$0xff]   ;;  %v14340_v22 = vld [vmem:[#allocation14 + $0x30] ss:$12 sps:$4 sm:$0xff]   ;;  %v14344_v23 = vld [vmem:[#allocation14 + $0x18] ss:$12 sps:$4 sm:$0xff]  }
 0x884   :  { %7295 = vmatprep.mubr.bf16.mxu1 %v15285_v47  ;;  %13142 = vmatprep.mubr.msk.bf16.mxu0 %vm15286_vm0, %v15452_v21  ;;  %v6854_v45 = vsub.f32 1.0, %v14891_v40  ;;  %v6856_v50 = vmul.f32 %v14891_v40, %v15855_v5  ;;  %v14319_v5 = vld [vmem:[#allocation19 + $0x8] ss:$12 sps:$4 sm:$0xff]   ;;  %v14356_v40 = vld [vmem:[#allocation16 + $0x90] ss:$12 sps:$4 sm:$0xff]  }
 0x885   :  { %14892 = vtanh.f32 %v6852_v33  ;;  %v14346_v8 = vld [vmem:[#allocation14 + $0x1c] ss:$12 sps:$4 sm:$0xff]   ;;  %v14348_v33 = vld [vmem:[#allocation14] ss:$12 sps:$4 sm:$0xff]  }
 0x886   :  { %7266 = vmatpush1.bf16.msra.mxu1 %v14292_v28  ;;  %13129 = vmatpush3.bf16.msra.mxu0 %v14295_v30  ;;  %v14347_v28 = vld [vmem:[#allocation14 + $0x20] ss:$12 sps:$4 sm:$0xff]   ;;  %v14350_v30 = vld [vmem:[#allocation14 + $0x4] ss:$12 sps:$4 sm:$0xff]  }
 0x887   :  { %7267 = vmatprep.subr.bf16.mxu1 %v14298_v15  ;;  %13130 = vmatprep.subr.bf16.mxu0 %v15452_v21  ;;  %v14351_v15 = vld [vmem:[#allocation14 + $0x8] ss:$12 sps:$4 sm:$0xff]  }
 0x88a   :  { %7268 = vmatpush1.bf16.msra.mxu1 %v14296_v35  ;;  %13131 = vmatpush3.bf16.msra.mxu0 %v14299_v1  ;;  %v14354_v35 = vld [vmem:[#allocation16 + $0xac] ss:$12 sps:$4 sm:$0xff]  }
 0x88b   :  { %7269 = vmatprep.subr.bf16.mxu1 %v14302_v34  ;;  %13132 = vmatprep.subr.bf16.mxu0 %v15452_v21  ;;  %v14352_v34 = vld [vmem:[#allocation16 + $0xa8] ss:$12 sps:$4 sm:$0xff]  }
 0x88e   :  { %7270 = vmatpush1.bf16.msra.mxu1 %v14300_v36  ;;  %13133 = vmatpush3.bf16.msra.mxu0 %v14303_v37  ;;  %v14355_v36 = vld [vmem:[#allocation16 + $0xb0] ss:$12 sps:$4 sm:$0xff]  }
 0x88f   :  { %7271 = vmatprep.subr.bf16.mxu1 %v14306_v0  ;;  %13134 = vmatprep.subr.bf16.mxu0 %v15452_v21  ;;  %v14358_v0 = vld [vmem:[#allocation16 + $0x94] ss:$12 sps:$4 sm:$0xff]  }
 0x892   :  { %v14893_v12 = vpop.eup %14892  ;;  %7272 = vmatpush1.bf16.msra.mxu1 %v14304_v26  ;;  %13135 = vmatpush3.bf16.msra.mxu0 %v14307_v41  ;;  %v14359_v26 = vld [vmem:[#allocation16 + $0x98] ss:$12 sps:$4 sm:$0xff]   ;;  %v14362_v41 = vld [vmem:[#allocation16 + $0x7c] ss:$12 sps:$4 sm:$0xff]  }
 0x893   :  { %v6855_v39 = vmul.f32 %v14893_v12, %v6854_v45  ;;  %7273 = vmatprep.subr.bf16.mxu1 %v14310_v44  ;;  %13136 = vmatprep.subr.bf16.mxu0 %v15452_v21  ;;  %v14360_v44 = vld [vmem:[#allocation16 + $0x78] ss:$12 sps:$4 sm:$0xff]   ;;  %v14363_v45 = vld [vmem:[#allocation16 + $0x80] ss:$12 sps:$4 sm:$0xff]  }
 0x894   :  { %v14366_v12 = vld [vmem:[#allocation16 + $0x64] ss:$12 sps:$4 sm:$0xff]  }
 0x895   :  { %v15949_v53 = vadd.f32 %v6856_v50, %v6855_v39  ;;  %v14370_v39 = vld [vmem:[#allocation16 + $0x4c] ss:$12 sps:$4 sm:$0xff]   ;;  %v14368_v50 = vld [vmem:[#allocation16 + $0x48] ss:$12 sps:$4 sm:$0xff]  }
 0x896   :  { %7274 = vmatpush1.bf16.msra.mxu1 %v14308_v31  ;;  %13137 = vmatpush3.bf16.msra.mxu0 %v14311_v48  ;;  %v14364_v31 = vld [vmem:[#allocation16 + $0x60] ss:$12 sps:$4 sm:$0xff]   ;;  %v14367_v48 = vld [vmem:[#allocation16 + $0x68] ss:$12 sps:$4 sm:$0xff]  }
 0x897   :  { %6858 = vst [vmem:[#allocation3 + $0x5] sm:$0x1] %v15949_v53  ;;  %7275 = vmatprep.subr.bf16.mxu1 %v14314_v51  ;;  %13138 = vmatprep.subr.bf16.mxu0 %v15452_v21  ;;  %v14371_v51 = vld [vmem:[#allocation16 + $0x50] ss:$12 sps:$4 sm:$0xff]  }
 0x89a   :  { %7276 = vmatpush1.bf16.msra.mxu1 %v14312_v57  ;;  %13139 = vmatpush3.bf16.msra.mxu0 %v14315_v20  ;;  %v14374_v57 = vld [vmem:[#allocation16 + $0x34] ss:$12 sps:$4 sm:$0xff]   ;;  %v14372_v20 = vld [vmem:[#allocation16 + $0x30] ss:$12 sps:$4 sm:$0xff]  }
 0x89b   :  { %7277 = vmatprep.subr.bf16.mxu1 %v14318_v52  ;;  %13140 = vmatprep.subr.bf16.mxu0 %v15452_v21  ;;  %v14375_v52 = vld [vmem:[#allocation16 + $0x38] ss:$12 sps:$4 sm:$0xff]  }
 0x89e   :  { %7278 = vmatpush1.bf16.msra.mxu1 %v14316_v58  ;;  %13141 = vmatpush3.bf16.msra.mxu0 %v14319_v5  ;;  %v7366_v1 = vld [vmem:[#allocation3 + $0x5] sm:$0x1]  ;;  %v14376_v5 = vld [vmem:[#allocation16 + $0x18] ss:$12 sps:$4 sm:$0xff]  }
 0x89f   :  { %7528 = vmatprep.subr.bf16.mxu1 %v14322_v6  ;;  %13146 = vmatprep.subr.bf16.mxu0 %v15452_v21  ;;  %v7367_v37 = vpack.c.bf16 %v7366_v1, %v7366_v1  ;;  %v14378_v58 = vld [vmem:[#allocation16 + $0x1c] ss:$12 sps:$4 sm:$0xff]   ;;  %v14379_v6 = vld [vmem:[#allocation16 + $0x20] ss:$12 sps:$4 sm:$0xff]  }
 0x8a0   :  { %v14414_v1 = vld [vmem:[#allocation11 + $0x4] ss:$12 sps:$4 sm:$0xff]  }
 0x8a1   :  { %7296 = vmatmul.mubr.bf16.vlgmr.msra.gmra.mxu1 %v7102_v2  ;;  %13143 = vmatmul.mubr.bf16.vlgmr.msra.gmra.mxu0 %v7102_v2  ;;  %v14383_v2 = vld [vmem:[#allocation16 + $0x8] ss:$12 sps:$4 sm:$0xff]  }
 0x8a2   :  { %7529 = vmatpush1.bf16.msra.mxu1 %v14320_v59  ;;  %13147 = vmatpush3.bf16.msra.mxu0 %v14323_v62  ;;  %v14382_v59 = vld [vmem:[#allocation16 + $0x4] ss:$12 sps:$4 sm:$0xff]   ;;  %v14380_v62 = vld [vmem:[#allocation16] ss:$12 sps:$4 sm:$0xff]  }
 0x8a3   :  { %7530 = vmatprep.subr.bf16.mxu1 %v14326_v49  ;;  %13148 = vmatprep.subr.bf16.mxu0 %v15452_v21  ;;  %v14386_v49 = vld [vmem:[#allocation11 + $0xac] ss:$12 sps:$4 sm:$0xff]  }
 0x8a4   :  { %7560 = vmatprep.mubr.bf16.mxu1 %v15285_v47  ;;  %13162 = vmatprep.mubr.msk.bf16.mxu0 %vm15286_vm0, %v15452_v21 }
 0x8a6   :  { %7531 = vmatpush1.bf16.msra.mxu1 %v14324_v3  ;;  %13149 = vmatpush3.bf16.msra.mxu0 %v14327_v4  ;;  %v14384_v3 = vld [vmem:[#allocation11 + $0xa8] ss:$12 sps:$4 sm:$0xff]   ;;  %v14387_v4 = vld [vmem:[#allocation11 + $0xb0] ss:$12 sps:$4 sm:$0xff]  }
 0x8a7   :  { %7532 = vmatprep.subr.bf16.mxu1 %v14330_v9  ;;  %13150 = vmatprep.subr.bf16.mxu0 %v15452_v21  ;;  %v7609_v9 = vpack.c.bf16 %v15934_v46, %v15934_v46 }
 0x8aa   :  { %7533 = vmatpush1.bf16.msra.mxu1 %v14328_v32  ;;  %13151 = vmatpush3.bf16.msra.mxu0 %v14331_v10  ;;  %v14390_v32 = vld [vmem:[#allocation11 + $0x94] ss:$12 sps:$4 sm:$0xff]   ;;  %v14388_v10 = vld [vmem:[#allocation11 + $0x90] ss:$12 sps:$4 sm:$0xff]  }
 0x8ab   :  { %7534 = vmatprep.subr.bf16.mxu1 %v14334_v13  ;;  %13152 = vmatprep.subr.bf16.mxu0 %v15452_v21  ;;  %v14391_v13 = vld [vmem:[#allocation11 + $0x98] ss:$12 sps:$4 sm:$0xff]  }
 0x8ae   :  { %7535 = vmatpush1.bf16.msra.mxu1 %v14332_v54  ;;  %13153 = vmatpush3.bf16.msra.mxu0 %v14335_v14  ;;  %v14394_v54 = vld [vmem:[#allocation11 + $0x7c] ss:$12 sps:$4 sm:$0xff]   ;;  %v14392_v14 = vld [vmem:[#allocation11 + $0x78] ss:$12 sps:$4 sm:$0xff]  }
 0x8af   :  { %7536 = vmatprep.subr.bf16.mxu1 %v14338_v17  ;;  %13154 = vmatprep.subr.bf16.mxu0 %v15452_v21  ;;  %v14395_v17 = vld [vmem:[#allocation11 + $0x80] ss:$12 sps:$4 sm:$0xff]  }
 0x8b2   :  { %7537 = vmatpush1.bf16.msra.mxu1 %v14336_v18  ;;  %13155 = vmatpush3.bf16.msra.mxu0 %v14339_v29  ;;  %v14398_v18 = vld [vmem:[#allocation11 + $0x64] ss:$12 sps:$4 sm:$0xff]   ;;  %v14396_v29 = vld [vmem:[#allocation11 + $0x60] ss:$12 sps:$4 sm:$0xff]  }
 0x8b3   :  { %7538 = vmatprep.subr.bf16.mxu1 %v14342_v19  ;;  %13156 = vmatprep.subr.bf16.mxu0 %v15452_v21  ;;  %v14399_v19 = vld [vmem:[#allocation11 + $0x68] ss:$12 sps:$4 sm:$0xff]  }
 0x8b6   :  { %7539 = vmatpush1.bf16.msra.mxu1 %v14340_v22  ;;  %13157 = vmatpush3.bf16.msra.mxu0 %v14343_v24  ;;  %v14402_v22 = vld [vmem:[#allocation11 + $0x4c] ss:$12 sps:$4 sm:$0xff]   ;;  %v14400_v24 = vld [vmem:[#allocation11 + $0x48] ss:$12 sps:$4 sm:$0xff]  }
 0x8b7   :  { %7540 = vmatprep.subr.bf16.mxu1 %v14346_v8  ;;  %13158 = vmatprep.subr.bf16.mxu0 %v15452_v21  ;;  %v14403_v8 = vld [vmem:[#allocation11 + $0x50] ss:$12 sps:$4 sm:$0xff]  }
 0x8ba   :  { %7541 = vmatpush1.bf16.msra.mxu1 %v14344_v23  ;;  %13159 = vmatpush3.bf16.msra.mxu0 %v14347_v28  ;;  %v14406_v23 = vld [vmem:[#allocation11 + $0x34] ss:$12 sps:$4 sm:$0xff]   ;;  %v14404_v28 = vld [vmem:[#allocation11 + $0x30] ss:$12 sps:$4 sm:$0xff]  }
 0x8bb   :  { %7542 = vmatprep.subr.bf16.mxu1 %v14350_v30  ;;  %13160 = vmatprep.subr.bf16.mxu0 %v15452_v21  ;;  %v14407_v30 = vld [vmem:[#allocation11 + $0x38] ss:$12 sps:$4 sm:$0xff]  }
 0x8be   :  { %7543 = vmatpush1.bf16.msra.mxu1 %v14348_v33  ;;  %13161 = vmatpush3.bf16.msra.mxu0 %v14351_v15  ;;  %v14410_v33 = vld [vmem:[#allocation11 + $0x1c] ss:$12 sps:$4 sm:$0xff]   ;;  %v14408_v15 = vld [vmem:[#allocation11 + $0x18] ss:$12 sps:$4 sm:$0xff]  }
 0x8bf   :  { %7770 = vmatprep.subr.bf16.mxu1 %v14354_v35  ;;  %13166 = vmatprep.subr.bf16.mxu0 %v15452_v21  ;;  %v14411_v35 = vld [vmem:[#allocation11 + $0x20] ss:$12 sps:$4 sm:$0xff]  }
 0x8c1   :  { %7561 = vmatmul.mubr.bf16.vlgmr.msra.gmra.mxu1 %v7367_v37  ;;  %13163 = vmatmul.mubr.bf16.vlgmr.msra.gmra.mxu0 %v7367_v37  ;;  %v7876_v37 = vpack.c.bf16 %v15949_v53, %v15949_v53 }
 0x8c2   :  { %7771 = vmatpush1.bf16.msra.mxu1 %v14352_v34  ;;  %13167 = vmatpush3.bf16.msra.mxu0 %v14355_v36  ;;  %v14412_v34 = vld [vmem:[#allocation11] ss:$12 sps:$4 sm:$0xff]   ;;  %v14415_v36 = vld [vmem:[#allocation11 + $0x8] ss:$12 sps:$4 sm:$0xff]  }
 0x8c3   :  { %7772 = vmatprep.subr.bf16.mxu1 %v14358_v0  ;;  %13168 = vmatprep.subr.bf16.mxu0 %v15452_v21 }
 0x8c4   :  { %7802 = vmatprep.mubr.bf16.mxu1 %v15285_v47  ;;  %13182 = vmatprep.mubr.msk.bf16.mxu0 %vm15286_vm0, %v15452_v21 }
 0x8c6   :  { %7773 = vmatpush1.bf16.msra.mxu1 %v14356_v40  ;;  %13169 = vmatpush3.bf16.msra.mxu0 %v14359_v26 }
 0x8c7   :  { %7774 = vmatprep.subr.bf16.mxu1 %v14362_v41  ;;  %13170 = vmatprep.subr.bf16.mxu0 %v15452_v21 }
 0x8ca   :  { %7775 = vmatpush1.bf16.msra.mxu1 %v14360_v44  ;;  %13171 = vmatpush3.bf16.msra.mxu0 %v14363_v45 }
 0x8cb   :  { %7776 = vmatprep.subr.bf16.mxu1 %v14366_v12  ;;  %13172 = vmatprep.subr.bf16.mxu0 %v15452_v21 }
 0x8ce   :  { %7777 = vmatpush1.bf16.msra.mxu1 %v14364_v31  ;;  %13173 = vmatpush3.bf16.msra.mxu0 %v14367_v48 }
 0x8cf   :  { %7778 = vmatprep.subr.bf16.mxu1 %v14370_v39  ;;  %13174 = vmatprep.subr.bf16.mxu0 %v15452_v21 }
 0x8d2   :  { %7779 = vmatpush1.bf16.msra.mxu1 %v14368_v50  ;;  %13175 = vmatpush3.bf16.msra.mxu0 %v14371_v51 }
 0x8d3   :  { %7780 = vmatprep.subr.bf16.mxu1 %v14374_v57  ;;  %13176 = vmatprep.subr.bf16.mxu0 %v15452_v21 }
 0x8d6   :  { %7781 = vmatpush1.bf16.msra.mxu1 %v14372_v20  ;;  %13177 = vmatpush3.bf16.msra.mxu0 %v14375_v52 }
 0x8d7   :  { %7782 = vmatprep.subr.bf16.mxu1 %v14378_v58  ;;  %13178 = vmatprep.subr.bf16.mxu0 %v15452_v21 }
 0x8da   :  { %7783 = vmatpush1.bf16.msra.mxu1 %v14376_v5  ;;  %13179 = vmatpush3.bf16.msra.mxu0 %v14379_v6 }
 0x8db   :  { %7784 = vmatprep.subr.bf16.mxu1 %v14382_v59  ;;  %13180 = vmatprep.subr.bf16.mxu0 %v15452_v21 }
 0x8de   :  { %7785 = vmatpush1.bf16.msra.mxu1 %v14380_v62  ;;  %13181 = vmatpush3.bf16.msra.mxu0 %v14383_v2 }
 0x8df   :  { %8037 = vmatprep.subr.bf16.mxu1 %v14386_v49  ;;  %13186 = vmatprep.subr.bf16.mxu0 %v15452_v21 }
 0x8e1   :  { %7803 = vmatmul.mubr.bf16.vlgmr.msra.gmra.mxu1 %v7609_v9  ;;  %13183 = vmatmul.mubr.bf16.vlgmr.msra.gmra.mxu0 %v7609_v9  ;;  %v14416_v9 = vld [vmem:[#allocation17 + $0xa8] ss:$12 sps:$4 sm:$0xff]  }
 0x8e2   :  { %8038 = vmatpush1.bf16.msra.mxu1 %v14384_v3  ;;  %13187 = vmatpush3.bf16.msra.mxu0 %v14387_v4 }
 0x8e3   :  { %8039 = vmatprep.subr.bf16.mxu1 %v14390_v32  ;;  %13188 = vmatprep.subr.bf16.mxu0 %v15452_v21  ;;  %v14418_v32 = vld [vmem:[#allocation17 + $0xac] ss:$12 sps:$4 sm:$0xff]  }
 0x8e4   :  { %8069 = vmatprep.mubr.bf16.mxu1 %v15285_v47  ;;  %13202 = vmatprep.mubr.msk.bf16.mxu0 %vm15286_vm0, %v15452_v21 }
 0x8e6   :  { %8040 = vmatpush1.bf16.msra.mxu1 %v14388_v10  ;;  %13189 = vmatpush3.bf16.msra.mxu0 %v14391_v13  ;;  %v14419_v10 = vld [vmem:[#allocation17 + $0xb0] ss:$12 sps:$4 sm:$0xff]   ;;  %v14422_v13 = vld [vmem:[#allocation17 + $0x94] ss:$12 sps:$4 sm:$0xff]  }
 0x8e7   :  { %8041 = vmatprep.subr.bf16.mxu1 %v14394_v54  ;;  %13190 = vmatprep.subr.bf16.mxu0 %v15452_v21  ;;  %v14423_v54 = vld [vmem:[#allocation17 + $0x98] ss:$12 sps:$4 sm:$0xff]  }
 0x8ea   :  { %8042 = vmatpush1.bf16.msra.mxu1 %v14392_v14  ;;  %13191 = vmatpush3.bf16.msra.mxu0 %v14395_v17  ;;  %v14420_v17 = vld [vmem:[#allocation17 + $0x90] ss:$12 sps:$4 sm:$0xff]  }
 0x8eb   :  { %8043 = vmatprep.subr.bf16.mxu1 %v14398_v18  ;;  %13192 = vmatprep.subr.bf16.mxu0 %v15452_v21  ;;  %v14426_v18 = vld [vmem:[#allocation17 + $0x7c] ss:$12 sps:$4 sm:$0xff]  }
 0x8ee   :  { %8044 = vmatpush1.bf16.msra.mxu1 %v14396_v29  ;;  %13193 = vmatpush3.bf16.msra.mxu0 %v14399_v19  ;;  %v14427_v19 = vld [vmem:[#allocation17 + $0x80] ss:$12 sps:$4 sm:$0xff]  }
 0x8ef   :  { %8045 = vmatprep.subr.bf16.mxu1 %v14402_v22  ;;  %13194 = vmatprep.subr.bf16.mxu0 %v15452_v21 }
 0x8f2   :  { %8046 = vmatpush1.bf16.msra.mxu1 %v14400_v24  ;;  %13195 = vmatpush3.bf16.msra.mxu0 %v14403_v8  ;;  %v14424_v8 = vld [vmem:[#allocation17 + $0x78] ss:$12 sps:$4 sm:$0xff]  }
 0x8f3   :  { %8047 = vmatprep.subr.bf16.mxu1 %v14406_v23  ;;  %13196 = vmatprep.subr.bf16.mxu0 %v15452_v21  ;;  %v16008_v23 = vld [vmem:[%s16370_s13] sm:$0x1] }
 0x8f6   :  { %8048 = vmatpush1.bf16.msra.mxu1 %v14404_v28  ;;  %13197 = vmatpush3.bf16.msra.mxu0 %v14407_v30  ;;  %v14430_v30 = vld [vmem:[#allocation17 + $0x64] ss:$12 sps:$4 sm:$0xff]  }
 0x8f7   :  { %8049 = vmatprep.subr.bf16.mxu1 %v14410_v33  ;;  %13198 = vmatprep.subr.bf16.mxu0 %v15452_v21 }
 0x8fa   :  { %8050 = vmatpush1.bf16.msra.mxu1 %v14408_v15  ;;  %13199 = vmatpush3.bf16.msra.mxu0 %v14411_v35 }
 0x8fb   :  { %8051 = vmatprep.subr.bf16.mxu1 %v14414_v1  ;;  %13200 = vmatprep.subr.bf16.mxu0 %v15452_v21 }
 0x8fe   :  { %8052 = vmatpush1.bf16.msra.mxu1 %v14412_v34  ;;  %13201 = vmatpush3.bf16.msra.mxu0 %v14415_v36  ;;  %v14431_v36 = vld [vmem:[#allocation17 + $0x68] ss:$12 sps:$4 sm:$0xff]  }
 0x8ff   :  { %13206 = vmatprep.subr.bf16.mxu0 %v15452_v21  ;;  %8308 = vmatprep.subr.bf16.mxu1 %v14418_v32 }
 0x901   :  { %8070 = vmatmul.mubr.bf16.vlgmr.msra.gmra.mxu1 %v7876_v37  ;;  %13203 = vmatmul.mubr.bf16.vlgmr.msra.gmra.mxu0 %v7876_v37 }
 0x902   :  { %8340 = vmatprep.mubr.bf16.mxu1 %v15285_v47  ;;  %13222 = vmatprep.mubr.msk.bf16.mxu0 %vm15286_vm0, %v15452_v21 }
 0x903   :  { %13207 = vmatpush3.bf16.msra.mxu0 %v14419_v10  ;;  %8309 = vmatpush1.bf16.msra.mxu1 %v14416_v9 }
 0x904   :  { %13208 = vmatprep.subr.bf16.mxu0 %v15452_v21  ;;  %8310 = vmatprep.subr.bf16.mxu1 %v14422_v13 }
 0x907   :  { %13209 = vmatpush3.bf16.msra.mxu0 %v14423_v54  ;;  %8311 = vmatpush1.bf16.msra.mxu1 %v14420_v17 }
 0x908   :  { %13210 = vmatprep.subr.bf16.mxu0 %v15452_v21  ;;  %8312 = vmatprep.subr.bf16.mxu1 %v14426_v18 }
 0x90b   :  { %13211 = vmatpush3.bf16.msra.mxu0 %v14427_v19  ;;  %8313 = vmatpush1.bf16.msra.mxu1 %v14424_v8 }
 0x90c   :  { %13212 = vmatprep.subr.bf16.mxu0 %v15452_v21  ;;  %8314 = vmatprep.subr.bf16.mxu1 %v14430_v30 }
 0x90f   :  { %13213 = vmatpush3.bf16.msra.mxu0 %v14431_v36 }
 0x910   :  { %13214 = vmatprep.subr.bf16.mxu0 %v15452_v21 }
 0x941   :  { %v7055_v0 = vpop.f32.mrf.mxu1  ;;  %v7096_v40 = vpop.f32.mrf.mxu0 }
 0x942   :  { %v7056_v48 = vadd.f32 %v7055_v0, %v15626_v60  ;;  %v7097_v1 = vadd.f32 %v7096_v40, %v15643_v25  ;;  %v14432_v40 = vld [vmem:[#allocation17 + $0x48] ss:$12 sps:$4 sm:$0xff]  }
 0x943   :  { %v7057_v26 = vpop.f32.mrf.mxu1  ;;  %v13124_v41 = vpop.f32.mrf.mxu0 }
 0x944   :  { %v7058_v51 = vadd.f32 %v7057_v26, %v15629_v61  ;;  %v14428_v26 = vld [vmem:[#allocation17 + $0x60] ss:$12 sps:$4 sm:$0xff]  }
 0x945   :  { %v7059_v44 = vpop.f32.mrf.mxu1  ;;  %v7099_v45 = vpop.f32.mrf.mxu0  ;;  %8315 = vmatpush1.bf16.msra.mxu1 %v14428_v26 }
 0x946   :  { %v14434_v44 = vld [vmem:[#allocation17 + $0x4c] ss:$12 sps:$4 sm:$0xff]  }
 0x947   :  { %v7060_v12 = vpop.f32.mrf.mxu1  ;;  %v13125_v31 = vpop.f32.mrf.mxu0  ;;  %8316 = vmatprep.subr.bf16.mxu1 %v14434_v44 }
 0x948   :  { %v14435_v31 = vld [vmem:[#allocation17 + $0x50] ss:$12 sps:$4 sm:$0xff]  }
 0x949   :  { %13215 = vmatpush3.bf16.msra.mxu0 %v14435_v31  ;;  %8317 = vmatpush1.bf16.msra.mxu1 %v14432_v40 }
 0x94a   :  { %13216 = vmatprep.subr.bf16.mxu0 %v15452_v21 }
 0x961   :  { %v7297_v39 = vpop.f32.mrf.mxu1  ;;  %v7338_v50 = vpop.f32.mrf.mxu0 }
 0x962   :  { %v7344_v57 = vadd.f32 %v7297_v39, %v7056_v48  ;;  %v7358_v28 = vadd.f32 %v16008_v23, %v7338_v50  ;;  %v14438_v48 = vld [vmem:[#allocation17 + $0x34] ss:$12 sps:$4 sm:$0xff]   ;;  %v14439_v39 = vld [vmem:[#allocation17 + $0x38] ss:$12 sps:$4 sm:$0xff]   ;;  %v14436_v50 = vld [vmem:[#allocation17 + $0x30] ss:$12 sps:$4 sm:$0xff]  }
 0x963   :  { %v7299_v20 = vpop.f32.mrf.mxu1  ;;  %v13144_v52 = vpop.f32.mrf.mxu0  ;;  %8318 = vmatprep.subr.bf16.mxu1 %v14438_v48  ;;  %13217 = vmatpush3.bf16.msra.mxu0 %v14439_v39 }
 0x964   :  { %v11874_v58 = vmul.f32 -1.442695, %v7344_v57  ;;  %v7351_v5 = vadd.f32 %v7299_v20, %v7058_v51  ;;  %v14442_v51 = vld [vmem:[#allocation17 + $0x1c] ss:$12 sps:$4 sm:$0xff]   ;;  %v14443_v57 = vld [vmem:[#allocation17 + $0x20] ss:$12 sps:$4 sm:$0xff]   ;;  %8319 = vmatpush1.bf16.msra.mxu1 %v14436_v50  ;;  %13218 = vmatprep.subr.bf16.mxu0 %v15452_v21 }
 0x965   :  { %v7301_v6 = vpop.f32.mrf.mxu1  ;;  %v7341_v59 = vpop.f32.mrf.mxu0  ;;  %v14440_v52 = vld [vmem:[#allocation17 + $0x18] ss:$12 sps:$4 sm:$0xff]   ;;  %8320 = vmatprep.subr.bf16.mxu1 %v14442_v51 }
 0x966   :  { %14894 = vpow2.f32 %v11874_v58  ;;  %v11875_v49 = vmul.f32 -1.442695, %v7351_v5  ;;  %v14446_v58 = vld [vmem:[#allocation17 + $0x4] ss:$12 sps:$4 sm:$0xff]   ;;  %v14447_v5 = vld [vmem:[#allocation17 + $0x8] ss:$12 sps:$4 sm:$0xff]  }
 0x967   :  { %v7302_v62 = vpop.f32.mrf.mxu1  ;;  %v13145_v2 = vpop.f32.mrf.mxu0  ;;  %13219 = vmatpush3.bf16.msra.mxu0 %v14443_v57 }
 0x968   :  { %14896 = vpow2.f32 %v11875_v49  ;;  %8321 = vmatpush1.bf16.msra.mxu1 %v14440_v52  ;;  %v14444_v62 = vld [vmem:[#allocation17] ss:$12 sps:$4 sm:$0xff]   ;;  %13220 = vmatprep.subr.bf16.mxu0 %v15452_v21 }
 0x969   :  { %8322 = vmatprep.subr.bf16.mxu1 %v14446_v58  ;;  %v14450_v2 = vld [vmem:[#allocation19 + $0xac] ss:$12 sps:$4 sm:$0xff]  }
 0x96b   :  { %13221 = vmatpush3.bf16.msra.mxu0 %v14447_v5 }
 0x96c   :  { %8323 = vmatpush1.bf16.msra.mxu1 %v14444_v62  ;;  %13226 = vmatprep.subr.bf16.mxu0 %v15452_v21 }
 0x96d   :  { %8550 = vmatprep.subr.bf16.mxu1 %v14450_v2 }
 0x973   :  { %v14895_v3 = vpop.eup %14894 }
 0x974   :  { %v7348_v4 = vadd.f32 1.0, %v14895_v3 }
 0x975   :  { %v14897_v14 = vpop.eup %14896 }
 0x976   :  { %14898 = vrcp.f32 %v7348_v4  ;;  %v7355_v29 = vadd.f32 1.0, %v14897_v14 }
 0x978   :  { %14900 = vrcp.f32 %v7355_v29 }
 0x981   :  { %v16000_v22 = vpop.f32.mrf.mxu1  ;;  %v16002_v24 = vpop.f32.mrf.mxu0 }
 0x982   :  { %v7563_v9 = vadd.f32 %v16000_v22, %v15527_v7 }
 0x983   :  { %v14899_v33 = vpop.eup %14898  ;;  %v16011_v15 = vpop.f32.mrf.mxu1 }
 0x984   :  { %v13164_v35 = vpop.f32.mrf.mxu0  ;;  %v7359_v34 = vmul.f32 %v14899_v33, %v7358_v28 }
 0x985   :  { %v7566_v37 = vpop.f32.mrf.mxu1  ;;  %v14901_v20 = vpop.eup %14900 }
 0x986   :  { %v7606_v0 = vpop.f32.mrf.mxu0  ;;  %v7360_v41 = vadd.f32 %v7359_v34, %v7097_v1  ;;  %v7362_v6 = vsub.f32 1.0, %v14901_v20  ;;  %v7364_v3 = vmul.f32 %v14901_v20, %v15921_v16  ;;  %v7565_v16 = vadd.f32 %v16011_v15, %v15531_v11  ;;  %v7875_v34 = vld [vmem:[#allocation2 + $0x6] ss:$8 sm:$0x7] }
 0x987   :  { %v7567_v45 = vpop.f32.mrf.mxu1  ;;  %v8126_v50 = vrot.slane %v7875_v34, 1 }
 0x988   :  { %v13165_v12 = vpop.f32.mrf.mxu0  ;;  %14902 = vtanh.f32 %v7360_v41  ;;  %v7604_v45 = vadd.f32 %v16002_v24, %v15540_v27 }
 0x995   :  { %v14903_v59 = vpop.eup %14902 }
 0x996   :  { %v7363_v49 = vmul.f32 %v14903_v59, %v7362_v6 }
 0x998   :  { %v16020_v4 = vadd.f32 %v7364_v3, %v7363_v49 }
 0x9a1   :  { %v7804_v32 = vpop.f32.mrf.mxu1  ;;  %v7845_v10 = vpop.f32.mrf.mxu0 }
 0x9a2   :  { %v7851_v13 = vadd.f32 %v7804_v32, %v7563_v9  ;;  %v7865_v0 = vadd.f32 %v15928_v38, %v7845_v10  ;;  %v14448_v9 = vld [vmem:[#allocation19 + $0xa8] ss:$12 sps:$4 sm:$0xff]   ;;  %v14451_v10 = vld [vmem:[#allocation19 + $0xb0] ss:$12 sps:$4 sm:$0xff]  }
 0x9a3   :  { %v7806_v54 = vpop.f32.mrf.mxu1  ;;  %v13184_v14 = vpop.f32.mrf.mxu0 }
 0x9a4   :  { %v11924_v17 = vmul.f32 -1.442695, %v7851_v13  ;;  %v7858_v28 = vadd.f32 %v7806_v54, %v7565_v16  ;;  %v14454_v14 = vld [vmem:[#allocation19 + $0x94] ss:$12 sps:$4 sm:$0xff]   ;;  %v14455_v16 = vld [vmem:[#allocation19 + $0x98] ss:$12 sps:$4 sm:$0xff]  }
 0x9a5   :  { %v7808_v18 = vpop.f32.mrf.mxu1  ;;  %v7848_v29 = vpop.f32.mrf.mxu0 }
 0x9a6   :  { %14904 = vpow2.f32 %v11924_v17  ;;  %v11925_v30 = vmul.f32 -1.442695, %v7858_v28  ;;  %v8137_v18 = vrot.slane %v7875_v34, 2  ;;  %v14459_v28 = vld [vmem:[#allocation19 + $0x80] ss:$12 sps:$4 sm:$0xff]  }
 0x9a7   :  { %v7809_v19 = vpop.f32.mrf.mxu1  ;;  %v13185_v8 = vpop.f32.mrf.mxu0 }
 0x9a8   :  { %14906 = vpow2.f32 %v11925_v30  ;;  %v14458_v8 = vld [vmem:[#allocation19 + $0x7c] ss:$12 sps:$4 sm:$0xff]   ;;  %v14462_v30 = vld [vmem:[#allocation19 + $0x64] ss:$12 sps:$4 sm:$0xff]  }
 0x9b3   :  { %v14905_v33 = vpop.eup %14904 }
 0x9b4   :  { %v7855_v35 = vadd.f32 1.0, %v14905_v33  ;;  %v14460_v33 = vld [vmem:[#allocation19 + $0x60] ss:$12 sps:$4 sm:$0xff]  }
 0x9b5   :  { %v14907_v22 = vpop.eup %14906 }
 0x9b6   :  { %14908 = vrcp.f32 %v7855_v35  ;;  %v7862_v1 = vadd.f32 1.0, %v14907_v22  ;;  %v14463_v35 = vld [vmem:[#allocation19 + $0x68] ss:$12 sps:$4 sm:$0xff]   ;;  %v14466_v22 = vld [vmem:[#allocation19 + $0x4c] ss:$12 sps:$4 sm:$0xff]  }
 0x9b8   :  { %14910 = vrcp.f32 %v7862_v1 }
 0x9c1   :  { %v8071_v36 = vpop.f32.mrf.mxu1  ;;  %v8112_v37 = vpop.f32.mrf.mxu0 }
 0x9c2   :  { %v8118_v26 = vadd.f32 %v8071_v36, %v7875_v34  ;;  %v8135_v13 = vadd.f32 %v15937_v63, %v8112_v37  ;;  %v14456_v63 = vld [vmem:[#allocation19 + $0x78] ss:$12 sps:$4 sm:$0xff]   ;;  %v14464_v34 = vld [vmem:[#allocation19 + $0x48] ss:$12 sps:$4 sm:$0xff]   ;;  %v14467_v36 = vld [vmem:[#allocation19 + $0x50] ss:$12 sps:$4 sm:$0xff]  }
 0x9c3   :  { %v14909_v41 = vpop.eup %14908  ;;  %v8073_v44 = vpop.f32.mrf.mxu1  ;;  %v14470_v37 = vld [vmem:[#allocation19 + $0x34] ss:$12 sps:$4 sm:$0xff]  }
 0x9c4   :  { %v13204_v15 = vpop.f32.mrf.mxu0  ;;  %v7866_v12 = vmul.f32 %v14909_v41, %v7865_v0  ;;  %v11950_v31 = vmul.f32 -1.442695, %v8118_v26  ;;  %v8128_v20 = vadd.f32 %v8126_v50, %v8073_v44  ;;  %v14468_v41 = vld [vmem:[#allocation19 + $0x30] ss:$12 sps:$4 sm:$0xff]   ;;  %v14471_v44 = vld [vmem:[#allocation19 + $0x38] ss:$12 sps:$4 sm:$0xff]  }
 0x9c5   :  { %v8075_v40 = vpop.f32.mrf.mxu1  ;;  %v14911_v52 = vpop.eup %14910  ;;  %v14476_v50 = vld [vmem:[#allocation19] ss:$12 sps:$4 sm:$0xff]  }
 0x9c6   :  { %v8115_v48 = vpop.f32.mrf.mxu0  ;;  %v7867_v39 = vadd.f32 %v7866_v12, %v7604_v45  ;;  %14912 = vpow2.f32 %v11950_v31  ;;  %v11951_v38 = vmul.f32 -1.442695, %v8128_v20  ;;  %v7869_v5 = vsub.f32 1.0, %v14911_v52  ;;  %v14474_v12 = vld [vmem:[#allocation19 + $0x1c] ss:$12 sps:$4 sm:$0xff]  }
 0x9c7   :  { %v8076_v51 = vpop.f32.mrf.mxu1  ;;  %v7871_v62 = vmul.f32 %v14911_v52, %v15934_v46  ;;  %v14452_v46 = vld [vmem:[#allocation19 + $0x90] ss:$12 sps:$4 sm:$0xff]   ;;  %v14472_v40 = vld [vmem:[#allocation19 + $0x18] ss:$12 sps:$4 sm:$0xff]   ;;  %v14475_v48 = vld [vmem:[#allocation19 + $0x20] ss:$12 sps:$4 sm:$0xff]  }
 0x9c8   :  { %v13205_v57 = vpop.f32.mrf.mxu0  ;;  %14914 = vtanh.f32 %v7867_v39  ;;  %v14478_v39 = vld [vmem:[#allocation19 + $0x4] ss:$12 sps:$4 sm:$0xff]   ;;  %v14482_v51 = vld [vmem:[#allocation14 + $0xac] ss:$12 sps:$4 sm:$0xff]   ;;  %v14486_v52 = vld [vmem:[#allocation14 + $0x94] ss:$12 sps:$4 sm:$0xff]  }
 0x9c9   :  { %14916 = vpow2.f32 %v11951_v38  ;;  %v14480_v57 = vld [vmem:[#allocation14 + $0xa8] ss:$12 sps:$4 sm:$0xff]   ;;  %v14483_v20 = vld [vmem:[#allocation14 + $0xb0] ss:$12 sps:$4 sm:$0xff]   ;;  %v8389_v38 = vpack.c.bf16 %v16020_v4, %v16020_v4 }
 0x9d3   :  { %v14913_v58 = vpop.eup %14912 }
 0x9d4   :  { %v8122_v6 = vadd.f32 1.0, %v14913_v58  ;;  %v14484_v58 = vld [vmem:[#allocation14 + $0x90] ss:$12 sps:$4 sm:$0xff]  }
 0x9d5   :  { %v14915_v59 = vpop.eup %14914 }
 0x9d6   :  { %v7870_v24 = vmul.f32 %v14915_v59, %v7869_v5  ;;  %14918 = vrcp.f32 %v8122_v6  ;;  %v14917_v49 = vpop.eup %14916  ;;  %v14487_v5 = vld [vmem:[#allocation14 + $0x98] ss:$12 sps:$4 sm:$0xff]   ;;  %v14490_v6 = vld [vmem:[#allocation14 + $0x7c] ss:$12 sps:$4 sm:$0xff]  }
 0x9d7   :  { %v8132_v3 = vadd.f32 1.0, %v14917_v49  ;;  %v14488_v59 = vld [vmem:[#allocation14 + $0x78] ss:$12 sps:$4 sm:$0xff]   ;;  %v14492_v49 = vld [vmem:[#allocation14 + $0x60] ss:$12 sps:$4 sm:$0xff]  }
 0x9d8   :  { %v16031_v2 = vadd.f32 %v7871_v62, %v7870_v24  ;;  %v14491_v24 = vld [vmem:[#allocation14 + $0x80] ss:$12 sps:$4 sm:$0xff]   ;;  %v14494_v62 = vld [vmem:[#allocation14 + $0x64] ss:$12 sps:$4 sm:$0xff]  }
 0x9d9   :  { %14920 = vrcp.f32 %v8132_v3  ;;  %v14495_v3 = vld [vmem:[#allocation14 + $0x68] ss:$12 sps:$4 sm:$0xff]  }
 0x9da   :  { %7873 = vst [vmem:[#allocation4 + $0x5] sm:$0x1] %v16031_v2 }
 0x9e1   :  { %v8146_v32 = vld [vmem:[#allocation4 + $0x5] sm:$0x1] }
 0x9e2   :  { %v8147_v54 = vpack.c.bf16 %v8146_v32, %v8146_v32  ;;  %v14496_v32 = vld [vmem:[#allocation14 + $0x48] ss:$12 sps:$4 sm:$0xff]  }
 0x9e3   :  { %v14919_v17 = vpop.eup %14918 }
 0x9e4   :  { %v8136_v29 = vmul.f32 %v14919_v17, %v8135_v13  ;;  %8341 = vmatmul.mubr.bf16.vlgmr.msra.gmra.mxu1 %v8147_v54  ;;  %13223 = vmatmul.mubr.bf16.vlgmr.msra.gmra.mxu0 %v8147_v54  ;;  %v14502_v13 = vld [vmem:[#allocation14 + $0x34] ss:$12 sps:$4 sm:$0xff]   ;;  %v14500_v54 = vld [vmem:[#allocation14 + $0x30] ss:$12 sps:$4 sm:$0xff]  }
 0x9e5   :  { %8551 = vmatpush1.bf16.msra.mxu1 %v14448_v9  ;;  %13227 = vmatpush3.bf16.msra.mxu0 %v14451_v10  ;;  %v14498_v9 = vld [vmem:[#allocation14 + $0x4c] ss:$12 sps:$4 sm:$0xff]   ;;  %v14499_v10 = vld [vmem:[#allocation14 + $0x50] ss:$12 sps:$4 sm:$0xff]  }
 0x9e6   :  { %v8139_v19 = vadd.f32 %v8137_v18, %v8136_v29  ;;  %8552 = vmatprep.subr.bf16.mxu1 %v14454_v14  ;;  %13228 = vmatprep.subr.bf16.mxu0 %v15452_v21  ;;  %v14921_v1 = vpop.eup %14920  ;;  %v14503_v14 = vld [vmem:[#allocation14 + $0x38] ss:$12 sps:$4 sm:$0xff]   ;;  %v14506_v17 = vld [vmem:[#allocation14 + $0x1c] ss:$12 sps:$4 sm:$0xff]   ;;  %v14507_v29 = vld [vmem:[#allocation14 + $0x20] ss:$12 sps:$4 sm:$0xff]  }
 0x9e7   :  { %8582 = vmatprep.mubr.bf16.mxu1 %v15285_v47  ;;  %13242 = vmatprep.mubr.msk.bf16.mxu0 %vm15286_vm0, %v15452_v21  ;;  %v8141_v0 = vsub.f32 1.0, %v14921_v1  ;;  %v8143_v45 = vmul.f32 %v14921_v1, %v15949_v53  ;;  %v14479_v53 = vld [vmem:[#allocation19 + $0x8] ss:$12 sps:$4 sm:$0xff]   ;;  %v14504_v18 = vld [vmem:[#allocation14 + $0x18] ss:$12 sps:$4 sm:$0xff]  }
 0x9e8   :  { %14922 = vtanh.f32 %v8139_v19  ;;  %v14511_v19 = vld [vmem:[#allocation14 + $0x8] ss:$12 sps:$4 sm:$0xff]   ;;  %v14519_v1 = vld [vmem:[#allocation16 + $0x98] ss:$12 sps:$4 sm:$0xff]  }
 0x9e9   :  { %8553 = vmatpush1.bf16.msra.mxu1 %v14452_v46  ;;  %13229 = vmatpush3.bf16.msra.mxu0 %v14455_v16  ;;  %v14510_v46 = vld [vmem:[#allocation14 + $0x4] ss:$12 sps:$4 sm:$0xff]   ;;  %v14508_v16 = vld [vmem:[#allocation14] ss:$12 sps:$4 sm:$0xff]  }
 0x9ea   :  { %8554 = vmatprep.subr.bf16.mxu1 %v14458_v8  ;;  %13230 = vmatprep.subr.bf16.mxu0 %v15452_v21  ;;  %v14514_v8 = vld [vmem:[#allocation16 + $0xac] ss:$12 sps:$4 sm:$0xff]  }
 0x9ed   :  { %8555 = vmatpush1.bf16.msra.mxu1 %v14456_v63  ;;  %13231 = vmatpush3.bf16.msra.mxu0 %v14459_v28  ;;  %v14512_v28 = vld [vmem:[#allocation16 + $0xa8] ss:$12 sps:$4 sm:$0xff]  }
 0x9ee   :  { %8556 = vmatprep.subr.bf16.mxu1 %v14462_v30  ;;  %13232 = vmatprep.subr.bf16.mxu0 %v15452_v21  ;;  %v14515_v30 = vld [vmem:[#allocation16 + $0xb0] ss:$12 sps:$4 sm:$0xff]  }
 0x9f1   :  { %8557 = vmatpush1.bf16.msra.mxu1 %v14460_v33  ;;  %13233 = vmatpush3.bf16.msra.mxu0 %v14463_v35  ;;  %v14518_v35 = vld [vmem:[#allocation16 + $0x94] ss:$12 sps:$4 sm:$0xff]  }
 0x9f2   :  { %8558 = vmatprep.subr.bf16.mxu1 %v14466_v22  ;;  %13234 = vmatprep.subr.bf16.mxu0 %v15452_v21  ;;  %v14516_v22 = vld [vmem:[#allocation16 + $0x90] ss:$12 sps:$4 sm:$0xff]  }
 0x9f5   :  { %v14923_v26 = vpop.eup %14922  ;;  %8559 = vmatpush1.bf16.msra.mxu1 %v14464_v34  ;;  %13235 = vmatpush3.bf16.msra.mxu0 %v14467_v36  ;;  %v14522_v34 = vld [vmem:[#allocation16 + $0x7c] ss:$12 sps:$4 sm:$0xff]   ;;  %v14520_v36 = vld [vmem:[#allocation16 + $0x78] ss:$12 sps:$4 sm:$0xff]  }
 0x9f6   :  { %v8142_v15 = vmul.f32 %v14923_v26, %v8141_v0  ;;  %8560 = vmatprep.subr.bf16.mxu1 %v14470_v37  ;;  %13236 = vmatprep.subr.bf16.mxu0 %v15452_v21  ;;  %v14523_v37 = vld [vmem:[#allocation16 + $0x80] ss:$12 sps:$4 sm:$0xff]   ;;  %v14526_v0 = vld [vmem:[#allocation16 + $0x64] ss:$12 sps:$4 sm:$0xff]  }
 0x9f7   :  { %v14524_v26 = vld [vmem:[#allocation16 + $0x60] ss:$12 sps:$4 sm:$0xff]  }
 0x9f8   :  { %v16044_v31 = vadd.f32 %v8143_v45, %v8142_v15  ;;  %v14528_v15 = vld [vmem:[#allocation16 + $0x48] ss:$12 sps:$4 sm:$0xff]   ;;  %v14531_v45 = vld [vmem:[#allocation16 + $0x50] ss:$12 sps:$4 sm:$0xff]  }
 0x9f9   :  { %8561 = vmatpush1.bf16.msra.mxu1 %v14468_v41  ;;  %13237 = vmatpush3.bf16.msra.mxu0 %v14471_v44  ;;  %v14527_v41 = vld [vmem:[#allocation16 + $0x68] ss:$12 sps:$4 sm:$0xff]   ;;  %v14530_v44 = vld [vmem:[#allocation16 + $0x4c] ss:$12 sps:$4 sm:$0xff]  }
 0x9fa   :  { %8145 = vst [vmem:[#allocation3 + $0x6] sm:$0x1] %v16044_v31  ;;  %8562 = vmatprep.subr.bf16.mxu1 %v14474_v12  ;;  %13238 = vmatprep.subr.bf16.mxu0 %v15452_v21  ;;  %v14534_v12 = vld [vmem:[#allocation16 + $0x34] ss:$12 sps:$4 sm:$0xff]  }
 0x9fd   :  { %8563 = vmatpush1.bf16.msra.mxu1 %v14472_v40  ;;  %13239 = vmatpush3.bf16.msra.mxu0 %v14475_v48  ;;  %v14532_v40 = vld [vmem:[#allocation16 + $0x30] ss:$12 sps:$4 sm:$0xff]   ;;  %v14535_v48 = vld [vmem:[#allocation16 + $0x38] ss:$12 sps:$4 sm:$0xff]  }
 0x9fe   :  { %8564 = vmatprep.subr.bf16.mxu1 %v14478_v39  ;;  %13240 = vmatprep.subr.bf16.mxu0 %v15452_v21  ;;  %v14538_v39 = vld [vmem:[#allocation16 + $0x1c] ss:$12 sps:$4 sm:$0xff]  }
 0xa01   :  { %8565 = vmatpush1.bf16.msra.mxu1 %v14476_v50  ;;  %13241 = vmatpush3.bf16.msra.mxu0 %v14479_v53  ;;  %v8653_v63 = vld [vmem:[#allocation3 + $0x6] sm:$0x1]  ;;  %v14536_v50 = vld [vmem:[#allocation16 + $0x18] ss:$12 sps:$4 sm:$0xff]  }
 0xa02   :  { %8815 = vmatprep.subr.bf16.mxu1 %v14482_v51  ;;  %13246 = vmatprep.subr.bf16.mxu0 %v15452_v21  ;;  %v8654_v33 = vpack.c.bf16 %v8653_v63, %v8653_v63  ;;  %v14539_v53 = vld [vmem:[#allocation16 + $0x20] ss:$12 sps:$4 sm:$0xff]   ;;  %v14542_v51 = vld [vmem:[#allocation16 + $0x4] ss:$12 sps:$4 sm:$0xff]  }
 0xa03   :  { %v14572_v63 = vld [vmem:[#allocation11] ss:$12 sps:$4 sm:$0xff]  }
 0xa04   :  { %8583 = vmatmul.mubr.bf16.vlgmr.msra.gmra.mxu1 %v8389_v38  ;;  %13243 = vmatmul.mubr.bf16.vlgmr.msra.gmra.mxu0 %v8389_v38  ;;  %v14546_v38 = vld [vmem:[#allocation11 + $0xac] ss:$12 sps:$4 sm:$0xff]  }
 0xa05   :  { %8816 = vmatpush1.bf16.msra.mxu1 %v14480_v57  ;;  %13247 = vmatpush3.bf16.msra.mxu0 %v14483_v20  ;;  %v14540_v57 = vld [vmem:[#allocation16] ss:$12 sps:$4 sm:$0xff]   ;;  %v14543_v20 = vld [vmem:[#allocation16 + $0x8] ss:$12 sps:$4 sm:$0xff]  }
 0xa06   :  { %8817 = vmatprep.subr.bf16.mxu1 %v14486_v52  ;;  %13248 = vmatprep.subr.bf16.mxu0 %v15452_v21  ;;  %v14544_v52 = vld [vmem:[#allocation11 + $0xa8] ss:$12 sps:$4 sm:$0xff]  }
 0xa07   :  { %8847 = vmatprep.mubr.bf16.mxu1 %v15285_v47  ;;  %13262 = vmatprep.mubr.msk.bf16.mxu0 %vm15286_vm0, %v15452_v21 }
 0xa09   :  { %8818 = vmatpush1.bf16.msra.mxu1 %v14484_v58  ;;  %13249 = vmatpush3.bf16.msra.mxu0 %v14487_v5  ;;  %v14547_v58 = vld [vmem:[#allocation11 + $0xb0] ss:$12 sps:$4 sm:$0xff]   ;;  %v8896_v5 = vpack.c.bf16 %v16031_v2, %v16031_v2 }
 0xa0a   :  { %8819 = vmatprep.subr.bf16.mxu1 %v14490_v6  ;;  %13250 = vmatprep.subr.bf16.mxu0 %v15452_v21  ;;  %v14550_v6 = vld [vmem:[#allocation11 + $0x94] ss:$12 sps:$4 sm:$0xff]  }
 0xa0d   :  { %8820 = vmatpush1.bf16.msra.mxu1 %v14488_v59  ;;  %13251 = vmatpush3.bf16.msra.mxu0 %v14491_v24  ;;  %v14548_v59 = vld [vmem:[#allocation11 + $0x90] ss:$12 sps:$4 sm:$0xff]   ;;  %v14551_v24 = vld [vmem:[#allocation11 + $0x98] ss:$12 sps:$4 sm:$0xff]  }
 0xa0e   :  { %8821 = vmatprep.subr.bf16.mxu1 %v14494_v62  ;;  %13252 = vmatprep.subr.bf16.mxu0 %v15452_v21  ;;  %v14554_v62 = vld [vmem:[#allocation11 + $0x7c] ss:$12 sps:$4 sm:$0xff]  }
 0xa11   :  { %8822 = vmatpush1.bf16.msra.mxu1 %v14492_v49  ;;  %13253 = vmatpush3.bf16.msra.mxu0 %v14495_v3  ;;  %v14552_v49 = vld [vmem:[#allocation11 + $0x78] ss:$12 sps:$4 sm:$0xff]   ;;  %v14555_v3 = vld [vmem:[#allocation11 + $0x80] ss:$12 sps:$4 sm:$0xff]  }
 0xa12   :  { %8823 = vmatprep.subr.bf16.mxu1 %v14498_v9  ;;  %13254 = vmatprep.subr.bf16.mxu0 %v15452_v21  ;;  %v14558_v9 = vld [vmem:[#allocation11 + $0x64] ss:$12 sps:$4 sm:$0xff]  }
 0xa15   :  { %8824 = vmatpush1.bf16.msra.mxu1 %v14496_v32  ;;  %13255 = vmatpush3.bf16.msra.mxu0 %v14499_v10  ;;  %v14556_v32 = vld [vmem:[#allocation11 + $0x60] ss:$12 sps:$4 sm:$0xff]   ;;  %v14559_v10 = vld [vmem:[#allocation11 + $0x68] ss:$12 sps:$4 sm:$0xff]  }
 0xa16   :  { %8825 = vmatprep.subr.bf16.mxu1 %v14502_v13  ;;  %13256 = vmatprep.subr.bf16.mxu0 %v15452_v21  ;;  %v14562_v13 = vld [vmem:[#allocation11 + $0x4c] ss:$12 sps:$4 sm:$0xff]  }
 0xa19   :  { %8826 = vmatpush1.bf16.msra.mxu1 %v14500_v54  ;;  %13257 = vmatpush3.bf16.msra.mxu0 %v14503_v14  ;;  %v14560_v54 = vld [vmem:[#allocation11 + $0x48] ss:$12 sps:$4 sm:$0xff]   ;;  %v14563_v14 = vld [vmem:[#allocation11 + $0x50] ss:$12 sps:$4 sm:$0xff]  }
 0xa1a   :  { %8827 = vmatprep.subr.bf16.mxu1 %v14506_v17  ;;  %13258 = vmatprep.subr.bf16.mxu0 %v15452_v21  ;;  %v14566_v17 = vld [vmem:[#allocation11 + $0x34] ss:$12 sps:$4 sm:$0xff]  }
 0xa1d   :  { %8828 = vmatpush1.bf16.msra.mxu1 %v14504_v18  ;;  %13259 = vmatpush3.bf16.msra.mxu0 %v14507_v29  ;;  %v14564_v18 = vld [vmem:[#allocation11 + $0x30] ss:$12 sps:$4 sm:$0xff]   ;;  %v14567_v29 = vld [vmem:[#allocation11 + $0x38] ss:$12 sps:$4 sm:$0xff]  }
 0xa1e   :  { %8829 = vmatprep.subr.bf16.mxu1 %v14510_v46  ;;  %13260 = vmatprep.subr.bf16.mxu0 %v15452_v21  ;;  %v14570_v46 = vld [vmem:[#allocation11 + $0x1c] ss:$12 sps:$4 sm:$0xff]  }
 0xa21   :  { %8830 = vmatpush1.bf16.msra.mxu1 %v14508_v16  ;;  %13261 = vmatpush3.bf16.msra.mxu0 %v14511_v19  ;;  %v14568_v16 = vld [vmem:[#allocation11 + $0x18] ss:$12 sps:$4 sm:$0xff]   ;;  %v14571_v19 = vld [vmem:[#allocation11 + $0x20] ss:$12 sps:$4 sm:$0xff]  }
 0xa22   :  { %9057 = vmatprep.subr.bf16.mxu1 %v14514_v8  ;;  %13266 = vmatprep.subr.bf16.mxu0 %v15452_v21  ;;  %v14574_v8 = vld [vmem:[#allocation11 + $0x4] ss:$12 sps:$4 sm:$0xff]  }
 0xa24   :  { %8848 = vmatmul.mubr.bf16.vlgmr.msra.gmra.mxu1 %v8654_v33  ;;  %13263 = vmatmul.mubr.bf16.vlgmr.msra.gmra.mxu0 %v8654_v33 }
 0xa25   :  { %9058 = vmatpush1.bf16.msra.mxu1 %v14512_v28  ;;  %13267 = vmatpush3.bf16.msra.mxu0 %v14515_v30  ;;  %v14575_v28 = vld [vmem:[#allocation11 + $0x8] ss:$12 sps:$4 sm:$0xff]   ;;  %v9163_v30 = vpack.c.bf16 %v16044_v31, %v16044_v31 }
 0xa26   :  { %9059 = vmatprep.subr.bf16.mxu1 %v14518_v35  ;;  %13268 = vmatprep.subr.bf16.mxu0 %v15452_v21 }
 0xa27   :  { %9089 = vmatprep.mubr.bf16.mxu1 %v15285_v47  ;;  %13282 = vmatprep.mubr.msk.bf16.mxu0 %vm15286_vm0, %v15452_v21 }
 0xa29   :  { %9060 = vmatpush1.bf16.msra.mxu1 %v14516_v22  ;;  %13269 = vmatpush3.bf16.msra.mxu0 %v14519_v1 }
 0xa2a   :  { %9061 = vmatprep.subr.bf16.mxu1 %v14522_v34  ;;  %13270 = vmatprep.subr.bf16.mxu0 %v15452_v21 }
 0xa2d   :  { %9062 = vmatpush1.bf16.msra.mxu1 %v14520_v36  ;;  %13271 = vmatpush3.bf16.msra.mxu0 %v14523_v37 }
 0xa2e   :  { %9063 = vmatprep.subr.bf16.mxu1 %v14526_v0  ;;  %13272 = vmatprep.subr.bf16.mxu0 %v15452_v21 }
 0xa31   :  { %9064 = vmatpush1.bf16.msra.mxu1 %v14524_v26  ;;  %13273 = vmatpush3.bf16.msra.mxu0 %v14527_v41 }
 0xa32   :  { %9065 = vmatprep.subr.bf16.mxu1 %v14530_v44  ;;  %13274 = vmatprep.subr.bf16.mxu0 %v15452_v21 }
 0xa35   :  { %9066 = vmatpush1.bf16.msra.mxu1 %v14528_v15  ;;  %13275 = vmatpush3.bf16.msra.mxu0 %v14531_v45 }
 0xa36   :  { %9067 = vmatprep.subr.bf16.mxu1 %v14534_v12  ;;  %13276 = vmatprep.subr.bf16.mxu0 %v15452_v21 }
 0xa39   :  { %9068 = vmatpush1.bf16.msra.mxu1 %v14532_v40  ;;  %13277 = vmatpush3.bf16.msra.mxu0 %v14535_v48 }
 0xa3a   :  { %9069 = vmatprep.subr.bf16.mxu1 %v14538_v39  ;;  %13278 = vmatprep.subr.bf16.mxu0 %v15452_v21 }
 0xa3d   :  { %9070 = vmatpush1.bf16.msra.mxu1 %v14536_v50  ;;  %13279 = vmatpush3.bf16.msra.mxu0 %v14539_v53 }
 0xa3e   :  { %9071 = vmatprep.subr.bf16.mxu1 %v14542_v51  ;;  %13280 = vmatprep.subr.bf16.mxu0 %v15452_v21 }
 0xa41   :  { %9072 = vmatpush1.bf16.msra.mxu1 %v14540_v57  ;;  %13281 = vmatpush3.bf16.msra.mxu0 %v14543_v20 }
 0xa42   :  { %9324 = vmatprep.subr.bf16.mxu1 %v14546_v38  ;;  %13286 = vmatprep.subr.bf16.mxu0 %v15452_v21 }
 0xa44   :  { %9090 = vmatmul.mubr.bf16.vlgmr.msra.gmra.mxu1 %v8896_v5  ;;  %13283 = vmatmul.mubr.bf16.vlgmr.msra.gmra.mxu0 %v8896_v5  ;;  %v16096_v5 = vld [vmem:[#allocation17 + $0xac] ss:$12 sps:$4 sm:$0xff]  }
 0xa45   :  { %9325 = vmatpush1.bf16.msra.mxu1 %v14544_v52  ;;  %13287 = vmatpush3.bf16.msra.mxu0 %v14547_v58  ;;  %v16094_v58 = vld [vmem:[#allocation17 + $0xa8] ss:$12 sps:$4 sm:$0xff]  }
 0xa46   :  { %9326 = vmatprep.subr.bf16.mxu1 %v14550_v6  ;;  %13288 = vmatprep.subr.bf16.mxu0 %v15452_v21  ;;  %v14579_v6 = vld [vmem:[#allocation17 + $0xb0] ss:$12 sps:$4 sm:$0xff]  }
 0xa47   :  { %9356 = vmatprep.mubr.bf16.mxu1 %v15285_v47  ;;  %13302 = vmatprep.mubr.msk.bf16.mxu0 %vm15286_vm0, %v15452_v21 }
 0xa49   :  { %9327 = vmatpush1.bf16.msra.mxu1 %v14548_v59  ;;  %13289 = vmatpush3.bf16.msra.mxu0 %v14551_v24  ;;  %v16098_v59 = vld [vmem:[#allocation17 + $0x94] ss:$12 sps:$4 sm:$0xff]   ;;  %v14583_v24 = vld [vmem:[#allocation17 + $0x98] ss:$12 sps:$4 sm:$0xff]  }
 0xa4a   :  { %9328 = vmatprep.subr.bf16.mxu1 %v14554_v62  ;;  %13290 = vmatprep.subr.bf16.mxu0 %v15452_v21 }
 0xa4d   :  { %9329 = vmatpush1.bf16.msra.mxu1 %v14552_v49  ;;  %13291 = vmatpush3.bf16.msra.mxu0 %v14555_v3  ;;  %v16102_v49 = vld [vmem:[#allocation17 + $0x90] ss:$12 sps:$4 sm:$0xff]  }
 0xa4e   :  { %9330 = vmatprep.subr.bf16.mxu1 %v14558_v9  ;;  %13292 = vmatprep.subr.bf16.mxu0 %v15452_v21  ;;  %v16106_v3 = vld [vmem:[#allocation17 + $0x7c] ss:$12 sps:$4 sm:$0xff]  }
 0xa51   :  { %9331 = vmatpush1.bf16.msra.mxu1 %v14556_v32  ;;  %13293 = vmatpush3.bf16.msra.mxu0 %v14559_v10  ;;  %v14587_v32 = vld [vmem:[#allocation17 + $0x80] ss:$12 sps:$4 sm:$0xff]  }
 0xa52   :  { %9332 = vmatprep.subr.bf16.mxu1 %v14562_v13  ;;  %13294 = vmatprep.subr.bf16.mxu0 %v15452_v21 }
 0xa55   :  { %9333 = vmatpush1.bf16.msra.mxu1 %v14560_v54  ;;  %13295 = vmatpush3.bf16.msra.mxu0 %v14563_v14  ;;  %v16113_v54 = vld [vmem:[#allocation17 + $0x78] ss:$12 sps:$4 sm:$0xff]  }
 0xa56   :  { %9334 = vmatprep.subr.bf16.mxu1 %v14566_v17  ;;  %13296 = vmatprep.subr.bf16.mxu0 %v15452_v21  ;;  %v16118_v17 = vld [vmem:[#allocation17 + $0x64] ss:$12 sps:$4 sm:$0xff]  }
 0xa59   :  { %9335 = vmatpush1.bf16.msra.mxu1 %v14564_v18  ;;  %13297 = vmatpush3.bf16.msra.mxu0 %v14567_v29 }
 0xa5a   :  { %9336 = vmatprep.subr.bf16.mxu1 %v14570_v46  ;;  %13298 = vmatprep.subr.bf16.mxu0 %v15452_v21 }
 0xa5d   :  { %9337 = vmatpush1.bf16.msra.mxu1 %v14568_v16  ;;  %13299 = vmatpush3.bf16.msra.mxu0 %v14571_v19 }
 0xa5e   :  { %9338 = vmatprep.subr.bf16.mxu1 %v14574_v8  ;;  %13300 = vmatprep.subr.bf16.mxu0 %v15452_v21  ;;  %v14591_v8 = vld [vmem:[#allocation17 + $0x68] ss:$12 sps:$4 sm:$0xff]  }
 0xa61   :  { %9339 = vmatpush1.bf16.msra.mxu1 %v14572_v63  ;;  %13301 = vmatpush3.bf16.msra.mxu0 %v14575_v28 }
 0xa62   :  { %13306 = vmatprep.subr.bf16.mxu0 %v15452_v21  ;;  %9595 = vmatprep.subr.bf16.mxu1 %v16096_v5 }
 0xa64   :  { %9357 = vmatmul.mubr.bf16.vlgmr.msra.gmra.mxu1 %v9163_v30  ;;  %13303 = vmatmul.mubr.bf16.vlgmr.msra.gmra.mxu0 %v9163_v30  ;;  %v16124_v30 = vld [vmem:[#allocation17 + $0x60] ss:$12 sps:$4 sm:$0xff]  }
 0xa65   :  { %9627 = vmatprep.mubr.bf16.mxu1 %v15285_v47  ;;  %13322 = vmatprep.mubr.msk.bf16.mxu0 %vm15286_vm0, %v15452_v21 }
 0xa66   :  { %13307 = vmatpush3.bf16.msra.mxu0 %v14579_v6  ;;  %9596 = vmatpush1.bf16.msra.mxu1 %v16094_v58 }
 0xa67   :  { %13308 = vmatprep.subr.bf16.mxu0 %v15452_v21  ;;  %9597 = vmatprep.subr.bf16.mxu1 %v16098_v59 }
 0xa6a   :  { %13309 = vmatpush3.bf16.msra.mxu0 %v14583_v24  ;;  %9598 = vmatpush1.bf16.msra.mxu1 %v16102_v49 }
 0xa6b   :  { %13310 = vmatprep.subr.bf16.mxu0 %v15452_v21  ;;  %9599 = vmatprep.subr.bf16.mxu1 %v16106_v3 }
 0xa6e   :  { %13311 = vmatpush3.bf16.msra.mxu0 %v14587_v32  ;;  %9600 = vmatpush1.bf16.msra.mxu1 %v16113_v54 }
 0xa6f   :  { %13312 = vmatprep.subr.bf16.mxu0 %v15452_v21  ;;  %9601 = vmatprep.subr.bf16.mxu1 %v16118_v17 }
 0xa72   :  { %13313 = vmatpush3.bf16.msra.mxu0 %v14591_v8  ;;  %9602 = vmatpush1.bf16.msra.mxu1 %v16124_v30 }
 0xa73   :  { %13314 = vmatprep.subr.bf16.mxu0 %v15452_v21 }
 0xaa4   :  { %v8342_v33 = vpop.f32.mrf.mxu1  ;;  %v8383_v35 = vpop.f32.mrf.mxu0 }
 0xaa5   :  { %v8343_v26 = vadd.f32 %v8342_v33, %v15626_v60  ;;  %v8384_v16 = vadd.f32 %v8383_v35, %v15643_v25  ;;  %v16128_v33 = vld [vmem:[#allocation17 + $0x4c] ss:$12 sps:$4 sm:$0xff]   ;;  %v14595_v35 = vld [vmem:[#allocation17 + $0x50] ss:$12 sps:$4 sm:$0xff]  }
 0xaa6   :  { %v8344_v22 = vpop.f32.mrf.mxu1  ;;  %v13224_v1 = vpop.f32.mrf.mxu0  ;;  %9603 = vmatprep.subr.bf16.mxu1 %v16128_v33  ;;  %13315 = vmatpush3.bf16.msra.mxu0 %v14595_v35  ;;  %v16171_v35 = vld [vmem:[%s16366_s9] sm:$0x1] }
 0xaa7   :  { %v8345_v15 = vadd.f32 %v8344_v22, %v15629_v61  ;;  %13316 = vmatprep.subr.bf16.mxu0 %v15452_v21 }
 0xaa8   :  { %v8346_v34 = vpop.f32.mrf.mxu1  ;;  %v8386_v36 = vpop.f32.mrf.mxu0 }
 0xaa9   :  { %v16131_v34 = vld [vmem:[#allocation17 + $0x48] ss:$12 sps:$4 sm:$0xff]  }
 0xaaa   :  { %v8347_v37 = vpop.f32.mrf.mxu1  ;;  %v13225_v0 = vpop.f32.mrf.mxu0  ;;  %v16135_v36 = vld [vmem:[#allocation17 + $0x34] ss:$12 sps:$4 sm:$0xff]   ;;  %9604 = vmatpush1.bf16.msra.mxu1 %v16131_v34 }
 0xaab   :  { %v14599_v37 = vld [vmem:[#allocation17 + $0x38] ss:$12 sps:$4 sm:$0xff]   ;;  %v16138_v0 = vld [vmem:[#allocation17 + $0x30] ss:$12 sps:$4 sm:$0xff]   ;;  %9605 = vmatprep.subr.bf16.mxu1 %v16135_v36 }
 0xaac   :  { %13317 = vmatpush3.bf16.msra.mxu0 %v14599_v37 }
 0xaad   :  { %13318 = vmatprep.subr.bf16.mxu0 %v15452_v21 }
 0xaae   :  { %9606 = vmatpush1.bf16.msra.mxu1 %v16138_v0 }
 0xac4   :  { %v8584_v41 = vpop.f32.mrf.mxu1  ;;  %v8625_v44 = vpop.f32.mrf.mxu0 }
 0xac5   :  { %v8631_v45 = vadd.f32 %v8584_v41, %v8343_v26  ;;  %v8645_v14 = vadd.f32 %v16008_v23, %v8625_v44  ;;  %v16142_v26 = vld [vmem:[#allocation17 + $0x1c] ss:$12 sps:$4 sm:$0xff]   ;;  %v14603_v41 = vld [vmem:[#allocation17 + $0x20] ss:$12 sps:$4 sm:$0xff]  }
 0xac6   :  { %v8586_v12 = vpop.f32.mrf.mxu1  ;;  %v13244_v40 = vpop.f32.mrf.mxu0  ;;  %9607 = vmatprep.subr.bf16.mxu1 %v16142_v26  ;;  %13319 = vmatpush3.bf16.msra.mxu0 %v14603_v41 }
 0xac7   :  { %v12000_v48 = vmul.f32 -1.442695, %v8631_v45  ;;  %v8638_v39 = vadd.f32 %v8586_v12, %v8345_v15  ;;  %v16145_v15 = vld [vmem:[#allocation17 + $0x18] ss:$12 sps:$4 sm:$0xff]   ;;  %v14607_v12 = vld [vmem:[#allocation17 + $0x8] ss:$12 sps:$4 sm:$0xff]   ;;  %13320 = vmatprep.subr.bf16.mxu0 %v15452_v21 }
 0xac8   :  { %v8588_v50 = vpop.f32.mrf.mxu1  ;;  %v8628_v53 = vpop.f32.mrf.mxu0  ;;  %v16149_v45 = vld [vmem:[#allocation17 + $0x4] ss:$12 sps:$4 sm:$0xff]   ;;  %9608 = vmatpush1.bf16.msra.mxu1 %v16145_v15 }
 0xac9   :  { %14924 = vpow2.f32 %v12000_v48  ;;  %v12001_v20 = vmul.f32 -1.442695, %v8638_v39  ;;  %v16152_v39 = vld [vmem:[#allocation17] ss:$12 sps:$4 sm:$0xff]   ;;  %9609 = vmatprep.subr.bf16.mxu1 %v16149_v45 }
 0xaca   :  { %v8589_v51 = vpop.f32.mrf.mxu1  ;;  %v13245_v57 = vpop.f32.mrf.mxu0  ;;  %v16156_v50 = vld [vmem:[#allocation19 + $0xac] ss:$12 sps:$4 sm:$0xff]   ;;  %13321 = vmatpush3.bf16.msra.mxu0 %v14607_v12 }
 0xacb   :  { %14926 = vpow2.f32 %v12001_v20  ;;  %13326 = vmatprep.subr.bf16.mxu0 %v15452_v21 }
 0xacc   :  { %9610 = vmatpush1.bf16.msra.mxu1 %v16152_v39 }
 0xacd   :  { %9837 = vmatprep.subr.bf16.mxu1 %v16156_v50 }
 0xad6   :  { %v14925_v38 = vpop.eup %14924 }
 0xad7   :  { %v8635_v52 = vadd.f32 1.0, %v14925_v38 }
 0xad8   :  { %v14927_v62 = vpop.eup %14926 }
 0xad9   :  { %14928 = vrcp.f32 %v8635_v52  ;;  %v8642_v9 = vadd.f32 1.0, %v14927_v62 }
 0xadb   :  { %14930 = vrcp.f32 %v8642_v9 }
 0xae4   :  { %v16108_v10 = vpop.f32.mrf.mxu1  ;;  %v16110_v13 = vpop.f32.mrf.mxu0 }
 0xae5   :  { %v8850_v20 = vadd.f32 %v16108_v10, %v15527_v7 }
 0xae6   :  { %v14929_v18 = vpop.eup %14928  ;;  %v16120_v29 = vpop.f32.mrf.mxu1 }
 0xae7   :  { %v13264_v46 = vpop.f32.mrf.mxu0  ;;  %v8646_v19 = vmul.f32 %v14929_v18, %v8645_v14  ;;  %v8852_v14 = vadd.f32 %v16120_v29, %v15531_v11 }
 0xae8   :  { %v8853_v63 = vpop.f32.mrf.mxu1  ;;  %v14931_v44 = vpop.eup %14930 }
 0xae9   :  { %v8893_v28 = vpop.f32.mrf.mxu0  ;;  %v8647_v23 = vadd.f32 %v8646_v19, %v8384_v16  ;;  %v8649_v40 = vsub.f32 1.0, %v14931_v44  ;;  %v8651_v51 = vmul.f32 %v14931_v44, %v16020_v4 }
 0xaea   :  { %v8854_v22 = vpop.f32.mrf.mxu1 }
 0xaeb   :  { %v13265_v1 = vpop.f32.mrf.mxu0  ;;  %14932 = vtanh.f32 %v8647_v23  ;;  %v9162_v23 = vld [vmem:[#allocation2 + $0x7] ss:$8 sm:$0x7] }
 0xaf8   :  { %v14933_v48 = vpop.eup %14932 }
 0xaf9   :  { %v8650_v53 = vmul.f32 %v14933_v48, %v8649_v40  ;;  %v8891_v40 = vadd.f32 %v16110_v13, %v15540_v27 }
 0xafb   :  { %v16159_v57 = vadd.f32 %v8651_v51, %v8650_v53 }
 0xb04   :  { %v9091_v38 = vpop.f32.mrf.mxu1  ;;  %v9132_v52 = vpop.f32.mrf.mxu0 }
 0xb05   :  { %v9138_v6 = vadd.f32 %v9091_v38, %v8850_v20  ;;  %v9152_v29 = vadd.f32 %v16171_v35, %v9132_v52 }
 0xb06   :  { %v9093_v24 = vpop.f32.mrf.mxu1  ;;  %v13284_v62 = vpop.f32.mrf.mxu0 }
 0xb07   :  { %v12050_v9 = vmul.f32 -1.442695, %v9138_v6  ;;  %v9145_v16 = vadd.f32 %v9093_v24, %v8852_v14  ;;  %v9413_v6 = vrot.slane %v9162_v23, 1 }
 0xb08   :  { %v9095_v32 = vpop.f32.mrf.mxu1  ;;  %v9135_v4 = vpop.f32.mrf.mxu0 }
 0xb09   :  { %14934 = vpow2.f32 %v12050_v9  ;;  %v12051_v19 = vmul.f32 -1.442695, %v9145_v16 }
 0xb0a   :  { %v9096_v18 = vpop.f32.mrf.mxu1  ;;  %v13285_v46 = vpop.f32.mrf.mxu0 }
 0xb0b   :  { %14936 = vpow2.f32 %v12051_v19 }
 0xb16   :  { %v14935_v8 = vpop.eup %14934 }
 0xb17   :  { %v9142_v63 = vadd.f32 1.0, %v14935_v8 }
 0xb18   :  { %v14937_v10 = vpop.eup %14936 }
 0xb19   :  { %14938 = vrcp.f32 %v9142_v63  ;;  %v9149_v28 = vadd.f32 1.0, %v14937_v10  ;;  %v16180_v10 = vld [vmem:[#allocation19 + $0xa8] ss:$12 sps:$4 sm:$0xff]  }
 0xb1b   :  { %14940 = vrcp.f32 %v9149_v28 }
 0xb24   :  { %v9358_v22 = vpop.f32.mrf.mxu1  ;;  %v9399_v1 = vpop.f32.mrf.mxu0 }
 0xb25   :  { %v9405_v37 = vadd.f32 %v9358_v22, %v9162_v23  ;;  %v14611_v22 = vld [vmem:[#allocation19 + $0xb0] ss:$12 sps:$4 sm:$0xff]  }
 0xb26   :  { %v14939_v41 = vpop.eup %14938  ;;  %v9360_v44 = vpop.f32.mrf.mxu1 }
 0xb27   :  { %v13304_v12 = vpop.f32.mrf.mxu0  ;;  %v9153_v48 = vmul.f32 %v14939_v41, %v9152_v29  ;;  %v12076_v53 = vmul.f32 -1.442695, %v9405_v37  ;;  %v9415_v9 = vadd.f32 %v9413_v6, %v9360_v44  ;;  %v15010_v29 = vld [vmem:[#allocation13] sm:$0x1]  ;;  %v16182_v44 = vld [vmem:[#allocation19 + $0x94] ss:$12 sps:$4 sm:$0xff]  }
 0xb28   :  { %v9362_v51 = vpop.f32.mrf.mxu1  ;;  %v14941_v32 = vpop.eup %14940  ;;  %v9422_v37 = vadd.f32 %v15010_v29, %v9399_v1  ;;  %v16189_v1 = vld [vmem:[#allocation19 + $0x7c] ss:$12 sps:$4 sm:$0xff]   ;;  %v16202_v6 = vld [vmem:[#allocation19 + $0x60] ss:$12 sps:$4 sm:$0xff]  }
 0xb29   :  { %v9402_v20 = vpop.f32.mrf.mxu0  ;;  %v9154_v38 = vadd.f32 %v9153_v48, %v8891_v40  ;;  %14942 = vpow2.f32 %v12076_v53  ;;  %v12077_v52 = vmul.f32 -1.442695, %v9415_v9  ;;  %v9156_v14 = vsub.f32 1.0, %v14941_v32  ;;  %v14615_v53 = vld [vmem:[#allocation19 + $0x98] ss:$12 sps:$4 sm:$0xff]  }
 0xb2a   :  { %v9363_v24 = vpop.f32.mrf.mxu1  ;;  %v9158_v16 = vmul.f32 %v14941_v32, %v16031_v2  ;;  %v9424_v40 = vrot.slane %v9162_v23, 2  ;;  %v16185_v2 = vld [vmem:[#allocation19 + $0x90] ss:$12 sps:$4 sm:$0xff]   ;;  %v16195_v23 = vld [vmem:[#allocation19 + $0x78] ss:$12 sps:$4 sm:$0xff]  }
 0xb2b   :  { %v13305_v62 = vpop.f32.mrf.mxu0  ;;  %14944 = vtanh.f32 %v9154_v38  ;;  %v14619_v20 = vld [vmem:[#allocation19 + $0x80] ss:$12 sps:$4 sm:$0xff]   ;;  %v16199_v38 = vld [vmem:[#allocation19 + $0x64] ss:$12 sps:$4 sm:$0xff]   ;;  %v14623_v24 = vld [vmem:[#allocation19 + $0x68] ss:$12 sps:$4 sm:$0xff]  }
 0xb2c   :  { %14946 = vpow2.f32 %v12077_v52  ;;  %v16206_v62 = vld [vmem:[#allocation19 + $0x4c] ss:$12 sps:$4 sm:$0xff]   ;;  %v16209_v52 = vld [vmem:[#allocation19 + $0x48] ss:$12 sps:$4 sm:$0xff]   ;;  %v14627_v32 = vld [vmem:[#allocation19 + $0x50] ss:$12 sps:$4 sm:$0xff]  }
 0xb2d   :  { %v14635_v29 = vld [vmem:[#allocation19 + $0x20] ss:$12 sps:$4 sm:$0xff]  }
 0xb36   :  { %v14943_v4 = vpop.eup %14942 }
 0xb37   :  { %v9409_v18 = vadd.f32 1.0, %v14943_v4  ;;  %v16213_v4 = vld [vmem:[#allocation19 + $0x34] ss:$12 sps:$4 sm:$0xff]  }
 0xb38   :  { %v14945_v46 = vpop.eup %14944 }
 0xb39   :  { %v9157_v13 = vmul.f32 %v14945_v46, %v9156_v14  ;;  %14948 = vrcp.f32 %v9409_v18  ;;  %v14947_v8 = vpop.eup %14946  ;;  %v16216_v46 = vld [vmem:[#allocation19 + $0x30] ss:$12 sps:$4 sm:$0xff]  }
 0xb3a   :  { %v9419_v63 = vadd.f32 1.0, %v14947_v8 }
 0xb3b   :  { %v16177_v19 = vadd.f32 %v9158_v16, %v9157_v13  ;;  %v14631_v13 = vld [vmem:[#allocation19 + $0x38] ss:$12 sps:$4 sm:$0xff]  }
 0xb3c   :  { %14950 = vrcp.f32 %v9419_v63  ;;  %v16221_v63 = vld [vmem:[#allocation19 + $0x1c] ss:$12 sps:$4 sm:$0xff]  }
 0xb3d   :  { %9160 = vst [vmem:[#allocation4 + $0x6] sm:$0x1] %v16177_v19 }
 0xb44   :  { %v9433_v28 = vld [vmem:[#allocation4 + $0x6] sm:$0x1] }
 0xb45   :  { %v9434_v41 = vpack.c.bf16 %v9433_v28, %v9433_v28 }
 0xb46   :  { %v14949_v12 = vpop.eup %14948 }
 0xb47   :  { %v9423_v48 = vmul.f32 %v14949_v12, %v9422_v37  ;;  %9628 = vmatmul.mubr.bf16.vlgmr.msra.gmra.mxu1 %v9434_v41  ;;  %13323 = vmatmul.mubr.bf16.vlgmr.msra.gmra.mxu0 %v9434_v41  ;;  %v16231_v37 = vld [vmem:[#allocation19] ss:$12 sps:$4 sm:$0xff]   ;;  %v14639_v41 = vld [vmem:[#allocation19 + $0x8] ss:$12 sps:$4 sm:$0xff]  }
 0xb48   :  { %9838 = vmatpush1.bf16.msra.mxu1 %v16180_v10  ;;  %13327 = vmatpush3.bf16.msra.mxu0 %v14611_v22  ;;  %v16224_v22 = vld [vmem:[#allocation19 + $0x18] ss:$12 sps:$4 sm:$0xff]  }
 0xb49   :  { %v9426_v51 = vadd.f32 %v9424_v40, %v9423_v48  ;;  %9839 = vmatprep.subr.bf16.mxu1 %v16182_v44  ;;  %13328 = vmatprep.subr.bf16.mxu0 %v15452_v21  ;;  %v14951_v9 = vpop.eup %14950  ;;  %v14642_v12 = vld [vmem:[#allocation14 + $0xac] ss:$12 sps:$4 sm:$0xff]   ;;  %v14640_v40 = vld [vmem:[#allocation14 + $0xa8] ss:$12 sps:$4 sm:$0xff]   ;;  %v14643_v48 = vld [vmem:[#allocation14 + $0xb0] ss:$12 sps:$4 sm:$0xff]  }
 0xb4a   :  { %9869 = vmatprep.mubr.bf16.mxu1 %v15285_v47  ;;  %13342 = vmatprep.mubr.msk.bf16.mxu0 %vm15286_vm0, %v15452_v21  ;;  %v9428_v14 = vsub.f32 1.0, %v14951_v9  ;;  %v9430_v8 = vmul.f32 %v14951_v9, %v16044_v31  ;;  %v16228_v31 = vld [vmem:[#allocation19 + $0x4] ss:$12 sps:$4 sm:$0xff]  }
 0xb4b   :  { %14952 = vtanh.f32 %v9426_v51  ;;  %v9676_v51 = vpack.c.bf16 %v16159_v57, %v16159_v57  ;;  %v14647_v9 = vld [vmem:[#allocation14 + $0x98] ss:$12 sps:$4 sm:$0xff]  }
 0xb4c   :  { %9840 = vmatpush1.bf16.msra.mxu1 %v16185_v2  ;;  %13329 = vmatpush3.bf16.msra.mxu0 %v14615_v53 }
 0xb4d   :  { %9841 = vmatprep.subr.bf16.mxu1 %v16189_v1  ;;  %13330 = vmatprep.subr.bf16.mxu0 %v15452_v21 }
 0xb50   :  { %9842 = vmatpush1.bf16.msra.mxu1 %v16195_v23  ;;  %13331 = vmatpush3.bf16.msra.mxu0 %v14619_v20  ;;  %v14646_v20 = vld [vmem:[#allocation14 + $0x94] ss:$12 sps:$4 sm:$0xff]  }
 0xb51   :  { %9843 = vmatprep.subr.bf16.mxu1 %v16199_v38  ;;  %13332 = vmatprep.subr.bf16.mxu0 %v15452_v21 }
 0xb54   :  { %9844 = vmatpush1.bf16.msra.mxu1 %v16202_v6  ;;  %13333 = vmatpush3.bf16.msra.mxu0 %v14623_v24  ;;  %v14644_v24 = vld [vmem:[#allocation14 + $0x90] ss:$12 sps:$4 sm:$0xff]  }
 0xb55   :  { %9845 = vmatprep.subr.bf16.mxu1 %v16206_v62  ;;  %13334 = vmatprep.subr.bf16.mxu0 %v15452_v21 }
 0xb58   :  { %v14953_v18 = vpop.eup %14952  ;;  %9846 = vmatpush1.bf16.msra.mxu1 %v16209_v52  ;;  %13335 = vmatpush3.bf16.msra.mxu0 %v14627_v32  ;;  %v14650_v32 = vld [vmem:[#allocation14 + $0x7c] ss:$12 sps:$4 sm:$0xff]  }
 0xb59   :  { %v9429_v16 = vmul.f32 %v14953_v18, %v9428_v14  ;;  %9847 = vmatprep.subr.bf16.mxu1 %v16213_v4  ;;  %13336 = vmatprep.subr.bf16.mxu0 %v15452_v21  ;;  %v14648_v14 = vld [vmem:[#allocation14 + $0x78] ss:$12 sps:$4 sm:$0xff]   ;;  %v14651_v18 = vld [vmem:[#allocation14 + $0x80] ss:$12 sps:$4 sm:$0xff]  }
 0xb5b   :  { %v9431_v28 = vadd.f32 %v9430_v8, %v9429_v16  ;;  %v14652_v16 = vld [vmem:[#allocation14 + $0x60] ss:$12 sps:$4 sm:$0xff]   ;;  %v14655_v8 = vld [vmem:[#allocation14 + $0x68] ss:$12 sps:$4 sm:$0xff]  }
 0xb5c   :  { %9848 = vmatpush1.bf16.msra.mxu1 %v16216_v46  ;;  %13337 = vmatpush3.bf16.msra.mxu0 %v14631_v13  ;;  %v14654_v13 = vld [vmem:[#allocation14 + $0x64] ss:$12 sps:$4 sm:$0xff]  }
 0xb5d   :  { %9432 = vst [vmem:[#allocation3 + $0x7] sm:$0x1] %v9431_v28  ;;  %10958 = vst [vmem:[#allocation23] sm:$0x1] %v9431_v28  ;;  %9849 = vmatprep.subr.bf16.mxu1 %v16221_v63  ;;  %13338 = vmatprep.subr.bf16.mxu0 %v15452_v21 }
 0xb60   :  { %9850 = vmatpush1.bf16.msra.mxu1 %v16224_v22  ;;  %13339 = vmatpush3.bf16.msra.mxu0 %v14635_v29  ;;  %v14656_v29 = vld [vmem:[#allocation14 + $0x48] ss:$12 sps:$4 sm:$0xff]  }
 0xb61   :  { %9851 = vmatprep.subr.bf16.mxu1 %v16228_v31  ;;  %13340 = vmatprep.subr.bf16.mxu0 %v15452_v21 }
 0xb64   :  { %9852 = vmatpush1.bf16.msra.mxu1 %v16231_v37  ;;  %13341 = vmatpush3.bf16.msra.mxu0 %v14639_v41  ;;  %v9940_v53 = vld [vmem:[#allocation3 + $0x7] sm:$0x1]  ;;  %v14659_v41 = vld [vmem:[#allocation14 + $0x50] ss:$12 sps:$4 sm:$0xff]  }
 0xb65   :  { %10102 = vmatprep.subr.bf16.mxu1 %v14642_v12  ;;  %13346 = vmatprep.subr.bf16.mxu0 %v15452_v21  ;;  %10448 = vst [vmem:[#allocation3 + $0x7] sm:$0x1] %v9431_v28   ;;  %v14658_v28 = vld [vmem:[#allocation14 + $0x4c] ss:$12 sps:$4 sm:$0xff]   ;;  %v14662_v12 = vld [vmem:[#allocation14 + $0x34] ss:$12 sps:$4 sm:$0xff]  }
 0xb67   :  { %9870 = vmatmul.mubr.bf16.vlgmr.msra.gmra.mxu1 %v9676_v51  ;;  %13343 = vmatmul.mubr.bf16.vlgmr.msra.gmra.mxu0 %v9676_v51  ;;  %v14666_v51 = vld [vmem:[#allocation14 + $0x1c] ss:$12 sps:$4 sm:$0xff]  }
 0xb68   :  { %10103 = vmatpush1.bf16.msra.mxu1 %v14640_v40  ;;  %13347 = vmatpush3.bf16.msra.mxu0 %v14643_v48  ;;  %v14660_v40 = vld [vmem:[#allocation14 + $0x30] ss:$12 sps:$4 sm:$0xff]   ;;  %v14663_v48 = vld [vmem:[#allocation14 + $0x38] ss:$12 sps:$4 sm:$0xff]  }
 0xb69   :  { %10104 = vmatprep.subr.bf16.mxu1 %v14646_v20  ;;  %13348 = vmatprep.subr.bf16.mxu0 %v15452_v21  ;;  %v14664_v20 = vld [vmem:[#allocation14 + $0x18] ss:$12 sps:$4 sm:$0xff]  }
 0xb6a   :  { %10134 = vmatprep.mubr.bf16.mxu1 %v15285_v47  ;;  %13362 = vmatprep.mubr.msk.bf16.mxu0 %vm15286_vm0, %v15452_v21 }
 0xb6c   :  { %10105 = vmatpush1.bf16.msra.mxu1 %v14644_v24  ;;  %13349 = vmatpush3.bf16.msra.mxu0 %v14647_v9  ;;  %v14667_v24 = vld [vmem:[#allocation14 + $0x20] ss:$12 sps:$4 sm:$0xff]   ;;  %v14670_v9 = vld [vmem:[#allocation14 + $0x4] ss:$12 sps:$4 sm:$0xff]  }
 0xb6d   :  { %10106 = vmatprep.subr.bf16.mxu1 %v14650_v32  ;;  %13350 = vmatprep.subr.bf16.mxu0 %v15452_v21  ;;  %v14668_v32 = vld [vmem:[#allocation14] ss:$12 sps:$4 sm:$0xff]  }
 0xb70   :  { %10107 = vmatpush1.bf16.msra.mxu1 %v14648_v14  ;;  %13351 = vmatpush3.bf16.msra.mxu0 %v14651_v18  ;;  %v14671_v14 = vld [vmem:[#allocation14 + $0x8] ss:$12 sps:$4 sm:$0xff]   ;;  %v14674_v18 = vld [vmem:[#allocation16 + $0xac] ss:$12 sps:$4 sm:$0xff]  }
 0xb71   :  { %10108 = vmatprep.subr.bf16.mxu1 %v14654_v13  ;;  %13352 = vmatprep.subr.bf16.mxu0 %v15452_v21  ;;  %v14672_v13 = vld [vmem:[#allocation16 + $0xa8] ss:$12 sps:$4 sm:$0xff]  }
 0xb74   :  { %10109 = vmatpush1.bf16.msra.mxu1 %v14652_v16  ;;  %13353 = vmatpush3.bf16.msra.mxu0 %v14655_v8  ;;  %v14675_v16 = vld [vmem:[#allocation16 + $0xb0] ss:$12 sps:$4 sm:$0xff]   ;;  %v9941_v8 = vpack.c.bf16 %v9940_v53, %v9940_v53  ;;  %v14680_v53 = vld [vmem:[#allocation16 + $0x78] ss:$12 sps:$4 sm:$0xff]  }
 0xb75   :  { %10110 = vmatprep.subr.bf16.mxu1 %v14658_v28  ;;  %13354 = vmatprep.subr.bf16.mxu0 %v15452_v21  ;;  %v14678_v28 = vld [vmem:[#allocation16 + $0x94] ss:$12 sps:$4 sm:$0xff]  }
 0xb78   :  { %10111 = vmatpush1.bf16.msra.mxu1 %v14656_v29  ;;  %13355 = vmatpush3.bf16.msra.mxu0 %v14659_v41  ;;  %v14676_v29 = vld [vmem:[#allocation16 + $0x90] ss:$12 sps:$4 sm:$0xff]   ;;  %v14679_v41 = vld [vmem:[#allocation16 + $0x98] ss:$12 sps:$4 sm:$0xff]  }
 0xb79   :  { %10112 = vmatprep.subr.bf16.mxu1 %v14662_v12  ;;  %13356 = vmatprep.subr.bf16.mxu0 %v15452_v21  ;;  %v14682_v12 = vld [vmem:[#allocation16 + $0x7c] ss:$12 sps:$4 sm:$0xff]  }
 0xb7c   :  { %10113 = vmatpush1.bf16.msra.mxu1 %v14660_v40  ;;  %13357 = vmatpush3.bf16.msra.mxu0 %v14663_v48  ;;  %v14683_v40 = vld [vmem:[#allocation16 + $0x80] ss:$12 sps:$4 sm:$0xff]   ;;  %v14686_v48 = vld [vmem:[#allocation16 + $0x64] ss:$12 sps:$4 sm:$0xff]  }
 0xb7d   :  { %10114 = vmatprep.subr.bf16.mxu1 %v14666_v51  ;;  %13358 = vmatprep.subr.bf16.mxu0 %v15452_v21  ;;  %v14684_v51 = vld [vmem:[#allocation16 + $0x60] ss:$12 sps:$4 sm:$0xff]  }
 0xb80   :  { %10115 = vmatpush1.bf16.msra.mxu1 %v14664_v20  ;;  %13359 = vmatpush3.bf16.msra.mxu0 %v14667_v24  ;;  %v14687_v20 = vld [vmem:[#allocation16 + $0x68] ss:$12 sps:$4 sm:$0xff]   ;;  %v14690_v24 = vld [vmem:[#allocation16 + $0x4c] ss:$12 sps:$4 sm:$0xff]  }
 0xb81   :  { %10116 = vmatprep.subr.bf16.mxu1 %v14670_v9  ;;  %13360 = vmatprep.subr.bf16.mxu0 %v15452_v21  ;;  %v14688_v9 = vld [vmem:[#allocation16 + $0x48] ss:$12 sps:$4 sm:$0xff]  }
 0xb84   :  { %10117 = vmatpush1.bf16.msra.mxu1 %v14668_v32  ;;  %13361 = vmatpush3.bf16.msra.mxu0 %v14671_v14  ;;  %v14691_v32 = vld [vmem:[#allocation16 + $0x50] ss:$12 sps:$4 sm:$0xff]   ;;  %v14694_v14 = vld [vmem:[#allocation16 + $0x34] ss:$12 sps:$4 sm:$0xff]  }
 0xb85   :  { %10344 = vmatprep.subr.bf16.mxu1 %v14674_v18  ;;  %13366 = vmatprep.subr.bf16.mxu0 %v15452_v21  ;;  %v14692_v18 = vld [vmem:[#allocation16 + $0x30] ss:$12 sps:$4 sm:$0xff]  }
 0xb87   :  { %10135 = vmatmul.mubr.bf16.vlgmr.msra.gmra.mxu1 %v9941_v8  ;;  %13363 = vmatmul.mubr.bf16.vlgmr.msra.gmra.mxu0 %v9941_v8  ;;  %v14696_v8 = vld [vmem:[#allocation16 + $0x18] ss:$12 sps:$4 sm:$0xff]  }
 0xb88   :  { %10345 = vmatpush1.bf16.msra.mxu1 %v14672_v13  ;;  %13367 = vmatpush3.bf16.msra.mxu0 %v14675_v16  ;;  %v14695_v13 = vld [vmem:[#allocation16 + $0x38] ss:$12 sps:$4 sm:$0xff]   ;;  %v14698_v16 = vld [vmem:[#allocation16 + $0x1c] ss:$12 sps:$4 sm:$0xff]  }
 0xb89   :  { %10346 = vmatprep.subr.bf16.mxu1 %v14678_v28  ;;  %13368 = vmatprep.subr.bf16.mxu0 %v15452_v21  ;;  %v14699_v28 = vld [vmem:[#allocation16 + $0x20] ss:$12 sps:$4 sm:$0xff]  }
 0xb8a   :  { %10376 = vmatprep.mubr.bf16.mxu1 %v15285_v47  ;;  %13382 = vmatprep.mubr.msk.bf16.mxu0 %vm15286_vm0, %v15452_v21 }
 0xb8c   :  { %10347 = vmatpush1.bf16.msra.mxu1 %v14676_v29  ;;  %13369 = vmatpush3.bf16.msra.mxu0 %v14679_v41  ;;  %v14702_v29 = vld [vmem:[#allocation16 + $0x4] ss:$12 sps:$4 sm:$0xff]   ;;  %v14700_v41 = vld [vmem:[#allocation16] ss:$12 sps:$4 sm:$0xff]  }
 0xb8d   :  { %10348 = vmatprep.subr.bf16.mxu1 %v14682_v12  ;;  %13370 = vmatprep.subr.bf16.mxu0 %v15452_v21  ;;  %v14703_v12 = vld [vmem:[#allocation16 + $0x8] ss:$12 sps:$4 sm:$0xff]  }
 0xb90   :  { %10349 = vmatpush1.bf16.msra.mxu1 %v14680_v53  ;;  %13371 = vmatpush3.bf16.msra.mxu0 %v14683_v40  ;;  %v10183_v53 = vpack.c.bf16 %v16177_v19, %v16177_v19 }
 0xb91   :  { %10350 = vmatprep.subr.bf16.mxu1 %v14686_v48  ;;  %13372 = vmatprep.subr.bf16.mxu0 %v15452_v21 }
 0xb94   :  { %10351 = vmatpush1.bf16.msra.mxu1 %v14684_v51  ;;  %13373 = vmatpush3.bf16.msra.mxu0 %v14687_v20  ;;  %v14707_v20 = vld [vmem:[#allocation17 + $0x68] ss:$12 sps:$4 sm:$0xff]  }
 0xb95   :  { %10352 = vmatprep.subr.bf16.mxu1 %v14690_v24  ;;  %13374 = vmatprep.subr.bf16.mxu0 %v15452_v21 }
 0xb98   :  { %10353 = vmatpush1.bf16.msra.mxu1 %v14688_v9  ;;  %13375 = vmatpush3.bf16.msra.mxu0 %v14691_v32 }
 0xb99   :  { %10354 = vmatprep.subr.bf16.mxu1 %v14694_v14  ;;  %13376 = vmatprep.subr.bf16.mxu0 %v15452_v21 }
 0xb9c   :  { %10355 = vmatpush1.bf16.msra.mxu1 %v14692_v18  ;;  %13377 = vmatpush3.bf16.msra.mxu0 %v14695_v13  ;;  %v14708_v18 = vld [vmem:[#allocation17 + $0x50] ss:$12 sps:$4 sm:$0xff]  }
 0xb9d   :  { %10356 = vmatprep.subr.bf16.mxu1 %v14698_v16  ;;  %13378 = vmatprep.subr.bf16.mxu0 %v15452_v21  ;;  %v14709_v16 = vld [vmem:[#allocation17 + $0x38] ss:$12 sps:$4 sm:$0xff]  }
 0xba0   :  { %10357 = vmatpush1.bf16.msra.mxu1 %v14696_v8  ;;  %13379 = vmatpush3.bf16.msra.mxu0 %v14699_v28  ;;  %v14710_v8 = vld [vmem:[#allocation17 + $0x20] ss:$12 sps:$4 sm:$0xff]  }
 0xba1   :  { %10358 = vmatprep.subr.bf16.mxu1 %v14702_v29  ;;  %13380 = vmatprep.subr.bf16.mxu0 %v15452_v21 }
 0xba4   :  { %10359 = vmatpush1.bf16.msra.mxu1 %v14700_v41  ;;  %13381 = vmatpush3.bf16.msra.mxu0 %v14703_v12  ;;  %v14711_v41 = vld [vmem:[#allocation17 + $0x8] ss:$12 sps:$4 sm:$0xff]  }
 0xba5   :  { %10611 = vmatprep.subr.bf16.mxu1 %v16096_v5  ;;  %13386 = vmatprep.subr.bf16.mxu0 %v15452_v21 }
 0xba7   :  { %10377 = vmatmul.mubr.bf16.vlgmr.msra.gmra.mxu1 %v10183_v53  ;;  %13383 = vmatmul.mubr.bf16.vlgmr.msra.gmra.mxu0 %v10183_v53 }
 0xba8   :  { %10612 = vmatpush1.bf16.msra.mxu1 %v16094_v58  ;;  %10643 = vmatprep.mubr.bf16.mxu1 %v15285_v47 }
 0xba9   :  { %10613 = vmatprep.subr.bf16.mxu1 %v16098_v59  ;;  %13402 = vmatprep.mubr.msk.bf16.mxu0 %vm15286_vm0, %v15452_v21 }
 0xbac   :  { %10614 = vmatpush1.bf16.msra.mxu1 %v16102_v49 }
 0xbad   :  { %10615 = vmatprep.subr.bf16.mxu1 %v16106_v3 }
 0xbb0   :  { %10616 = vmatpush1.bf16.msra.mxu1 %v16113_v54 }
 0xbb1   :  { %10617 = vmatprep.subr.bf16.mxu1 %v16118_v17 }
 0xbb4   :  { %10618 = vmatpush1.bf16.msra.mxu1 %v16124_v30 }
 0xbb5   :  { %10619 = vmatprep.subr.bf16.mxu1 %v16128_v33  ;;  %v14704_v33 = vld [vmem:[#allocation17 + $0xb0] ss:$12 sps:$4 sm:$0xff]  }
 0xbb6   :  { %13387 = vmatpush3.bf16.msra.mxu0 %v14704_v33 }
 0xbb7   :  { %13388 = vmatprep.subr.bf16.mxu0 %v15452_v21 }
 0xbb8   :  { %10620 = vmatpush1.bf16.msra.mxu1 %v16131_v34  ;;  %v14705_v34 = vld [vmem:[#allocation17 + $0x98] ss:$12 sps:$4 sm:$0xff]  }
 0xbb9   :  { %10621 = vmatprep.subr.bf16.mxu1 %v16135_v36 }
 0xbba   :  { %13389 = vmatpush3.bf16.msra.mxu0 %v14705_v34 }
 0xbbb   :  { %13390 = vmatprep.subr.bf16.mxu0 %v15452_v21 }
 0xbbc   :  { %10622 = vmatpush1.bf16.msra.mxu1 %v16138_v0  ;;  %v14706_v0 = vld [vmem:[#allocation17 + $0x80] ss:$12 sps:$4 sm:$0xff]  }
 0xbbd   :  { %10623 = vmatprep.subr.bf16.mxu1 %v16142_v26 }
 0xbbe   :  { %13391 = vmatpush3.bf16.msra.mxu0 %v14706_v0 }
 0xbbf   :  { %13392 = vmatprep.subr.bf16.mxu0 %v15452_v21 }
 0xbc0   :  { %10624 = vmatpush1.bf16.msra.mxu1 %v16145_v15 }
 0xbc1   :  { %10625 = vmatprep.subr.bf16.mxu1 %v16149_v45 }
 0xbc2   :  { %13393 = vmatpush3.bf16.msra.mxu0 %v14707_v20 }
 0xbc3   :  { %13394 = vmatprep.subr.bf16.mxu0 %v15452_v21 }
 0xbc4   :  { %10626 = vmatpush1.bf16.msra.mxu1 %v16152_v39 }
 0xbc5   :  { %10853 = vmatprep.subr.bf16.mxu1 %v16156_v50 }
 0xbc6   :  { %13395 = vmatpush3.bf16.msra.mxu0 %v14708_v18 }
 0xbc7   :  { %13396 = vmatprep.subr.bf16.mxu0 %v15452_v21 }
 0xbca   :  { %13397 = vmatpush3.bf16.msra.mxu0 %v14709_v16 }
 0xbcb   :  { %13398 = vmatprep.subr.bf16.mxu0 %v15452_v21 }
 0xbce   :  { %13399 = vmatpush3.bf16.msra.mxu0 %v14710_v8 }
 0xbcf   :  { %13400 = vmatprep.subr.bf16.mxu0 %v15452_v21 }
 0xbd2   :  { %13401 = vmatpush3.bf16.msra.mxu0 %v14711_v41 }
 0xbd3   :  { %13406 = vmatprep.subr.bf16.mxu0 %v15452_v21 }
 0xc07   :  { %v9629_v58 = vpop.f32.mrf.mxu1  ;;  %v9670_v5 = vpop.f32.mrf.mxu0 }
 0xc08   :  { %v9630_v36 = vadd.f32 %v9629_v58, %v15626_v60  ;;  %v9671_v33 = vadd.f32 %v9670_v5, %v15643_v25 }
 0xc09   :  { %v9631_v59 = vpop.f32.mrf.mxu1  ;;  %v13324_v49 = vpop.f32.mrf.mxu0 }
 0xc0a   :  { %v9632_v45 = vadd.f32 %v9631_v59, %v15629_v61  ;;  %v16296_v49 = vld [vmem:[%s16370_s13] sm:$0x1]  ;;  %s15287_s13 = smov [#allocation23]  }
 0xc0b   :  { %v9633_v3 = vpop.f32.mrf.mxu1  ;;  %v9673_v54 = vpop.f32.mrf.mxu0  ;;  %s11151_s22 = sshll.u32 %s15287_s13, 4  ;;  %s11152_s22 = int_to_ptr.vmem [resolvable:$true] %s11151_s22 }
 0xc0c   :  { %s15212_s26 = scalar_lea.vmem %s11152_s22, 48  ;;  %s15216_s6 = scalar_lea.vmem %s11152_s22, 64 }
 0xc0d   :  { %v9634_v17 = vpop.f32.mrf.mxu1  ;;  %v13325_v30 = vpop.f32.mrf.mxu0  ;;  %p15213_p8 = scmp.ne.s32.totalorder %s11152_s22, %s15212_s26  ;;  %p15217_p9 = scmp.lt.s32.totalorder %s11152_s22, %s11152_s22 }
 0xc0e   :  { %p15218_p10 = scmp.lt.s32.totalorder %s15216_s6, %s15212_s26 }
 0xc10   :  { %p15219_p11 = por %p15218_p10, %p15217_p9 }
 0xc12   :  { %p15220_p12 = pnand %p15219_p11, %p15213_p8 }
 0xc27   :  { %v9871_v26 = vpop.f32.mrf.mxu1  ;;  %v9912_v15 = vpop.f32.mrf.mxu0 }
 0xc28   :  { %v9918_v39 = vadd.f32 %v9871_v26, %v9630_v36  ;;  %v9932_v3 = vadd.f32 %v16296_v49, %v9912_v15 }
 0xc29   :  { %v9873_v50 = vpop.f32.mrf.mxu1  ;;  %v13344_v40 = vpop.f32.mrf.mxu0 }
 0xc2a   :  { %v12126_v48 = vmul.f32 -1.442695, %v9918_v39  ;;  %v9925_v51 = vadd.f32 %v9873_v50, %v9632_v45 }
 0xc2b   :  { %v9875_v24 = vpop.f32.mrf.mxu1  ;;  %v9915_v9 = vpop.f32.mrf.mxu0 }
 0xc2c   :  { %14954 = vpow2.f32 %v12126_v48  ;;  %v12127_v13 = vmul.f32 -1.442695, %v9925_v51 }
 0xc2d   :  { %v9876_v32 = vpop.f32.mrf.mxu1  ;;  %v13345_v14 = vpop.f32.mrf.mxu0 }
 0xc2e   :  { %14956 = vpow2.f32 %v12127_v13 }
 0xc39   :  { %v14955_v28 = vpop.eup %14954 }
 0xc3a   :  { %v9922_v29 = vadd.f32 1.0, %v14955_v28 }
 0xc3b   :  { %v14957_v12 = vpop.eup %14956 }
 0xc3c   :  { %14958 = vrcp.f32 %v9922_v29  ;;  %v9929_v53 = vadd.f32 1.0, %v14957_v12 }
 0xc3e   :  { %14960 = vrcp.f32 %v9929_v53 }
 0xc47   :  { %v10136_v58 = vpop.f32.mrf.mxu1  ;;  %v10177_v59 = vpop.f32.mrf.mxu0 }
 0xc48   :  { %v10137_v24 = vadd.f32 %v10136_v58, %v15527_v7 }
 0xc49   :  { %v14959_v54 = vpop.eup %14958  ;;  %v10138_v17 = vpop.f32.mrf.mxu1 }
 0xc4a   :  { %v13364_v30 = vpop.f32.mrf.mxu0  ;;  %v9933_v34 = vmul.f32 %v14959_v54, %v9932_v3  ;;  %v10139_v28 = vadd.f32 %v10138_v17, %v15531_v11 }
 0xc4b   :  { %v10140_v36 = vpop.f32.mrf.mxu1  ;;  %v14961_v50 = vpop.eup %14960 }
 0xc4c   :  { %v10180_v0 = vpop.f32.mrf.mxu0  ;;  %v9934_v26 = vadd.f32 %v9933_v34, %v9671_v33  ;;  %v9936_v40 = vsub.f32 1.0, %v14961_v50  ;;  %v9938_v20 = vmul.f32 %v14961_v50, %v16159_v57  ;;  %v10178_v33 = vadd.f32 %v10177_v59, %v15540_v27  ;;  %v14713_v27 = vld [vmem:[#allocation19 + $0x98] ss:$12 sps:$4 sm:$0xff]   ;;  %v14740_v59 = vld [vmem:[#allocation20 + $0x14] ss:$8 sps:$4 sm:$0xff]  }
 0xc4d   :  { %v10141_v45 = vpop.f32.mrf.mxu1 }
 0xc4e   :  { %v13365_v39 = vpop.f32.mrf.mxu0  ;;  %14962 = vtanh.f32 %v9934_v26 }
 0xc5b   :  { %v14963_v48 = vpop.eup %14962 }
 0xc5c   :  { %v9937_v51 = vmul.f32 %v14963_v48, %v9936_v40  ;;  %v14712_v40 = vld [vmem:[#allocation19 + $0xb0] ss:$12 sps:$4 sm:$0xff]  }
 0xc5e   :  { %v16301_v15 = vadd.f32 %v9938_v20, %v9937_v51  ;;  %v14738_v51 = vld [vmem:[#allocation20 + $0x10] ss:$8 sps:$4 sm:$0xff]   ;;  %v14743_v20 = vld [vmem:[#allocation20 + $0x4] ss:$8 sps:$4 sm:$0xff]  }
 0xc67   :  { %v10378_v9 = vpop.f32.mrf.mxu1  ;;  %v10419_v5 = vpop.f32.mrf.mxu0 }
 0xc68   :  { %v10425_v32 = vadd.f32 %v10378_v9, %v10137_v24  ;;  %v10439_v54 = vadd.f32 %v16171_v35, %v10419_v5  ;;  %v14714_v35 = vld [vmem:[#allocation19 + $0x80] ss:$12 sps:$4 sm:$0xff]  }
 0xc69   :  { %v10380_v14 = vpop.f32.mrf.mxu1  ;;  %v13384_v18 = vpop.f32.mrf.mxu0  ;;  %v14741_v24 = vld [vmem:[#allocation20] ss:$8 sps:$4 sm:$0xff]  }
 0xc6a   :  { %v12176_v13 = vmul.f32 -1.442695, %v10425_v32  ;;  %v10432_v12 = vadd.f32 %v10380_v14, %v10139_v28 }
 0xc6b   :  { %v10382_v16 = vpop.f32.mrf.mxu1  ;;  %v10422_v8 = vpop.f32.mrf.mxu0 }
 0xc6c   :  { %14964 = vpow2.f32 %v12176_v13  ;;  %v12177_v53 = vmul.f32 -1.442695, %v10432_v12 }
 0xc6d   :  { %v10383_v29 = vpop.f32.mrf.mxu1  ;;  %v13385_v41 = vpop.f32.mrf.mxu0 }
 0xc6e   :  { %14966 = vpow2.f32 %v12177_v53 }
 0xc79   :  { %v14965_v57 = vpop.eup %14964 }
 0xc7a   :  { %v10429_v3 = vadd.f32 1.0, %v14965_v57 }
 0xc7b   :  { %v14967_v7 = vpop.eup %14966 }
 0xc7c   :  { %14968 = vrcp.f32 %v10429_v3  ;;  %v10436_v58 = vadd.f32 1.0, %v14967_v7 }
 0xc7e   :  { %14970 = vrcp.f32 %v10436_v58 }
 0xc89   :  { %v14969_v30 = vpop.eup %14968 }
 0xc8a   :  { %v10440_v34 = vmul.f32 %v14969_v30, %v10439_v54 }
 0xc8b   :  { %v14971_v11 = vpop.eup %14970 }
 0xc8c   :  { %v10441_v36 = vadd.f32 %v10440_v34, %v10178_v33  ;;  %v10443_v17 = vsub.f32 1.0, %v14971_v11  ;;  %v10445_v45 = vmul.f32 %v14971_v11, %v16177_v19  ;;  %v14715_v19 = vld [vmem:[#allocation19 + $0x68] ss:$12 sps:$4 sm:$0xff]  }
 0xc8e   :  { %14972 = vtanh.f32 %v10441_v36 }
 0xc9b   :  { %v14973_v0 = vpop.eup %14972 }
 0xc9c   :  { %v10444_v26 = vmul.f32 %v14973_v0, %v10443_v17 }
 0xc9e   :  { %v10446_v39 = vadd.f32 %v10445_v45, %v10444_v26 }
 0xca0   :  { %10447 = vst [vmem:[#allocation4 + $0x7] sm:$0x1] %v10446_v39  ;;  %10960 = vst [vmem:[#allocation23 + $0x1] sm:$0x1] %v10446_v39 }
 0xca7   :  { %v10449_v50 = vld [vmem:[#allocation4 + $0x7] sm:$0x1] }
 0xca8   :  { %v10450_v48 = vpack.c.bf16 %v10449_v50, %v10449_v50  ;;  %10956 = vst [vmem:[#allocation4 + $0x7] sm:$0x1] %v10446_v39 }
 0xcaa   :  { %10644 = vmatmul.mubr.bf16.vlgmr.msra.gmra.mxu1 %v10450_v48  ;;  %13403 = vmatmul.mubr.bf16.vlgmr.msra.gmra.mxu0 %v10450_v48 }
 0xcab   :  { %10854 = vmatpush1.bf16.msra.mxu1 %v16180_v10  ;;  %13407 = vmatpush3.bf16.msra.mxu0 %v14712_v40  ;;  %v14716_v10 = vld [vmem:[#allocation19 + $0x50] ss:$12 sps:$4 sm:$0xff]  }
 0xcac   :  { %10855 = vmatprep.subr.bf16.mxu1 %v16182_v44  ;;  %13408 = vmatprep.subr.bf16.mxu0 %v15452_v21  ;;  %v14717_v44 = vld [vmem:[#allocation19 + $0x38] ss:$12 sps:$4 sm:$0xff]  }
 0xcad   :  { %10885 = vmatprep.mubr.bf16.mxu1 %v15285_v47  ;;  %13422 = vmatprep.mubr.msk.bf16.mxu0 %vm15286_vm0, %v15452_v21 }
 0xcaf   :  { %10856 = vmatpush1.bf16.msra.mxu1 %v16185_v2  ;;  %13409 = vmatpush3.bf16.msra.mxu0 %v14713_v27  ;;  %v14718_v2 = vld [vmem:[#allocation19 + $0x20] ss:$12 sps:$4 sm:$0xff]  }
 0xcb0   :  { %10857 = vmatprep.subr.bf16.mxu1 %v16189_v1  ;;  %13410 = vmatprep.subr.bf16.mxu0 %v15452_v21  ;;  %v14719_v1 = vld [vmem:[#allocation19 + $0x8] ss:$12 sps:$4 sm:$0xff]  }
 0xcb3   :  { %10858 = vmatpush1.bf16.msra.mxu1 %v16195_v23  ;;  %13411 = vmatpush3.bf16.msra.mxu0 %v14714_v35  ;;  %v10692_v23 = vpack.c.bf16 %v16301_v15, %v16301_v15 }
 0xcb4   :  { %10859 = vmatprep.subr.bf16.mxu1 %v16199_v38  ;;  %13412 = vmatprep.subr.bf16.mxu0 %v15452_v21  ;;  %v14720_v38 = vld [vmem:[#allocation20 + $0x70] ss:$8 sps:$4 sm:$0xff]  }
 0xcb7   :  { %10860 = vmatpush1.bf16.msra.mxu1 %v16202_v6  ;;  %13413 = vmatpush3.bf16.msra.mxu0 %v14715_v19  ;;  %v14722_v6 = vld [vmem:[#allocation20 + $0x74] ss:$8 sps:$4 sm:$0xff]  }
 0xcb8   :  { %10861 = vmatprep.subr.bf16.mxu1 %v16206_v62  ;;  %13414 = vmatprep.subr.bf16.mxu0 %v15452_v21  ;;  %v14725_v62 = vld [vmem:[#allocation20 + $0x64] ss:$8 sps:$4 sm:$0xff]  }
 0xcbb   :  { %10862 = vmatpush1.bf16.msra.mxu1 %v16209_v52  ;;  %13415 = vmatpush3.bf16.msra.mxu0 %v14716_v10  ;;  %v14723_v52 = vld [vmem:[#allocation20 + $0x60] ss:$8 sps:$4 sm:$0xff]  }
 0xcbc   :  { %10863 = vmatprep.subr.bf16.mxu1 %v16213_v4  ;;  %13416 = vmatprep.subr.bf16.mxu0 %v15452_v21  ;;  %v14728_v4 = vld [vmem:[#allocation20 + $0x54] ss:$8 sps:$4 sm:$0xff]  }
 0xcbf   :  { %10864 = vmatpush1.bf16.msra.mxu1 %v16216_v46  ;;  %13417 = vmatpush3.bf16.msra.mxu0 %v14717_v44  ;;  %v14731_v46 = vld [vmem:[#allocation20 + $0x44] ss:$8 sps:$4 sm:$0xff]  }
 0xcc0   :  { %10865 = vmatprep.subr.bf16.mxu1 %v16221_v63  ;;  %13418 = vmatprep.subr.bf16.mxu0 %v15452_v21  ;;  %v14729_v63 = vld [vmem:[#allocation20 + $0x40] ss:$8 sps:$4 sm:$0xff]  }
 0xcc3   :  { %10866 = vmatpush1.bf16.msra.mxu1 %v16224_v22  ;;  %13419 = vmatpush3.bf16.msra.mxu0 %v14718_v2  ;;  %v14734_v22 = vld [vmem:[#allocation20 + $0x34] ss:$8 sps:$4 sm:$0xff]  }
 0xcc4   :  { %10867 = vmatprep.subr.bf16.mxu1 %v16228_v31  ;;  %13420 = vmatprep.subr.bf16.mxu0 %v15452_v21  ;;  %v14726_v21 = vld [vmem:[#allocation20 + $0x50] ss:$8 sps:$4 sm:$0xff]  }
 0xcc5   :  { %v14732_v31 = vld [vmem:[#allocation20 + $0x30] ss:$8 sps:$4 sm:$0xff]  }
 0xcc7   :  { %10868 = vmatpush1.bf16.msra.mxu1 %v16231_v37  ;;  %13421 = vmatpush3.bf16.msra.mxu0 %v14719_v1  ;;  %v14735_v37 = vld [vmem:[#allocation20 + $0x20] ss:$8 sps:$4 sm:$0xff]  }
 0xcc8   :  { %11072 = vmatprep.subr.bf16.mxu1 %v14722_v6 }
 0xcca   :  { %10886 = vmatmul.mubr.bf16.vlgmr.msra.gmra.mxu1 %v10692_v23  ;;  %13423 = vmatmul.mubr.bf16.vlgmr.msra.gmra.mxu0 %v10692_v23 }
 0xccb   :  { %11104 = vmatprep.mubr.bf16.mxu1 %v15285_v47  ;;  %11073 = vmatpush1.bf16.msra.mxu1 %v14720_v38  ;;  %v14737_v47 = vld [vmem:[#allocation20 + $0x24] ss:$8 sps:$4 sm:$0xff]  }
 0xccc   :  { %11074 = vmatprep.subr.bf16.mxu1 %v14725_v62 }
 0xccf   :  { %11075 = vmatpush1.bf16.msra.mxu1 %v14723_v52 }
 0xcd0   :  { %11076 = vmatprep.subr.bf16.mxu1 %v14728_v4 }
 0xcd3   :  { %11077 = vmatpush1.bf16.msra.mxu1 %v14726_v21 }
 0xcd4   :  { %11078 = vmatprep.subr.bf16.mxu1 %v14731_v46 }
 0xcd7   :  { %11079 = vmatpush1.bf16.msra.mxu1 %v14729_v63 }
 0xcd8   :  { %11080 = vmatprep.subr.bf16.mxu1 %v14734_v22 }
 0xcdb   :  { %11081 = vmatpush1.bf16.msra.mxu1 %v14732_v31 }
 0xcdc   :  { %11082 = vmatprep.subr.bf16.mxu1 %v14737_v47 }
 0xcdf   :  { %11083 = vmatpush1.bf16.msra.mxu1 %v14735_v37 }
 0xce0   :  { %11084 = vmatprep.subr.bf16.mxu1 %v14740_v59 }
 0xce3   :  { %11085 = vmatpush1.bf16.msra.mxu1 %v14738_v51 }
 0xce4   :  { %11086 = vmatprep.subr.bf16.mxu1 %v14743_v20 }
 0xce7   :  { %11087 = vmatpush1.bf16.msra.mxu1 %v14741_v24 }
 0xd6a   :  { %v10645_v9 = vpop.f32.mrf.mxu1  ;;  %v10686_v5 = vpop.f32.mrf.mxu0 }
 0xd6b   :  { %v10646_v28 = vadd.f32 %v10645_v9, %v15626_v60  ;;  %v10687_v39 = vadd.f32 %v10686_v5, %v15643_v25 }
 0xd6c   :  { %v10647_v32 = vpop.f32.mrf.mxu1  ;;  %v13404_v14 = vpop.f32.mrf.mxu0 }
 0xd6d   :  { %v10648_v54 = vadd.f32 %v10647_v32, %v15629_v61 }
 0xd6e   :  { %v10649_v18 = vpop.f32.mrf.mxu1  ;;  %v10689_v13 = vpop.f32.mrf.mxu0 }
 0xd70   :  { %v10650_v16 = vpop.f32.mrf.mxu1  ;;  %v13405_v8 = vpop.f32.mrf.mxu0 }
 0xd8a   :  { %v10887_v29 = vpop.f32.mrf.mxu1  ;;  %v10928_v41 = vpop.f32.mrf.mxu0 }
 0xd8b   :  { %v10934_v12 = vadd.f32 %v10887_v29, %v10646_v28  ;;  %v10948_v26 = vadd.f32 %v16296_v49, %v10928_v41 }
 0xd8c   :  { %v10889_v53 = vpop.f32.mrf.mxu1  ;;  %v13424_v57 = vpop.f32.mrf.mxu0 }
 0xd8d   :  { %v12226_v3 = vmul.f32 -1.442695, %v10934_v12  ;;  %v10941_v34 = vadd.f32 %v10889_v53, %v10648_v54 }
 0xd8e   :  { %v10891_v7 = vpop.f32.mrf.mxu1  ;;  %v10931_v58 = vpop.f32.mrf.mxu0 }
 0xd8f   :  { %14974 = vpow2.f32 %v12226_v3  ;;  %v12227_v36 = vmul.f32 -1.442695, %v10941_v34 }
 0xd90   :  { %v10892_v30 = vpop.f32.mrf.mxu1  ;;  %v13425_v33 = vpop.f32.mrf.mxu0 }
 0xd91   :  { %14976 = vpow2.f32 %v12227_v36 }
 0xd9c   :  { %v14975_v11 = vpop.eup %14974 }
 0xd9d   :  { %v10938_v17 = vadd.f32 1.0, %v14975_v11 }
 0xd9e   :  { %v14977_v60 = vpop.eup %14976 }
 0xd9f   :  { %14978 = vrcp.f32 %v10938_v17  ;;  %v10945_v0 = vadd.f32 1.0, %v14977_v60 }
 0xda1   :  { %14980 = vrcp.f32 %v10945_v0 }
 0xdac   :  { %v14979_v45 = vpop.eup %14978 }
 0xdad   :  { %v10949_v50 = vmul.f32 %v14979_v45, %v10948_v26 }
 0xdae   :  { %v14981_v61 = vpop.eup %14980 }
 0xdaf   :  { %v10950_v40 = vadd.f32 %v10949_v50, %v10687_v39  ;;  %v10952_v48 = vsub.f32 1.0, %v14981_v61  ;;  %v10954_v19 = vmul.f32 %v14981_v61, %v16301_v15 }
 0xdb1   :  { %14982 = vtanh.f32 %v10950_v40 }
 0xdbe   :  { %v14983_v27 = vpop.eup %14982 }
 0xdbf   :  { %v10953_v35 = vmul.f32 %v14983_v27, %v10952_v48 }
 0xdc1   :  { %v10955_v10 = vadd.f32 %v10954_v19, %v10953_v35 }
 0xdc3   :  { %v10963_v44 = vpack.c.bf16 %v10955_v10, %v10955_v10  ;;  %10962 = vst [vmem:[#allocation23 + $0x2] sm:$0x1] %v10955_v10 }
 0xdc5   :  { %11105 = vmatmul.mubr.bf16.vlgmr.msra.gmra.mxu1 %v10963_v44 }
 0xdc6   :  { %15223 = shalt.err (!%p15220_p12)
}
 0xdc7   :  { %11157 = dma.vmem_to_hbm [thread:$0]  %s11152_s22, 48, %s16374_s17, [#allocation24], %s15269_s28, %s15269_s28, %s15270_s29   ;;  %v15288_v25 = vmov 1966171168   ;;  %vm11133_vm1 = vcmp.lt.s32.totalorder %v267_v42, 256 }
 0xdc8   :  { %v11117_v49 = vunpack.c.l.s4 %v15288_v25  ;;  %v10980_v15 = vld [vmem:[%s16372_s15] sm:$0x3]  ;;  %s15289_s17 = smov [#allocation22]  }
 0xdc9   :  { %v11065_v2 = vrot.slane %v10980_v15, %v15476_v55  ;;  %v11069_v1 = vrot.slane %v10980_v15, %v15479_v56  ;;  %s11142_s28 = sshll.u32 %s15289_s17, 4  ;;  %s11143_s28 = int_to_ptr.vmem [resolvable:$true] %s11142_s28 }
 0xdca   :  { %v11118_v23 = vunpack.c.0.s8 %v11117_v49  ;;  %s15232_s15 = scalar_lea.vmem %s11143_s28, 32  ;;  %p15237_p0 = scmp.lt.s32.totalorder %s11143_s28, %s11143_s28 }
 0xdcb   :  { %p15233_p13 = scmp.ne.s32.totalorder %s11143_s28, %s15232_s15  ;;  %p15238_p1 = scmp.lt.s32.totalorder %s15232_s15, %s15232_s15 }
 0xdcc   :  { %v11121_v4 = vsub.s32 %v11118_v23, %v15463_v43 }
 0xdcd   :  { %p15239_p2 = por %p15238_p1, %p15237_p0 }
 0xdcf   :  { %p15240_p3 = pnand %p15239_p2, %p15233_p13 }
 0xe85   :  { %v11106_v38 = vpop.f32.mrf.mxu1 }
 0xe86   :  { %v11107_v62 = vadd.f32 %v11106_v38, %v11065_v2 }
 0xe87   :  { %v11108_v6 = vpop.f32.mrf.mxu1 }
 0xe88   :  { %v11109_v52 = vadd.f32 %v11108_v6, %v11069_v1 }
 0xe89   :  { %v11110_v21 = vpop.f32.mrf.mxu1 }
 0xe8a   :  { %v11115_v46 = vcombine.low %v11107_v62, %v11109_v52 }
 0xe8b   :  { %v11111_v63 = vpop.f32.mrf.mxu1 }
 0xe8c   :  { %v11122_v22 = vrot.slane %v11115_v46, %v11121_v4 }
 0xe8e   :  { %v11129_v31 = vrot.slane %v11122_v22, %v11121_v4 }
 0xe90   :  { %11135 = vst.msk [vmem:[#allocation22] sm:$0x3] %vm11133_vm1, %v11129_v31 }
 0xe91   :  { %15243 = shalt.err (!%p15240_p3)
}
 0xe92   :  { %11145 = dma.vmem_to_hbm [thread:$0]  %s11143_s28, 32, %s16373_s16, [#allocation7]  }
 0xe93   :  { %15264 = dma.done.wait [#allocation7], 32  }
 0xe94   :  { %15265 = vsyncadd [#allocation7], 4294967264 }
 0xe95   :  { %15266 = dma.done.wait [#allocation24], 48  }
 0xe96   :  { %15267 = vsyncadd [#allocation24], 4294967248 }
 0xe97   :  { %11164 = vsyncpa [#allocation6], 1 }
 0xe98   :  { %11165 = vsyncpa [#allocation9], 1 }
 0xe99   :  { %11166 = vsyncpa [#allocation12], 1 }
 0xe9a   :  { %11167 = vsyncpa [#allocation15], 1 }
 0xe9b   :  { %11168 = vsyncpa [#allocation18], 1 }
 0xe9c   :  { %11169 = vsyncpa [#allocation21], 1 }
 0xe9d   :  { %11170 = vsyncpa [#allocation7], 1 }
 0xe9e   :  { %11171 = vsyncpa [#allocation24], 1 }

</bundles_post_ra>
